<compile_context>
chip_gen: v6e
topology: v6e:2x2x1
jax: 0.10.0
libtpu: 0.0.40
codegen_flags: <defaults>
</compile_context>

<pallas_src>
import jax
import jax.numpy as jnp
from jax.experimental import pallas as pl
from jax.experimental.pallas import tpu as pltpu

# ---------------- config (scaled-down, deterministic) ----------------
VOCAB = 100
SEQ = 8                       # must stay a multiple of 8 (aligned reshapes)
HIDDEN = 32
NUM_HEADS = 4
HEAD_DIM = HIDDEN // NUM_HEADS
FFN = 64
NUM_LAYERS = 2
IMG = 16                      # scaled stand-in for 512
GEN_H1 = 64                   # scaled stand-in for 512
GEN_H2 = 128                  # scaled stand-in for 1024
IMG_FLAT = 3 * IMG * IMG      # 768 = 6 x 128 lanes (lane-dense output)
BT = 8                        # batch rows per grid step (8-sublane stores)

_SQRT1_2 = 0.7071067811865476

# ---------------- packed bias/LN slab layout ----------------
VEC_W = IMG_FLAT              # every vector row padded to 768 lanes
_ROWS_PER_LAYER = 10          # bq, bk, bv, bo, ln1g, ln1b, b1, b2, ln2g, ln2b
_ROW_EMB_G, _ROW_EMB_B = 0, 1
_ROW_G1B = 2 + NUM_LAYERS * _ROWS_PER_LAYER
_ROW_G2B = _ROW_G1B + 1
_ROW_G3B = _ROW_G1B + 2
_N_VEC_ROWS = 32              # padded to a sublane multiple


def _lrow(l, i):
    return 2 + l * _ROWS_PER_LAYER + i


def _qkv_idx(l, which, h):    # which: 0=q, 1=k, 2=v
    return (l * 3 + which) * NUM_HEADS + h


def _wo_idx(l, h):
    return l * NUM_HEADS + h


# ---------------- in-kernel math helpers ----------------
def _erf_approx(x):
    """Abramowitz & Stegun 7.1.26 erf (max abs err ~1.5e-7); exp/abs/where only."""
    a1, a2, a3, a4, a5 = 0.254829592, -0.284496736, 1.421413741, -1.453152027, 1.061405429
    p = 0.3275911
    sgn = jnp.where(x >= 0.0, jnp.ones_like(x), -jnp.ones_like(x))
    ax = jnp.abs(x)
    t = 1.0 / (1.0 + p * ax)
    poly = ((((a5 * t + a4) * t + a3) * t + a2) * t + a1) * t
    return sgn * (1.0 - poly * jnp.exp(-ax * ax))


def _gelu_exact(x):
    return 0.5 * x * (1.0 + _erf_approx(x * _SQRT1_2))


def _layernorm(x, g, b):
    mu = jnp.mean(x, axis=-1, keepdims=True)
    var = jnp.mean((x - mu) ** 2, axis=-1, keepdims=True)
    return (x - mu) * jax.lax.rsqrt(var + 1e-12) * g + b


# ---------------- fused whole-model kernel (BT batch rows per grid step) ----------------
def _t2i_fused_kernel(x_ref, mask_ref, vec_ref, wqkv_ref, wo_ref,
                      w1_ref, w2_ref, g1w_ref, g2w_ref, g3w_ref, out_ref):
    f32, bf16 = jnp.float32, jnp.bfloat16
    bt = x_ref.shape[0]
    rows = bt * SEQ

    def vrow(row, width, off=0):
        # static [1, width] slice of the packed bias/LN slab (single vld)
        return vec_ref[row:row + 1, off:off + width]

    # ---- embedding LayerNorm; residual stream is a lane-dense [BT*S, H] matrix ----
    x = _layernorm(x_ref[...].reshape(rows, HIDDEN),
                   vrow(_ROW_EMB_G, HIDDEN), vrow(_ROW_EMB_B, HIDDEN))
    mask = mask_ref[...]                                    # [BT, 1, S] additive key bias
    scale = 1.0 / float(HEAD_DIM) ** 0.5

    # ---- transformer encoder (2 layers, weights VMEM-resident, bf16 matmuls) ----
    for l in range(NUM_LAYERS):
        xb = x.astype(bf16)
        attn = None
        for h in range(NUM_HEADS):
            off = h * HEAD_DIM
            # head-major weight refs: no lane slicing of activations needed
            qh = jnp.dot(xb, wqkv_ref[_qkv_idx(l, 0, h)],
                         preferred_element_type=f32) + vrow(_lrow(l, 0), HEAD_DIM, off)
            kh = jnp.dot(xb, wqkv_ref[_qkv_idx(l, 1, h)],
                         preferred_element_type=f32) + vrow(_lrow(l, 1), HEAD_DIM, off)
            vh = jnp.dot(xb, wqkv_ref[_qkv_idx(l, 2, h)],
                         preferred_element_type=f32) + vrow(_lrow(l, 2), HEAD_DIM, off)
            # aligned leading-dim split (S == 8) -> batched dot_general over BT
            q3 = qh.reshape(bt, SEQ, HEAD_DIM)
            k3 = kh.reshape(bt, SEQ, HEAD_DIM)
            v3 = vh.reshape(bt, SEQ, HEAD_DIM)
            s = jnp.einsum('bqd,bkd->bqk', q3, k3,
                           preferred_element_type=f32) * scale + mask
            s = s - jnp.max(s, axis=-1, keepdims=True)
            e = jnp.exp(s)
            p = e * pl.reciprocal(jnp.sum(e, axis=-1, keepdims=True), approx=True)
            ctx = jnp.einsum('bqk,bkd->bqd', p, v3, preferred_element_type=f32)
            # accumulate through the per-head slice of Wo (== concat(heads) @ Wo)
            ho = jnp.dot(ctx.reshape(rows, HEAD_DIM).astype(bf16),
                         wo_ref[_wo_idx(l, h)], preferred_element_type=f32)
            attn = ho if attn is None else attn + ho
        attn = attn + vrow(_lrow(l, 3), HIDDEN)
        x = _layernorm(x + attn, vrow(_lrow(l, 4), HIDDEN), vrow(_lrow(l, 5), HIDDEN))

        ffn = jnp.dot(x.astype(bf16), w1_ref[l],
                      preferred_element_type=f32) + vrow(_lrow(l, 6), FFN)
        ffn = _gelu_exact(ffn)
        ffn = jnp.dot(ffn.astype(bf16), w2_ref[l],
                      preferred_element_type=f32) + vrow(_lrow(l, 7), HIDDEN)
        x = _layernorm(x + ffn, vrow(_lrow(l, 8), HIDDEN), vrow(_lrow(l, 9), HIDDEN))

    # ---- [CLS] extraction via a 0/1 selection matmul (exact; avoids a
    #      cross-tile sublane gather), then the fused 3-layer generator MLP ----
    r_idx = jax.lax.broadcasted_iota(jnp.int32, (bt, rows), 0)
    c_idx = jax.lax.broadcasted_iota(jnp.int32, (bt, rows), 1)
    sel = (c_idx == r_idx * SEQ).astype(f32)                 # [BT, BT*S]
    cls = jnp.dot(sel, x, preferred_element_type=f32)        # [BT, H]

    h1 = jnp.maximum(jnp.dot(cls.astype(bf16), g1w_ref[...],
                             preferred_element_type=f32) + vrow(_ROW_G1B, GEN_H1), 0.0)
    h2 = jnp.maximum(jnp.dot(h1.astype(bf16), g2w_ref[...],
                             preferred_element_type=f32) + vrow(_ROW_G2B, GEN_H2), 0.0)
    logits = jnp.dot(h2.astype(bf16), g3w_ref[...],
                     preferred_element_type=f32) + vrow(_ROW_G3B, IMG_FLAT)
    out_ref[...] = jax.nn.sigmoid(logits)                    # [BT, 768] lane-dense


# ---------------- deterministic parameter init (standard BERT-like layout) ----------------
def init_params(key):
    keys = iter(jax.random.split(key, 40))

    def nrm(shape, scale=0.02):
        return scale * jax.random.normal(next(keys), shape, jnp.float32)

    L = NUM_LAYERS
    return dict(
        word_emb=nrm((VOCAB, HIDDEN)),
        pos_emb=nrm((SEQ, HIDDEN)),
        type_emb=nrm((2, HIDDEN)),
        emb_ln_g=jnp.ones((HIDDEN,), jnp.float32),
        emb_ln_b=jnp.zeros((HIDDEN,), jnp.float32),
        wq=nrm((L, HIDDEN, HIDDEN)), bq=jnp.zeros((L, HIDDEN), jnp.float32),
        wk=nrm((L, HIDDEN, HIDDEN)), bk=jnp.zeros((L, HIDDEN), jnp.float32),
        wv=nrm((L, HIDDEN, HIDDEN)), bv=jnp.zeros((L, HIDDEN), jnp.float32),
        wo=nrm((L, HIDDEN, HIDDEN)), bo=jnp.zeros((L, HIDDEN), jnp.float32),
        ln1_g=jnp.ones((L, HIDDEN), jnp.float32),
        ln1_b=jnp.zeros((L, HIDDEN), jnp.float32),
        w1=nrm((L, HIDDEN, FFN)), b1=jnp.zeros((L, FFN), jnp.float32),
        w2=nrm((L, FFN, HIDDEN)), b2=jnp.zeros((L, HIDDEN), jnp.float32),
        ln2_g=jnp.ones((L, HIDDEN), jnp.float32),
        ln2_b=jnp.zeros((L, HIDDEN), jnp.float32),
        g1_w=nrm((HIDDEN, GEN_H1)), g1_b=jnp.zeros((GEN_H1,), jnp.float32),
        g2_w=nrm((GEN_H1, GEN_H2)), g2_b=jnp.zeros((GEN_H2,), jnp.float32),
        g3_w=nrm((GEN_H2, IMG_FLAT)), g3_b=jnp.zeros((IMG_FLAT,), jnp.float32),
    )


# ---------------- one-time layout packing (pure XLA plumbing, outside the kernel) ----------------
def pack_params(p):
    L, H, NH, D = NUM_LAYERS, HIDDEN, NUM_HEADS, HEAD_DIM
    bf16 = jnp.bfloat16

    def head_cols(w):                       # [L, H, H] -> [L, NH, H, D] (per-head out cols)
        return w.reshape(L, H, NH, D).transpose(0, 2, 1, 3)

    wqkv = jnp.stack([head_cols(p["wq"]), head_cols(p["wk"]), head_cols(p["wv"])],
                     axis=1)                                # [L, 3, NH, H, D]
    wqkv = wqkv.reshape(L * 3 * NH, H, D).astype(bf16)
    wo = p["wo"].reshape(L, NH, D, H).reshape(L * NH, D, H).astype(bf16)

    def pad_row(v):
        v = jnp.asarray(v, jnp.float32).reshape(-1)
        return jnp.pad(v, (0, VEC_W - v.shape[0]))

    rows = [pad_row(p["emb_ln_g"]), pad_row(p["emb_ln_b"])]
    for l in range(L):
        rows += [pad_row(p["bq"][l]), pad_row(p["bk"][l]), pad_row(p["bv"][l]),
                 pad_row(p["bo"][l]), pad_row(p["ln1_g"][l]), pad_row(p["ln1_b"][l]),
                 pad_row(p["b1"][l]), pad_row(p["b2"][l]),
                 pad_row(p["ln2_g"][l]), pad_row(p["ln2_b"][l])]
    rows += [pad_row(p["g1_b"]), pad_row(p["g2_b"]), pad_row(p["g3_b"])]
    while len(rows) < _N_VEC_ROWS:
        rows.append(jnp.zeros((VEC_W,), jnp.float32))
    vec_slab = jnp.stack(rows, axis=0)                      # [32, 768] f32

    return dict(
        word_emb=p["word_emb"], pos_emb=p["pos_emb"], type_emb=p["type_emb"],
        vec_slab=vec_slab, wqkv=wqkv, wo=wo,
        w1=p["w1"].astype(bf16), w2=p["w2"].astype(bf16),
        g1_w=p["g1_w"].astype(bf16), g2_w=p["g2_w"].astype(bf16),
        g3_w=p["g3_w"].astype(bf16),
    )


# ---------------- forward pass ----------------
def _forward_impl(packed, input_ids, attention_mask):
    B, S = input_ids.shape
    assert S == SEQ and B % BT == 0

    # embeddings: gather + adds are XLA glue; LayerNorm happens inside the kernel.
    x = (packed["word_emb"][input_ids]
         + packed["pos_emb"][None, :S, :]
         + packed["type_emb"][0][None, None, :]).astype(jnp.float32)         # [B, S, H]
    # BERT-style additive key mask: 0 keep, -1e9 pad (one row per example).
    mask_bias = ((1.0 - attention_mask.astype(jnp.float32)) * -1e9)[:, None, :]  # [B, 1, S]

    def const_spec(shape):                  # grid-invariant full block (fetched once)
        n = len(shape)
        return pl.BlockSpec(shape, lambda b, _n=n: (0,) * _n)

    img_flat = pl.pallas_call(
        _t2i_fused_kernel,
        out_shape=jax.ShapeDtypeStruct((B, IMG_FLAT), jnp.float32),
        grid=(B // BT,),
        in_specs=[
            pl.BlockSpec((BT, S, HIDDEN), lambda b: (b, 0, 0)),   # token embeddings
            pl.BlockSpec((BT, 1, S), lambda b: (b, 0, 0)),        # additive mask bias
            const_spec(packed["vec_slab"].shape),                 # packed biases / LN params
            const_spec(packed["wqkv"].shape),                     # [L*3*NH, H, D] bf16
            const_spec(packed["wo"].shape),                       # [L*NH, D, H]   bf16
            const_spec(packed["w1"].shape),                       # [L, H, FFN]    bf16
            const_spec(packed["w2"].shape),                       # [L, FFN, H]    bf16
            const_spec(packed["g1_w"].shape),
            const_spec(packed["g2_w"].shape),
            const_spec(packed["g3_w"].shape),
        ],
        out_specs=pl.BlockSpec((BT, IMG_FLAT), lambda b: (b, 0)),
        compiler_params=pltpu.CompilerParams(
            dimension_semantics=("parallel",)),      # >= 2 grid steps -> both v7x TCs busy
    )(x, mask_bias, packed["vec_slab"], packed["wqkv"], packed["wo"],
      packed["w1"], packed["w2"], packed["g1_w"], packed["g2_w"], packed["g3_w"])

    return img_flat.reshape(-1, 3, IMG, IMG)          # NCHW, like .view(-1, 3, H, W)


text_to_image_forward = jax.jit(_forward_impl)


# ---------------- main ----------------
if __name__ == "__main__":
    key = jax.random.PRNGKey(0)
    k_param, k_ids = jax.random.split(key)

    params = init_params(k_param)
    packed = pack_params(params)

    B = 2 * BT                                          # 16 -> grid of 2 steps
    input_ids = jax.random.randint(k_ids, (B, SEQ), 0, VOCAB, dtype=jnp.int32)
    attention_mask = jnp.ones((B, SEQ), jnp.int32)
    attention_mask = attention_mask.at[1, 6:].set(0).at[9, 3:].set(0)   # some padded rows

    out = text_to_image_forward(packed, input_ids, attention_mask)
    out = jax.block_until_ready(out)

    assert out.shape == (B, 3, IMG, IMG), out.shape
    assert out.dtype == jnp.float32
    assert bool(jnp.all(jnp.isfinite(out)))
    assert bool(jnp.all(out >= 0.0) & jnp.all(out <= 1.0))  # sigmoid range
    print("KERNEL_OK")
</pallas_src>

<mosaic_0001>
module attributes {stable_mosaic.version = 11 : i64} {
  func.func @_t2i_fused_kernel(%arg0: i32, %arg1: memref<8x8x32xf32, #tpu.memory_space<vmem>>, %arg2: memref<8x1x8xf32, #tpu.memory_space<vmem>>, %arg3: memref<32x768xf32, #tpu.memory_space<vmem>>, %arg4: memref<24x32x8xbf16, #tpu.memory_space<vmem>>, %arg5: memref<8x8x32xbf16, #tpu.memory_space<vmem>>, %arg6: memref<2x32x64xbf16, #tpu.memory_space<vmem>>, %arg7: memref<2x64x32xbf16, #tpu.memory_space<vmem>>, %arg8: memref<32x64xbf16, #tpu.memory_space<vmem>>, %arg9: memref<64x128xbf16, #tpu.memory_space<vmem>>, %arg10: memref<128x768xbf16, #tpu.memory_space<vmem>>, %arg11: memref<8x768xf32, #tpu.memory_space<vmem>>) attributes {dimension_semantics = [#tpu.dimension_semantics<parallel>], iteration_bounds = array<i64: 2>, scalar_prefetch = 0 : i64, scratch_operands = 0 : i64, tpu.core_type = #tpu.core_type<tc>, window_params = [{transform_indices = @transform_0, window_bounds = array<i64: 8, 8, 32>}, {transform_indices = @transform_1, window_bounds = array<i64: 8, 1, 8>}, {pipeline_mode = #tpu.pipeline_mode<synchronous>, transform_indices = @transform_2, window_bounds = array<i64: 32, 768>}, {pipeline_mode = #tpu.pipeline_mode<synchronous>, transform_indices = @transform_3, window_bounds = array<i64: 24, 32, 8>}, {pipeline_mode = #tpu.pipeline_mode<synchronous>, transform_indices = @transform_4, window_bounds = array<i64: 8, 8, 32>}, {pipeline_mode = #tpu.pipeline_mode<synchronous>, transform_indices = @transform_5, window_bounds = array<i64: 2, 32, 64>}, {pipeline_mode = #tpu.pipeline_mode<synchronous>, transform_indices = @transform_6, window_bounds = array<i64: 2, 64, 32>}, {pipeline_mode = #tpu.pipeline_mode<synchronous>, transform_indices = @transform_7, window_bounds = array<i64: 32, 64>}, {pipeline_mode = #tpu.pipeline_mode<synchronous>, transform_indices = @transform_8, window_bounds = array<i64: 64, 128>}, {pipeline_mode = #tpu.pipeline_mode<synchronous>, transform_indices = @transform_9, window_bounds = array<i64: 128, 768>}, {transform_indices = @transform_10, window_bounds = array<i64: 8, 768>}]} {
    %c0 = arith.constant 0 : index
    %c0_0 = arith.constant 0 : index
    %c0_1 = arith.constant 0 : index
    %0 = vector.load %arg1[%c0, %c0_0, %c0_1] : memref<8x8x32xf32, #tpu.memory_space<vmem>>, vector<8x8x32xf32>
    %1 = vector.shape_cast %0 : vector<8x8x32xf32> to vector<64x32xf32>
    %c0_2 = arith.constant 0 : index
    %c0_3 = arith.constant 0 : index
    %2 = vector.load %arg3[%c0_2, %c0_3] : memref<32x768xf32, #tpu.memory_space<vmem>>, vector<1x32xf32>
    %c1 = arith.constant 1 : index
    %c0_4 = arith.constant 0 : index
    %3 = vector.load %arg3[%c1, %c0_4] : memref<32x768xf32, #tpu.memory_space<vmem>>, vector<1x32xf32>
    %cst = arith.constant dense<0.000000e+00> : vector<64xf32>
    %4 = vector.multi_reduction <add>, %1, %cst [1] : vector<64x32xf32> to vector<64xf32>
    %5 = vector.shape_cast %4 : vector<64xf32> to vector<64x1xf32>
    %cst_5 = arith.constant 3.200000e+01 : f32
    %6 = vector.broadcast %cst_5 : f32 to vector<64x1xf32>
    %7 = arith.divf %5, %6 : vector<64x1xf32>
    %8 = vector.broadcast %7 : vector<64x1xf32> to vector<64x32xf32>
    %9 = arith.subf %1, %8 : vector<64x32xf32>
    %10 = arith.mulf %9, %9 : vector<64x32xf32>
    %cst_6 = arith.constant dense<0.000000e+00> : vector<64xf32>
    %11 = vector.multi_reduction <add>, %10, %cst_6 [1] : vector<64x32xf32> to vector<64xf32>
    %12 = vector.shape_cast %11 : vector<64xf32> to vector<64x1xf32>
    %cst_7 = arith.constant 3.200000e+01 : f32
    %13 = vector.broadcast %cst_7 : f32 to vector<64x1xf32>
    %14 = arith.divf %12, %13 : vector<64x1xf32>
    %15 = vector.broadcast %7 : vector<64x1xf32> to vector<64x32xf32>
    %16 = arith.subf %1, %15 : vector<64x32xf32>
    %cst_8 = arith.constant 9.99999996E-13 : f32
    %17 = vector.broadcast %cst_8 : f32 to vector<64x1xf32>
    %18 = arith.addf %14, %17 : vector<64x1xf32>
    %19 = math.rsqrt %18 : vector<64x1xf32>
    %20 = vector.broadcast %19 : vector<64x1xf32> to vector<64x32xf32>
    %21 = arith.mulf %16, %20 : vector<64x32xf32>
    %22 = vector.broadcast %2 : vector<1x32xf32> to vector<64x32xf32>
    %23 = arith.mulf %21, %22 : vector<64x32xf32>
    %24 = vector.broadcast %3 : vector<1x32xf32> to vector<64x32xf32>
    %25 = arith.addf %23, %24 : vector<64x32xf32>
    %c0_9 = arith.constant 0 : index
    %c0_10 = arith.constant 0 : index
    %c0_11 = arith.constant 0 : index
    %26 = vector.load %arg2[%c0_9, %c0_10, %c0_11] : memref<8x1x8xf32, #tpu.memory_space<vmem>>, vector<8x1x8xf32>
    %27 = arith.truncf %25 : vector<64x32xf32> to vector<64x32xbf16>
    %c0_12 = arith.constant 0 : index
    %c0_13 = arith.constant 0 : index
    %c0_14 = arith.constant 0 : index
    %28 = vector.load %arg4[%c0_12, %c0_13, %c0_14] : memref<24x32x8xbf16, #tpu.memory_space<vmem>>, vector<1x32x8xbf16>
    %29 = vector.shape_cast %28 : vector<1x32x8xbf16> to vector<32x8xbf16>
    %cst_15 = arith.constant dense<0.000000e+00> : vector<64x8xf32>
    %30 = tpu.matmul %27, %29, %cst_15 {dimension_numbers = #tpu.dot_dimension_numbers<[1], [0], [0], [1], [0, 0, 1, 1], [], []>} : vector<64x32xbf16>, vector<32x8xbf16>, vector<64x8xf32> -> vector<64x8xf32>
    %c2 = arith.constant 2 : index
    %c0_16 = arith.constant 0 : index
    %31 = vector.load %arg3[%c2, %c0_16] : memref<32x768xf32, #tpu.memory_space<vmem>>, vector<1x8xf32>
    %32 = vector.broadcast %31 : vector<1x8xf32> to vector<64x8xf32>
    %33 = arith.addf %30, %32 : vector<64x8xf32>
    %c4 = arith.constant 4 : index
    %c0_17 = arith.constant 0 : index
    %c0_18 = arith.constant 0 : index
    %34 = vector.load %arg4[%c4, %c0_17, %c0_18] : memref<24x32x8xbf16, #tpu.memory_space<vmem>>, vector<1x32x8xbf16>
    %35 = vector.shape_cast %34 : vector<1x32x8xbf16> to vector<32x8xbf16>
    %cst_19 = arith.constant dense<0.000000e+00> : vector<64x8xf32>
    %36 = tpu.matmul %27, %35, %cst_19 {dimension_numbers = #tpu.dot_dimension_numbers<[1], [0], [0], [1], [0, 0, 1, 1], [], []>} : vector<64x32xbf16>, vector<32x8xbf16>, vector<64x8xf32> -> vector<64x8xf32>
    %c3 = arith.constant 3 : index
    %c0_20 = arith.constant 0 : index
    %37 = vector.load %arg3[%c3, %c0_20] : memref<32x768xf32, #tpu.memory_space<vmem>>, vector<1x8xf32>
    %38 = vector.broadcast %37 : vector<1x8xf32> to vector<64x8xf32>
    %39 = arith.addf %36, %38 : vector<64x8xf32>
    %c8 = arith.constant 8 : index
    %c0_21 = arith.constant 0 : index
    %c0_22 = arith.constant 0 : index
    %40 = vector.load %arg4[%c8, %c0_21, %c0_22] : memref<24x32x8xbf16, #tpu.memory_space<vmem>>, vector<1x32x8xbf16>
    %41 = vector.shape_cast %40 : vector<1x32x8xbf16> to vector<32x8xbf16>
    %cst_23 = arith.constant dense<0.000000e+00> : vector<64x8xf32>
    %42 = tpu.matmul %27, %41, %cst_23 {dimension_numbers = #tpu.dot_dimension_numbers<[1], [0], [0], [1], [0, 0, 1, 1], [], []>} : vector<64x32xbf16>, vector<32x8xbf16>, vector<64x8xf32> -> vector<64x8xf32>
    %c4_24 = arith.constant 4 : index
    %c0_25 = arith.constant 0 : index
    %43 = vector.load %arg3[%c4_24, %c0_25] : memref<32x768xf32, #tpu.memory_space<vmem>>, vector<1x8xf32>
    %44 = vector.broadcast %43 : vector<1x8xf32> to vector<64x8xf32>
    %45 = arith.addf %42, %44 : vector<64x8xf32>
    %46 = vector.shape_cast %33 : vector<64x8xf32> to vector<8x8x8xf32>
    %47 = vector.shape_cast %39 : vector<64x8xf32> to vector<8x8x8xf32>
    %48 = vector.shape_cast %45 : vector<64x8xf32> to vector<8x8x8xf32>
    "tpu.trace_start"() <{level = 10 : i32, message = "bqd,bkd->bqk"}> : () -> ()
    %cst_26 = arith.constant dense<0.000000e+00> : vector<8x8x8xf32>
    %49 = tpu.matmul %46, %47, %cst_26 {dimension_numbers = #tpu.dot_dimension_numbers<[2], [2], [1], [1], [0, 0, 0, 1, 1, 1], [0], [0]>} : vector<8x8x8xf32>, vector<8x8x8xf32>, vector<8x8x8xf32> -> vector<8x8x8xf32>
    "tpu.trace_stop"() : () -> ()
    %cst_27 = arith.constant 0.353553385 : f32
    %50 = vector.broadcast %cst_27 : f32 to vector<8x8x8xf32>
    %51 = arith.mulf %49, %50 : vector<8x8x8xf32>
    %52 = vector.broadcast %26 : vector<8x1x8xf32> to vector<8x8x8xf32>
    %53 = arith.addf %51, %52 : vector<8x8x8xf32>
    %cst_28 = arith.constant dense<0xFF800000> : vector<8x8xf32>
    %54 = vector.multi_reduction <maximumf>, %53, %cst_28 [2] : vector<8x8x8xf32> to vector<8x8xf32>
    %55 = vector.shape_cast %54 : vector<8x8xf32> to vector<8x8x1xf32>
    %56 = vector.broadcast %55 : vector<8x8x1xf32> to vector<8x8x8xf32>
    %57 = arith.subf %53, %56 : vector<8x8x8xf32>
    %58 = math.exp %57 : vector<8x8x8xf32>
    %cst_29 = arith.constant dense<0.000000e+00> : vector<8x8xf32>
    %59 = vector.multi_reduction <add>, %58, %cst_29 [2] : vector<8x8x8xf32> to vector<8x8xf32>
    %60 = vector.shape_cast %59 : vector<8x8xf32> to vector<8x8x1xf32>
    %61 = tpu.reciprocal %60 {approx = true} : vector<8x8x1xf32> -> vector<8x8x1xf32>
    %62 = vector.broadcast %61 : vector<8x8x1xf32> to vector<8x8x8xf32>
    %63 = arith.mulf %58, %62 : vector<8x8x8xf32>
    "tpu.trace_start"() <{level = 10 : i32, message = "bqk,bkd->bqd"}> : () -> ()
    %cst_30 = arith.constant dense<0.000000e+00> : vector<8x8x8xf32>
    %64 = tpu.matmul %63, %48, %cst_30 {dimension_numbers = #tpu.dot_dimension_numbers<[2], [1], [1], [2], [0, 0, 0, 1, 1, 2], [0], [0]>} : vector<8x8x8xf32>, vector<8x8x8xf32>, vector<8x8x8xf32> -> vector<8x8x8xf32>
    "tpu.trace_stop"() : () -> ()
    %65 = vector.shape_cast %64 : vector<8x8x8xf32> to vector<64x8xf32>
    %66 = arith.truncf %65 : vector<64x8xf32> to vector<64x8xbf16>
    %c0_31 = arith.constant 0 : index
    %c0_32 = arith.constant 0 : index
    %c0_33 = arith.constant 0 : index
    %67 = vector.load %arg5[%c0_31, %c0_32, %c0_33] : memref<8x8x32xbf16, #tpu.memory_space<vmem>>, vector<1x8x32xbf16>
    %68 = vector.shape_cast %67 : vector<1x8x32xbf16> to vector<8x32xbf16>
    %cst_34 = arith.constant dense<0.000000e+00> : vector<64x32xf32>
    %69 = tpu.matmul %66, %68, %cst_34 {dimension_numbers = #tpu.dot_dimension_numbers<[1], [0], [0], [1], [0, 0, 1, 1], [], []>} : vector<64x8xbf16>, vector<8x32xbf16>, vector<64x32xf32> -> vector<64x32xf32>
    %c1_35 = arith.constant 1 : index
    %c0_36 = arith.constant 0 : index
    %c0_37 = arith.constant 0 : index
    %70 = vector.load %arg4[%c1_35, %c0_36, %c0_37] : memref<24x32x8xbf16, #tpu.memory_space<vmem>>, vector<1x32x8xbf16>
    %71 = vector.shape_cast %70 : vector<1x32x8xbf16> to vector<32x8xbf16>
    %cst_38 = arith.constant dense<0.000000e+00> : vector<64x8xf32>
    %72 = tpu.matmul %27, %71, %cst_38 {dimension_numbers = #tpu.dot_dimension_numbers<[1], [0], [0], [1], [0, 0, 1, 1], [], []>} : vector<64x32xbf16>, vector<32x8xbf16>, vector<64x8xf32> -> vector<64x8xf32>
    %c2_39 = arith.constant 2 : index
    %c8_40 = arith.constant 8 : index
    %73 = vector.load %arg3[%c2_39, %c8_40] : memref<32x768xf32, #tpu.memory_space<vmem>>, vector<1x8xf32>
    %74 = vector.broadcast %73 : vector<1x8xf32> to vector<64x8xf32>
    %75 = arith.addf %72, %74 : vector<64x8xf32>
    %c5 = arith.constant 5 : index
    %c0_41 = arith.constant 0 : index
    %c0_42 = arith.constant 0 : index
    %76 = vector.load %arg4[%c5, %c0_41, %c0_42] : memref<24x32x8xbf16, #tpu.memory_space<vmem>>, vector<1x32x8xbf16>
    %77 = vector.shape_cast %76 : vector<1x32x8xbf16> to vector<32x8xbf16>
    %cst_43 = arith.constant dense<0.000000e+00> : vector<64x8xf32>
    %78 = tpu.matmul %27, %77, %cst_43 {dimension_numbers = #tpu.dot_dimension_numbers<[1], [0], [0], [1], [0, 0, 1, 1], [], []>} : vector<64x32xbf16>, vector<32x8xbf16>, vector<64x8xf32> -> vector<64x8xf32>
    %c3_44 = arith.constant 3 : index
    %c8_45 = arith.constant 8 : index
    %79 = vector.load %arg3[%c3_44, %c8_45] : memref<32x768xf32, #tpu.memory_space<vmem>>, vector<1x8xf32>
    %80 = vector.broadcast %79 : vector<1x8xf32> to vector<64x8xf32>
    %81 = arith.addf %78, %80 : vector<64x8xf32>
    %c9 = arith.constant 9 : index
    %c0_46 = arith.constant 0 : index
    %c0_47 = arith.constant 0 : index
    %82 = vector.load %arg4[%c9, %c0_46, %c0_47] : memref<24x32x8xbf16, #tpu.memory_space<vmem>>, vector<1x32x8xbf16>
    %83 = vector.shape_cast %82 : vector<1x32x8xbf16> to vector<32x8xbf16>
    %cst_48 = arith.constant dense<0.000000e+00> : vector<64x8xf32>
    %84 = tpu.matmul %27, %83, %cst_48 {dimension_numbers = #tpu.dot_dimension_numbers<[1], [0], [0], [1], [0, 0, 1, 1], [], []>} : vector<64x32xbf16>, vector<32x8xbf16>, vector<64x8xf32> -> vector<64x8xf32>
    %c4_49 = arith.constant 4 : index
    %c8_50 = arith.constant 8 : index
    %85 = vector.load %arg3[%c4_49, %c8_50] : memref<32x768xf32, #tpu.memory_space<vmem>>, vector<1x8xf32>
    %86 = vector.broadcast %85 : vector<1x8xf32> to vector<64x8xf32>
    %87 = arith.addf %84, %86 : vector<64x8xf32>
    %88 = vector.shape_cast %75 : vector<64x8xf32> to vector<8x8x8xf32>
    %89 = vector.shape_cast %81 : vector<64x8xf32> to vector<8x8x8xf32>
    %90 = vector.shape_cast %87 : vector<64x8xf32> to vector<8x8x8xf32>
    "tpu.trace_start"() <{level = 10 : i32, message = "bqd,bkd->bqk"}> : () -> ()
    %cst_51 = arith.constant dense<0.000000e+00> : vector<8x8x8xf32>
    %91 = tpu.matmul %88, %89, %cst_51 {dimension_numbers = #tpu.dot_dimension_numbers<[2], [2], [1], [1], [0, 0, 0, 1, 1, 1], [0], [0]>} : vector<8x8x8xf32>, vector<8x8x8xf32>, vector<8x8x8xf32> -> vector<8x8x8xf32>
    "tpu.trace_stop"() : () -> ()
    %cst_52 = arith.constant 0.353553385 : f32
    %92 = vector.broadcast %cst_52 : f32 to vector<8x8x8xf32>
    %93 = arith.mulf %91, %92 : vector<8x8x8xf32>
    %94 = vector.broadcast %26 : vector<8x1x8xf32> to vector<8x8x8xf32>
    %95 = arith.addf %93, %94 : vector<8x8x8xf32>
    %cst_53 = arith.constant dense<0xFF800000> : vector<8x8xf32>
    %96 = vector.multi_reduction <maximumf>, %95, %cst_53 [2] : vector<8x8x8xf32> to vector<8x8xf32>
    %97 = vector.shape_cast %96 : vector<8x8xf32> to vector<8x8x1xf32>
    %98 = vector.broadcast %97 : vector<8x8x1xf32> to vector<8x8x8xf32>
    %99 = arith.subf %95, %98 : vector<8x8x8xf32>
    %100 = math.exp %99 : vector<8x8x8xf32>
    %cst_54 = arith.constant dense<0.000000e+00> : vector<8x8xf32>
    %101 = vector.multi_reduction <add>, %100, %cst_54 [2] : vector<8x8x8xf32> to vector<8x8xf32>
    %102 = vector.shape_cast %101 : vector<8x8xf32> to vector<8x8x1xf32>
    %103 = tpu.reciprocal %102 {approx = true} : vector<8x8x1xf32> -> vector<8x8x1xf32>
    %104 = vector.broadcast %103 : vector<8x8x1xf32> to vector<8x8x8xf32>
    %105 = arith.mulf %100, %104 : vector<8x8x8xf32>
    "tpu.trace_start"() <{level = 10 : i32, message = "bqk,bkd->bqd"}> : () -> ()
    %cst_55 = arith.constant dense<0.000000e+00> : vector<8x8x8xf32>
    %106 = tpu.matmul %105, %90, %cst_55 {dimension_numbers = #tpu.dot_dimension_numbers<[2], [1], [1], [2], [0, 0, 0, 1, 1, 2], [0], [0]>} : vector<8x8x8xf32>, vector<8x8x8xf32>, vector<8x8x8xf32> -> vector<8x8x8xf32>
    "tpu.trace_stop"() : () -> ()
    %107 = vector.shape_cast %106 : vector<8x8x8xf32> to vector<64x8xf32>
    %108 = arith.truncf %107 : vector<64x8xf32> to vector<64x8xbf16>
    %c1_56 = arith.constant 1 : index
    %c0_57 = arith.constant 0 : index
    %c0_58 = arith.constant 0 : index
    %109 = vector.load %arg5[%c1_56, %c0_57, %c0_58] : memref<8x8x32xbf16, #tpu.memory_space<vmem>>, vector<1x8x32xbf16>
    %110 = vector.shape_cast %109 : vector<1x8x32xbf16> to vector<8x32xbf16>
    %cst_59 = arith.constant dense<0.000000e+00> : vector<64x32xf32>
    %111 = tpu.matmul %108, %110, %cst_59 {dimension_numbers = #tpu.dot_dimension_numbers<[1], [0], [0], [1], [0, 0, 1, 1], [], []>} : vector<64x8xbf16>, vector<8x32xbf16>, vector<64x32xf32> -> vector<64x32xf32>
    %112 = arith.addf %69, %111 : vector<64x32xf32>
    %c2_60 = arith.constant 2 : index
    %c0_61 = arith.constant 0 : index
    %c0_62 = arith.constant 0 : index
    %113 = vector.load %arg4[%c2_60, %c0_61, %c0_62] : memref<24x32x8xbf16, #tpu.memory_space<vmem>>, vector<1x32x8xbf16>
    %114 = vector.shape_cast %113 : vector<1x32x8xbf16> to vector<32x8xbf16>
    %cst_63 = arith.constant dense<0.000000e+00> : vector<64x8xf32>
    %115 = tpu.matmul %27, %114, %cst_63 {dimension_numbers = #tpu.dot_dimension_numbers<[1], [0], [0], [1], [0, 0, 1, 1], [], []>} : vector<64x32xbf16>, vector<32x8xbf16>, vector<64x8xf32> -> vector<64x8xf32>
    %c2_64 = arith.constant 2 : index
    %c16 = arith.constant 16 : index
    %116 = vector.load %arg3[%c2_64, %c16] : memref<32x768xf32, #tpu.memory_space<vmem>>, vector<1x8xf32>
    %117 = vector.broadcast %116 : vector<1x8xf32> to vector<64x8xf32>
    %118 = arith.addf %115, %117 : vector<64x8xf32>
    %c6 = arith.constant 6 : index
    %c0_65 = arith.constant 0 : index
    %c0_66 = arith.constant 0 : index
    %119 = vector.load %arg4[%c6, %c0_65, %c0_66] : memref<24x32x8xbf16, #tpu.memory_space<vmem>>, vector<1x32x8xbf16>
    %120 = vector.shape_cast %119 : vector<1x32x8xbf16> to vector<32x8xbf16>
    %cst_67 = arith.constant dense<0.000000e+00> : vector<64x8xf32>
    %121 = tpu.matmul %27, %120, %cst_67 {dimension_numbers = #tpu.dot_dimension_numbers<[1], [0], [0], [1], [0, 0, 1, 1], [], []>} : vector<64x32xbf16>, vector<32x8xbf16>, vector<64x8xf32> -> vector<64x8xf32>
    %c3_68 = arith.constant 3 : index
    %c16_69 = arith.constant 16 : index
    %122 = vector.load %arg3[%c3_68, %c16_69] : memref<32x768xf32, #tpu.memory_space<vmem>>, vector<1x8xf32>
    %123 = vector.broadcast %122 : vector<1x8xf32> to vector<64x8xf32>
    %124 = arith.addf %121, %123 : vector<64x8xf32>
    %c10 = arith.constant 10 : index
    %c0_70 = arith.constant 0 : index
    %c0_71 = arith.constant 0 : index
    %125 = vector.load %arg4[%c10, %c0_70, %c0_71] : memref<24x32x8xbf16, #tpu.memory_space<vmem>>, vector<1x32x8xbf16>
    %126 = vector.shape_cast %125 : vector<1x32x8xbf16> to vector<32x8xbf16>
    %cst_72 = arith.constant dense<0.000000e+00> : vector<64x8xf32>
    %127 = tpu.matmul %27, %126, %cst_72 {dimension_numbers = #tpu.dot_dimension_numbers<[1], [0], [0], [1], [0, 0, 1, 1], [], []>} : vector<64x32xbf16>, vector<32x8xbf16>, vector<64x8xf32> -> vector<64x8xf32>
    %c4_73 = arith.constant 4 : index
    %c16_74 = arith.constant 16 : index
    %128 = vector.load %arg3[%c4_73, %c16_74] : memref<32x768xf32, #tpu.memory_space<vmem>>, vector<1x8xf32>
    %129 = vector.broadcast %128 : vector<1x8xf32> to vector<64x8xf32>
    %130 = arith.addf %127, %129 : vector<64x8xf32>
    %131 = vector.shape_cast %118 : vector<64x8xf32> to vector<8x8x8xf32>
    %132 = vector.shape_cast %124 : vector<64x8xf32> to vector<8x8x8xf32>
    %133 = vector.shape_cast %130 : vector<64x8xf32> to vector<8x8x8xf32>
    "tpu.trace_start"() <{level = 10 : i32, message = "bqd,bkd->bqk"}> : () -> ()
    %cst_75 = arith.constant dense<0.000000e+00> : vector<8x8x8xf32>
    %134 = tpu.matmul %131, %132, %cst_75 {dimension_numbers = #tpu.dot_dimension_numbers<[2], [2], [1], [1], [0, 0, 0, 1, 1, 1], [0], [0]>} : vector<8x8x8xf32>, vector<8x8x8xf32>, vector<8x8x8xf32> -> vector<8x8x8xf32>
    "tpu.trace_stop"() : () -> ()
    %cst_76 = arith.constant 0.353553385 : f32
    %135 = vector.broadcast %cst_76 : f32 to vector<8x8x8xf32>
    %136 = arith.mulf %134, %135 : vector<8x8x8xf32>
    %137 = vector.broadcast %26 : vector<8x1x8xf32> to vector<8x8x8xf32>
    %138 = arith.addf %136, %137 : vector<8x8x8xf32>
    %cst_77 = arith.constant dense<0xFF800000> : vector<8x8xf32>
    %139 = vector.multi_reduction <maximumf>, %138, %cst_77 [2] : vector<8x8x8xf32> to vector<8x8xf32>
    %140 = vector.shape_cast %139 : vector<8x8xf32> to vector<8x8x1xf32>
    %141 = vector.broadcast %140 : vector<8x8x1xf32> to vector<8x8x8xf32>
    %142 = arith.subf %138, %141 : vector<8x8x8xf32>
    %143 = math.exp %142 : vector<8x8x8xf32>
    %cst_78 = arith.constant dense<0.000000e+00> : vector<8x8xf32>
    %144 = vector.multi_reduction <add>, %143, %cst_78 [2] : vector<8x8x8xf32> to vector<8x8xf32>
    %145 = vector.shape_cast %144 : vector<8x8xf32> to vector<8x8x1xf32>
    %146 = tpu.reciprocal %145 {approx = true} : vector<8x8x1xf32> -> vector<8x8x1xf32>
    %147 = vector.broadcast %146 : vector<8x8x1xf32> to vector<8x8x8xf32>
    %148 = arith.mulf %143, %147 : vector<8x8x8xf32>
    "tpu.trace_start"() <{level = 10 : i32, message = "bqk,bkd->bqd"}> : () -> ()
    %cst_79 = arith.constant dense<0.000000e+00> : vector<8x8x8xf32>
    %149 = tpu.matmul %148, %133, %cst_79 {dimension_numbers = #tpu.dot_dimension_numbers<[2], [1], [1], [2], [0, 0, 0, 1, 1, 2], [0], [0]>} : vector<8x8x8xf32>, vector<8x8x8xf32>, vector<8x8x8xf32> -> vector<8x8x8xf32>
    "tpu.trace_stop"() : () -> ()
    %150 = vector.shape_cast %149 : vector<8x8x8xf32> to vector<64x8xf32>
    %151 = arith.truncf %150 : vector<64x8xf32> to vector<64x8xbf16>
    %c2_80 = arith.constant 2 : index
    %c0_81 = arith.constant 0 : index
    %c0_82 = arith.constant 0 : index
    %152 = vector.load %arg5[%c2_80, %c0_81, %c0_82] : memref<8x8x32xbf16, #tpu.memory_space<vmem>>, vector<1x8x32xbf16>
    %153 = vector.shape_cast %152 : vector<1x8x32xbf16> to vector<8x32xbf16>
    %cst_83 = arith.constant dense<0.000000e+00> : vector<64x32xf32>
    %154 = tpu.matmul %151, %153, %cst_83 {dimension_numbers = #tpu.dot_dimension_numbers<[1], [0], [0], [1], [0, 0, 1, 1], [], []>} : vector<64x8xbf16>, vector<8x32xbf16>, vector<64x32xf32> -> vector<64x32xf32>
    %155 = arith.addf %112, %154 : vector<64x32xf32>
    %c3_84 = arith.constant 3 : index
    %c0_85 = arith.constant 0 : index
    %c0_86 = arith.constant 0 : index
    %156 = vector.load %arg4[%c3_84, %c0_85, %c0_86] : memref<24x32x8xbf16, #tpu.memory_space<vmem>>, vector<1x32x8xbf16>
    %157 = vector.shape_cast %156 : vector<1x32x8xbf16> to vector<32x8xbf16>
    %cst_87 = arith.constant dense<0.000000e+00> : vector<64x8xf32>
    %158 = tpu.matmul %27, %157, %cst_87 {dimension_numbers = #tpu.dot_dimension_numbers<[1], [0], [0], [1], [0, 0, 1, 1], [], []>} : vector<64x32xbf16>, vector<32x8xbf16>, vector<64x8xf32> -> vector<64x8xf32>
    %c2_88 = arith.constant 2 : index
    %c24 = arith.constant 24 : index
    %159 = vector.load %arg3[%c2_88, %c24] : memref<32x768xf32, #tpu.memory_space<vmem>>, vector<1x8xf32>
    %160 = vector.broadcast %159 : vector<1x8xf32> to vector<64x8xf32>
    %161 = arith.addf %158, %160 : vector<64x8xf32>
    %c7 = arith.constant 7 : index
    %c0_89 = arith.constant 0 : index
    %c0_90 = arith.constant 0 : index
    %162 = vector.load %arg4[%c7, %c0_89, %c0_90] : memref<24x32x8xbf16, #tpu.memory_space<vmem>>, vector<1x32x8xbf16>
    %163 = vector.shape_cast %162 : vector<1x32x8xbf16> to vector<32x8xbf16>
    %cst_91 = arith.constant dense<0.000000e+00> : vector<64x8xf32>
    %164 = tpu.matmul %27, %163, %cst_91 {dimension_numbers = #tpu.dot_dimension_numbers<[1], [0], [0], [1], [0, 0, 1, 1], [], []>} : vector<64x32xbf16>, vector<32x8xbf16>, vector<64x8xf32> -> vector<64x8xf32>
    %c3_92 = arith.constant 3 : index
    %c24_93 = arith.constant 24 : index
    %165 = vector.load %arg3[%c3_92, %c24_93] : memref<32x768xf32, #tpu.memory_space<vmem>>, vector<1x8xf32>
    %166 = vector.broadcast %165 : vector<1x8xf32> to vector<64x8xf32>
    %167 = arith.addf %164, %166 : vector<64x8xf32>
    %c11 = arith.constant 11 : index
    %c0_94 = arith.constant 0 : index
    %c0_95 = arith.constant 0 : index
    %168 = vector.load %arg4[%c11, %c0_94, %c0_95] : memref<24x32x8xbf16, #tpu.memory_space<vmem>>, vector<1x32x8xbf16>
    %169 = vector.shape_cast %168 : vector<1x32x8xbf16> to vector<32x8xbf16>
    %cst_96 = arith.constant dense<0.000000e+00> : vector<64x8xf32>
    %170 = tpu.matmul %27, %169, %cst_96 {dimension_numbers = #tpu.dot_dimension_numbers<[1], [0], [0], [1], [0, 0, 1, 1], [], []>} : vector<64x32xbf16>, vector<32x8xbf16>, vector<64x8xf32> -> vector<64x8xf32>
    %c4_97 = arith.constant 4 : index
    %c24_98 = arith.constant 24 : index
    %171 = vector.load %arg3[%c4_97, %c24_98] : memref<32x768xf32, #tpu.memory_space<vmem>>, vector<1x8xf32>
    %172 = vector.broadcast %171 : vector<1x8xf32> to vector<64x8xf32>
    %173 = arith.addf %170, %172 : vector<64x8xf32>
    %174 = vector.shape_cast %161 : vector<64x8xf32> to vector<8x8x8xf32>
    %175 = vector.shape_cast %167 : vector<64x8xf32> to vector<8x8x8xf32>
    %176 = vector.shape_cast %173 : vector<64x8xf32> to vector<8x8x8xf32>
    "tpu.trace_start"() <{level = 10 : i32, message = "bqd,bkd->bqk"}> : () -> ()
    %cst_99 = arith.constant dense<0.000000e+00> : vector<8x8x8xf32>
    %177 = tpu.matmul %174, %175, %cst_99 {dimension_numbers = #tpu.dot_dimension_numbers<[2], [2], [1], [1], [0, 0, 0, 1, 1, 1], [0], [0]>} : vector<8x8x8xf32>, vector<8x8x8xf32>, vector<8x8x8xf32> -> vector<8x8x8xf32>
    "tpu.trace_stop"() : () -> ()
    %cst_100 = arith.constant 0.353553385 : f32
    %178 = vector.broadcast %cst_100 : f32 to vector<8x8x8xf32>
    %179 = arith.mulf %177, %178 : vector<8x8x8xf32>
    %180 = vector.broadcast %26 : vector<8x1x8xf32> to vector<8x8x8xf32>
    %181 = arith.addf %179, %180 : vector<8x8x8xf32>
    %cst_101 = arith.constant dense<0xFF800000> : vector<8x8xf32>
    %182 = vector.multi_reduction <maximumf>, %181, %cst_101 [2] : vector<8x8x8xf32> to vector<8x8xf32>
    %183 = vector.shape_cast %182 : vector<8x8xf32> to vector<8x8x1xf32>
    %184 = vector.broadcast %183 : vector<8x8x1xf32> to vector<8x8x8xf32>
    %185 = arith.subf %181, %184 : vector<8x8x8xf32>
    %186 = math.exp %185 : vector<8x8x8xf32>
    %cst_102 = arith.constant dense<0.000000e+00> : vector<8x8xf32>
    %187 = vector.multi_reduction <add>, %186, %cst_102 [2] : vector<8x8x8xf32> to vector<8x8xf32>
    %188 = vector.shape_cast %187 : vector<8x8xf32> to vector<8x8x1xf32>
    %189 = tpu.reciprocal %188 {approx = true} : vector<8x8x1xf32> -> vector<8x8x1xf32>
    %190 = vector.broadcast %189 : vector<8x8x1xf32> to vector<8x8x8xf32>
    %191 = arith.mulf %186, %190 : vector<8x8x8xf32>
    "tpu.trace_start"() <{level = 10 : i32, message = "bqk,bkd->bqd"}> : () -> ()
    %cst_103 = arith.constant dense<0.000000e+00> : vector<8x8x8xf32>
    %192 = tpu.matmul %191, %176, %cst_103 {dimension_numbers = #tpu.dot_dimension_numbers<[2], [1], [1], [2], [0, 0, 0, 1, 1, 2], [0], [0]>} : vector<8x8x8xf32>, vector<8x8x8xf32>, vector<8x8x8xf32> -> vector<8x8x8xf32>
    "tpu.trace_stop"() : () -> ()
    %193 = vector.shape_cast %192 : vector<8x8x8xf32> to vector<64x8xf32>
    %194 = arith.truncf %193 : vector<64x8xf32> to vector<64x8xbf16>
    %c3_104 = arith.constant 3 : index
    %c0_105 = arith.constant 0 : index
    %c0_106 = arith.constant 0 : index
    %195 = vector.load %arg5[%c3_104, %c0_105, %c0_106] : memref<8x8x32xbf16, #tpu.memory_space<vmem>>, vector<1x8x32xbf16>
    %196 = vector.shape_cast %195 : vector<1x8x32xbf16> to vector<8x32xbf16>
    %cst_107 = arith.constant dense<0.000000e+00> : vector<64x32xf32>
    %197 = tpu.matmul %194, %196, %cst_107 {dimension_numbers = #tpu.dot_dimension_numbers<[1], [0], [0], [1], [0, 0, 1, 1], [], []>} : vector<64x8xbf16>, vector<8x32xbf16>, vector<64x32xf32> -> vector<64x32xf32>
    %198 = arith.addf %155, %197 : vector<64x32xf32>
    %c5_108 = arith.constant 5 : index
    %c0_109 = arith.constant 0 : index
    %199 = vector.load %arg3[%c5_108, %c0_109] : memref<32x768xf32, #tpu.memory_space<vmem>>, vector<1x32xf32>
    %200 = vector.broadcast %199 : vector<1x32xf32> to vector<64x32xf32>
    %201 = arith.addf %198, %200 : vector<64x32xf32>
    %202 = arith.addf %25, %201 : vector<64x32xf32>
    %c6_110 = arith.constant 6 : index
    %c0_111 = arith.constant 0 : index
    %203 = vector.load %arg3[%c6_110, %c0_111] : memref<32x768xf32, #tpu.memory_space<vmem>>, vector<1x32xf32>
    %c7_112 = arith.constant 7 : index
    %c0_113 = arith.constant 0 : index
    %204 = vector.load %arg3[%c7_112, %c0_113] : memref<32x768xf32, #tpu.memory_space<vmem>>, vector<1x32xf32>
    %cst_114 = arith.constant dense<0.000000e+00> : vector<64xf32>
    %205 = vector.multi_reduction <add>, %202, %cst_114 [1] : vector<64x32xf32> to vector<64xf32>
    %206 = vector.shape_cast %205 : vector<64xf32> to vector<64x1xf32>
    %cst_115 = arith.constant 3.200000e+01 : f32
    %207 = vector.broadcast %cst_115 : f32 to vector<64x1xf32>
    %208 = arith.divf %206, %207 : vector<64x1xf32>
    %209 = vector.broadcast %208 : vector<64x1xf32> to vector<64x32xf32>
    %210 = arith.subf %202, %209 : vector<64x32xf32>
    %211 = arith.mulf %210, %210 : vector<64x32xf32>
    %cst_116 = arith.constant dense<0.000000e+00> : vector<64xf32>
    %212 = vector.multi_reduction <add>, %211, %cst_116 [1] : vector<64x32xf32> to vector<64xf32>
    %213 = vector.shape_cast %212 : vector<64xf32> to vector<64x1xf32>
    %cst_117 = arith.constant 3.200000e+01 : f32
    %214 = vector.broadcast %cst_117 : f32 to vector<64x1xf32>
    %215 = arith.divf %213, %214 : vector<64x1xf32>
    %216 = vector.broadcast %208 : vector<64x1xf32> to vector<64x32xf32>
    %217 = arith.subf %202, %216 : vector<64x32xf32>
    %cst_118 = arith.constant 9.99999996E-13 : f32
    %218 = vector.broadcast %cst_118 : f32 to vector<64x1xf32>
    %219 = arith.addf %215, %218 : vector<64x1xf32>
    %220 = math.rsqrt %219 : vector<64x1xf32>
    %221 = vector.broadcast %220 : vector<64x1xf32> to vector<64x32xf32>
    %222 = arith.mulf %217, %221 : vector<64x32xf32>
    %223 = vector.broadcast %203 : vector<1x32xf32> to vector<64x32xf32>
    %224 = arith.mulf %222, %223 : vector<64x32xf32>
    %225 = vector.broadcast %204 : vector<1x32xf32> to vector<64x32xf32>
    %226 = arith.addf %224, %225 : vector<64x32xf32>
    %227 = arith.truncf %226 : vector<64x32xf32> to vector<64x32xbf16>
    %c0_119 = arith.constant 0 : index
    %c0_120 = arith.constant 0 : index
    %c0_121 = arith.constant 0 : index
    %228 = vector.load %arg6[%c0_119, %c0_120, %c0_121] : memref<2x32x64xbf16, #tpu.memory_space<vmem>>, vector<1x32x64xbf16>
    %229 = vector.shape_cast %228 : vector<1x32x64xbf16> to vector<32x64xbf16>
    %cst_122 = arith.constant dense<0.000000e+00> : vector<64x64xf32>
    %230 = tpu.matmul %227, %229, %cst_122 {dimension_numbers = #tpu.dot_dimension_numbers<[1], [0], [0], [1], [0, 0, 1, 1], [], []>} : vector<64x32xbf16>, vector<32x64xbf16>, vector<64x64xf32> -> vector<64x64xf32>
    %c8_123 = arith.constant 8 : index
    %c0_124 = arith.constant 0 : index
    %231 = vector.load %arg3[%c8_123, %c0_124] : memref<32x768xf32, #tpu.memory_space<vmem>>, vector<1x64xf32>
    %232 = vector.broadcast %231 : vector<1x64xf32> to vector<64x64xf32>
    %233 = arith.addf %230, %232 : vector<64x64xf32>
    %cst_125 = arith.constant 5.000000e-01 : f32
    %234 = vector.broadcast %cst_125 : f32 to vector<64x64xf32>
    %235 = arith.mulf %234, %233 : vector<64x64xf32>
    %cst_126 = arith.constant 0.707106769 : f32
    %236 = vector.broadcast %cst_126 : f32 to vector<64x64xf32>
    %237 = arith.mulf %233, %236 : vector<64x64xf32>
    %cst_127 = arith.constant 0.000000e+00 : f32
    %238 = vector.broadcast %cst_127 : f32 to vector<64x64xf32>
    %239 = arith.cmpf oge, %237, %238 : vector<64x64xf32>
    %cst_128 = arith.constant 1.000000e+00 : f32
    %240 = vector.broadcast %cst_128 : f32 to vector<64x64xf32>
    %cst_129 = arith.constant 1.000000e+00 : f32
    %241 = vector.broadcast %cst_129 : f32 to vector<64x64xf32>
    %cst_130 = arith.constant 0.000000e+00 : f32
    %242 = vector.broadcast %cst_130 : f32 to vector<64x64xf32>
    %243 = arith.subf %242, %241 : vector<64x64xf32>
    %244 = arith.select %239, %240, %243 : vector<64x64xi1>, vector<64x64xf32>
    %245 = math.absf %237 : vector<64x64xf32>
    %cst_131 = arith.constant 0.327591091 : f32
    %246 = vector.broadcast %cst_131 : f32 to vector<64x64xf32>
    %247 = arith.mulf %246, %245 : vector<64x64xf32>
    %cst_132 = arith.constant 1.000000e+00 : f32
    %248 = vector.broadcast %cst_132 : f32 to vector<64x64xf32>
    %249 = arith.addf %248, %247 : vector<64x64xf32>
    %cst_133 = arith.constant 1.000000e+00 : f32
    %250 = vector.broadcast %cst_133 : f32 to vector<64x64xf32>
    %251 = arith.divf %250, %249 : vector<64x64xf32>
    %cst_134 = arith.constant 1.06140542 : f32
    %252 = vector.broadcast %cst_134 : f32 to vector<64x64xf32>
    %253 = arith.mulf %252, %251 : vector<64x64xf32>
    %cst_135 = arith.constant -1.45315206 : f32
    %254 = vector.broadcast %cst_135 : f32 to vector<64x64xf32>
    %255 = arith.addf %253, %254 : vector<64x64xf32>
    %256 = arith.mulf %255, %251 : vector<64x64xf32>
    %cst_136 = arith.constant 1.42141378 : f32
    %257 = vector.broadcast %cst_136 : f32 to vector<64x64xf32>
    %258 = arith.addf %256, %257 : vector<64x64xf32>
    %259 = arith.mulf %258, %251 : vector<64x64xf32>
    %cst_137 = arith.constant -0.284496725 : f32
    %260 = vector.broadcast %cst_137 : f32 to vector<64x64xf32>
    %261 = arith.addf %259, %260 : vector<64x64xf32>
    %262 = arith.mulf %261, %251 : vector<64x64xf32>
    %cst_138 = arith.constant 0.254829586 : f32
    %263 = vector.broadcast %cst_138 : f32 to vector<64x64xf32>
    %264 = arith.addf %262, %263 : vector<64x64xf32>
    %265 = arith.mulf %264, %251 : vector<64x64xf32>
    %cst_139 = arith.constant 0.000000e+00 : f32
    %266 = vector.broadcast %cst_139 : f32 to vector<64x64xf32>
    %267 = arith.subf %266, %245 : vector<64x64xf32>
    %268 = arith.mulf %267, %245 : vector<64x64xf32>
    %269 = math.exp %268 : vector<64x64xf32>
    %270 = arith.mulf %265, %269 : vector<64x64xf32>
    %cst_140 = arith.constant 1.000000e+00 : f32
    %271 = vector.broadcast %cst_140 : f32 to vector<64x64xf32>
    %272 = arith.subf %271, %270 : vector<64x64xf32>
    %273 = arith.mulf %244, %272 : vector<64x64xf32>
    %cst_141 = arith.constant 1.000000e+00 : f32
    %274 = vector.broadcast %cst_141 : f32 to vector<64x64xf32>
    %275 = arith.addf %274, %273 : vector<64x64xf32>
    %276 = arith.mulf %235, %275 : vector<64x64xf32>
    %277 = arith.truncf %276 : vector<64x64xf32> to vector<64x64xbf16>
    %c0_142 = arith.constant 0 : index
    %c0_143 = arith.constant 0 : index
    %c0_144 = arith.constant 0 : index
    %278 = vector.load %arg7[%c0_142, %c0_143, %c0_144] : memref<2x64x32xbf16, #tpu.memory_space<vmem>>, vector<1x64x32xbf16>
    %279 = vector.shape_cast %278 : vector<1x64x32xbf16> to vector<64x32xbf16>
    %cst_145 = arith.constant dense<0.000000e+00> : vector<64x32xf32>
    %280 = tpu.matmul %277, %279, %cst_145 {dimension_numbers = #tpu.dot_dimension_numbers<[1], [0], [0], [1], [0, 0, 1, 1], [], []>} : vector<64x64xbf16>, vector<64x32xbf16>, vector<64x32xf32> -> vector<64x32xf32>
    %c9_146 = arith.constant 9 : index
    %c0_147 = arith.constant 0 : index
    %281 = vector.load %arg3[%c9_146, %c0_147] : memref<32x768xf32, #tpu.memory_space<vmem>>, vector<1x32xf32>
    %282 = vector.broadcast %281 : vector<1x32xf32> to vector<64x32xf32>
    %283 = arith.addf %280, %282 : vector<64x32xf32>
    %284 = arith.addf %226, %283 : vector<64x32xf32>
    %c10_148 = arith.constant 10 : index
    %c0_149 = arith.constant 0 : index
    %285 = vector.load %arg3[%c10_148, %c0_149] : memref<32x768xf32, #tpu.memory_space<vmem>>, vector<1x32xf32>
    %c11_150 = arith.constant 11 : index
    %c0_151 = arith.constant 0 : index
    %286 = vector.load %arg3[%c11_150, %c0_151] : memref<32x768xf32, #tpu.memory_space<vmem>>, vector<1x32xf32>
    %cst_152 = arith.constant dense<0.000000e+00> : vector<64xf32>
    %287 = vector.multi_reduction <add>, %284, %cst_152 [1] : vector<64x32xf32> to vector<64xf32>
    %288 = vector.shape_cast %287 : vector<64xf32> to vector<64x1xf32>
    %cst_153 = arith.constant 3.200000e+01 : f32
    %289 = vector.broadcast %cst_153 : f32 to vector<64x1xf32>
    %290 = arith.divf %288, %289 : vector<64x1xf32>
    %291 = vector.broadcast %290 : vector<64x1xf32> to vector<64x32xf32>
    %292 = arith.subf %284, %291 : vector<64x32xf32>
    %293 = arith.mulf %292, %292 : vector<64x32xf32>
    %cst_154 = arith.constant dense<0.000000e+00> : vector<64xf32>
    %294 = vector.multi_reduction <add>, %293, %cst_154 [1] : vector<64x32xf32> to vector<64xf32>
    %295 = vector.shape_cast %294 : vector<64xf32> to vector<64x1xf32>
    %cst_155 = arith.constant 3.200000e+01 : f32
    %296 = vector.broadcast %cst_155 : f32 to vector<64x1xf32>
    %297 = arith.divf %295, %296 : vector<64x1xf32>
    %298 = vector.broadcast %290 : vector<64x1xf32> to vector<64x32xf32>
    %299 = arith.subf %284, %298 : vector<64x32xf32>
    %cst_156 = arith.constant 9.99999996E-13 : f32
    %300 = vector.broadcast %cst_156 : f32 to vector<64x1xf32>
    %301 = arith.addf %297, %300 : vector<64x1xf32>
    %302 = math.rsqrt %301 : vector<64x1xf32>
    %303 = vector.broadcast %302 : vector<64x1xf32> to vector<64x32xf32>
    %304 = arith.mulf %299, %303 : vector<64x32xf32>
    %305 = vector.broadcast %285 : vector<1x32xf32> to vector<64x32xf32>
    %306 = arith.mulf %304, %305 : vector<64x32xf32>
    %307 = vector.broadcast %286 : vector<1x32xf32> to vector<64x32xf32>
    %308 = arith.addf %306, %307 : vector<64x32xf32>
    %309 = arith.truncf %308 : vector<64x32xf32> to vector<64x32xbf16>
    %c12 = arith.constant 12 : index
    %c0_157 = arith.constant 0 : index
    %c0_158 = arith.constant 0 : index
    %310 = vector.load %arg4[%c12, %c0_157, %c0_158] : memref<24x32x8xbf16, #tpu.memory_space<vmem>>, vector<1x32x8xbf16>
    %311 = vector.shape_cast %310 : vector<1x32x8xbf16> to vector<32x8xbf16>
    %cst_159 = arith.constant dense<0.000000e+00> : vector<64x8xf32>
    %312 = tpu.matmul %309, %311, %cst_159 {dimension_numbers = #tpu.dot_dimension_numbers<[1], [0], [0], [1], [0, 0, 1, 1], [], []>} : vector<64x32xbf16>, vector<32x8xbf16>, vector<64x8xf32> -> vector<64x8xf32>
    %c12_160 = arith.constant 12 : index
    %c0_161 = arith.constant 0 : index
    %313 = vector.load %arg3[%c12_160, %c0_161] : memref<32x768xf32, #tpu.memory_space<vmem>>, vector<1x8xf32>
    %314 = vector.broadcast %313 : vector<1x8xf32> to vector<64x8xf32>
    %315 = arith.addf %312, %314 : vector<64x8xf32>
    %c16_162 = arith.constant 16 : index
    %c0_163 = arith.constant 0 : index
    %c0_164 = arith.constant 0 : index
    %316 = vector.load %arg4[%c16_162, %c0_163, %c0_164] : memref<24x32x8xbf16, #tpu.memory_space<vmem>>, vector<1x32x8xbf16>
    %317 = vector.shape_cast %316 : vector<1x32x8xbf16> to vector<32x8xbf16>
    %cst_165 = arith.constant dense<0.000000e+00> : vector<64x8xf32>
    %318 = tpu.matmul %309, %317, %cst_165 {dimension_numbers = #tpu.dot_dimension_numbers<[1], [0], [0], [1], [0, 0, 1, 1], [], []>} : vector<64x32xbf16>, vector<32x8xbf16>, vector<64x8xf32> -> vector<64x8xf32>
    %c13 = arith.constant 13 : index
    %c0_166 = arith.constant 0 : index
    %319 = vector.load %arg3[%c13, %c0_166] : memref<32x768xf32, #tpu.memory_space<vmem>>, vector<1x8xf32>
    %320 = vector.broadcast %319 : vector<1x8xf32> to vector<64x8xf32>
    %321 = arith.addf %318, %320 : vector<64x8xf32>
    %c20 = arith.constant 20 : index
    %c0_167 = arith.constant 0 : index
    %c0_168 = arith.constant 0 : index
    %322 = vector.load %arg4[%c20, %c0_167, %c0_168] : memref<24x32x8xbf16, #tpu.memory_space<vmem>>, vector<1x32x8xbf16>
    %323 = vector.shape_cast %322 : vector<1x32x8xbf16> to vector<32x8xbf16>
    %cst_169 = arith.constant dense<0.000000e+00> : vector<64x8xf32>
    %324 = tpu.matmul %309, %323, %cst_169 {dimension_numbers = #tpu.dot_dimension_numbers<[1], [0], [0], [1], [0, 0, 1, 1], [], []>} : vector<64x32xbf16>, vector<32x8xbf16>, vector<64x8xf32> -> vector<64x8xf32>
    %c14 = arith.constant 14 : index
    %c0_170 = arith.constant 0 : index
    %325 = vector.load %arg3[%c14, %c0_170] : memref<32x768xf32, #tpu.memory_space<vmem>>, vector<1x8xf32>
    %326 = vector.broadcast %325 : vector<1x8xf32> to vector<64x8xf32>
    %327 = arith.addf %324, %326 : vector<64x8xf32>
    %328 = vector.shape_cast %315 : vector<64x8xf32> to vector<8x8x8xf32>
    %329 = vector.shape_cast %321 : vector<64x8xf32> to vector<8x8x8xf32>
    %330 = vector.shape_cast %327 : vector<64x8xf32> to vector<8x8x8xf32>
    "tpu.trace_start"() <{level = 10 : i32, message = "bqd,bkd->bqk"}> : () -> ()
    %cst_171 = arith.constant dense<0.000000e+00> : vector<8x8x8xf32>
    %331 = tpu.matmul %328, %329, %cst_171 {dimension_numbers = #tpu.dot_dimension_numbers<[2], [2], [1], [1], [0, 0, 0, 1, 1, 1], [0], [0]>} : vector<8x8x8xf32>, vector<8x8x8xf32>, vector<8x8x8xf32> -> vector<8x8x8xf32>
    "tpu.trace_stop"() : () -> ()
    %cst_172 = arith.constant 0.353553385 : f32
    %332 = vector.broadcast %cst_172 : f32 to vector<8x8x8xf32>
    %333 = arith.mulf %331, %332 : vector<8x8x8xf32>
    %334 = vector.broadcast %26 : vector<8x1x8xf32> to vector<8x8x8xf32>
    %335 = arith.addf %333, %334 : vector<8x8x8xf32>
    %cst_173 = arith.constant dense<0xFF800000> : vector<8x8xf32>
    %336 = vector.multi_reduction <maximumf>, %335, %cst_173 [2] : vector<8x8x8xf32> to vector<8x8xf32>
    %337 = vector.shape_cast %336 : vector<8x8xf32> to vector<8x8x1xf32>
    %338 = vector.broadcast %337 : vector<8x8x1xf32> to vector<8x8x8xf32>
    %339 = arith.subf %335, %338 : vector<8x8x8xf32>
    %340 = math.exp %339 : vector<8x8x8xf32>
    %cst_174 = arith.constant dense<0.000000e+00> : vector<8x8xf32>
    %341 = vector.multi_reduction <add>, %340, %cst_174 [2] : vector<8x8x8xf32> to vector<8x8xf32>
    %342 = vector.shape_cast %341 : vector<8x8xf32> to vector<8x8x1xf32>
    %343 = tpu.reciprocal %342 {approx = true} : vector<8x8x1xf32> -> vector<8x8x1xf32>
    %344 = vector.broadcast %343 : vector<8x8x1xf32> to vector<8x8x8xf32>
    %345 = arith.mulf %340, %344 : vector<8x8x8xf32>
    "tpu.trace_start"() <{level = 10 : i32, message = "bqk,bkd->bqd"}> : () -> ()
    %cst_175 = arith.constant dense<0.000000e+00> : vector<8x8x8xf32>
    %346 = tpu.matmul %345, %330, %cst_175 {dimension_numbers = #tpu.dot_dimension_numbers<[2], [1], [1], [2], [0, 0, 0, 1, 1, 2], [0], [0]>} : vector<8x8x8xf32>, vector<8x8x8xf32>, vector<8x8x8xf32> -> vector<8x8x8xf32>
    "tpu.trace_stop"() : () -> ()
    %347 = vector.shape_cast %346 : vector<8x8x8xf32> to vector<64x8xf32>
    %348 = arith.truncf %347 : vector<64x8xf32> to vector<64x8xbf16>
    %c4_176 = arith.constant 4 : index
    %c0_177 = arith.constant 0 : index
    %c0_178 = arith.constant 0 : index
    %349 = vector.load %arg5[%c4_176, %c0_177, %c0_178] : memref<8x8x32xbf16, #tpu.memory_space<vmem>>, vector<1x8x32xbf16>
    %350 = vector.shape_cast %349 : vector<1x8x32xbf16> to vector<8x32xbf16>
    %cst_179 = arith.constant dense<0.000000e+00> : vector<64x32xf32>
    %351 = tpu.matmul %348, %350, %cst_179 {dimension_numbers = #tpu.dot_dimension_numbers<[1], [0], [0], [1], [0, 0, 1, 1], [], []>} : vector<64x8xbf16>, vector<8x32xbf16>, vector<64x32xf32> -> vector<64x32xf32>
    %c13_180 = arith.constant 13 : index
    %c0_181 = arith.constant 0 : index
    %c0_182 = arith.constant 0 : index
    %352 = vector.load %arg4[%c13_180, %c0_181, %c0_182] : memref<24x32x8xbf16, #tpu.memory_space<vmem>>, vector<1x32x8xbf16>
    %353 = vector.shape_cast %352 : vector<1x32x8xbf16> to vector<32x8xbf16>
    %cst_183 = arith.constant dense<0.000000e+00> : vector<64x8xf32>
    %354 = tpu.matmul %309, %353, %cst_183 {dimension_numbers = #tpu.dot_dimension_numbers<[1], [0], [0], [1], [0, 0, 1, 1], [], []>} : vector<64x32xbf16>, vector<32x8xbf16>, vector<64x8xf32> -> vector<64x8xf32>
    %c12_184 = arith.constant 12 : index
    %c8_185 = arith.constant 8 : index
    %355 = vector.load %arg3[%c12_184, %c8_185] : memref<32x768xf32, #tpu.memory_space<vmem>>, vector<1x8xf32>
    %356 = vector.broadcast %355 : vector<1x8xf32> to vector<64x8xf32>
    %357 = arith.addf %354, %356 : vector<64x8xf32>
    %c17 = arith.constant 17 : index
    %c0_186 = arith.constant 0 : index
    %c0_187 = arith.constant 0 : index
    %358 = vector.load %arg4[%c17, %c0_186, %c0_187] : memref<24x32x8xbf16, #tpu.memory_space<vmem>>, vector<1x32x8xbf16>
    %359 = vector.shape_cast %358 : vector<1x32x8xbf16> to vector<32x8xbf16>
    %cst_188 = arith.constant dense<0.000000e+00> : vector<64x8xf32>
    %360 = tpu.matmul %309, %359, %cst_188 {dimension_numbers = #tpu.dot_dimension_numbers<[1], [0], [0], [1], [0, 0, 1, 1], [], []>} : vector<64x32xbf16>, vector<32x8xbf16>, vector<64x8xf32> -> vector<64x8xf32>
    %c13_189 = arith.constant 13 : index
    %c8_190 = arith.constant 8 : index
    %361 = vector.load %arg3[%c13_189, %c8_190] : memref<32x768xf32, #tpu.memory_space<vmem>>, vector<1x8xf32>
    %362 = vector.broadcast %361 : vector<1x8xf32> to vector<64x8xf32>
    %363 = arith.addf %360, %362 : vector<64x8xf32>
    %c21 = arith.constant 21 : index
    %c0_191 = arith.constant 0 : index
    %c0_192 = arith.constant 0 : index
    %364 = vector.load %arg4[%c21, %c0_191, %c0_192] : memref<24x32x8xbf16, #tpu.memory_space<vmem>>, vector<1x32x8xbf16>
    %365 = vector.shape_cast %364 : vector<1x32x8xbf16> to vector<32x8xbf16>
    %cst_193 = arith.constant dense<0.000000e+00> : vector<64x8xf32>
    %366 = tpu.matmul %309, %365, %cst_193 {dimension_numbers = #tpu.dot_dimension_numbers<[1], [0], [0], [1], [0, 0, 1, 1], [], []>} : vector<64x32xbf16>, vector<32x8xbf16>, vector<64x8xf32> -> vector<64x8xf32>
    %c14_194 = arith.constant 14 : index
    %c8_195 = arith.constant 8 : index
    %367 = vector.load %arg3[%c14_194, %c8_195] : memref<32x768xf32, #tpu.memory_space<vmem>>, vector<1x8xf32>
    %368 = vector.broadcast %367 : vector<1x8xf32> to vector<64x8xf32>
    %369 = arith.addf %366, %368 : vector<64x8xf32>
    %370 = vector.shape_cast %357 : vector<64x8xf32> to vector<8x8x8xf32>
    %371 = vector.shape_cast %363 : vector<64x8xf32> to vector<8x8x8xf32>
    %372 = vector.shape_cast %369 : vector<64x8xf32> to vector<8x8x8xf32>
    "tpu.trace_start"() <{level = 10 : i32, message = "bqd,bkd->bqk"}> : () -> ()
    %cst_196 = arith.constant dense<0.000000e+00> : vector<8x8x8xf32>
    %373 = tpu.matmul %370, %371, %cst_196 {dimension_numbers = #tpu.dot_dimension_numbers<[2], [2], [1], [1], [0, 0, 0, 1, 1, 1], [0], [0]>} : vector<8x8x8xf32>, vector<8x8x8xf32>, vector<8x8x8xf32> -> vector<8x8x8xf32>
    "tpu.trace_stop"() : () -> ()
    %cst_197 = arith.constant 0.353553385 : f32
    %374 = vector.broadcast %cst_197 : f32 to vector<8x8x8xf32>
    %375 = arith.mulf %373, %374 : vector<8x8x8xf32>
    %376 = vector.broadcast %26 : vector<8x1x8xf32> to vector<8x8x8xf32>
    %377 = arith.addf %375, %376 : vector<8x8x8xf32>
    %cst_198 = arith.constant dense<0xFF800000> : vector<8x8xf32>
    %378 = vector.multi_reduction <maximumf>, %377, %cst_198 [2] : vector<8x8x8xf32> to vector<8x8xf32>
    %379 = vector.shape_cast %378 : vector<8x8xf32> to vector<8x8x1xf32>
    %380 = vector.broadcast %379 : vector<8x8x1xf32> to vector<8x8x8xf32>
    %381 = arith.subf %377, %380 : vector<8x8x8xf32>
    %382 = math.exp %381 : vector<8x8x8xf32>
    %cst_199 = arith.constant dense<0.000000e+00> : vector<8x8xf32>
    %383 = vector.multi_reduction <add>, %382, %cst_199 [2] : vector<8x8x8xf32> to vector<8x8xf32>
    %384 = vector.shape_cast %383 : vector<8x8xf32> to vector<8x8x1xf32>
    %385 = tpu.reciprocal %384 {approx = true} : vector<8x8x1xf32> -> vector<8x8x1xf32>
    %386 = vector.broadcast %385 : vector<8x8x1xf32> to vector<8x8x8xf32>
    %387 = arith.mulf %382, %386 : vector<8x8x8xf32>
    "tpu.trace_start"() <{level = 10 : i32, message = "bqk,bkd->bqd"}> : () -> ()
    %cst_200 = arith.constant dense<0.000000e+00> : vector<8x8x8xf32>
    %388 = tpu.matmul %387, %372, %cst_200 {dimension_numbers = #tpu.dot_dimension_numbers<[2], [1], [1], [2], [0, 0, 0, 1, 1, 2], [0], [0]>} : vector<8x8x8xf32>, vector<8x8x8xf32>, vector<8x8x8xf32> -> vector<8x8x8xf32>
    "tpu.trace_stop"() : () -> ()
    %389 = vector.shape_cast %388 : vector<8x8x8xf32> to vector<64x8xf32>
    %390 = arith.truncf %389 : vector<64x8xf32> to vector<64x8xbf16>
    %c5_201 = arith.constant 5 : index
    %c0_202 = arith.constant 0 : index
    %c0_203 = arith.constant 0 : index
    %391 = vector.load %arg5[%c5_201, %c0_202, %c0_203] : memref<8x8x32xbf16, #tpu.memory_space<vmem>>, vector<1x8x32xbf16>
    %392 = vector.shape_cast %391 : vector<1x8x32xbf16> to vector<8x32xbf16>
    %cst_204 = arith.constant dense<0.000000e+00> : vector<64x32xf32>
    %393 = tpu.matmul %390, %392, %cst_204 {dimension_numbers = #tpu.dot_dimension_numbers<[1], [0], [0], [1], [0, 0, 1, 1], [], []>} : vector<64x8xbf16>, vector<8x32xbf16>, vector<64x32xf32> -> vector<64x32xf32>
    %394 = arith.addf %351, %393 : vector<64x32xf32>
    %c14_205 = arith.constant 14 : index
    %c0_206 = arith.constant 0 : index
    %c0_207 = arith.constant 0 : index
    %395 = vector.load %arg4[%c14_205, %c0_206, %c0_207] : memref<24x32x8xbf16, #tpu.memory_space<vmem>>, vector<1x32x8xbf16>
    %396 = vector.shape_cast %395 : vector<1x32x8xbf16> to vector<32x8xbf16>
    %cst_208 = arith.constant dense<0.000000e+00> : vector<64x8xf32>
    %397 = tpu.matmul %309, %396, %cst_208 {dimension_numbers = #tpu.dot_dimension_numbers<[1], [0], [0], [1], [0, 0, 1, 1], [], []>} : vector<64x32xbf16>, vector<32x8xbf16>, vector<64x8xf32> -> vector<64x8xf32>
    %c12_209 = arith.constant 12 : index
    %c16_210 = arith.constant 16 : index
    %398 = vector.load %arg3[%c12_209, %c16_210] : memref<32x768xf32, #tpu.memory_space<vmem>>, vector<1x8xf32>
    %399 = vector.broadcast %398 : vector<1x8xf32> to vector<64x8xf32>
    %400 = arith.addf %397, %399 : vector<64x8xf32>
    %c18 = arith.constant 18 : index
    %c0_211 = arith.constant 0 : index
    %c0_212 = arith.constant 0 : index
    %401 = vector.load %arg4[%c18, %c0_211, %c0_212] : memref<24x32x8xbf16, #tpu.memory_space<vmem>>, vector<1x32x8xbf16>
    %402 = vector.shape_cast %401 : vector<1x32x8xbf16> to vector<32x8xbf16>
    %cst_213 = arith.constant dense<0.000000e+00> : vector<64x8xf32>
    %403 = tpu.matmul %309, %402, %cst_213 {dimension_numbers = #tpu.dot_dimension_numbers<[1], [0], [0], [1], [0, 0, 1, 1], [], []>} : vector<64x32xbf16>, vector<32x8xbf16>, vector<64x8xf32> -> vector<64x8xf32>
    %c13_214 = arith.constant 13 : index
    %c16_215 = arith.constant 16 : index
    %404 = vector.load %arg3[%c13_214, %c16_215] : memref<32x768xf32, #tpu.memory_space<vmem>>, vector<1x8xf32>
    %405 = vector.broadcast %404 : vector<1x8xf32> to vector<64x8xf32>
    %406 = arith.addf %403, %405 : vector<64x8xf32>
    %c22 = arith.constant 22 : index
    %c0_216 = arith.constant 0 : index
    %c0_217 = arith.constant 0 : index
    %407 = vector.load %arg4[%c22, %c0_216, %c0_217] : memref<24x32x8xbf16, #tpu.memory_space<vmem>>, vector<1x32x8xbf16>
    %408 = vector.shape_cast %407 : vector<1x32x8xbf16> to vector<32x8xbf16>
    %cst_218 = arith.constant dense<0.000000e+00> : vector<64x8xf32>
    %409 = tpu.matmul %309, %408, %cst_218 {dimension_numbers = #tpu.dot_dimension_numbers<[1], [0], [0], [1], [0, 0, 1, 1], [], []>} : vector<64x32xbf16>, vector<32x8xbf16>, vector<64x8xf32> -> vector<64x8xf32>
    %c14_219 = arith.constant 14 : index
    %c16_220 = arith.constant 16 : index
    %410 = vector.load %arg3[%c14_219, %c16_220] : memref<32x768xf32, #tpu.memory_space<vmem>>, vector<1x8xf32>
    %411 = vector.broadcast %410 : vector<1x8xf32> to vector<64x8xf32>
    %412 = arith.addf %409, %411 : vector<64x8xf32>
    %413 = vector.shape_cast %400 : vector<64x8xf32> to vector<8x8x8xf32>
    %414 = vector.shape_cast %406 : vector<64x8xf32> to vector<8x8x8xf32>
    %415 = vector.shape_cast %412 : vector<64x8xf32> to vector<8x8x8xf32>
    "tpu.trace_start"() <{level = 10 : i32, message = "bqd,bkd->bqk"}> : () -> ()
    %cst_221 = arith.constant dense<0.000000e+00> : vector<8x8x8xf32>
    %416 = tpu.matmul %413, %414, %cst_221 {dimension_numbers = #tpu.dot_dimension_numbers<[2], [2], [1], [1], [0, 0, 0, 1, 1, 1], [0], [0]>} : vector<8x8x8xf32>, vector<8x8x8xf32>, vector<8x8x8xf32> -> vector<8x8x8xf32>
    "tpu.trace_stop"() : () -> ()
    %cst_222 = arith.constant 0.353553385 : f32
    %417 = vector.broadcast %cst_222 : f32 to vector<8x8x8xf32>
    %418 = arith.mulf %416, %417 : vector<8x8x8xf32>
    %419 = vector.broadcast %26 : vector<8x1x8xf32> to vector<8x8x8xf32>
    %420 = arith.addf %418, %419 : vector<8x8x8xf32>
    %cst_223 = arith.constant dense<0xFF800000> : vector<8x8xf32>
    %421 = vector.multi_reduction <maximumf>, %420, %cst_223 [2] : vector<8x8x8xf32> to vector<8x8xf32>
    %422 = vector.shape_cast %421 : vector<8x8xf32> to vector<8x8x1xf32>
    %423 = vector.broadcast %422 : vector<8x8x1xf32> to vector<8x8x8xf32>
    %424 = arith.subf %420, %423 : vector<8x8x8xf32>
    %425 = math.exp %424 : vector<8x8x8xf32>
    %cst_224 = arith.constant dense<0.000000e+00> : vector<8x8xf32>
    %426 = vector.multi_reduction <add>, %425, %cst_224 [2] : vector<8x8x8xf32> to vector<8x8xf32>
    %427 = vector.shape_cast %426 : vector<8x8xf32> to vector<8x8x1xf32>
    %428 = tpu.reciprocal %427 {approx = true} : vector<8x8x1xf32> -> vector<8x8x1xf32>
    %429 = vector.broadcast %428 : vector<8x8x1xf32> to vector<8x8x8xf32>
    %430 = arith.mulf %425, %429 : vector<8x8x8xf32>
    "tpu.trace_start"() <{level = 10 : i32, message = "bqk,bkd->bqd"}> : () -> ()
    %cst_225 = arith.constant dense<0.000000e+00> : vector<8x8x8xf32>
    %431 = tpu.matmul %430, %415, %cst_225 {dimension_numbers = #tpu.dot_dimension_numbers<[2], [1], [1], [2], [0, 0, 0, 1, 1, 2], [0], [0]>} : vector<8x8x8xf32>, vector<8x8x8xf32>, vector<8x8x8xf32> -> vector<8x8x8xf32>
    "tpu.trace_stop"() : () -> ()
    %432 = vector.shape_cast %431 : vector<8x8x8xf32> to vector<64x8xf32>
    %433 = arith.truncf %432 : vector<64x8xf32> to vector<64x8xbf16>
    %c6_226 = arith.constant 6 : index
    %c0_227 = arith.constant 0 : index
    %c0_228 = arith.constant 0 : index
    %434 = vector.load %arg5[%c6_226, %c0_227, %c0_228] : memref<8x8x32xbf16, #tpu.memory_space<vmem>>, vector<1x8x32xbf16>
    %435 = vector.shape_cast %434 : vector<1x8x32xbf16> to vector<8x32xbf16>
    %cst_229 = arith.constant dense<0.000000e+00> : vector<64x32xf32>
    %436 = tpu.matmul %433, %435, %cst_229 {dimension_numbers = #tpu.dot_dimension_numbers<[1], [0], [0], [1], [0, 0, 1, 1], [], []>} : vector<64x8xbf16>, vector<8x32xbf16>, vector<64x32xf32> -> vector<64x32xf32>
    %437 = arith.addf %394, %436 : vector<64x32xf32>
    %c15 = arith.constant 15 : index
    %c0_230 = arith.constant 0 : index
    %c0_231 = arith.constant 0 : index
    %438 = vector.load %arg4[%c15, %c0_230, %c0_231] : memref<24x32x8xbf16, #tpu.memory_space<vmem>>, vector<1x32x8xbf16>
    %439 = vector.shape_cast %438 : vector<1x32x8xbf16> to vector<32x8xbf16>
    %cst_232 = arith.constant dense<0.000000e+00> : vector<64x8xf32>
    %440 = tpu.matmul %309, %439, %cst_232 {dimension_numbers = #tpu.dot_dimension_numbers<[1], [0], [0], [1], [0, 0, 1, 1], [], []>} : vector<64x32xbf16>, vector<32x8xbf16>, vector<64x8xf32> -> vector<64x8xf32>
    %c12_233 = arith.constant 12 : index
    %c24_234 = arith.constant 24 : index
    %441 = vector.load %arg3[%c12_233, %c24_234] : memref<32x768xf32, #tpu.memory_space<vmem>>, vector<1x8xf32>
    %442 = vector.broadcast %441 : vector<1x8xf32> to vector<64x8xf32>
    %443 = arith.addf %440, %442 : vector<64x8xf32>
    %c19 = arith.constant 19 : index
    %c0_235 = arith.constant 0 : index
    %c0_236 = arith.constant 0 : index
    %444 = vector.load %arg4[%c19, %c0_235, %c0_236] : memref<24x32x8xbf16, #tpu.memory_space<vmem>>, vector<1x32x8xbf16>
    %445 = vector.shape_cast %444 : vector<1x32x8xbf16> to vector<32x8xbf16>
    %cst_237 = arith.constant dense<0.000000e+00> : vector<64x8xf32>
    %446 = tpu.matmul %309, %445, %cst_237 {dimension_numbers = #tpu.dot_dimension_numbers<[1], [0], [0], [1], [0, 0, 1, 1], [], []>} : vector<64x32xbf16>, vector<32x8xbf16>, vector<64x8xf32> -> vector<64x8xf32>
    %c13_238 = arith.constant 13 : index
    %c24_239 = arith.constant 24 : index
    %447 = vector.load %arg3[%c13_238, %c24_239] : memref<32x768xf32, #tpu.memory_space<vmem>>, vector<1x8xf32>
    %448 = vector.broadcast %447 : vector<1x8xf32> to vector<64x8xf32>
    %449 = arith.addf %446, %448 : vector<64x8xf32>
    %c23 = arith.constant 23 : index
    %c0_240 = arith.constant 0 : index
    %c0_241 = arith.constant 0 : index
    %450 = vector.load %arg4[%c23, %c0_240, %c0_241] : memref<24x32x8xbf16, #tpu.memory_space<vmem>>, vector<1x32x8xbf16>
    %451 = vector.shape_cast %450 : vector<1x32x8xbf16> to vector<32x8xbf16>
    %cst_242 = arith.constant dense<0.000000e+00> : vector<64x8xf32>
    %452 = tpu.matmul %309, %451, %cst_242 {dimension_numbers = #tpu.dot_dimension_numbers<[1], [0], [0], [1], [0, 0, 1, 1], [], []>} : vector<64x32xbf16>, vector<32x8xbf16>, vector<64x8xf32> -> vector<64x8xf32>
    %c14_243 = arith.constant 14 : index
    %c24_244 = arith.constant 24 : index
    %453 = vector.load %arg3[%c14_243, %c24_244] : memref<32x768xf32, #tpu.memory_space<vmem>>, vector<1x8xf32>
    %454 = vector.broadcast %453 : vector<1x8xf32> to vector<64x8xf32>
    %455 = arith.addf %452, %454 : vector<64x8xf32>
    %456 = vector.shape_cast %443 : vector<64x8xf32> to vector<8x8x8xf32>
    %457 = vector.shape_cast %449 : vector<64x8xf32> to vector<8x8x8xf32>
    %458 = vector.shape_cast %455 : vector<64x8xf32> to vector<8x8x8xf32>
    "tpu.trace_start"() <{level = 10 : i32, message = "bqd,bkd->bqk"}> : () -> ()
    %cst_245 = arith.constant dense<0.000000e+00> : vector<8x8x8xf32>
    %459 = tpu.matmul %456, %457, %cst_245 {dimension_numbers = #tpu.dot_dimension_numbers<[2], [2], [1], [1], [0, 0, 0, 1, 1, 1], [0], [0]>} : vector<8x8x8xf32>, vector<8x8x8xf32>, vector<8x8x8xf32> -> vector<8x8x8xf32>
    "tpu.trace_stop"() : () -> ()
    %cst_246 = arith.constant 0.353553385 : f32
    %460 = vector.broadcast %cst_246 : f32 to vector<8x8x8xf32>
    %461 = arith.mulf %459, %460 : vector<8x8x8xf32>
    %462 = vector.broadcast %26 : vector<8x1x8xf32> to vector<8x8x8xf32>
    %463 = arith.addf %461, %462 : vector<8x8x8xf32>
    %cst_247 = arith.constant dense<0xFF800000> : vector<8x8xf32>
    %464 = vector.multi_reduction <maximumf>, %463, %cst_247 [2] : vector<8x8x8xf32> to vector<8x8xf32>
    %465 = vector.shape_cast %464 : vector<8x8xf32> to vector<8x8x1xf32>
    %466 = vector.broadcast %465 : vector<8x8x1xf32> to vector<8x8x8xf32>
    %467 = arith.subf %463, %466 : vector<8x8x8xf32>
    %468 = math.exp %467 : vector<8x8x8xf32>
    %cst_248 = arith.constant dense<0.000000e+00> : vector<8x8xf32>
    %469 = vector.multi_reduction <add>, %468, %cst_248 [2] : vector<8x8x8xf32> to vector<8x8xf32>
    %470 = vector.shape_cast %469 : vector<8x8xf32> to vector<8x8x1xf32>
    %471 = tpu.reciprocal %470 {approx = true} : vector<8x8x1xf32> -> vector<8x8x1xf32>
    %472 = vector.broadcast %471 : vector<8x8x1xf32> to vector<8x8x8xf32>
    %473 = arith.mulf %468, %472 : vector<8x8x8xf32>
    "tpu.trace_start"() <{level = 10 : i32, message = "bqk,bkd->bqd"}> : () -> ()
    %cst_249 = arith.constant dense<0.000000e+00> : vector<8x8x8xf32>
    %474 = tpu.matmul %473, %458, %cst_249 {dimension_numbers = #tpu.dot_dimension_numbers<[2], [1], [1], [2], [0, 0, 0, 1, 1, 2], [0], [0]>} : vector<8x8x8xf32>, vector<8x8x8xf32>, vector<8x8x8xf32> -> vector<8x8x8xf32>
    "tpu.trace_stop"() : () -> ()
    %475 = vector.shape_cast %474 : vector<8x8x8xf32> to vector<64x8xf32>
    %476 = arith.truncf %475 : vector<64x8xf32> to vector<64x8xbf16>
    %c7_250 = arith.constant 7 : index
    %c0_251 = arith.constant 0 : index
    %c0_252 = arith.constant 0 : index
    %477 = vector.load %arg5[%c7_250, %c0_251, %c0_252] : memref<8x8x32xbf16, #tpu.memory_space<vmem>>, vector<1x8x32xbf16>
    %478 = vector.shape_cast %477 : vector<1x8x32xbf16> to vector<8x32xbf16>
    %cst_253 = arith.constant dense<0.000000e+00> : vector<64x32xf32>
    %479 = tpu.matmul %476, %478, %cst_253 {dimension_numbers = #tpu.dot_dimension_numbers<[1], [0], [0], [1], [0, 0, 1, 1], [], []>} : vector<64x8xbf16>, vector<8x32xbf16>, vector<64x32xf32> -> vector<64x32xf32>
    %480 = arith.addf %437, %479 : vector<64x32xf32>
    %c15_254 = arith.constant 15 : index
    %c0_255 = arith.constant 0 : index
    %481 = vector.load %arg3[%c15_254, %c0_255] : memref<32x768xf32, #tpu.memory_space<vmem>>, vector<1x32xf32>
    %482 = vector.broadcast %481 : vector<1x32xf32> to vector<64x32xf32>
    %483 = arith.addf %480, %482 : vector<64x32xf32>
    %484 = arith.addf %308, %483 : vector<64x32xf32>
    %c16_256 = arith.constant 16 : index
    %c0_257 = arith.constant 0 : index
    %485 = vector.load %arg3[%c16_256, %c0_257] : memref<32x768xf32, #tpu.memory_space<vmem>>, vector<1x32xf32>
    %c17_258 = arith.constant 17 : index
    %c0_259 = arith.constant 0 : index
    %486 = vector.load %arg3[%c17_258, %c0_259] : memref<32x768xf32, #tpu.memory_space<vmem>>, vector<1x32xf32>
    %cst_260 = arith.constant dense<0.000000e+00> : vector<64xf32>
    %487 = vector.multi_reduction <add>, %484, %cst_260 [1] : vector<64x32xf32> to vector<64xf32>
    %488 = vector.shape_cast %487 : vector<64xf32> to vector<64x1xf32>
    %cst_261 = arith.constant 3.200000e+01 : f32
    %489 = vector.broadcast %cst_261 : f32 to vector<64x1xf32>
    %490 = arith.divf %488, %489 : vector<64x1xf32>
    %491 = vector.broadcast %490 : vector<64x1xf32> to vector<64x32xf32>
    %492 = arith.subf %484, %491 : vector<64x32xf32>
    %493 = arith.mulf %492, %492 : vector<64x32xf32>
    %cst_262 = arith.constant dense<0.000000e+00> : vector<64xf32>
    %494 = vector.multi_reduction <add>, %493, %cst_262 [1] : vector<64x32xf32> to vector<64xf32>
    %495 = vector.shape_cast %494 : vector<64xf32> to vector<64x1xf32>
    %cst_263 = arith.constant 3.200000e+01 : f32
    %496 = vector.broadcast %cst_263 : f32 to vector<64x1xf32>
    %497 = arith.divf %495, %496 : vector<64x1xf32>
    %498 = vector.broadcast %490 : vector<64x1xf32> to vector<64x32xf32>
    %499 = arith.subf %484, %498 : vector<64x32xf32>
    %cst_264 = arith.constant 9.99999996E-13 : f32
    %500 = vector.broadcast %cst_264 : f32 to vector<64x1xf32>
    %501 = arith.addf %497, %500 : vector<64x1xf32>
    %502 = math.rsqrt %501 : vector<64x1xf32>
    %503 = vector.broadcast %502 : vector<64x1xf32> to vector<64x32xf32>
    %504 = arith.mulf %499, %503 : vector<64x32xf32>
    %505 = vector.broadcast %485 : vector<1x32xf32> to vector<64x32xf32>
    %506 = arith.mulf %504, %505 : vector<64x32xf32>
    %507 = vector.broadcast %486 : vector<1x32xf32> to vector<64x32xf32>
    %508 = arith.addf %506, %507 : vector<64x32xf32>
    %509 = arith.truncf %508 : vector<64x32xf32> to vector<64x32xbf16>
    %c1_265 = arith.constant 1 : index
    %c0_266 = arith.constant 0 : index
    %c0_267 = arith.constant 0 : index
    %510 = vector.load %arg6[%c1_265, %c0_266, %c0_267] : memref<2x32x64xbf16, #tpu.memory_space<vmem>>, vector<1x32x64xbf16>
    %511 = vector.shape_cast %510 : vector<1x32x64xbf16> to vector<32x64xbf16>
    %cst_268 = arith.constant dense<0.000000e+00> : vector<64x64xf32>
    %512 = tpu.matmul %509, %511, %cst_268 {dimension_numbers = #tpu.dot_dimension_numbers<[1], [0], [0], [1], [0, 0, 1, 1], [], []>} : vector<64x32xbf16>, vector<32x64xbf16>, vector<64x64xf32> -> vector<64x64xf32>
    %c18_269 = arith.constant 18 : index
    %c0_270 = arith.constant 0 : index
    %513 = vector.load %arg3[%c18_269, %c0_270] : memref<32x768xf32, #tpu.memory_space<vmem>>, vector<1x64xf32>
    %514 = vector.broadcast %513 : vector<1x64xf32> to vector<64x64xf32>
    %515 = arith.addf %512, %514 : vector<64x64xf32>
    %cst_271 = arith.constant 5.000000e-01 : f32
    %516 = vector.broadcast %cst_271 : f32 to vector<64x64xf32>
    %517 = arith.mulf %516, %515 : vector<64x64xf32>
    %cst_272 = arith.constant 0.707106769 : f32
    %518 = vector.broadcast %cst_272 : f32 to vector<64x64xf32>
    %519 = arith.mulf %515, %518 : vector<64x64xf32>
    %cst_273 = arith.constant 0.000000e+00 : f32
    %520 = vector.broadcast %cst_273 : f32 to vector<64x64xf32>
    %521 = arith.cmpf oge, %519, %520 : vector<64x64xf32>
    %cst_274 = arith.constant 1.000000e+00 : f32
    %522 = vector.broadcast %cst_274 : f32 to vector<64x64xf32>
    %cst_275 = arith.constant 1.000000e+00 : f32
    %523 = vector.broadcast %cst_275 : f32 to vector<64x64xf32>
    %cst_276 = arith.constant 0.000000e+00 : f32
    %524 = vector.broadcast %cst_276 : f32 to vector<64x64xf32>
    %525 = arith.subf %524, %523 : vector<64x64xf32>
    %526 = arith.select %521, %522, %525 : vector<64x64xi1>, vector<64x64xf32>
    %527 = math.absf %519 : vector<64x64xf32>
    %cst_277 = arith.constant 0.327591091 : f32
    %528 = vector.broadcast %cst_277 : f32 to vector<64x64xf32>
    %529 = arith.mulf %528, %527 : vector<64x64xf32>
    %cst_278 = arith.constant 1.000000e+00 : f32
    %530 = vector.broadcast %cst_278 : f32 to vector<64x64xf32>
    %531 = arith.addf %530, %529 : vector<64x64xf32>
    %cst_279 = arith.constant 1.000000e+00 : f32
    %532 = vector.broadcast %cst_279 : f32 to vector<64x64xf32>
    %533 = arith.divf %532, %531 : vector<64x64xf32>
    %cst_280 = arith.constant 1.06140542 : f32
    %534 = vector.broadcast %cst_280 : f32 to vector<64x64xf32>
    %535 = arith.mulf %534, %533 : vector<64x64xf32>
    %cst_281 = arith.constant -1.45315206 : f32
    %536 = vector.broadcast %cst_281 : f32 to vector<64x64xf32>
    %537 = arith.addf %535, %536 : vector<64x64xf32>
    %538 = arith.mulf %537, %533 : vector<64x64xf32>
    %cst_282 = arith.constant 1.42141378 : f32
    %539 = vector.broadcast %cst_282 : f32 to vector<64x64xf32>
    %540 = arith.addf %538, %539 : vector<64x64xf32>
    %541 = arith.mulf %540, %533 : vector<64x64xf32>
    %cst_283 = arith.constant -0.284496725 : f32
    %542 = vector.broadcast %cst_283 : f32 to vector<64x64xf32>
    %543 = arith.addf %541, %542 : vector<64x64xf32>
    %544 = arith.mulf %543, %533 : vector<64x64xf32>
    %cst_284 = arith.constant 0.254829586 : f32
    %545 = vector.broadcast %cst_284 : f32 to vector<64x64xf32>
    %546 = arith.addf %544, %545 : vector<64x64xf32>
    %547 = arith.mulf %546, %533 : vector<64x64xf32>
    %cst_285 = arith.constant 0.000000e+00 : f32
    %548 = vector.broadcast %cst_285 : f32 to vector<64x64xf32>
    %549 = arith.subf %548, %527 : vector<64x64xf32>
    %550 = arith.mulf %549, %527 : vector<64x64xf32>
    %551 = math.exp %550 : vector<64x64xf32>
    %552 = arith.mulf %547, %551 : vector<64x64xf32>
    %cst_286 = arith.constant 1.000000e+00 : f32
    %553 = vector.broadcast %cst_286 : f32 to vector<64x64xf32>
    %554 = arith.subf %553, %552 : vector<64x64xf32>
    %555 = arith.mulf %526, %554 : vector<64x64xf32>
    %cst_287 = arith.constant 1.000000e+00 : f32
    %556 = vector.broadcast %cst_287 : f32 to vector<64x64xf32>
    %557 = arith.addf %556, %555 : vector<64x64xf32>
    %558 = arith.mulf %517, %557 : vector<64x64xf32>
    %559 = arith.truncf %558 : vector<64x64xf32> to vector<64x64xbf16>
    %c1_288 = arith.constant 1 : index
    %c0_289 = arith.constant 0 : index
    %c0_290 = arith.constant 0 : index
    %560 = vector.load %arg7[%c1_288, %c0_289, %c0_290] : memref<2x64x32xbf16, #tpu.memory_space<vmem>>, vector<1x64x32xbf16>
    %561 = vector.shape_cast %560 : vector<1x64x32xbf16> to vector<64x32xbf16>
    %cst_291 = arith.constant dense<0.000000e+00> : vector<64x32xf32>
    %562 = tpu.matmul %559, %561, %cst_291 {dimension_numbers = #tpu.dot_dimension_numbers<[1], [0], [0], [1], [0, 0, 1, 1], [], []>} : vector<64x64xbf16>, vector<64x32xbf16>, vector<64x32xf32> -> vector<64x32xf32>
    %c19_292 = arith.constant 19 : index
    %c0_293 = arith.constant 0 : index
    %563 = vector.load %arg3[%c19_292, %c0_293] : memref<32x768xf32, #tpu.memory_space<vmem>>, vector<1x32xf32>
    %564 = vector.broadcast %563 : vector<1x32xf32> to vector<64x32xf32>
    %565 = arith.addf %562, %564 : vector<64x32xf32>
    %566 = arith.addf %508, %565 : vector<64x32xf32>
    %c20_294 = arith.constant 20 : index
    %c0_295 = arith.constant 0 : index
    %567 = vector.load %arg3[%c20_294, %c0_295] : memref<32x768xf32, #tpu.memory_space<vmem>>, vector<1x32xf32>
    %c21_296 = arith.constant 21 : index
    %c0_297 = arith.constant 0 : index
    %568 = vector.load %arg3[%c21_296, %c0_297] : memref<32x768xf32, #tpu.memory_space<vmem>>, vector<1x32xf32>
    %cst_298 = arith.constant dense<0.000000e+00> : vector<64xf32>
    %569 = vector.multi_reduction <add>, %566, %cst_298 [1] : vector<64x32xf32> to vector<64xf32>
    %570 = vector.shape_cast %569 : vector<64xf32> to vector<64x1xf32>
    %cst_299 = arith.constant 3.200000e+01 : f32
    %571 = vector.broadcast %cst_299 : f32 to vector<64x1xf32>
    %572 = arith.divf %570, %571 : vector<64x1xf32>
    %573 = vector.broadcast %572 : vector<64x1xf32> to vector<64x32xf32>
    %574 = arith.subf %566, %573 : vector<64x32xf32>
    %575 = arith.mulf %574, %574 : vector<64x32xf32>
    %cst_300 = arith.constant dense<0.000000e+00> : vector<64xf32>
    %576 = vector.multi_reduction <add>, %575, %cst_300 [1] : vector<64x32xf32> to vector<64xf32>
    %577 = vector.shape_cast %576 : vector<64xf32> to vector<64x1xf32>
    %cst_301 = arith.constant 3.200000e+01 : f32
    %578 = vector.broadcast %cst_301 : f32 to vector<64x1xf32>
    %579 = arith.divf %577, %578 : vector<64x1xf32>
    %580 = vector.broadcast %572 : vector<64x1xf32> to vector<64x32xf32>
    %581 = arith.subf %566, %580 : vector<64x32xf32>
    %cst_302 = arith.constant 9.99999996E-13 : f32
    %582 = vector.broadcast %cst_302 : f32 to vector<64x1xf32>
    %583 = arith.addf %579, %582 : vector<64x1xf32>
    %584 = math.rsqrt %583 : vector<64x1xf32>
    %585 = vector.broadcast %584 : vector<64x1xf32> to vector<64x32xf32>
    %586 = arith.mulf %581, %585 : vector<64x32xf32>
    %587 = vector.broadcast %567 : vector<1x32xf32> to vector<64x32xf32>
    %588 = arith.mulf %586, %587 : vector<64x32xf32>
    %589 = vector.broadcast %568 : vector<1x32xf32> to vector<64x32xf32>
    %590 = arith.addf %588, %589 : vector<64x32xf32>
    %591 = tpu.iota {dimensions = array<i32: 0>} : vector<8x64xi32>
    %592 = tpu.iota {dimensions = array<i32: 1>} : vector<8x64xi32>
    %c8_i32 = arith.constant 8 : i32
    %593 = vector.broadcast %c8_i32 : i32 to vector<8x64xi32>
    %594 = arith.muli %591, %593 : vector<8x64xi32>
    %595 = arith.cmpi eq, %592, %594 : vector<8x64xi32>
    %596 = arith.extui %595 : vector<8x64xi1> to vector<8x64xi32>
    %597 = arith.sitofp %596 : vector<8x64xi32> to vector<8x64xf32>
    %cst_303 = arith.constant dense<0.000000e+00> : vector<8x32xf32>
    %598 = tpu.matmul %597, %590, %cst_303 {dimension_numbers = #tpu.dot_dimension_numbers<[1], [0], [0], [1], [0, 0, 1, 1], [], []>} : vector<8x64xf32>, vector<64x32xf32>, vector<8x32xf32> -> vector<8x32xf32>
    %599 = arith.truncf %598 : vector<8x32xf32> to vector<8x32xbf16>
    %c0_304 = arith.constant 0 : index
    %c0_305 = arith.constant 0 : index
    %600 = vector.load %arg8[%c0_304, %c0_305] : memref<32x64xbf16, #tpu.memory_space<vmem>>, vector<32x64xbf16>
    %cst_306 = arith.constant dense<0.000000e+00> : vector<8x64xf32>
    %601 = tpu.matmul %599, %600, %cst_306 {dimension_numbers = #tpu.dot_dimension_numbers<[1], [0], [0], [1], [0, 0, 1, 1], [], []>} : vector<8x32xbf16>, vector<32x64xbf16>, vector<8x64xf32> -> vector<8x64xf32>
    %c22_307 = arith.constant 22 : index
    %c0_308 = arith.constant 0 : index
    %602 = vector.load %arg3[%c22_307, %c0_308] : memref<32x768xf32, #tpu.memory_space<vmem>>, vector<1x64xf32>
    %603 = vector.broadcast %602 : vector<1x64xf32> to vector<8x64xf32>
    %604 = arith.addf %601, %603 : vector<8x64xf32>
    %cst_309 = arith.constant 0.000000e+00 : f32
    %605 = vector.broadcast %cst_309 : f32 to vector<8x64xf32>
    %606 = arith.maximumf %604, %605 : vector<8x64xf32>
    %607 = arith.truncf %606 : vector<8x64xf32> to vector<8x64xbf16>
    %c0_310 = arith.constant 0 : index
    %c0_311 = arith.constant 0 : index
    %608 = vector.load %arg9[%c0_310, %c0_311] : memref<64x128xbf16, #tpu.memory_space<vmem>>, vector<64x128xbf16>
    %cst_312 = arith.constant dense<0.000000e+00> : vector<8x128xf32>
    %609 = tpu.matmul %607, %608, %cst_312 {dimension_numbers = #tpu.dot_dimension_numbers<[1], [0], [0], [1], [0, 0, 1, 1], [], []>} : vector<8x64xbf16>, vector<64x128xbf16>, vector<8x128xf32> -> vector<8x128xf32>
    %c23_313 = arith.constant 23 : index
    %c0_314 = arith.constant 0 : index
    %610 = vector.load %arg3[%c23_313, %c0_314] : memref<32x768xf32, #tpu.memory_space<vmem>>, vector<1x128xf32>
    %611 = vector.broadcast %610 : vector<1x128xf32> to vector<8x128xf32>
    %612 = arith.addf %609, %611 : vector<8x128xf32>
    %cst_315 = arith.constant 0.000000e+00 : f32
    %613 = vector.broadcast %cst_315 : f32 to vector<8x128xf32>
    %614 = arith.maximumf %612, %613 : vector<8x128xf32>
    %615 = arith.truncf %614 : vector<8x128xf32> to vector<8x128xbf16>
    %c0_316 = arith.constant 0 : index
    %c0_317 = arith.constant 0 : index
    %616 = vector.load %arg10[%c0_316, %c0_317] : memref<128x768xbf16, #tpu.memory_space<vmem>>, vector<128x768xbf16>
    %cst_318 = arith.constant dense<0.000000e+00> : vector<8x768xf32>
    %617 = tpu.matmul %615, %616, %cst_318 {dimension_numbers = #tpu.dot_dimension_numbers<[1], [0], [0], [1], [0, 0, 1, 1], [], []>} : vector<8x128xbf16>, vector<128x768xbf16>, vector<8x768xf32> -> vector<8x768xf32>
    %c24_319 = arith.constant 24 : index
    %c0_320 = arith.constant 0 : index
    %618 = vector.load %arg3[%c24_319, %c0_320] : memref<32x768xf32, #tpu.memory_space<vmem>>, vector<1x768xf32>
    %619 = vector.broadcast %618 : vector<1x768xf32> to vector<8x768xf32>
    %620 = arith.addf %617, %619 : vector<8x768xf32>
    %621 = arith.negf %620 : vector<8x768xf32>
    %622 = math.exp %621 : vector<8x768xf32>
    %cst_321 = arith.constant 1.000000e+00 : f32
    %623 = vector.broadcast %cst_321 : f32 to vector<8x768xf32>
    %624 = arith.addf %623, %622 : vector<8x768xf32>
    %625 = arith.divf %623, %624 : vector<8x768xf32>
    %c0_322 = arith.constant 0 : index
    %c0_323 = arith.constant 0 : index
    %626 = vector.load %arg11[%c0_322, %c0_323] : memref<8x768xf32, #tpu.memory_space<vmem>>, vector<8x768xf32>
    tpu.vector_store %arg11[%c0_322, %c0_323], %625 {strides = array<i32>} : memref<8x768xf32, #tpu.memory_space<vmem>>, vector<8x768xf32>,
    return
  }
  func.func @transform_0(%arg0: i32) -> (i32, i32, i32) {
    %c0_i32 = arith.constant 0 : i32
    %c0_i32_0 = arith.constant 0 : i32
    %c0_i32_1 = arith.constant 0 : i32
    return %arg0, %c0_i32, %c0_i32_0 : i32, i32, i32
  }
  func.func @transform_1(%arg0: i32) -> (i32, i32, i32) {
    %c0_i32 = arith.constant 0 : i32
    %c0_i32_0 = arith.constant 0 : i32
    %c0_i32_1 = arith.constant 0 : i32
    return %arg0, %c0_i32, %c0_i32_0 : i32, i32, i32
  }
  func.func @transform_2(%arg0: i32) -> (i32, i32) {
    %c0_i32 = arith.constant 0 : i32
    %c0_i32_0 = arith.constant 0 : i32
    %c0_i32_1 = arith.constant 0 : i32
    return %c0_i32, %c0_i32_0 : i32, i32
  }
  func.func @transform_3(%arg0: i32) -> (i32, i32, i32) {
    %c0_i32 = arith.constant 0 : i32
    %c0_i32_0 = arith.constant 0 : i32
    %c0_i32_1 = arith.constant 0 : i32
    %c0_i32_2 = arith.constant 0 : i32
    return %c0_i32, %c0_i32_0, %c0_i32_1 : i32, i32, i32
  }
  func.func @transform_4(%arg0: i32) -> (i32, i32, i32) {
    %c0_i32 = arith.constant 0 : i32
    %c0_i32_0 = arith.constant 0 : i32
    %c0_i32_1 = arith.constant 0 : i32
    %c0_i32_2 = arith.constant 0 : i32
    return %c0_i32, %c0_i32_0, %c0_i32_1 : i32, i32, i32
  }
  func.func @transform_5(%arg0: i32) -> (i32, i32, i32) {
    %c0_i32 = arith.constant 0 : i32
    %c0_i32_0 = arith.constant 0 : i32
    %c0_i32_1 = arith.constant 0 : i32
    %c0_i32_2 = arith.constant 0 : i32
    return %c0_i32, %c0_i32_0, %c0_i32_1 : i32, i32, i32
  }
  func.func @transform_6(%arg0: i32) -> (i32, i32, i32) {
    %c0_i32 = arith.constant 0 : i32
    %c0_i32_0 = arith.constant 0 : i32
    %c0_i32_1 = arith.constant 0 : i32
    %c0_i32_2 = arith.constant 0 : i32
    return %c0_i32, %c0_i32_0, %c0_i32_1 : i32, i32, i32
  }
  func.func @transform_7(%arg0: i32) -> (i32, i32) {
    %c0_i32 = arith.constant 0 : i32
    %c0_i32_0 = arith.constant 0 : i32
    %c0_i32_1 = arith.constant 0 : i32
    return %c0_i32, %c0_i32_0 : i32, i32
  }
  func.func @transform_8(%arg0: i32) -> (i32, i32) {
    %c0_i32 = arith.constant 0 : i32
    %c0_i32_0 = arith.constant 0 : i32
    %c0_i32_1 = arith.constant 0 : i32
    return %c0_i32, %c0_i32_0 : i32, i32
  }
  func.func @transform_9(%arg0: i32) -> (i32, i32) {
    %c0_i32 = arith.constant 0 : i32
    %c0_i32_0 = arith.constant 0 : i32
    %c0_i32_1 = arith.constant 0 : i32
    return %c0_i32, %c0_i32_0 : i32, i32
  }
  func.func @transform_10(%arg0: i32) -> (i32, i32) {
    %c0_i32 = arith.constant 0 : i32
    %c0_i32_0 = arith.constant 0 : i32
    return %arg0, %c0_i32 : i32, i32
  }
}

</mosaic_0001>

<bundles_post_ra>
// kernel: _forward_impl.1
= control target key start
LH: loop header
LB: loop body
LE: loop exit
PB: predicated region body
PF: predicated region fallthrough
CT: control target
= control target key end

     0   :  { %s18785_s13 = smov 0   ;;  %s21800_s0 = inlined_call_operand.vmem [shape: f32[16,8,32], index: 0, kind: input, shape index: {}]   ;;  %s21801_s1 = inlined_call_operand.vmem [shape: f32[16,1,8], index: 1, kind: input, shape index: {}]   ;;  %s21802_s2 = inlined_call_operand.vmem [shape: f32[32,768], index: 2, kind: input, shape index: {}]   ;;  %s21803_s3 = inlined_call_operand.vmem [shape: bf16[24,32,8], index: 3, kind: input, shape index: {}]   ;;  %s21804_s4 = inlined_call_operand.vmem [shape: bf16[8,8,32], index: 4, kind: input, shape index: {}]   ;;  %s21805_s5 = inlined_call_operand.vmem [shape: bf16[2,32,64], index: 5, kind: input, shape index: {}]   ;;  %s21806_s6 = inlined_call_operand.vmem [shape: bf16[2,64,32], index: 6, kind: input, shape index: {}]   ;;  %s21807_s7 = inlined_call_operand.vmem [shape: bf16[32,64], index: 7, kind: input, shape index: {}]   ;;  %s21808_s8 = inlined_call_operand.vmem [shape: bf16[64,128], index: 8, kind: input, shape index: {}]   ;;  %s21809_s9 = inlined_call_operand.vmem [shape: bf16[128,768], index: 9, kind: input, shape index: {}]   ;;  %s21810_s10 = inlined_call_operand.vmem [shape: f32[16,768], index: 10, kind: output, shape index: {}]  }
   0x1 LB: > { %s18791_s14 = sadd.s32 4294967295, %s18721_s13   ;;  %p15929_p0 = scmp.ge.s32.totalorder %s18721_s13, 1  ;;  %s18721_s13 = sphi %s18785_s13, %s20_s13  }
   0x2   : > { %p323_p1 = scmp.lt.s32.totalorder %s18721_s13, 3 }
   0x4   : > { %p324_p2 = pnand %p15929_p0, %p323_p1 }
   0x6   : > { %327 = sbr.rel (%p324_p2) target bundleno = 10854 (0x2a66), region = 60 }
   0xb   : > { %s15930_s15 = sshll.u32 %s18791_s14, 3  ;;  %vm392_vm0 = vcmask 261120   ;;  %v18129_v56 = vld [vmem:[%s21803_s3 + $0x8] sm:$0xff]   ;;  %v18131_v58 = vld [vmem:[%s21803_s3] sm:$0xff]   ;;  %vm18724_vm1 = vmmov 0   ;;  %vm786_vm2 = vcmask 64512  }
   0xc   : > { %p366_p3 = scmp.lt.s32.totalorder %s15930_s15, 15  ;;  %v18130_v57 = vld [vmem:[%s21803_s3 + $0x88] sm:$0xff]   ;;  %17002 = vmatprep.subr.bf16.mxu1 %v18129_v56  ;;  %v18132_v59 = vld [vmem:[%s21803_s3 + $0x80] sm:$0xff]   ;;  %s18726_s25 = smov 112   ;;  %vm3711_vm3 = vcmask 1043456   ;;  %vm7652_vm8 = vcmask 523264  }
   0xd   : > { %17026 = vmatprep.subr.bf16.mxu0 %v18130_v57  ;;  %17003 = vmatpush3.bf16.msra.mxu1 %v18129_v56  ;;  %v18865_v60 = vld [vmem:[%s21803_s3 + $0x48] sm:$0xff]   ;;  %s18727_s12 = smov 104   ;;  %p376_p4 = scmp.lt.s32.totalorder %s18791_s14, 1 }
   0xe   : > { %s21862_s15 = smov (!%p366_p3, %s15930_s15), 15  ;;  %17027 = vmatpush3.bf16.msra.mxu0 %v18130_v57  ;;  %17004 = vmatprep.subr.bf16.mxu1 %v18131_v58 }
   0xf   : > { %s15931_s16 = sshll.u32 %s21862_s15, 3  ;;  %17028 = vmatprep.subr.bf16.mxu0 %v18132_v59  ;;  %s19036_s27 = scalar_lea.vmem %s21801_s1, %s21862_s15 }
  0x10   : > { %s369_s19 = scalar_lea.vmem %s21800_s0, %s15931_s16  ;;  %s18725_s15 = smov 120  }
  0x11   : > { %v382_v0 = vld [vmem:[%s369_s19] sm:$0xff]  ;;  %v384_v1 = vld [vmem:[%s369_s19 + $0x10] sm:$0xff]  ;;  %v383_v2 = vld [vmem:[%s369_s19 + $0x8] sm:$0xff]  ;;  %17005 = vmatpush3.bf16.msra.mxu1 %v18131_v58  ;;  %s21864_s14 = smov (!%p376_p4, %s18791_s14), 1 }
  0x12   : > { %v393_v3 = vsel %vm392_vm0, %v382_v0, 0.0  ;;  %v399_v4 = vsel %vm392_vm0, %v384_v1, 0.0  ;;  %v396_v5 = vsel %vm392_vm0, %v383_v2, 0.0  ;;  %v385_v6 = vld [vmem:[%s369_s19 + $0x18] sm:$0xff]  ;;  %v386_v7 = vld [vmem:[%s369_s19 + $0x20] sm:$0xff]  ;;  %v387_v8 = vld [vmem:[%s369_s19 + $0x28] sm:$0xff]  ;;  %17029 = vmatpush3.bf16.msra.mxu0 %v18132_v59  ;;  %17014 = vmatprep.subr.bf16.mxu1 %v18865_v60 }
  0x13   : > { %394 = vadd.xlane.f32.xlu0 %v393_v3  ;;  %400 = vadd.xlane.f32.xlu1 %v399_v4  ;;  %v402_v9 = vsel %vm392_vm0, %v385_v6, 0.0  ;;  %v405_v10 = vsel %vm392_vm0, %v386_v7, 0.0  ;;  %v408_v11 = vsel %vm392_vm0, %v387_v8, 0.0  ;;  %v388_v12 = vld [vmem:[%s369_s19 + $0x30] sm:$0xff]  ;;  %v389_v13 = vld [vmem:[%s369_s19 + $0x38] sm:$0xff] }
  0x14   : > { %v411_v14 = vsel %vm392_vm0, %v388_v12, 0.0  ;;  %v414_v15 = vsel %vm392_vm0, %v389_v13, 0.0 }
  0x17   : > { %397 = vadd.xlane.f32.xlu0 %v396_v5  ;;  %403 = vadd.xlane.f32.xlu1 %v402_v9 }
  0x1b   : > { %406 = vadd.xlane.f32.xlu0 %v405_v10  ;;  %409 = vadd.xlane.f32.xlu1 %v408_v11 }
  0x1f   : > { %412 = vadd.xlane.f32.xlu0 %v411_v14  ;;  %415 = vadd.xlane.f32.xlu1 %v414_v15 }
  0x9c   : > { %v395_v16 = vpop.xlane.xlu0 %394  ;;  %v401_v17 = vpop.xlane.xlu1 %400 }
  0x9d   : > { %v418_v18 = vmul.f32 0.03125, %v395_v16  ;;  %v420_v19 = vmul.f32 0.03125, %v401_v17 }
  0x9f   : > { %v18810_v20 = vsub.f32 %v382_v0, %v418_v18  ;;  %v18812_v21 = vsub.f32 %v384_v1, %v420_v19 }
  0xa0   : > { %v398_v22 = vpop.xlane.xlu0 %397  ;;  %v404_v23 = vpop.xlane.xlu1 %403 }
  0xa1   : > { %v419_v24 = vmul.f32 0.03125, %v398_v22  ;;  %v421_v25 = vmul.f32 0.03125, %v404_v23  ;;  %v434_v26 = vmul.f32 %v18810_v20, %v18810_v20  ;;  %v436_v27 = vmul.f32 %v18812_v21, %v18812_v21 }
  0xa3   : > { %v18818_v28 = vsub.f32 %v383_v2, %v419_v24  ;;  %v18820_v29 = vsub.f32 %v385_v6, %v421_v25  ;;  %v442_v30 = vsel %vm392_vm0, %v434_v26, 0.0  ;;  %v448_v33 = vsel %vm392_vm0, %v436_v27, 0.0  ;;  %v390_v25 = vld [vmem:[%s21802_s2] ss:$0 sm:$0xff] }
  0xa4   : > { %443 = vadd.xlane.f32.xlu0 %v442_v30  ;;  %v407_v31 = vpop.xlane.xlu0 %406  ;;  %v410_v32 = vpop.xlane.xlu1 %409 }
  0xa5   : > { %v422_v34 = vmul.f32 0.03125, %v407_v31  ;;  %v423_v35 = vmul.f32 0.03125, %v410_v32  ;;  %v435_v36 = vmul.f32 %v18818_v28, %v18818_v28  ;;  %v437_v37 = vmul.f32 %v18820_v29, %v18820_v29  ;;  %v391_v32 = vld [vmem:[%s21802_s2 + $0x1] ss:$0 sm:$0xff] }
  0xa7   : > { %v18828_v38 = vsub.f32 %v386_v7, %v422_v34  ;;  %v18830_v39 = vsub.f32 %v387_v8, %v423_v35  ;;  %v445_v40 = vsel %vm392_vm0, %v435_v36, 0.0  ;;  %v451_v43 = vsel %vm392_vm0, %v437_v37, 0.0 }
  0xa8   : > { %449 = vadd.xlane.f32.xlu0 %v448_v33  ;;  %446 = vadd.xlane.f32.xlu1 %v445_v40  ;;  %v413_v41 = vpop.xlane.xlu0 %412  ;;  %v416_v42 = vpop.xlane.xlu1 %415 }
  0xa9   : > { %v424_v44 = vmul.f32 0.03125, %v413_v41  ;;  %v425_v45 = vmul.f32 0.03125, %v416_v42  ;;  %v438_v46 = vmul.f32 %v18828_v38, %v18828_v38  ;;  %v439_v47 = vmul.f32 %v18830_v39, %v18830_v39 }
  0xab   : > { %v18838_v48 = vsub.f32 %v388_v12, %v424_v44  ;;  %v18840_v49 = vsub.f32 %v389_v13, %v425_v45  ;;  %v454_v50 = vsel %vm392_vm0, %v438_v46, 0.0  ;;  %v457_v51 = vsel %vm392_vm0, %v439_v47, 0.0 }
  0xac   : > { %452 = vadd.xlane.f32.xlu1 %v451_v43  ;;  %455 = vadd.xlane.f32.xlu0 %v454_v50 }
  0xad   : > { %v440_v52 = vmul.f32 %v18838_v48, %v18838_v48  ;;  %v441_v53 = vmul.f32 %v18840_v49, %v18840_v49 }
  0xaf   : > { %v460_v54 = vsel %vm392_vm0, %v440_v52, 0.0  ;;  %v463_v55 = vsel %vm392_vm0, %v441_v53, 0.0  ;;  %v18134_v52 = vld [vmem:[%s21803_s3 + $0x40] sm:$0xff]  }
  0xb0   : > { %458 = vadd.xlane.f32.xlu1 %v457_v51  ;;  %461 = vadd.xlane.f32.xlu0 %v460_v54 }
  0xb4   : > { %464 = vadd.xlane.f32.xlu1 %v463_v55 }
 0x12d   : > { %v444_v61 = vpop.xlane.xlu0 %443 }
 0x12e   : > { %v466_v62 = vmul.f32 0.03125, %v444_v61 }
 0x130   : > { %v474_v63 = vadd.f32 1e-12, %v466_v62 }
 0x131   : > { %v447_v0 = vpop.xlane.xlu1 %446  ;;  %v450_v1 = vpop.xlane.xlu0 %449 }
 0x132   : > { %18267 = vrsqrt.f32 %v474_v63  ;;  %v467_v2 = vmul.f32 0.03125, %v447_v0  ;;  %v468_v3 = vmul.f32 0.03125, %v450_v1 }
 0x134   : > { %v475_v4 = vadd.f32 1e-12, %v467_v2  ;;  %v476_v5 = vadd.f32 1e-12, %v468_v3 }
 0x135   : > { %v453_v6 = vpop.xlane.xlu1 %452  ;;  %v456_v7 = vpop.xlane.xlu0 %455 }
 0x136   : > { %18269 = vrsqrt.f32 %v475_v4  ;;  %v469_v8 = vmul.f32 0.03125, %v453_v6  ;;  %v470_v9 = vmul.f32 0.03125, %v456_v7  ;;  %v18953_v6 = vld [vmem:[%s21802_s2 + $0x3] ss:$0 sm:$0xff] }
 0x137   : > { %18271 = vrsqrt.f32 %v476_v5 }
 0x138   : > { %v477_v10 = vadd.f32 1e-12, %v469_v8  ;;  %v478_v11 = vadd.f32 1e-12, %v470_v9 }
 0x139   : > { %v459_v12 = vpop.xlane.xlu1 %458  ;;  %v462_v13 = vpop.xlane.xlu0 %461 }
 0x13a   : > { %18273 = vrsqrt.f32 %v477_v10  ;;  %v471_v14 = vmul.f32 0.03125, %v459_v12  ;;  %v472_v15 = vmul.f32 0.03125, %v462_v13  ;;  %v18959_v10 = vld [vmem:[%s21802_s2 + $0x2] ss:$0 sm:$0xff] }
 0x13b   : > { %18275 = vrsqrt.f32 %v478_v11 }
 0x13c   : > { %v479_v16 = vadd.f32 1e-12, %v471_v14  ;;  %v480_v17 = vadd.f32 1e-12, %v472_v15 }
 0x13d   : > { %v465_v18 = vpop.xlane.xlu1 %464 }
 0x13e   : > { %18277 = vrsqrt.f32 %v479_v16  ;;  %v473_v19 = vmul.f32 0.03125, %v465_v18 }
 0x13f   : > { %v18268_v22 = vpop.eup %18267  ;;  %18279 = vrsqrt.f32 %v480_v17 }
 0x140   : > { %v490_v23 = vmul.f32 %v18268_v22, %v18810_v20  ;;  %v481_v24 = vadd.f32 1e-12, %v473_v19 }
 0x142   : > { %18281 = vrsqrt.f32 %v481_v24  ;;  %v498_v30 = vmul.f32 %v490_v23, %v390_v25 }
 0x143   : > { %v18270_v26 = vpop.eup %18269 }
 0x144   : > { %v18272_v27 = vpop.eup %18271  ;;  %v491_v31 = vmul.f32 %v18270_v26, %v18818_v28  ;;  %v18877_v36 = vadd.f32 %v498_v30, %v391_v32 }
 0x145   : > { %v492_v33 = vmul.f32 %v18272_v27, %v18812_v21 }
 0x146   : > { %v499_v34 = vmul.f32 %v491_v31, %v390_v25  ;;  %v18993_v31 = vld [vmem:[%s21802_s2 + $0x4] ss:$0 sm:$0xff] }
 0x147   : > { %v18274_v35 = vpop.eup %18273  ;;  %v500_v40 = vmul.f32 %v492_v33, %v390_v25 }
 0x148   : > { %v18276_v20 = vpop.eup %18275  ;;  %v18879_v37 = vadd.f32 %v499_v34, %v391_v32  ;;  %v493_v41 = vmul.f32 %v18274_v35, %v18820_v29 }
 0x149   : > { %v494_v42 = vmul.f32 %v18276_v20, %v18828_v38  ;;  %v18887_v46 = vadd.f32 %v500_v40, %v391_v32 }
 0x14a   : > { %21829 = vst [vmem:[#allocation2_spill] sm:$0xff] %v18879_v37  ;;  %v18885_v28 = vpack.c.bf16 %v18879_v37, %v18877_v36  ;;  %v501_v43 = vmul.f32 %v493_v41, %v390_v25 }
 0x14b   : > { %v18278_v44 = vpop.eup %18277  ;;  %v502_v45 = vmul.f32 %v494_v42, %v390_v25 }
 0x14c   : > { %v18280_v21 = vpop.eup %18279  ;;  %v18889_v47 = vadd.f32 %v501_v43, %v391_v32  ;;  %v495_v50 = vmul.f32 %v18278_v44, %v18830_v39  ;;  %17006 = vmatprep.mubr.msk.bf16.mxu1 %vm392_vm0, %v18885_v28  ;;  %17030 = vmatprep.mubr.msk.bf16.mxu0 %vm392_vm0, %v18885_v28 }
 0x14d   : > { %v496_v29 = vmul.f32 %v18280_v21, %v18838_v48  ;;  %v18904_v54 = vadd.f32 %v502_v45, %v391_v32 }
 0x14e   : > { %21830 = vst [vmem:[#allocation3_spill] sm:$0xff] %v18889_v47  ;;  %v18899_v38 = vpack.c.bf16 %v18889_v47, %v18887_v46  ;;  %v503_v51 = vmul.f32 %v495_v50, %v390_v25 }
 0x14f   : > { %v18282_v53 = vpop.eup %18281  ;;  %21831 = vst [vmem:[#allocation4_spill] sm:$0xff] %v18904_v54  ;;  %v504_v55 = vmul.f32 %v496_v29, %v390_v25  ;;  %v19041_v29 = vld [vmem:[%s19036_s27] ss:$0 sm:$0xff] }
 0x150   : > { %v18906_v39 = vadd.f32 %v503_v51, %v391_v32  ;;  %v497_v56 = vmul.f32 %v18282_v53, %v18840_v49  ;;  %17007 = vmatmul.mubr.msk.bf16.vlgmr.msra.gmra.mxu1 %vm392_vm0, %v18899_v38  ;;  %17031 = vmatmul.mubr.msk.bf16.vlgmr.msra.gmra.mxu0 %vm392_vm0, %v18899_v38 }
 0x151   : > { %17015 = vmatpush3.bf16.msra.mxu1 %v18865_v60  ;;  %v18918_v58 = vadd.f32 %v504_v55, %v391_v32  ;;  %v21811_v60 = vmov 0.0  }
 0x152   : > { %21832 = vst [vmem:[#allocation5_spill] sm:$0xff] %v18906_v39  ;;  %v18916_v48 = vpack.c.bf16 %v18906_v39, %v18904_v54  ;;  %v505_v57 = vmul.f32 %v497_v56, %v390_v25  ;;  %17016 = vmatprep.subr.bf16.mxu1 %v18134_v52  ;;  %17058 = vmatprep.subr.mxu0 %v21811_v60 }
 0x153   : > { %21833 = vst [vmem:[#allocation6_spill] sm:$0xff] %v18918_v58 }
 0x154   : > { %v18920_v59 = vadd.f32 %v505_v57, %v391_v32  ;;  %17010 = vmatprep.mubr.msk.bf16.mxu1 %vm392_vm0, %v18916_v48  ;;  %17034 = vmatprep.mubr.msk.bf16.mxu0 %vm392_vm0, %v18916_v48  ;;  %v19047_v57 = vld [vmem:[%s19036_s27 + $0x1] ss:$0 sm:$0xff] }
 0x155   : > { %17017 = vmatpush3.bf16.msra.mxu1 %v18134_v52 }
 0x156   : > { %21834 = vst [vmem:[#allocation7_spill] sm:$0xff] %v18920_v59  ;;  %v18928_v49 = vpack.c.bf16 %v18920_v59, %v18918_v58  ;;  %17038 = vmatprep.subr.mxu1 %v21811_v60 }
 0x158   : > { %17011 = vmatmul.mubr.msk.bf16.gmra.mxu1 %vm392_vm0, %v18928_v49  ;;  %17035 = vmatmul.mubr.msk.bf16.gmra.mxu0 %vm392_vm0, %v18928_v49 }
 0x159   : > { %17018 = vmatprep.mubr.msk.bf16.mxu1 %vm392_vm0, %v18885_v28  ;;  %17060 = vmatprep.mubr.msk.f32.mxu0 %vm18724_vm1, %v21811_v60 }
 0x160   : > { %17019 = vmatmul.mubr.msk.bf16.vlgmr.msra.gmra.mxu1 %vm392_vm0, %v18899_v38 }
 0x161   : > { %17022 = vmatprep.mubr.msk.bf16.mxu1 %vm392_vm0, %v18916_v48 }
 0x168   : > { %17023 = vmatmul.mubr.msk.bf16.gmra.mxu1 %vm392_vm0, %v18928_v49 }
 0x169   : > { %17040 = vmatprep.mubr.msk.f32.mxu1 %vm18724_vm1, %v21811_v60 }
 0x210   : > { %v17008_v61 = vpop.f32.mrf.mxu1  ;;  %v18973_v19 = vpop.f32.mrf.mxu0 }
 0x211   : > { %v598_v23 = vadd.f32 %v17008_v61, %v18959_v10 }
 0x212   : > { %v589_v62 = vpop.f32.mrf.mxu1  ;;  %v755_v27 = vpop.f32.mrf.mxu0 }
 0x213   : > { %v590_v11 = vadd.f32 %v589_v62, %v18959_v10  ;;  %v756_v34 = vadd.f32 %v755_v27, %v18993_v31 }
 0x214   : > { %v17009_v63 = vpop.f32.mrf.mxu1  ;;  %v19005_v20 = vpop.f32.mrf.mxu0 }
 0x215   : > { %v601_v32 = vadd.f32 %v17009_v63, %v18959_v10 }
 0x216   : > { %v592_v0 = vpop.f32.mrf.mxu1  ;;  %v758_v42 = vpop.f32.mrf.mxu0 }
 0x217   : > { %v593_v15 = vadd.f32 %v592_v0, %v18959_v10  ;;  %v759_v44 = vadd.f32 %v758_v42, %v18993_v31 }
 0x218   : > { %v17012_v1 = vpop.f32.mrf.mxu1  ;;  %v19030_v45 = vpop.f32.mrf.mxu0 }
 0x219   : > { %v614_v33 = vadd.f32 %v17012_v1, %v18959_v10 }
 0x21a   : > { %v605_v2 = vpop.f32.mrf.mxu1  ;;  %v19038_v21 = vpop.f32.mrf.mxu0 }
 0x21b   : > { %v606_v24 = vadd.f32 %v605_v2, %v18959_v10 }
 0x21c   : > { %v18948_v3 = vpop.f32.mrf.mxu1  ;;  %v19043_v52 = vpop.f32.mrf.mxu0 }
 0x21d   : > { %v617_v43 = vadd.f32 %v18948_v3, %v18959_v10 }
 0x21e   : > { %v608_v4 = vpop.f32.mrf.mxu1  ;;  %v19050_v63 = vpop.f32.mrf.mxu0 }
 0x21f   : > { %v609_v40 = vadd.f32 %v608_v4, %v18959_v10  ;;  %v19054_v4 = vld [vmem:[%s19036_s27 + $0x2] ss:$0 sm:$0xff] }
 0x220   : > { %v17020_v5 = vpop.f32.mrf.mxu1 }
 0x221   : > { %v681_v17 = vadd.f32 %v17020_v5, %v18953_v6 }
 0x222   : > { %v672_v7 = vpop.f32.mrf.mxu1 }
 0x223   : > { %v673_v8 = vadd.f32 %v672_v7, %v18953_v6 }
 0x224   : > { %v17021_v9 = vpop.f32.mrf.mxu1 }
 0x225   : > { %17039 = vmatpush3.xpose.msk.msra.mxu1 %vm786_vm2, %v673_v8  ;;  %v684_v25 = vadd.f32 %v17021_v9, %v18953_v6 }
 0x226   : > { %v675_v12 = vpop.f32.mrf.mxu1  ;;  %17043 = vmatprep.subr.mxu1 %v21811_v60 }
 0x227   : > { %v676_v13 = vadd.f32 %v675_v12, %v18953_v6  ;;  %v19058_v12 = vld [vmem:[%s19036_s27 + $0x4] ss:$0 sm:$0xff] }
 0x228   : > { %v17024_v14 = vpop.f32.mrf.mxu1  ;;  %17041 = vmatmul.mubr.msk.f32.vlgmr.msra.gmra.mxu1 %vm786_vm2, %v590_v11 }
 0x229   : > { %17044 = vmatpush3.xpose.msk.msra.mxu1 %vm786_vm2, %v676_v13  ;;  %17045 = vmatprep.mubr.msk.f32.mxu1 %vm18724_vm1, %v21811_v60  ;;  %v697_v26 = vadd.f32 %v17024_v14, %v18953_v6 }
 0x22a   : > { %v688_v16 = vpop.f32.mrf.mxu1  ;;  %17048 = vmatprep.subr.mxu1 %v21811_v60 }
 0x22b   : > { %v689_v18 = vadd.f32 %v688_v16, %v18953_v6  ;;  %v19062_v16 = vld [vmem:[%s19036_s27 + $0x3] ss:$0 sm:$0xff] }
 0x22c   : > { %v17025_v22 = vpop.f32.mrf.mxu1  ;;  %17046 = vmatmul.mubr.msk.f32.vlgmr.msra.gmra.mxu1 %vm786_vm2, %v593_v15 }
 0x22d   : > { %17049 = vmatpush3.xpose.msk.msra.mxu1 %vm786_vm2, %v681_v17  ;;  %17059 = vmatpush3.xpose.msk.msra.mxu0 %vm786_vm2, %v689_v18  ;;  %v700_v41 = vadd.f32 %v17025_v22, %v18953_v6 }
 0x22e   : > { %17050 = vmatprep.mubr.msk.f32.mxu1 %vm18724_vm1, %v21811_v60  ;;  %17053 = vmatprep.subr.mxu1 %v21811_v60  ;;  %v691_v30 = vpop.f32.mrf.mxu1 }
 0x22f   : > { %17068 = vmatprep.subr.mxu0 %v21811_v60  ;;  %v692_v35 = vadd.f32 %v691_v30, %v18953_v6 }
 0x230   : > { %17051 = vmatmul.mubr.msk.f32.vlgmr.msra.gmra.mxu1 %vm786_vm2, %v598_v23  ;;  %17061 = vmatmul.mubr.msk.f32.vlgmr.msra.gmra.mxu0 %vm786_vm2, %v606_v24 }
 0x231   : > { %17054 = vmatpush3.xpose.msk.msra.mxu1 %vm786_vm2, %v684_v25  ;;  %17069 = vmatpush3.xpose.msk.msra.mxu0 %vm786_vm2, %v697_v26  ;;  %v19067_v26 = vld [vmem:[%s19036_s27 + $0x6] ss:$0 sm:$0xff] }
 0x232   : > { %17055 = vmatprep.mubr.msk.f32.mxu1 %vm18724_vm1, %v21811_v60  ;;  %17070 = vmatprep.mubr.msk.f32.mxu0 %vm18724_vm1, %v21811_v60 }
 0x233   : > { %17063 = vmatprep.subr.mxu1 %v21811_v60  ;;  %17078 = vmatprep.subr.mxu0 %v21811_v60 }
 0x234   : > { %17056 = vmatmul.mubr.msk.f32.vlgmr.msra.gmra.mxu1 %vm786_vm2, %v601_v32  ;;  %17071 = vmatmul.mubr.msk.f32.vlgmr.msra.gmra.mxu0 %vm786_vm2, %v614_v33  ;;  %v19071_v32 = vld [vmem:[%s19036_s27 + $0x5] ss:$0 sm:$0xff] }
 0x235   : > { %17064 = vmatpush3.xpose.msk.msra.mxu1 %vm786_vm2, %v692_v35  ;;  %17079 = vmatpush3.msra.mxu0 %v756_v34 }
 0x236   : > { %17065 = vmatprep.mubr.msk.f32.mxu1 %vm18724_vm1, %v21811_v60  ;;  %17073 = vmatprep.subr.mxu1 %v21811_v60 }
 0x237   : > { %17080 = vmatprep.mubr.msk.f32.mxu0 %vm18724_vm1, %v21811_v60  ;;  %17088 = vmatprep.subr.mxu0 %v21811_v60 }
 0x238   : > { %17066 = vmatmul.mubr.msk.f32.vlgmr.msra.gmra.mxu1 %vm786_vm2, %v609_v40 }
 0x239   : > { %17074 = vmatpush3.xpose.msk.msra.mxu1 %vm786_vm2, %v700_v41  ;;  %17075 = vmatprep.mubr.msk.f32.mxu1 %vm18724_vm1, %v21811_v60 }
 0x23a   : > { %17083 = vmatprep.subr.mxu1 %v21811_v60 }
 0x23c   : > { %17076 = vmatmul.mubr.msk.f32.vlgmr.msra.gmra.mxu1 %vm786_vm2, %v617_v43 }
 0x23d   : > { %17084 = vmatpush3.msra.mxu1 %v759_v44  ;;  %17085 = vmatprep.mubr.msk.f32.mxu1 %vm18724_vm1, %v21811_v60  ;;  %v19078_v44 = vld [vmem:[%s19036_s27 + $0x7] ss:$0 sm:$0xff] }
 0x23e   : > { %17093 = vmatprep.subr.mxu1 %v21811_v60 }
 0x2e8   : > { %v859_v50 = vpop.f32.mrf.mxu1 }
 0x2e9   : > { %v1395_v51 = vmul.f32 0.35355338, %v859_v50 }
 0x2ea   : > { %v17042_v53 = vpop.f32.mrf.mxu1 }
 0x2eb   : > { %v1451_v55 = vadd.f32 %v19041_v29, %v1395_v51 }
 0x2ec   : > { %v935_v56 = vpop.f32.mrf.mxu1 }
 0x2ed   : > { %v1396_v61 = vmul.f32 0.35355338, %v935_v56  ;;  %v1459_v62 = vsel %vm786_vm2, %v1451_v55, -inf }
 0x2ee   : > { %1460 = vmax.xlane.f32.xlu1 %v1459_v62  ;;  %v17047_v0 = vpop.f32.mrf.mxu1 }
 0x2ef   : > { %v1452_v1 = vadd.f32 %v19047_v57, %v1396_v61 }
 0x2f0   : > { %v1011_v2 = vpop.f32.mrf.mxu1  ;;  %v1163_v3 = vpop.f32.mrf.mxu0 }
 0x2f1   : > { %v1397_v5 = vmul.f32 0.35355338, %v1011_v2  ;;  %v1399_v7 = vmul.f32 0.35355338, %v1163_v3  ;;  %v1462_v8 = vsel %vm786_vm2, %v1452_v1, -inf }
 0x2f2   : > { %1463 = vmax.xlane.f32.xlu0 %v1462_v8  ;;  %v17052_v9 = vpop.f32.mrf.mxu1  ;;  %v17062_v11 = vpop.f32.mrf.mxu0 }
 0x2f3   : > { %v1453_v13 = vadd.f32 %v19054_v4, %v1397_v5  ;;  %v1455_v23 = vadd.f32 %v19058_v12, %v1399_v7 }
 0x2f4   : > { %v1087_v14 = vpop.f32.mrf.mxu1  ;;  %v1315_v15 = vpop.f32.mrf.mxu0 }
 0x2f5   : > { %v1398_v17 = vmul.f32 0.35355338, %v1087_v14  ;;  %v1401_v18 = vmul.f32 0.35355338, %v1315_v15  ;;  %v1465_v22 = vsel %vm786_vm2, %v1453_v13, -inf  ;;  %v1471_v35 = vsel %vm786_vm2, %v1455_v23, -inf }
 0x2f6   : > { %1466 = vmax.xlane.f32.xlu1 %v1465_v22  ;;  %v17057_v24 = vpop.f32.mrf.mxu1  ;;  %v17072_v25 = vpop.f32.mrf.mxu0 }
 0x2f7   : > { %v1454_v27 = vadd.f32 %v19062_v16, %v1398_v17  ;;  %v1457_v40 = vadd.f32 %v19067_v26, %v1401_v18 }
 0x2f8   : > { %v1239_v30 = vpop.f32.mrf.mxu1 }
 0x2f9   : > { %v1400_v33 = vmul.f32 0.35355338, %v1239_v30  ;;  %v1468_v34 = vsel %vm786_vm2, %v1454_v27, -inf  ;;  %v1477_v53 = vsel %vm786_vm2, %v1457_v40, -inf }
 0x2fa   : > { %1469 = vmax.xlane.f32.xlu0 %v1468_v34  ;;  %v17067_v41 = vpop.f32.mrf.mxu1  ;;  %1472 = vmax.xlane.f32.xlu1 %v1471_v35 }
 0x2fb   : > { %v1456_v42 = vadd.f32 %v19071_v32, %v1400_v33 }
 0x2fc   : > { %v1391_v43 = vpop.f32.mrf.mxu1 }
 0x2fd   : > { %v1402_v50 = vmul.f32 0.35355338, %v1391_v43  ;;  %v1474_v51 = vsel %vm786_vm2, %v1456_v42, -inf }
 0x2fe   : > { %1475 = vmax.xlane.f32.xlu0 %v1474_v51  ;;  %v17077_v56 = vpop.f32.mrf.mxu1  ;;  %1478 = vmax.xlane.f32.xlu1 %v1477_v53 }
 0x2ff   : > { %v1458_v61 = vadd.f32 %v19078_v44, %v1402_v50 }
 0x301   : > { %v1480_v62 = vsel %vm786_vm2, %v1458_v61, -inf }
 0x302   : > { %1481 = vmax.xlane.f32.xlu0 %v1480_v62 }
 0x377   : > { %v1461_v0 = vpop.xlane.xlu1 %1460 }
 0x378   : > { %v1483_v2 = vsub.f32 %v1451_v55, %v1461_v0 }
 0x37a   : > { %v1491_v3 = vmul.f32 1.442695, %v1483_v2 }
 0x37b   : > { %v1464_v5 = vpop.xlane.xlu0 %1463 }
 0x37c   : > { %18283 = vpow2.f32 %v1491_v3  ;;  %v1484_v7 = vsub.f32 %v1452_v1, %v1464_v5 }
 0x37e   : > { %v1493_v8 = vmul.f32 1.442695, %v1484_v7 }
 0x37f   : > { %v1467_v9 = vpop.xlane.xlu1 %1466 }
 0x380   : > { %18285 = vpow2.f32 %v1493_v8  ;;  %v1485_v11 = vsub.f32 %v1453_v13, %v1467_v9 }
 0x382   : > { %v1495_v14 = vmul.f32 1.442695, %v1485_v11 }
 0x383   : > { %v1470_v15 = vpop.xlane.xlu0 %1469  ;;  %v1473_v17 = vpop.xlane.xlu1 %1472 }
 0x384   : > { %18287 = vpow2.f32 %v1495_v14  ;;  %v1486_v18 = vsub.f32 %v1454_v27, %v1470_v15  ;;  %v1487_v22 = vsub.f32 %v1455_v23, %v1473_v17 }
 0x386   : > { %v1497_v24 = vmul.f32 1.442695, %v1486_v18  ;;  %v1499_v25 = vmul.f32 1.442695, %v1487_v22 }
 0x387   : > { %v1476_v30 = vpop.xlane.xlu0 %1475  ;;  %v1479_v33 = vpop.xlane.xlu1 %1478 }
 0x388   : > { %18289 = vpow2.f32 %v1497_v24  ;;  %v1488_v55 = vsub.f32 %v1456_v42, %v1476_v30  ;;  %v1489_v34 = vsub.f32 %v1457_v40, %v1479_v33  ;;  %v764_v24 = vadd.f32 %v18973_v19, %v18993_v31 }
 0x389   : > { %v18284_v35 = vpop.eup %18283  ;;  %18291 = vpow2.f32 %v1499_v25  ;;  %v767_v33 = vadd.f32 %v19005_v20, %v18993_v31 }
 0x38a   : > { %v1501_v1 = vmul.f32 1.442695, %v1488_v55  ;;  %v1503_v41 = vmul.f32 1.442695, %v1489_v34  ;;  %v1507_v43 = vsel %vm786_vm2, %v18284_v35, 0.0 }
 0x38b   : > { %v1482_v13 = vpop.xlane.xlu0 %1481  ;;  %1508 = vadd.xlane.f32.xlu1 %v1507_v43  ;;  %v775_v43 = vadd.f32 %v19050_v63, %v18993_v31 }
 0x38c   : > { %18293 = vpow2.f32 %v1501_v1  ;;  %v1490_v50 = vsub.f32 %v1458_v61, %v1482_v13 }
 0x38d   : > { %v18286_v51 = vpop.eup %18285  ;;  %18295 = vpow2.f32 %v1503_v41 }
 0x38e   : > { %v1505_v23 = vmul.f32 1.442695, %v1490_v50  ;;  %v1510_v27 = vsel %vm786_vm2, %v18286_v51, 0.0  ;;  %v780_v50 = vadd.f32 %v19030_v45, %v18993_v31  ;;  %v783_v45 = vadd.f32 %v19043_v52, %v18993_v31 }
 0x38f   : > { %1511 = vadd.xlane.f32.xlu0 %v1510_v27 }
 0x390   : > { %18297 = vpow2.f32 %v1505_v23 }
 0x391   : > { %v18288_v53 = vpop.eup %18287 }
 0x392   : > { %v1513_v40 = vsel %vm786_vm2, %v18288_v53, 0.0 }
 0x393   : > { %1514 = vadd.xlane.f32.xlu1 %v1513_v40  ;;  %v18137_v40 = vld [vmem:[%s21803_s3 + $0x58] sm:$0xff]  }
 0x395   : > { %v18290_v42 = vpop.eup %18289 }
 0x396   : > { %v18292_v56 = vpop.eup %18291  ;;  %v1516_v62 = vsel %vm786_vm2, %v18290_v42, 0.0 }
 0x397   : > { %1517 = vadd.xlane.f32.xlu0 %v1516_v62  ;;  %v1519_v0 = vsel %vm786_vm2, %v18292_v56, 0.0  ;;  %v18139_v62 = vld [vmem:[%s21803_s3 + $0x98] sm:$0xff]  }
 0x398   : > { %1520 = vadd.xlane.f32.xlu1 %v1519_v0  ;;  %v18140_v0 = vld [vmem:[%s21803_s3 + $0x90] sm:$0xff]  }
 0x399   : > { %v19089_v61 = vpop.eup %18293 }
 0x39a   : > { %v19091_v2 = vpop.eup %18295  ;;  %v1522_v3 = vsel %vm786_vm2, %v19089_v61, 0.0 }
 0x39b   : > { %1523 = vadd.xlane.f32.xlu0 %v1522_v3  ;;  %v1525_v5 = vsel %vm786_vm2, %v19091_v2, 0.0 }
 0x39c   : > { %1526 = vadd.xlane.f32.xlu1 %v1525_v5 }
 0x39d   : > { %v19097_v7 = vpop.eup %18297 }
 0x39e   : > { %v1528_v8 = vsel %vm786_vm2, %v19097_v7, 0.0 }
 0x39f   : > { %1529 = vadd.xlane.f32.xlu0 %v1528_v8 }
 0x3ad   : > { %2155 = vrot.lane.b32.xlu1 %v18959_v10, %s18725_s15 }
 0x3b5   : > { %2242 = vrot.lane.b32.xlu0 %v18953_v6, %s18725_s15 }
 0x414   : > { %v1509_v9 = vpop.xlane.xlu1 %1508 }
 0x415   : > { %18299 = vrcp.f32 %v1509_v9 }
 0x418   : > { %v1512_v11 = vpop.xlane.xlu0 %1511 }
 0x419   : > { %18301 = vrcp.f32 %v1512_v11 }
 0x41c   : > { %v1515_v14 = vpop.xlane.xlu1 %1514 }
 0x41d   : > { %18303 = vrcp.f32 %v1515_v14 }
 0x420   : > { %v1518_v15 = vpop.xlane.xlu0 %1517 }
 0x421   : > { %18305 = vrcp.f32 %v1518_v15  ;;  %v1521_v17 = vpop.xlane.xlu1 %1520 }
 0x422   : > { %v18300_v18 = vpop.eup %18299  ;;  %18307 = vrcp.f32 %v1521_v17 }
 0x423   : > { %v1539_v22 = vmul.f32 %v18300_v18, %v18284_v35  ;;  %v772_v35 = vadd.f32 %v19038_v21, %v18993_v31  ;;  %v18135_v21 = vld [vmem:[%s21803_s3 + $0x18] sm:$0xff]  }
 0x424   : > { %v1524_v25 = vpop.xlane.xlu0 %1523 }
 0x425   : > { %18309 = vrcp.f32 %v1524_v25  ;;  %v1527_v10 = vpop.xlane.xlu1 %1526  ;;  %17081 = vmatmul.mubr.msk.f32.vlgmr.msra.gmra.mxu0 %vm786_vm2, %v1539_v22 }
 0x426   : > { %v18302_v6 = vpop.eup %18301  ;;  %18311 = vrcp.f32 %v1527_v10  ;;  %17089 = vmatpush3.msra.mxu0 %v764_v24  ;;  %17090 = vmatprep.mubr.msk.f32.mxu0 %vm18724_vm1, %v21811_v60 }
 0x427   : > { %v1540_v30 = vmul.f32 %v18302_v6, %v18286_v51  ;;  %17098 = vmatprep.subr.mxu0 %v21811_v60 }
 0x428   : > { %v1530_v55 = vpop.xlane.xlu0 %1529 }
 0x429   : > { %18313 = vrcp.f32 %v1530_v55  ;;  %17086 = vmatmul.mubr.msk.f32.vlgmr.msra.gmra.mxu1 %vm786_vm2, %v1540_v30 }
 0x42a   : > { %v18304_v19 = vpop.eup %18303  ;;  %17094 = vmatpush3.msra.mxu1 %v767_v33  ;;  %17095 = vmatprep.mubr.msk.f32.mxu1 %vm18724_vm1, %v21811_v60 }
 0x42b   : > { %v1541_v34 = vmul.f32 %v18304_v19, %v18288_v53  ;;  %17103 = vmatprep.subr.mxu1 %v21811_v60  ;;  %v18136_v53 = vld [vmem:[%s21803_s3 + $0x10] sm:$0xff]  }
 0x42d   : > { %17091 = vmatmul.mubr.msk.f32.vlgmr.msra.gmra.mxu0 %vm786_vm2, %v1541_v34 }
 0x42e   : > { %v18306_v1 = vpop.eup %18305  ;;  %17099 = vmatpush3.msra.mxu0 %v772_v35  ;;  %17100 = vmatprep.mubr.msk.f32.mxu0 %vm18724_vm1, %v21811_v60 }
 0x42f   : > { %v18308_v20 = vpop.eup %18307  ;;  %17108 = vmatprep.subr.mxu0 %v21811_v60  ;;  %v1542_v41 = vmul.f32 %v18306_v1, %v18290_v42 }
 0x430   : > { %v1543_v13 = vmul.f32 %v18308_v20, %v18292_v56  ;;  %v18138_v56 = vld [vmem:[%s21803_s3 + $0x50] sm:$0xff]   ;;  %v2243_v20 = vpop.permute.xlu0 %2242 }
 0x431   : > { %17096 = vmatmul.mubr.msk.f32.vlgmr.msra.gmra.mxu1 %vm786_vm2, %v1542_v41 }
 0x432   : > { %v18310_v51 = vpop.eup %18309  ;;  %17101 = vmatmul.mubr.msk.f32.vlgmr.msra.gmra.mxu0 %vm786_vm2, %v1543_v13  ;;  %17104 = vmatpush3.msra.mxu1 %v775_v43 }
 0x433   : > { %v18312_v23 = vpop.eup %18311  ;;  %17109 = vmatpush3.msra.mxu0 %v780_v50  ;;  %17105 = vmatprep.mubr.msk.f32.mxu1 %vm18724_vm1, %v21811_v60  ;;  %v1544_v63 = vmul.f32 %v18310_v51, %v19089_v61 }
 0x434   : > { %17110 = vmatprep.mubr.msk.f32.mxu0 %vm18724_vm1, %v21811_v60  ;;  %17113 = vmatprep.subr.mxu1 %v21811_v60  ;;  %v1545_v27 = vmul.f32 %v18312_v23, %v19091_v2 }
 0x435   : > { %17118 = vmatprep.subr.bf16.mxu0 %v18135_v21  ;;  %17106 = vmatmul.mubr.msk.f32.vlgmr.msra.gmra.mxu1 %vm786_vm2, %v1544_v63 }
 0x436   : > { %v18314_v42 = vpop.eup %18313  ;;  %17111 = vmatmul.mubr.msk.f32.vlgmr.msra.gmra.mxu0 %vm786_vm2, %v1545_v27  ;;  %17114 = vmatpush3.msra.mxu1 %v783_v45 }
 0x437   : > { %17119 = vmatpush3.bf16.msra.mxu0 %v18135_v21  ;;  %17122 = vmatprep.mubr.msk.bf16.mxu0 %vm392_vm0, %v18885_v28  ;;  %v1546_v52 = vmul.f32 %v18314_v42, %v19097_v7  ;;  %v2156_v21 = vpop.permute.xlu1 %2155 }
 0x438   : > { %17115 = vmatprep.mubr.msk.f32.mxu1 %vm18724_vm1, %v21811_v60  ;;  %17120 = vmatprep.subr.bf16.mxu0 %v18136_v53 }
 0x439   : > { %17130 = vmatprep.subr.bf16.mxu1 %v18137_v40  ;;  %17116 = vmatmul.mubr.msk.f32.vlgmr.msra.gmra.mxu1 %vm786_vm2, %v1546_v52 }
 0x43a   : > { %17131 = vmatpush3.bf16.msra.mxu1 %v18137_v40  ;;  %17134 = vmatprep.mubr.msk.bf16.mxu1 %vm392_vm0, %v18885_v28 }
 0x43b   : > { %17121 = vmatpush3.bf16.msra.mxu0 %v18136_v53  ;;  %17132 = vmatprep.subr.bf16.mxu1 %v18138_v56 }
 0x43c   : > { %17142 = vmatprep.subr.bf16.mxu0 %v18139_v62 }
 0x43e   : > { %17123 = vmatmul.mubr.msk.bf16.vlgmr.msra.gmra.mxu0 %vm392_vm0, %v18899_v38  ;;  %17133 = vmatpush3.bf16.msra.mxu1 %v18138_v56 }
 0x43f   : > { %17126 = vmatprep.mubr.msk.bf16.mxu0 %vm392_vm0, %v18916_v48  ;;  %17143 = vmatpush3.bf16.msra.mxu0 %v18139_v62 }
 0x440   : > { %17144 = vmatprep.subr.bf16.mxu0 %v18140_v0  ;;  %17154 = vmatprep.subr.mxu1 %v21811_v60 }
 0x441   : > { %17135 = vmatmul.mubr.msk.bf16.vlgmr.msra.gmra.mxu1 %vm392_vm0, %v18899_v38 }
 0x442   : > { %17138 = vmatprep.mubr.msk.bf16.mxu1 %vm392_vm0, %v18916_v48 }
 0x443   : > { %17145 = vmatpush3.bf16.msra.mxu0 %v18140_v0 }
 0x444   : > { %17174 = vmatprep.subr.mxu0 %v21811_v60 }
 0x446   : > { %17127 = vmatmul.mubr.msk.bf16.gmra.mxu0 %vm392_vm0, %v18928_v49 }
 0x447   : > { %17146 = vmatprep.mubr.msk.bf16.mxu0 %vm392_vm0, %v18885_v28 }
 0x449   : > { %17139 = vmatmul.mubr.msk.bf16.gmra.mxu1 %vm392_vm0, %v18928_v49 }
 0x44a   : > { %17156 = vmatprep.mubr.msk.f32.mxu1 %vm18724_vm1, %v21811_v60 }
 0x44e   : > { %17147 = vmatmul.mubr.msk.bf16.vlgmr.msra.gmra.mxu0 %vm392_vm0, %v18899_v38 }
 0x44f   : > { %17150 = vmatprep.mubr.msk.bf16.mxu0 %vm392_vm0, %v18916_v48 }
 0x456   : > { %17151 = vmatmul.mubr.msk.bf16.gmra.mxu0 %vm392_vm0, %v18928_v49 }
 0x457   : > { %17176 = vmatprep.mubr.msk.f32.mxu0 %vm18724_vm1, %v21811_v60 }
 0x4e5   : > { %v19192_v61 = vpop.f32.mrf.mxu0 }
 0x4e7   : > { %v17082_v2 = vpop.f32.mrf.mxu0 }
 0x4e9   : > { %v19194_v3 = vpop.f32.mrf.mxu1 }
 0x4ea   : > { %v2131_v5 = vpack.c.bf16 %v19194_v3, %v19192_v61  ;;  %v16046_v61 = vld [vmem:[%s21804_s4 + $0x4] sm:$0xf] }
 0x4eb   : > { %v17087_v7 = vpop.f32.mrf.mxu1  ;;  %v3713_v3 = vsel %vm3711_vm3, %v16046_v61, 0 }
 0x4ed   : > { %v19198_v8 = vpop.f32.mrf.mxu0 }
 0x4ef   : > { %v17092_v9 = vpop.f32.mrf.mxu0 }
 0x4f1   : > { %v19200_v11 = vpop.f32.mrf.mxu1 }
 0x4f2   : > { %v2132_v14 = vpack.c.bf16 %v19200_v11, %v19198_v8  ;;  %v19204_v15 = vpop.f32.mrf.mxu0  ;;  %v19404_v8 = vld [vmem:[%s21802_s2 + $0x2] ss:$0 sm:$0xff] }
 0x4f3   : > { %v17097_v17 = vpop.f32.mrf.mxu1 }
 0x4f4   : > { %v17102_v18 = vpop.f32.mrf.mxu0 }
 0x4f5   : > { %v19206_v22 = vpop.f32.mrf.mxu1 }
 0x4f6   : > { %v2133_v24 = vpack.c.bf16 %v19206_v22, %v19204_v15  ;;  %v19210_v25 = vpop.f32.mrf.mxu0 }
 0x4f7   : > { %v17107_v10 = vpop.f32.mrf.mxu1 }
 0x4f8   : > { %v17112_v6 = vpop.f32.mrf.mxu0 }
 0x4f9   : > { %v19212_v30 = vpop.f32.mrf.mxu1 }
 0x4fa   : > { %v2134_v33 = vpack.c.bf16 %v19212_v30, %v19210_v25 }
 0x4fb   : > { %v17117_v55 = vpop.f32.mrf.mxu1 }
 0x4fe   : > { %v17124_v19 = vpop.f32.mrf.mxu0 }
 0x4ff   : > { %v2201_v0 = vadd.f32 %v17124_v19, %v2156_v21 }
 0x500   : > { %v2192_v34 = vpop.f32.mrf.mxu0 }
 0x501   : > { %v17136_v35 = vpop.f32.mrf.mxu1  ;;  %v2193_v51 = vadd.f32 %v2192_v34, %v2156_v21 }
 0x502   : > { %v17125_v1 = vpop.f32.mrf.mxu0  ;;  %v2288_v42 = vadd.f32 %v17136_v35, %v2243_v20 }
 0x503   : > { %v2279_v41 = vpop.f32.mrf.mxu1  ;;  %v2204_v10 = vadd.f32 %v17125_v1, %v2156_v21 }
 0x504   : > { %v2195_v43 = vpop.f32.mrf.mxu0  ;;  %v2280_v13 = vadd.f32 %v2279_v41, %v2243_v20 }
 0x505   : > { %v17137_v50 = vpop.f32.mrf.mxu1  ;;  %v2196_v53 = vadd.f32 %v2195_v43, %v2156_v21 }
 0x506   : > { %17155 = vmatpush3.xpose.msk.msra.mxu1 %vm786_vm2, %v2280_v13  ;;  %v17128_v63 = vpop.f32.mrf.mxu0  ;;  %v2291_v7 = vadd.f32 %v17137_v50, %v2243_v20 }
 0x507   : > { %v2282_v23 = vpop.f32.mrf.mxu1  ;;  %17159 = vmatprep.subr.mxu1 %v21811_v60  ;;  %v2217_v6 = vadd.f32 %v17128_v63, %v2156_v21 }
 0x508   : > { %v2283_v45 = vadd.f32 %v2282_v23, %v2243_v20  ;;  %v2208_v52 = vpop.f32.mrf.mxu0 }
 0x509   : > { %v17140_v27 = vpop.f32.mrf.mxu1  ;;  %17157 = vmatmul.mubr.msk.f32.vlgmr.msra.gmra.mxu1 %vm786_vm2, %v2193_v51  ;;  %v2209_v2 = vadd.f32 %v2208_v52, %v2156_v21 }
 0x50a   : > { %17160 = vmatpush3.xpose.msk.msra.mxu1 %vm786_vm2, %v2283_v45  ;;  %17161 = vmatprep.mubr.msk.f32.mxu1 %vm18724_vm1, %v21811_v60  ;;  %v17129_v9 = vpop.f32.mrf.mxu0  ;;  %v2304_v17 = vadd.f32 %v17140_v27, %v2243_v20 }
 0x50b   : > { %v2295_v40 = vpop.f32.mrf.mxu1  ;;  %17164 = vmatprep.subr.mxu1 %v21811_v60  ;;  %v2220_v1 = vadd.f32 %v17129_v9, %v2156_v21 }
 0x50c   : > { %v2296_v56 = vadd.f32 %v2295_v40, %v2243_v20  ;;  %v2211_v55 = vpop.f32.mrf.mxu0 }
 0x50d   : > { %v17141_v62 = vpop.f32.mrf.mxu1  ;;  %17162 = vmatmul.mubr.msk.f32.vlgmr.msra.gmra.mxu1 %vm786_vm2, %v2196_v53  ;;  %v2212_v34 = vadd.f32 %v2211_v55, %v2156_v21 }
 0x50e   : > { %17165 = vmatpush3.xpose.msk.msra.mxu1 %vm786_vm2, %v2288_v42  ;;  %17175 = vmatpush3.xpose.msk.msra.mxu0 %vm786_vm2, %v2296_v56  ;;  %v2307_v35 = vadd.f32 %v17141_v62, %v2243_v20  ;;  %v19256_v41 = vpop.f32.mrf.mxu0 }
 0x50f   : > { %17166 = vmatprep.mubr.msk.f32.mxu1 %vm18724_vm1, %v21811_v60  ;;  %17169 = vmatprep.subr.mxu1 %v21811_v60  ;;  %v2298_v18 = vpop.f32.mrf.mxu1 }
 0x510   : > { %17184 = vmatprep.subr.mxu0 %v21811_v60  ;;  %v2299_v19 = vadd.f32 %v2298_v18, %v2243_v20  ;;  %v19258_v43 = vpop.f32.mrf.mxu0 }
 0x511   : > { %17167 = vmatmul.mubr.msk.f32.vlgmr.msra.gmra.mxu1 %vm786_vm2, %v2201_v0  ;;  %17177 = vmatmul.mubr.msk.f32.vlgmr.msra.gmra.mxu0 %vm786_vm2, %v2209_v2 }
 0x512   : > { %17170 = vmatpush3.xpose.msk.msra.mxu1 %vm786_vm2, %v2291_v7  ;;  %17185 = vmatpush3.xpose.msk.msra.mxu0 %vm786_vm2, %v2304_v17  ;;  %v19260_v20 = vpop.f32.mrf.mxu0 }
 0x513   : > { %17171 = vmatprep.mubr.msk.f32.mxu1 %vm18724_vm1, %v21811_v60  ;;  %17186 = vmatprep.mubr.msk.f32.mxu0 %vm18724_vm1, %v21811_v60 }
 0x514   : > { %17179 = vmatprep.subr.mxu1 %v21811_v60  ;;  %17194 = vmatprep.subr.mxu0 %v21811_v60  ;;  %v19262_v13 = vpop.f32.mrf.mxu0 }
 0x515   : > { %17172 = vmatmul.mubr.msk.f32.vlgmr.msra.gmra.mxu1 %vm786_vm2, %v2204_v10  ;;  %17187 = vmatmul.mubr.msk.f32.vlgmr.msra.gmra.mxu0 %vm786_vm2, %v2217_v6 }
 0x516   : > { %17180 = vmatpush3.xpose.msk.msra.mxu1 %vm786_vm2, %v2299_v19  ;;  %17181 = vmatprep.mubr.msk.f32.mxu1 %vm18724_vm1, %v21811_v60  ;;  %v19264_v50 = vpop.f32.mrf.mxu0 }
 0x517   : > { %17189 = vmatprep.subr.mxu1 %v21811_v60  ;;  %17196 = vmatprep.mubr.msk.f32.mxu0 %vm18724_vm1, %v21811_v60 }
 0x518   : > { %v19266_v51 = vpop.f32.mrf.mxu0 }
 0x519   : > { %17182 = vmatmul.mubr.msk.f32.vlgmr.msra.gmra.mxu1 %vm786_vm2, %v2212_v34 }
 0x51a   : > { %17190 = vmatpush3.xpose.msk.msra.mxu1 %vm786_vm2, %v2307_v35  ;;  %17191 = vmatprep.mubr.msk.f32.mxu1 %vm18724_vm1, %v21811_v60  ;;  %v19268_v63 = vpop.f32.mrf.mxu0 }
 0x51b   : > { %17199 = vmatprep.subr.mxu1 %v21811_v60 }
 0x51c   : > { %v19272_v52 = vpop.f32.mrf.mxu0 }
 0x51d   : > { %17192 = vmatmul.mubr.msk.f32.vlgmr.msra.gmra.mxu1 %vm786_vm2, %v2220_v1 }
 0x51e   : > { %17201 = vmatprep.mubr.msk.f32.mxu1 %vm18724_vm1, %v21811_v60 }
 0x5c9   : > { %v2469_v21 = vpop.f32.mrf.mxu1 }
 0x5ca   : > { %v3005_v23 = vmul.f32 0.35355338, %v2469_v21 }
 0x5cb   : > { %v17158_v45 = vpop.f32.mrf.mxu1 }
 0x5cc   : > { %v3013_v27 = vadd.f32 %v19041_v29, %v3005_v23 }
 0x5cd   : > { %v2545_v53 = vpop.f32.mrf.mxu1 }
 0x5ce   : > { %v3006_v40 = vmul.f32 0.35355338, %v2545_v53  ;;  %v3021_v42 = vsel %vm786_vm2, %v3013_v27, -inf }
 0x5cf   : > { %3022 = vmax.xlane.f32.xlu1 %v3021_v42  ;;  %v17163_v56 = vpop.f32.mrf.mxu1 }
 0x5d0   : > { %v3014_v62 = vadd.f32 %v19047_v57, %v3006_v40 }
 0x5d1   : > { %v2621_v0 = vpop.f32.mrf.mxu1  ;;  %v2773_v2 = vpop.f32.mrf.mxu0 }
 0x5d2   : > { %v3007_v7 = vmul.f32 0.35355338, %v2621_v0  ;;  %v3009_v9 = vmul.f32 0.35355338, %v2773_v2  ;;  %v3024_v17 = vsel %vm786_vm2, %v3014_v62, -inf }
 0x5d3   : > { %v17178_v18 = vpop.f32.mrf.mxu0  ;;  %3025 = vmax.xlane.f32.xlu0 %v3024_v17  ;;  %v17168_v10 = vpop.f32.mrf.mxu1 }
 0x5d4   : > { %v3015_v29 = vadd.f32 %v19054_v4, %v3007_v7  ;;  %v3017_v1 = vadd.f32 %v19058_v12, %v3009_v9 }
 0x5d5   : > { %v2697_v6 = vpop.f32.mrf.mxu1  ;;  %v2925_v55 = vpop.f32.mrf.mxu0 }
 0x5d6   : > { %v3008_v19 = vmul.f32 0.35355338, %v2697_v6  ;;  %v3011_v34 = vmul.f32 0.35355338, %v2925_v55  ;;  %v3027_v35 = vsel %vm786_vm2, %v3015_v29, -inf  ;;  %v3033_v40 = vsel %vm786_vm2, %v3017_v1, -inf }
 0x5d7   : > { %v17188_v57 = vpop.f32.mrf.mxu0  ;;  %3028 = vmax.xlane.f32.xlu0 %v3027_v35  ;;  %v17173_v21 = vpop.f32.mrf.mxu1 }
 0x5d8   : > { %v3016_v23 = vadd.f32 %v19062_v16, %v3008_v19  ;;  %v3019_v4 = vadd.f32 %v19067_v26, %v3011_v34 }
 0x5d9   : > { %v2849_v45 = vpop.f32.mrf.mxu1 }
 0x5da   : > { %v3010_v53 = vmul.f32 0.35355338, %v2849_v45  ;;  %v3030_v42 = vsel %vm786_vm2, %v3016_v23, -inf  ;;  %v3039_v7 = vsel %vm786_vm2, %v3019_v4, -inf }
 0x5db   : > { %3034 = vmax.xlane.f32.xlu0 %v3033_v40  ;;  %3031 = vmax.xlane.f32.xlu1 %v3030_v42  ;;  %v17183_v56 = vpop.f32.mrf.mxu1 }
 0x5dc   : > { %v3018_v0 = vadd.f32 %v19071_v32, %v3010_v53 }
 0x5dd   : > { %v3001_v2 = vpop.f32.mrf.mxu1 }
 0x5de   : > { %v3012_v12 = vmul.f32 0.35355338, %v3001_v2  ;;  %v3036_v9 = vsel %vm786_vm2, %v3018_v0, -inf }
 0x5df   : > { %3040 = vmax.xlane.f32.xlu0 %v3039_v7  ;;  %3037 = vmax.xlane.f32.xlu1 %v3036_v9  ;;  %v17193_v16 = vpop.f32.mrf.mxu1 }
 0x5e0   : > { %v3020_v17 = vadd.f32 %v19078_v44, %v3012_v12 }
 0x5e2   : > { %v3042_v18 = vsel %vm786_vm2, %v3020_v17, -inf }
 0x5e3   : > { %3043 = vmax.xlane.f32.xlu1 %v3042_v18 }
 0x658   : > { %v3023_v26 = vpop.xlane.xlu1 %3022 }
 0x659   : > { %v3045_v10 = vsub.f32 %v3013_v27, %v3023_v26 }
 0x65b   : > { %v3053_v6 = vmul.f32 1.442695, %v3045_v10 }
 0x65c   : > { %v3026_v55 = vpop.xlane.xlu0 %3025 }
 0x65d   : > { %18315 = vpow2.f32 %v3053_v6  ;;  %v3046_v32 = vsub.f32 %v3014_v62, %v3026_v55 }
 0x65f   : > { %v3055_v19 = vmul.f32 1.442695, %v3046_v32 }
 0x660   : > { %v3029_v34 = vpop.xlane.xlu0 %3028 }
 0x661   : > { %18317 = vpow2.f32 %v3055_v19  ;;  %v3047_v35 = vsub.f32 %v3015_v29, %v3029_v34 }
 0x663   : > { %v3057_v57 = vmul.f32 1.442695, %v3047_v35 }
 0x664   : > { %v3035_v21 = vpop.xlane.xlu0 %3034  ;;  %v3032_v45 = vpop.xlane.xlu1 %3031 }
 0x665   : > { %18319 = vpow2.f32 %v3057_v57  ;;  %v3049_v53 = vsub.f32 %v3017_v1, %v3035_v21  ;;  %v3048_v40 = vsub.f32 %v3016_v23, %v3032_v45  ;;  %v19313_v45 = vld [vmem:[%s21802_s2 + $0x3] ss:$0 sm:$0xff] }
 0x667   : > { %v3061_v44 = vmul.f32 1.442695, %v3049_v53  ;;  %v3059_v42 = vmul.f32 1.442695, %v3048_v40 }
 0x668   : > { %v3041_v56 = vpop.xlane.xlu0 %3040  ;;  %v3038_v2 = vpop.xlane.xlu1 %3037 }
 0x669   : > { %18321 = vpow2.f32 %v3061_v44  ;;  %v3051_v27 = vsub.f32 %v3019_v4, %v3041_v56  ;;  %v3050_v12 = vsub.f32 %v3018_v0, %v3038_v2 }
 0x66a   : > { %v18316_v7 = vpop.eup %18315  ;;  %18323 = vpow2.f32 %v3059_v42 }
 0x66b   : > { %v3065_v62 = vmul.f32 1.442695, %v3051_v27  ;;  %v3063_v9 = vmul.f32 1.442695, %v3050_v12  ;;  %v3069_v16 = vsel %vm786_vm2, %v18316_v7, 0.0 }
 0x66c   : > { %3070 = vadd.xlane.f32.xlu0 %v3069_v16  ;;  %v3044_v29 = vpop.xlane.xlu1 %3043 }
 0x66d   : > { %18325 = vpow2.f32 %v3065_v62  ;;  %v3052_v18 = vsub.f32 %v3020_v17, %v3044_v29 }
 0x66e   : > { %v18318_v26 = vpop.eup %18317  ;;  %18327 = vpow2.f32 %v3063_v9 }
 0x66f   : > { %v3067_v1 = vmul.f32 1.442695, %v3052_v18  ;;  %v3072_v23 = vsel %vm786_vm2, %v18318_v26, 0.0 }
 0x670   : > { %3073 = vadd.xlane.f32.xlu1 %v3072_v23 }
 0x671   : > { %18329 = vpow2.f32 %v3067_v1 }
 0x672   : > { %v18320_v10 = vpop.eup %18319 }
 0x673   : > { %v3075_v4 = vsel %vm786_vm2, %v18320_v10, 0.0 }
 0x674   : > { %3076 = vadd.xlane.f32.xlu0 %v3075_v4 }
 0x676   : > { %v19291_v0 = vpop.eup %18321 }
 0x677   : > { %v18324_v6 = vpop.eup %18323  ;;  %v3081_v55 = vsel %vm786_vm2, %v19291_v0, 0.0 }
 0x678   : > { %3082 = vadd.xlane.f32.xlu0 %v3081_v55  ;;  %v3078_v17 = vsel %vm786_vm2, %v18324_v6, 0.0 }
 0x679   : > { %3079 = vadd.xlane.f32.xlu1 %v3078_v17 }
 0x67a   : > { %v19296_v32 = vpop.eup %18325 }
 0x67b   : > { %v19298_v19 = vpop.eup %18327  ;;  %v3087_v34 = vsel %vm786_vm2, %v19296_v32, 0.0 }
 0x67c   : > { %3088 = vadd.xlane.f32.xlu0 %v3087_v34  ;;  %v3084_v35 = vsel %vm786_vm2, %v19298_v19, 0.0 }
 0x67d   : > { %3085 = vadd.xlane.f32.xlu1 %v3084_v35 }
 0x67e   : > { %v19304_v57 = vpop.eup %18329 }
 0x67f   : > { %v3090_v21 = vsel %vm786_vm2, %v19304_v57, 0.0 }
 0x681   : > { %3091 = vadd.xlane.f32.xlu1 %v3090_v21  ;;  %v18141_v21 = vld [vmem:[%s21803_s3 + $0x68] sm:$0xff]  }
 0x692   : > { %2329 = vrot.lane.b32.xlu0 %v18993_v31, %s18725_s15  ;;  %3966 = vrot.lane.b32.xlu1 %v19313_v45, %s18726_s25 }
 0x696   : > { %3879 = vrot.lane.b32.xlu1 %v19404_v8, %s18726_s25 }
 0x6f5   : > { %v3071_v53 = vpop.xlane.xlu0 %3070 }
 0x6f6   : > { %18331 = vrcp.f32 %v3071_v53  ;;  %v18144_v53 = vld [vmem:[%s21803_s3 + $0x20] sm:$0xff]  }
 0x6f9   : > { %v3074_v40 = vpop.xlane.xlu1 %3073 }
 0x6fa   : > { %18333 = vrcp.f32 %v3074_v40 }
 0x6fd   : > { %v3077_v44 = vpop.xlane.xlu0 %3076 }
 0x6fe   : > { %18335 = vrcp.f32 %v3077_v44 }
 0x701   : > { %v3083_v42 = vpop.xlane.xlu0 %3082 }
 0x702   : > { %18337 = vrcp.f32 %v3083_v42  ;;  %v3080_v56 = vpop.xlane.xlu1 %3079 }
 0x703   : > { %18339 = vrcp.f32 %v3080_v56  ;;  %v18332_v27 = vpop.eup %18331 }
 0x704   : > { %v3101_v18 = vmul.f32 %v18332_v27, %v18316_v7 }
 0x705   : > { %v3089_v31 = vpop.xlane.xlu0 %3088 }
 0x706   : > { %18341 = vrcp.f32 %v3089_v31  ;;  %v3086_v2 = vpop.xlane.xlu1 %3085 }
 0x707   : > { %18343 = vrcp.f32 %v3086_v2  ;;  %v18334_v12 = vpop.eup %18333  ;;  %v18145_v2 = vld [vmem:[%s21803_s3 + $0xa8] sm:$0xff]  }
 0x708   : > { %v3102_v1 = vmul.f32 %v18334_v12, %v18318_v26 }
 0x709   : > { %v2330_v62 = vpop.permute.xlu0 %2329 }
 0x70a   : > { %v3092_v9 = vpop.xlane.xlu1 %3091  ;;  %v2367_v16 = vadd.f32 %v19258_v43, %v2330_v62  ;;  %v2370_v29 = vadd.f32 %v19262_v13, %v2330_v62  ;;  %v2375_v4 = vadd.f32 %v19256_v41, %v2330_v62  ;;  %v2378_v55 = vadd.f32 %v19260_v20, %v2330_v62 }
 0x70b   : > { %18345 = vrcp.f32 %v3092_v9  ;;  %v18336_v23 = vpop.eup %18335  ;;  %v2383_v26 = vadd.f32 %v19266_v51, %v2330_v62  ;;  %v2386_v20 = vadd.f32 %v19272_v52, %v2330_v62  ;;  %v2391_v34 = vadd.f32 %v19264_v50, %v2330_v62 }
 0x70c   : > { %17195 = vmatpush3.msra.mxu0 %v2367_v16  ;;  %17200 = vmatpush3.msra.mxu1 %v2370_v29  ;;  %v3103_v13 = vmul.f32 %v18336_v23, %v18320_v10 }
 0x70d   : > { %17197 = vmatmul.mubr.msk.f32.vlgmr.msra.gmra.mxu0 %vm786_vm2, %v3101_v18  ;;  %17202 = vmatmul.mubr.msk.f32.vlgmr.msra.gmra.mxu1 %vm786_vm2, %v3102_v1 }
 0x70e   : > { %17204 = vmatprep.subr.mxu0 %v21811_v60  ;;  %17209 = vmatprep.subr.mxu1 %v21811_v60 }
 0x70f   : > { %v18338_v43 = vpop.eup %18337  ;;  %17205 = vmatpush3.msra.mxu0 %v2375_v4  ;;  %17210 = vmatpush3.msra.mxu1 %v2378_v55  ;;  %v18146_v4 = vld [vmem:[%s21803_s3 + $0xa0] sm:$0xff]  }
 0x710   : > { %v18340_v7 = vpop.eup %18339  ;;  %17206 = vmatprep.mubr.msk.f32.mxu0 %vm18724_vm1, %v21811_v60  ;;  %17214 = vmatprep.subr.mxu0 %v21811_v60  ;;  %v3105_v17 = vmul.f32 %v18338_v43, %v19291_v0  ;;  %v2135_v0 = vld [vmem:[%s21804_s4] sm:$0xf] }
 0x711   : > { %17207 = vmatmul.mubr.msk.f32.vlgmr.msra.gmra.mxu0 %vm786_vm2, %v3103_v13  ;;  %17211 = vmatprep.mubr.msk.f32.mxu1 %vm18724_vm1, %v21811_v60  ;;  %v3104_v41 = vmul.f32 %v18340_v7, %v18324_v6  ;;  %v2394_v6 = vadd.f32 %v19268_v63, %v2330_v62 }
 0x712   : > { %17215 = vmatpush3.msra.mxu0 %v2383_v26  ;;  %17219 = vmatprep.subr.mxu1 %v21811_v60 }
 0x713   : > { %v18342_v10 = vpop.eup %18341  ;;  %17212 = vmatmul.mubr.msk.f32.vlgmr.msra.gmra.mxu1 %vm786_vm2, %v3104_v41  ;;  %17216 = vmatprep.mubr.msk.f32.mxu0 %vm18724_vm1, %v21811_v60 }
 0x714   : > { %v18344_v51 = vpop.eup %18343  ;;  %17220 = vmatpush3.msra.mxu1 %v2386_v20  ;;  %17224 = vmatprep.subr.mxu0 %v21811_v60  ;;  %v3107_v50 = vmul.f32 %v18342_v10, %v19296_v32  ;;  %v18142_v32 = vld [vmem:[%s21803_s3 + $0x60] sm:$0xff]   ;;  %v19448_v20 = vpop.permute.xlu1 %3966 }
 0x715   : > { %17217 = vmatmul.mubr.msk.f32.vlgmr.msra.gmra.mxu0 %vm786_vm2, %v3105_v17  ;;  %17221 = vmatprep.mubr.msk.f32.mxu1 %vm18724_vm1, %v21811_v60  ;;  %v3106_v52 = vmul.f32 %v18344_v51, %v19298_v19  ;;  %v3793_v19 = vsel %vm3711_vm3, %v2135_v0, 0 }
 0x716   : > { %17225 = vmatpush3.msra.mxu0 %v2391_v34  ;;  %17229 = vmatprep.subr.mxu1 %v21811_v60 }
 0x717   : > { %17222 = vmatmul.mubr.msk.f32.vlgmr.msra.gmra.mxu1 %vm786_vm2, %v3106_v52  ;;  %17226 = vmatprep.mubr.msk.f32.mxu0 %vm18724_vm1, %v21811_v60 }
 0x718   : > { %v18346_v35 = vpop.eup %18345  ;;  %17230 = vmatpush3.msra.mxu1 %v2394_v6  ;;  %17231 = vmatprep.mubr.msk.f32.mxu1 %vm18724_vm1, %v21811_v60 }
 0x719   : > { %17227 = vmatmul.mubr.msk.f32.vlgmr.msra.gmra.mxu0 %vm786_vm2, %v3107_v50  ;;  %v3108_v63 = vmul.f32 %v18346_v35, %v19304_v57  ;;  %18106 = vmatprep.subr.msk.bf16.mxu1 %vm3711_vm3, %v2135_v0 }
 0x71a   : > { %18105 = vmatprep.subr.msk.bf16.mxu0 %vm3711_vm3, %v16046_v61 }
 0x71b   : > { %17232 = vmatmul.mubr.msk.f32.vlgmr.msra.gmra.mxu1 %vm786_vm2, %v3108_v63  ;;  %17235 = vmatpush3.bf16.msra.mxu0 %v3713_v3 }
 0x71c   : > { %17245 = vmatpush3.bf16.msra.mxu1 %v3793_v19  ;;  %17246 = vmatprep.mubr.msk.bf16.mxu1 %vm786_vm2, %v2131_v5  ;;  %v18143_v5 = vld [vmem:[%s21803_s3 + $0x28] sm:$0xff]  }
 0x71d   : > { %17266 = vmatprep.subr.bf16.mxu1 %v18141_v21  ;;  %17254 = vmatprep.subr.bf16.mxu0 %v18143_v5 }
 0x71f   : > { %17247 = vmatmul.mubr.msk.bf16.vlgmr.msra.gmra.mxu1 %vm786_vm2, %v2132_v14 }
 0x720   : > { %17250 = vmatprep.mubr.msk.bf16.mxu1 %vm786_vm2, %v2133_v24  ;;  %17267 = vmatpush3.bf16.msra.mxu1 %v18141_v21 }
 0x721   : > { %17268 = vmatprep.subr.bf16.mxu1 %v18142_v32 }
 0x724   : > { %17269 = vmatpush3.bf16.msra.mxu1 %v18142_v32 }
 0x725   : > { %17290 = vmatprep.subr.mxu1 %v21811_v60 }
 0x727   : > { %17251 = vmatmul.mubr.msk.bf16.gmra.mxu1 %vm786_vm2, %v2134_v33 }
 0x728   : > { %17270 = vmatprep.mubr.msk.bf16.mxu1 %vm392_vm0, %v18885_v28 }
 0x72f   : > { %17271 = vmatmul.mubr.msk.bf16.vlgmr.msra.gmra.mxu1 %vm392_vm0, %v18899_v38 }
 0x730   : > { %17274 = vmatprep.mubr.msk.bf16.mxu1 %vm392_vm0, %v18916_v48 }
 0x737   : > { %17275 = vmatmul.mubr.msk.bf16.gmra.mxu1 %vm392_vm0, %v18928_v49 }
 0x738   : > { %17292 = vmatprep.mubr.msk.f32.mxu1 %vm18724_vm1, %v21811_v60 }
 0x7cd   : > { %v3178_v11 = vpop.f32.mrf.mxu0  ;;  %v3251_v14 = vpop.f32.mrf.mxu1 }
 0x7ce   : > { %v3693_v15 = vpack.c.bf16 %v3251_v14, %v3178_v11  ;;  %v3880_v11 = vpop.permute.xlu1 %3879 }
 0x7cf   : > { %v17198_v22 = vpop.f32.mrf.mxu0  ;;  %v17203_v24 = vpop.f32.mrf.mxu1 }
 0x7d0   : > { %17236 = vmatprep.mubr.msk.bf16.mxu0 %vm786_vm2, %v3693_v15 }
 0x7d1   : > { %v3324_v25 = vpop.f32.mrf.mxu0 }
 0x7d3   : > { %v3397_v30 = vpop.f32.mrf.mxu1  ;;  %v17208_v33 = vpop.f32.mrf.mxu0 }
 0x7d4   : > { %v3694_v57 = vpack.c.bf16 %v3397_v30, %v3324_v25 }
 0x7d5   : > { %v17213_v40 = vpop.f32.mrf.mxu1  ;;  %v3470_v44 = vpop.f32.mrf.mxu0 }
 0x7d6   : > { %17237 = vmatmul.mubr.msk.bf16.vlgmr.msra.gmra.mxu0 %vm786_vm2, %v3694_v57 }
 0x7d7   : > { %v3543_v42 = vpop.f32.mrf.mxu1  ;;  %v17218_v56 = vpop.f32.mrf.mxu0  ;;  %17255 = vmatpush3.bf16.msra.mxu0 %v18143_v5 }
 0x7d8   : > { %v3695_v31 = vpack.c.bf16 %v3543_v42, %v3470_v44  ;;  %17256 = vmatprep.subr.bf16.mxu0 %v18144_v53 }
 0x7d9   : > { %v17223_v27 = vpop.f32.mrf.mxu1  ;;  %v3616_v12 = vpop.f32.mrf.mxu0 }
 0x7da   : > { %17240 = vmatprep.mubr.msk.bf16.mxu0 %vm786_vm2, %v3695_v31 }
 0x7db   : > { %v3689_v62 = vpop.f32.mrf.mxu1  ;;  %v17228_v9 = vpop.f32.mrf.mxu0  ;;  %17257 = vmatpush3.bf16.msra.mxu0 %v18144_v53 }
 0x7dc   : > { %v3696_v16 = vpack.c.bf16 %v3689_v62, %v3616_v12  ;;  %17278 = vmatprep.subr.bf16.mxu0 %v18145_v2 }
 0x7dd   : > { %v17233_v29 = vpop.f32.mrf.mxu1 }
 0x7de   : > { %17241 = vmatmul.mubr.msk.bf16.gmra.mxu0 %vm786_vm2, %v3696_v16 }
 0x7df   : > { %v19418_v18 = vpop.f32.mrf.mxu1  ;;  %17258 = vmatprep.mubr.msk.bf16.mxu0 %vm392_vm0, %v18885_v28 }
 0x7e1   : > { %v19422_v1 = vpop.f32.mrf.mxu1 }
 0x7e3   : > { %v19424_v23 = vpop.f32.mrf.mxu1 }
 0x7e5   : > { %v19429_v55 = vpop.f32.mrf.mxu1 }
 0x7e6   : > { %17259 = vmatmul.mubr.msk.bf16.vlgmr.msra.gmra.mxu0 %vm392_vm0, %v18899_v38 }
 0x7e7   : > { %v19433_v43 = vpop.f32.mrf.mxu1  ;;  %17262 = vmatprep.mubr.msk.bf16.mxu0 %vm392_vm0, %v18916_v48  ;;  %17279 = vmatpush3.bf16.msra.mxu0 %v18145_v2 }
 0x7e8   : > { %17280 = vmatprep.subr.bf16.mxu0 %v18146_v4 }
 0x7e9   : > { %v19437_v13 = vpop.f32.mrf.mxu1 }
 0x7eb   : > { %v19439_v7 = vpop.f32.mrf.mxu1  ;;  %17281 = vmatpush3.bf16.msra.mxu0 %v18146_v4 }
 0x7ec   : > { %17310 = vmatprep.subr.mxu0 %v21811_v60 }
 0x7ed   : > { %v19442_v26 = vpop.f32.mrf.mxu1 }
 0x7ee   : > { %21835 = vst [vmem:[#allocation8_spill] sm:$0xff] %v19442_v26  ;;  %17263 = vmatmul.mubr.msk.bf16.gmra.mxu0 %vm392_vm0, %v18928_v49 }
 0x7ef   : > { %v17272_v41 = vpop.f32.mrf.mxu1  ;;  %17282 = vmatprep.mubr.msk.bf16.mxu0 %vm392_vm0, %v18885_v28 }
 0x7f0   : > { %v4012_v33 = vadd.f32 %v17272_v41, %v19448_v20 }
 0x7f1   : > { %v4003_v10 = vpop.f32.mrf.mxu1 }
 0x7f2   : > { %v4004_v17 = vadd.f32 %v4003_v10, %v19448_v20 }
 0x7f3   : > { %v17273_v51 = vpop.f32.mrf.mxu1 }
 0x7f4   : > { %17291 = vmatpush3.xpose.msk.msra.mxu1 %vm786_vm2, %v4004_v17  ;;  %v4015_v56 = vadd.f32 %v17273_v51, %v19448_v20 }
 0x7f5   : > { %v4006_v34 = vpop.f32.mrf.mxu1  ;;  %17295 = vmatprep.subr.mxu1 %v21811_v60 }
 0x7f6   : > { %17283 = vmatmul.mubr.msk.bf16.vlgmr.msra.gmra.mxu0 %vm392_vm0, %v18899_v38  ;;  %v4007_v22 = vadd.f32 %v4006_v34, %v19448_v20 }
 0x7f7   : > { %v17276_v52 = vpop.f32.mrf.mxu1  ;;  %17286 = vmatprep.mubr.msk.bf16.mxu0 %vm392_vm0, %v18916_v48 }
 0x7f8   : > { %v4028_v31 = vadd.f32 %v17276_v52, %v19448_v20 }
 0x7f9   : > { %v4019_v6 = vpop.f32.mrf.mxu1 }
 0x7fa   : > { %v4020_v0 = vadd.f32 %v4019_v6, %v19448_v20 }
 0x7fb   : > { %v17277_v53 = vpop.f32.mrf.mxu1 }
 0x7fc   : > { %17311 = vmatpush3.xpose.msk.msra.mxu0 %vm786_vm2, %v4020_v0  ;;  %v4031_v4 = vadd.f32 %v17277_v53, %v19448_v20 }
 0x7fd   : > { %17320 = vmatprep.subr.mxu0 %v21811_v60  ;;  %v4022_v27 = vpop.f32.mrf.mxu1 }
 0x7fe   : > { %17287 = vmatmul.mubr.msk.bf16.gmra.mxu0 %vm392_vm0, %v18928_v49  ;;  %v4023_v9 = vadd.f32 %v4022_v27, %v19448_v20 }
 0x7ff   : > { %17312 = vmatprep.mubr.msk.f32.mxu0 %vm18724_vm1, %v21811_v60 }
 0x896   : > { %v19464_v50 = vpop.f32.mrf.mxu0 }
 0x898   : > { %v19466_v35 = vpop.f32.mrf.mxu0 }
 0x89a   : > { %v19468_v63 = vpop.f32.mrf.mxu0 }
 0x89c   : > { %v19470_v19 = vpop.f32.mrf.mxu0 }
 0x89e   : > { %v19472_v21 = vpop.f32.mrf.mxu0 }
 0x8a0   : > { %v19474_v32 = vpop.f32.mrf.mxu0 }
 0x8a2   : > { %v19476_v61 = vpop.f32.mrf.mxu0 }
 0x8a4   : > { %v19478_v3 = vpop.f32.mrf.mxu0 }
 0x8a6   : > { %v17260_v5 = vpop.f32.mrf.mxu0 }
 0x8a7   : > { %v3925_v44 = vadd.f32 %v17260_v5, %v3880_v11 }
 0x8a8   : > { %v3916_v14 = vpop.f32.mrf.mxu0 }
 0x8a9   : > { %v3917_v15 = vadd.f32 %v3916_v14, %v3880_v11  ;;  %v19537_v14 = vld [vmem:[%s19036_s27] ss:$0 sm:$0xff] }
 0x8aa   : > { %v17261_v24 = vpop.f32.mrf.mxu0 }
 0x8ab   : > { %17293 = vmatmul.mubr.msk.f32.vlgmr.msra.gmra.mxu1 %vm786_vm2, %v3917_v15  ;;  %v3928_v12 = vadd.f32 %v17261_v24, %v3880_v11 }
 0x8ac   : > { %17296 = vmatpush3.xpose.msk.msra.mxu1 %vm786_vm2, %v4007_v22  ;;  %v3919_v25 = vpop.f32.mrf.mxu0  ;;  %17297 = vmatprep.mubr.msk.f32.mxu1 %vm18724_vm1, %v21811_v60 }
 0x8ad   : > { %v3920_v30 = vadd.f32 %v3919_v25, %v3880_v11  ;;  %17300 = vmatprep.subr.mxu1 %v21811_v60 }
 0x8ae   : > { %v17264_v57 = vpop.f32.mrf.mxu0 }
 0x8af   : > { %17298 = vmatmul.mubr.msk.f32.vlgmr.msra.gmra.mxu1 %vm786_vm2, %v3920_v30  ;;  %v3941_v62 = vadd.f32 %v17264_v57, %v3880_v11  ;;  %v19544_v57 = vld [vmem:[%s19036_s27 + $0x1] ss:$0 sm:$0xff] }
 0x8b0   : > { %17301 = vmatpush3.xpose.msk.msra.mxu1 %vm786_vm2, %v4012_v33  ;;  %v3932_v40 = vpop.f32.mrf.mxu0  ;;  %17302 = vmatprep.mubr.msk.f32.mxu1 %vm18724_vm1, %v21811_v60 }
 0x8b1   : > { %v3933_v42 = vadd.f32 %v3932_v40, %v3880_v11  ;;  %17305 = vmatprep.subr.mxu1 %v21811_v60 }
 0x8b2   : > { %v17265_v2 = vpop.f32.mrf.mxu0 }
 0x8b3   : > { %17303 = vmatmul.mubr.msk.f32.vlgmr.msra.gmra.mxu1 %vm786_vm2, %v3925_v44  ;;  %17313 = vmatmul.mubr.msk.f32.vlgmr.msra.gmra.mxu0 %vm786_vm2, %v3933_v42  ;;  %v3944_v41 = vadd.f32 %v17265_v2, %v3880_v11 }
 0x8b4   : > { %17306 = vmatpush3.xpose.msk.msra.mxu1 %vm786_vm2, %v4015_v56  ;;  %17321 = vmatpush3.xpose.msk.msra.mxu0 %vm786_vm2, %v4028_v31  ;;  %v3935_v16 = vpop.f32.mrf.mxu0 }
 0x8b5   : > { %17307 = vmatprep.mubr.msk.f32.mxu1 %vm18724_vm1, %v21811_v60  ;;  %17315 = vmatprep.subr.mxu1 %v21811_v60  ;;  %v3936_v29 = vadd.f32 %v3935_v16, %v3880_v11 }
 0x8b6   : > { %17322 = vmatprep.mubr.msk.f32.mxu0 %vm18724_vm1, %v21811_v60  ;;  %17330 = vmatprep.subr.mxu0 %v21811_v60  ;;  %v19522_v10 = vpop.f32.mrf.mxu0 }
 0x8b7   : > { %17308 = vmatmul.mubr.msk.f32.vlgmr.msra.gmra.mxu1 %vm786_vm2, %v3928_v12  ;;  %17323 = vmatmul.mubr.msk.f32.vlgmr.msra.gmra.mxu0 %vm786_vm2, %v3941_v62  ;;  %v19549_v12 = vld [vmem:[%s19036_s27 + $0x4] ss:$0 sm:$0xff] }
 0x8b8   : > { %17316 = vmatpush3.xpose.msk.msra.mxu1 %vm786_vm2, %v4023_v9  ;;  %17317 = vmatprep.mubr.msk.f32.mxu1 %vm18724_vm1, %v21811_v60  ;;  %v19524_v17 = vpop.f32.mrf.mxu0  ;;  %v19553_v9 = vld [vmem:[%s19036_s27 + $0x2] ss:$0 sm:$0xff] }
 0x8b9   : > { %17325 = vmatprep.subr.mxu1 %v21811_v60  ;;  %17332 = vmatprep.mubr.msk.f32.mxu0 %vm18724_vm1, %v21811_v60 }
 0x8ba   : > { %v19526_v20 = vpop.f32.mrf.mxu0 }
 0x8bb   : > { %17318 = vmatmul.mubr.msk.f32.vlgmr.msra.gmra.mxu1 %vm786_vm2, %v3936_v29 }
 0x8bc   : > { %17326 = vmatpush3.xpose.msk.msra.mxu1 %vm786_vm2, %v4031_v4  ;;  %17327 = vmatprep.mubr.msk.f32.mxu1 %vm18724_vm1, %v21811_v60  ;;  %v19528_v51 = vpop.f32.mrf.mxu0 }
 0x8bd   : > { %17335 = vmatprep.subr.mxu1 %v21811_v60 }
 0x8be   : > { %v19530_v34 = vpop.f32.mrf.mxu0 }
 0x8bf   : > { %17328 = vmatmul.mubr.msk.f32.vlgmr.msra.gmra.mxu1 %vm786_vm2, %v3944_v41 }
 0x8c0   : > { %17337 = vmatprep.mubr.msk.f32.mxu1 %vm18724_vm1, %v21811_v60  ;;  %v19532_v52 = vpop.f32.mrf.mxu0 }
 0x8c2   : > { %v19534_v5 = vpop.f32.mrf.mxu0 }
 0x8c4   : > { %v19541_v30 = vpop.f32.mrf.mxu0 }
 0x96b   : > { %v4193_v6 = vpop.f32.mrf.mxu1 }
 0x96c   : > { %v4729_v0 = vmul.f32 0.35355338, %v4193_v6 }
 0x96d   : > { %v17294_v11 = vpop.f32.mrf.mxu1 }
 0x96e   : > { %v4737_v15 = vadd.f32 %v19537_v14, %v4729_v0 }
 0x96f   : > { %v4269_v22 = vpop.f32.mrf.mxu1 }
 0x970   : > { %v4730_v24 = vmul.f32 0.35355338, %v4269_v22  ;;  %v4745_v25 = vsel %vm786_vm2, %v4737_v15, -inf }
 0x971   : > { %4746 = vmax.xlane.f32.xlu1 %v4745_v25  ;;  %v17299_v33 = vpop.f32.mrf.mxu1  ;;  %v19559_v25 = vld [vmem:[%s19036_s27 + $0x6] ss:$0 sm:$0xff] }
 0x972   : > { %v4738_v53 = vadd.f32 %v19544_v57, %v4730_v24 }
 0x973   : > { %v4345_v40 = vpop.f32.mrf.mxu1  ;;  %v4497_v44 = vpop.f32.mrf.mxu0 }
 0x974   : > { %v4731_v42 = vmul.f32 0.35355338, %v4345_v40  ;;  %v4733_v56 = vmul.f32 0.35355338, %v4497_v44  ;;  %v4748_v31 = vsel %vm786_vm2, %v4738_v53, -inf }
 0x975   : > { %v17314_v2 = vpop.f32.mrf.mxu0  ;;  %4749 = vmax.xlane.f32.xlu0 %v4748_v31  ;;  %v17304_v27 = vpop.f32.mrf.mxu1  ;;  %v19563_v40 = vld [vmem:[%s19036_s27 + $0x3] ss:$0 sm:$0xff] }
 0x976   : > { %v4741_v62 = vadd.f32 %v19549_v12, %v4733_v56  ;;  %v4739_v16 = vadd.f32 %v19553_v9, %v4731_v42 }
 0x977   : > { %v4421_v29 = vpop.f32.mrf.mxu1  ;;  %v4649_v4 = vpop.f32.mrf.mxu0 }
 0x978   : > { %v4732_v41 = vmul.f32 0.35355338, %v4421_v29  ;;  %v4735_v6 = vmul.f32 0.35355338, %v4649_v4  ;;  %v4757_v0 = vsel %vm786_vm2, %v4741_v62, -inf  ;;  %v4751_v11 = vsel %vm786_vm2, %v4739_v16, -inf }
 0x979   : > { %v17324_v22 = vpop.f32.mrf.mxu0  ;;  %4758 = vmax.xlane.f32.xlu1 %v4757_v0  ;;  %4752 = vmax.xlane.f32.xlu0 %v4751_v11  ;;  %v17309_v24 = vpop.f32.mrf.mxu1  ;;  %v19569_v29 = vld [vmem:[%s19036_s27 + $0x5] ss:$0 sm:$0xff] }
 0x97a   : > { %v4743_v33 = vadd.f32 %v19559_v25, %v4735_v6  ;;  %v4740_v44 = vadd.f32 %v19563_v40, %v4732_v41  ;;  %v19574_v41 = vld [vmem:[%s19036_s27 + $0x7] ss:$0 sm:$0xff] }
 0x97b   : > { %v4573_v42 = vpop.f32.mrf.mxu1 }
 0x97c   : > { %v4734_v56 = vmul.f32 0.35355338, %v4573_v42  ;;  %v4763_v31 = vsel %vm786_vm2, %v4743_v33, -inf  ;;  %v4754_v2 = vsel %vm786_vm2, %v4740_v44, -inf }
 0x97d   : > { %4764 = vmax.xlane.f32.xlu1 %v4763_v31  ;;  %4755 = vmax.xlane.f32.xlu0 %v4754_v2  ;;  %v17319_v27 = vpop.f32.mrf.mxu1 }
 0x97e   : > { %v4742_v4 = vadd.f32 %v19569_v29, %v4734_v56 }
 0x97f   : > { %v4725_v0 = vpop.f32.mrf.mxu1 }
 0x980   : > { %v4736_v6 = vmul.f32 0.35355338, %v4725_v0  ;;  %v4760_v11 = vsel %vm786_vm2, %v4742_v4, -inf }
 0x981   : > { %4761 = vmax.xlane.f32.xlu0 %v4760_v11  ;;  %v17329_v22 = vpop.f32.mrf.mxu1 }
 0x982   : > { %v4744_v24 = vadd.f32 %v19574_v41, %v4736_v6 }
 0x984   : > { %v4766_v42 = vsel %vm786_vm2, %v4744_v24, -inf }
 0x985   : > { %4767 = vmax.xlane.f32.xlu0 %v4766_v42 }
 0x9fa   : > { %v4747_v31 = vpop.xlane.xlu1 %4746 }
 0x9fb   : > { %v4769_v2 = vsub.f32 %v4737_v15, %v4747_v31 }
 0x9fd   : > { %v4777_v27 = vmul.f32 1.442695, %v4769_v2 }
 0x9fe   : > { %v4750_v60 = vpop.xlane.xlu0 %4749 }
 0x9ff   : > { %18347 = vpow2.f32 %v4777_v27  ;;  %v4770_v59 = vsub.f32 %v4738_v53, %v4750_v60 }
 0xa01   : > { %v4779_v56 = vmul.f32 1.442695, %v4770_v59 }
 0xa02   : > { %v4759_v39 = vpop.xlane.xlu1 %4758  ;;  %v4753_v0 = vpop.xlane.xlu0 %4752 }
 0xa03   : > { %18349 = vpow2.f32 %v4779_v56  ;;  %v4773_v54 = vsub.f32 %v4741_v62, %v4759_v39  ;;  %v4771_v11 = vsub.f32 %v4739_v16, %v4753_v0 }
 0xa05   : > { %v4781_v22 = vmul.f32 1.442695, %v4771_v11  ;;  %v4785_v37 = vmul.f32 1.442695, %v4773_v54 }
 0xa06   : > { %v4765_v58 = vpop.xlane.xlu1 %4764  ;;  %v4756_v47 = vpop.xlane.xlu0 %4755 }
 0xa07   : > { %v4775_v6 = vsub.f32 %v4743_v33, %v4765_v58  ;;  %v4772_v26 = vsub.f32 %v4740_v44, %v4756_v47  ;;  %18351 = vpow2.f32 %v4781_v22 }
 0xa08   : > { %18353 = vpow2.f32 %v4785_v37 }
 0xa09   : > { %v4783_v42 = vmul.f32 1.442695, %v4772_v26  ;;  %v4789_v15 = vmul.f32 1.442695, %v4775_v6  ;;  %v19601_v6 = vld [vmem:[%s21802_s2 + $0x4] ss:$0 sm:$0xff] }
 0xa0a   : > { %v4762_v31 = vpop.xlane.xlu0 %4761 }
 0xa0b   : > { %v4774_v2 = vsub.f32 %v4742_v4, %v4762_v31  ;;  %18355 = vpow2.f32 %v4783_v42 }
 0xa0c   : > { %v18348_v27 = vpop.eup %18347  ;;  %18357 = vpow2.f32 %v4789_v15 }
 0xa0d   : > { %v4787_v59 = vmul.f32 1.442695, %v4774_v2  ;;  %v4793_v60 = vsel %vm786_vm2, %v18348_v27, 0.0 }
 0xa0e   : > { %4794 = vadd.xlane.f32.xlu1 %v4793_v60  ;;  %v4768_v39 = vpop.xlane.xlu0 %4767 }
 0xa0f   : > { %18359 = vpow2.f32 %v4787_v59  ;;  %v4776_v54 = vsub.f32 %v4744_v24, %v4768_v39 }
 0xa10   : > { %v18350_v53 = vpop.eup %18349 }
 0xa11   : > { %v4791_v62 = vmul.f32 1.442695, %v4776_v54  ;;  %v4796_v47 = vsel %vm786_vm2, %v18350_v53, 0.0 }
 0xa12   : > { %4797 = vadd.xlane.f32.xlu0 %v4796_v47 }
 0xa13   : > { %18361 = vpow2.f32 %v4791_v62 }
 0xa14   : > { %v18352_v37 = vpop.eup %18351 }
 0xa15   : > { %v4799_v58 = vsel %vm786_vm2, %v18352_v37, 0.0  ;;  %v19581_v26 = vpop.eup %18353 }
 0xa16   : > { %4800 = vadd.xlane.f32.xlu1 %v4799_v58  ;;  %v4805_v33 = vsel %vm786_vm2, %v19581_v26, 0.0 }
 0xa18   : > { %v18356_v16 = vpop.eup %18355 }
 0xa19   : > { %v4802_v44 = vsel %vm786_vm2, %v18356_v16, 0.0  ;;  %v19586_v4 = vpop.eup %18357 }
 0xa1a   : > { %4806 = vadd.xlane.f32.xlu1 %v4805_v33  ;;  %4803 = vadd.xlane.f32.xlu0 %v4802_v44  ;;  %v4811_v0 = vsel %vm786_vm2, %v19586_v4, 0.0 }
 0xa1c   : > { %v19588_v24 = vpop.eup %18359 }
 0xa1d   : > { %v4808_v56 = vsel %vm786_vm2, %v19588_v24, 0.0 }
 0xa1e   : > { %4812 = vadd.xlane.f32.xlu1 %v4811_v0  ;;  %4809 = vadd.xlane.f32.xlu0 %v4808_v56 }
 0xa20   : > { %v19594_v11 = vpop.eup %18361 }
 0xa21   : > { %v4814_v22 = vsel %vm786_vm2, %v19594_v11, 0.0 }
 0xa22   : > { %4815 = vadd.xlane.f32.xlu0 %v4814_v22 }
 0xa2f   : > { %4053 = vrot.lane.b32.xlu1 %v19601_v6, %s18726_s25 }
 0xa33   : > { %5530 = vrot.lane.b32.xlu1 %v19404_v8, %s18727_s12 }
 0xa38   : > { %5617 = vrot.lane.b32.xlu0 %v19313_v45, %s18727_s12 }
 0xa97   : > { %v4795_v42 = vpop.xlane.xlu1 %4794 }
 0xa98   : > { %18363 = vrcp.f32 %v4795_v42  ;;  %v21836_v42 = vmov 0.0  }
 0xa9b   : > { %v4798_v15 = vpop.xlane.xlu0 %4797 }
 0xa9c   : > { %18365 = vrcp.f32 %v4798_v15 }
 0xa9f   : > { %v4801_v31 = vpop.xlane.xlu1 %4800 }
 0xaa0   : > { %18367 = vrcp.f32 %v4801_v31 }
 0xaa3   : > { %v4807_v2 = vpop.xlane.xlu1 %4806  ;;  %v4804_v59 = vpop.xlane.xlu0 %4803 }
 0xaa4   : > { %18369 = vrcp.f32 %v4807_v2 }
 0xaa5   : > { %18371 = vrcp.f32 %v4804_v59  ;;  %v18364_v54 = vpop.eup %18363  ;;  %v16109_v59 = vld [vmem:[%s21804_s4 + $0x8] sm:$0xf] }
 0xaa6   : > { %v4825_v33 = vmul.f32 %v18364_v54, %v18348_v27 }
 0xaa7   : > { %v4813_v60 = vpop.xlane.xlu1 %4812  ;;  %v4810_v39 = vpop.xlane.xlu0 %4809 }
 0xaa8   : > { %18373 = vrcp.f32 %v4813_v60  ;;  %v5436_v60 = vsel %vm3711_vm3, %v16109_v59, 0 }
 0xaa9   : > { %18375 = vrcp.f32 %v4810_v39  ;;  %v18366_v62 = vpop.eup %18365  ;;  %v18151_v39 = vld [vmem:[%s21803_s3 + $0x78] sm:$0xff]  }
 0xaaa   : > { %v4826_v44 = vmul.f32 %v18366_v62, %v18350_v53 }
 0xaab   : > { %v4054_v8 = vpop.permute.xlu1 %4053  ;;  %v4816_v47 = vpop.xlane.xlu0 %4815 }
 0xaac   : > { %18377 = vrcp.f32 %v4816_v47  ;;  %v4091_v45 = vadd.f32 %v19524_v17, %v4054_v8  ;;  %v4094_v58 = vadd.f32 %v19528_v51, %v4054_v8  ;;  %v4099_v0 = vadd.f32 %v19522_v10, %v4054_v8 }
 0xaad   : > { %v18368_v56 = vpop.eup %18367  ;;  %v4102_v22 = vadd.f32 %v19526_v20, %v4054_v8  ;;  %v4107_v53 = vadd.f32 %v19532_v52, %v4054_v8  ;;  %v4110_v20 = vadd.f32 %v19541_v30, %v4054_v8  ;;  %v4115_v31 = vadd.f32 %v19530_v34, %v4054_v8 }
 0xaae   : > { %17331 = vmatpush3.msra.mxu0 %v4091_v45  ;;  %17336 = vmatpush3.msra.mxu1 %v4094_v58  ;;  %v4827_v51 = vmul.f32 %v18368_v56, %v18352_v37 }
 0xaaf   : > { %17333 = vmatmul.mubr.msk.f32.vlgmr.msra.gmra.mxu0 %vm786_vm2, %v4825_v33  ;;  %17338 = vmatmul.mubr.msk.f32.vlgmr.msra.gmra.mxu1 %vm786_vm2, %v4826_v44 }
 0xab0   : > { %17340 = vmatprep.subr.mxu0 %v21836_v42  ;;  %17345 = vmatprep.subr.mxu1 %v21836_v42 }
 0xab1   : > { %v18370_v17 = vpop.eup %18369  ;;  %17341 = vmatpush3.msra.mxu0 %v4099_v0  ;;  %17346 = vmatpush3.msra.mxu1 %v4102_v22  ;;  %v18152_v0 = vld [vmem:[%s21803_s3 + $0x70] sm:$0xff]  }
 0xab2   : > { %v18372_v27 = vpop.eup %18371  ;;  %17342 = vmatprep.mubr.msk.f32.mxu0 %vm18724_vm1, %v21836_v42  ;;  %17350 = vmatprep.subr.mxu0 %v21836_v42  ;;  %v4829_v15 = vmul.f32 %v18370_v17, %v19581_v26  ;;  %v4118_v26 = vadd.f32 %v19534_v5, %v4054_v8  ;;  %v18148_v5 = vld [vmem:[%s21803_s3 + $0x30] sm:$0xff]  }
 0xab3   : > { %17343 = vmatmul.mubr.msk.f32.vlgmr.msra.gmra.mxu0 %vm786_vm2, %v4827_v51  ;;  %17347 = vmatprep.mubr.msk.f32.mxu1 %vm18724_vm1, %v21836_v42  ;;  %v4828_v10 = vmul.f32 %v18372_v27, %v18356_v16  ;;  %v18147_v16 = vld [vmem:[%s21803_s3 + $0x38] sm:$0xff]  }
 0xab4   : > { %17351 = vmatpush3.msra.mxu0 %v4107_v53  ;;  %17355 = vmatprep.subr.mxu1 %v21836_v42 }
 0xab5   : > { %v18374_v37 = vpop.eup %18373  ;;  %17348 = vmatmul.mubr.msk.f32.vlgmr.msra.gmra.mxu1 %vm786_vm2, %v4828_v10  ;;  %17352 = vmatprep.mubr.msk.f32.mxu0 %vm18724_vm1, %v21836_v42 }
 0xab6   : > { %v18376_v52 = vpop.eup %18375  ;;  %17356 = vmatpush3.msra.mxu1 %v4110_v20  ;;  %17360 = vmatprep.subr.mxu0 %v21836_v42  ;;  %v4831_v34 = vmul.f32 %v18374_v37, %v19586_v4  ;;  %v18149_v4 = vld [vmem:[%s21803_s3 + $0xb8] sm:$0xff]  }
 0xab7   : > { %17353 = vmatmul.mubr.msk.f32.vlgmr.msra.gmra.mxu0 %vm786_vm2, %v4829_v15  ;;  %17357 = vmatprep.mubr.msk.f32.mxu1 %vm18724_vm1, %v21836_v42  ;;  %v4830_v30 = vmul.f32 %v18376_v52, %v19588_v24 }
 0xab8   : > { %17361 = vmatpush3.msra.mxu0 %v4115_v31  ;;  %17365 = vmatprep.subr.mxu1 %v21836_v42 }
 0xab9   : > { %v18378_v2 = vpop.eup %18377  ;;  %17358 = vmatmul.mubr.msk.f32.vlgmr.msra.gmra.mxu1 %vm786_vm2, %v4830_v30  ;;  %17362 = vmatprep.mubr.msk.f32.mxu0 %vm18724_vm1, %v21836_v42  ;;  %v3838_v30 = vadd.f32 %v19418_v18, %v19464_v50  ;;  %v3854_v18 = vadd.f32 %v19433_v43, %v19472_v21  ;;  %v5618_v43 = vpop.permute.xlu0 %5617 }
 0xaba   : > { %17366 = vmatpush3.msra.mxu1 %v4118_v26  ;;  %17367 = vmatprep.mubr.msk.f32.mxu1 %vm18724_vm1, %v21836_v42  ;;  %v4832_v24 = vmul.f32 %v18378_v2, %v19594_v11  ;;  %v18150_v11 = vld [vmem:[%s21803_s3 + $0xb0] sm:$0xff]   ;;  %v3830_v26 = vadd.f32 %v19422_v1, %v19466_v35  ;;  %v3846_v1 = vadd.f32 %v19437_v13, %v19474_v32 }
 0xabb   : > { %17363 = vmatmul.mubr.msk.f32.vlgmr.msra.gmra.mxu0 %vm786_vm2, %v4831_v34  ;;  %17380 = vmatprep.subr.bf16.mxu1 %v18147_v16 }
 0xabc   : > { %18107 = vmatprep.subr.msk.bf16.mxu0 %vm3711_vm3, %v16109_v59 }
 0xabd   : > { %17368 = vmatmul.mubr.msk.f32.vlgmr.msra.gmra.mxu1 %vm786_vm2, %v4832_v24  ;;  %17371 = vmatpush3.bf16.msra.mxu0 %v5436_v60 }
 0xabe   : > { %17381 = vmatpush3.bf16.msra.mxu1 %v18147_v16  ;;  %17384 = vmatprep.mubr.msk.bf16.mxu1 %vm392_vm0, %v18885_v28 }
 0xabf   : > { %17382 = vmatprep.subr.bf16.mxu1 %v18148_v5  ;;  %17392 = vmatprep.subr.bf16.mxu0 %v18151_v39 }
 0xac2   : > { %17383 = vmatpush3.bf16.msra.mxu1 %v18148_v5 }
 0xac3   : > { %17404 = vmatprep.subr.bf16.mxu1 %v18149_v4 }
 0xac5   : > { %17385 = vmatmul.mubr.msk.bf16.vlgmr.msra.gmra.mxu1 %vm392_vm0, %v18899_v38 }
 0xac6   : > { %17388 = vmatprep.mubr.msk.bf16.mxu1 %vm392_vm0, %v18916_v48  ;;  %17405 = vmatpush3.bf16.msra.mxu1 %v18149_v4 }
 0xac7   : > { %17406 = vmatprep.subr.bf16.mxu1 %v18150_v11 }
 0xaca   : > { %17407 = vmatpush3.bf16.msra.mxu1 %v18150_v11 }
 0xacb   : > { %17426 = vmatprep.subr.mxu1 %v21836_v42 }
 0xacd   : > { %17389 = vmatmul.mubr.msk.bf16.gmra.mxu1 %vm392_vm0, %v18928_v49 }
 0xace   : > { %17408 = vmatprep.mubr.msk.bf16.mxu1 %vm392_vm0, %v18885_v28 }
 0xad5   : > { %17409 = vmatmul.mubr.msk.bf16.vlgmr.msra.gmra.mxu1 %vm392_vm0, %v18899_v38 }
 0xad6   : > { %17412 = vmatprep.mubr.msk.bf16.mxu1 %vm392_vm0, %v18916_v48 }
 0xadd   : > { %17413 = vmatmul.mubr.msk.bf16.gmra.mxu1 %vm392_vm0, %v18928_v49 }
 0xade   : > { %17428 = vmatprep.mubr.msk.f32.mxu1 %vm18724_vm1, %v21836_v42 }
 0xb6f   : > { %v4902_v54 = vpop.f32.mrf.mxu0  ;;  %v4975_v62 = vpop.f32.mrf.mxu1 }
 0xb70   : > { %v5417_v8 = vpack.c.bf16 %v4975_v62, %v4902_v54 }
 0xb71   : > { %v17334_v47 = vpop.f32.mrf.mxu0  ;;  %v17339_v45 = vpop.f32.mrf.mxu1 }
 0xb72   : > { %17372 = vmatprep.mubr.msk.bf16.mxu0 %vm786_vm2, %v5417_v8  ;;  %v5531_v8 = vpop.permute.xlu1 %5530 }
 0xb73   : > { %v5048_v58 = vpop.f32.mrf.mxu0 }
 0xb75   : > { %v5121_v33 = vpop.f32.mrf.mxu1  ;;  %v17344_v44 = vpop.f32.mrf.mxu0 }
 0xb76   : > { %v5418_v56 = vpack.c.bf16 %v5121_v33, %v5048_v58 }
 0xb77   : > { %v17349_v22 = vpop.f32.mrf.mxu1  ;;  %v5194_v17 = vpop.f32.mrf.mxu0 }
 0xb78   : > { %17373 = vmatmul.mubr.msk.bf16.vlgmr.msra.gmra.mxu0 %vm786_vm2, %v5418_v56 }
 0xb79   : > { %v5267_v51 = vpop.f32.mrf.mxu1  ;;  %v17354_v27 = vpop.f32.mrf.mxu0  ;;  %17393 = vmatpush3.bf16.msra.mxu0 %v18151_v39 }
 0xb7a   : > { %v5419_v53 = vpack.c.bf16 %v5267_v51, %v5194_v17  ;;  %17394 = vmatprep.subr.bf16.mxu0 %v18152_v0 }
 0xb7b   : > { %v17359_v10 = vpop.f32.mrf.mxu1  ;;  %v5340_v20 = vpop.f32.mrf.mxu0 }
 0xb7c   : > { %17376 = vmatprep.mubr.msk.bf16.mxu0 %vm786_vm2, %v5419_v53 }
 0xb7d   : > { %v5413_v37 = vpop.f32.mrf.mxu1  ;;  %v17364_v15 = vpop.f32.mrf.mxu0  ;;  %17395 = vmatpush3.bf16.msra.mxu0 %v18152_v0 }
 0xb7e   : > { %v5420_v52 = vpack.c.bf16 %v5413_v37, %v5340_v20  ;;  %17416 = vmatprep.subr.mxu0 %v21836_v42 }
 0xb7f   : > { %v17369_v31 = vpop.f32.mrf.mxu1 }
 0xb80   : > { %17377 = vmatmul.mubr.msk.bf16.gmra.mxu0 %vm786_vm2, %v5420_v52 }
 0xb81   : > { %17396 = vmatprep.mubr.msk.bf16.mxu0 %vm392_vm0, %v18885_v28 }
 0xb88   : > { %17397 = vmatmul.mubr.msk.bf16.vlgmr.msra.gmra.mxu0 %vm392_vm0, %v18899_v38  ;;  %v3841_v38 = vadd.f32 %v19424_v23, %v19468_v63  ;;  %v3857_v23 = vadd.f32 %v19439_v7, %v19476_v61 }
 0xb89   : > { %17400 = vmatprep.mubr.msk.bf16.mxu0 %vm392_vm0, %v18916_v48  ;;  %v17386_v48 = vpop.f32.mrf.mxu1 }
 0xb8a   : > { %v5576_v58 = vadd.f32 %v17386_v48, %v5531_v8 }
 0xb8b   : > { %v5567_v50 = vpop.f32.mrf.mxu1 }
 0xb8c   : > { %v5568_v61 = vadd.f32 %v5567_v50, %v5531_v8 }
 0xb8d   : > { %v17387_v63 = vpop.f32.mrf.mxu1 }
 0xb8e   : > { %v5579_v20 = vadd.f32 %v17387_v63, %v5531_v8 }
 0xb8f   : > { %v5570_v21 = vpop.f32.mrf.mxu1 }
 0xb90   : > { %17401 = vmatmul.mubr.msk.bf16.gmra.mxu0 %vm392_vm0, %v18928_v49  ;;  %v5571_v22 = vadd.f32 %v5570_v21, %v5531_v8 }
 0xb91   : > { %17418 = vmatprep.mubr.msk.f32.mxu0 %vm18724_vm1, %v21836_v42  ;;  %v17390_v32 = vpop.f32.mrf.mxu1 }
 0xb93   : > { %v5583_v44 = vpop.f32.mrf.mxu1 }
 0xb94   : > { %v5584_v37 = vadd.f32 %v5583_v44, %v5531_v8 }
 0xb95   : > { %v17391_v51 = vpop.f32.mrf.mxu1 }
 0xb97   : > { %v5586_v52 = vpop.f32.mrf.mxu1 }
 0xb99   : > { %v19772_v48 = vpop.f32.mrf.mxu1 }
 0xc38   : > { %v17374_v16 = vpop.f32.mrf.mxu0 }
 0xc39   : > { %v19708_v28 = vadd.f32 %v17374_v16, %v3838_v30  ;;  %v5592_v16 = vadd.f32 %v17390_v32, %v5531_v8 }
 0xc3a   : > { %v5472_v2 = vpop.f32.mrf.mxu0 }
 0xc3b   : > { %v19712_v34 = vadd.f32 %v5472_v2, %v3830_v26  ;;  %v5587_v26 = vadd.f32 %v5586_v52, %v5531_v8 }
 0xc3c   : > { %v17375_v49 = vpop.f32.mrf.mxu0 }
 0xc3d   : > { %v19714_v24 = vadd.f32 %v17375_v49, %v3841_v38  ;;  %v5595_v38 = vadd.f32 %v17391_v51, %v5531_v8  ;;  %v19774_v49 = vpop.f32.mrf.mxu1 }
 0xc3e   : > { %v19716_v5 = vpop.f32.mrf.mxu0 }
 0xc40   : > { %v17378_v4 = vpop.f32.mrf.mxu0 }
 0xc41   : > { %v19722_v35 = vadd.f32 %v17378_v4, %v3854_v18  ;;  %v19776_v18 = vpop.f32.mrf.mxu1 }
 0xc42   : > { %v5488_v11 = vpop.f32.mrf.mxu0 }
 0xc43   : > { %v19726_v59 = vadd.f32 %v5488_v11, %v3846_v1  ;;  %v19778_v50 = vpop.f32.mrf.mxu1 }
 0xc44   : > { %v17379_v60 = vpop.f32.mrf.mxu0 }
 0xc45   : > { %v19728_v39 = vadd.f32 %v17379_v60, %v3857_v23  ;;  %v19780_v4 = vpop.f32.mrf.mxu1 }
 0xc46   : > { %v19730_v54 = vpop.f32.mrf.mxu0 }
 0xc47   : > { %v19782_v1 = vpop.f32.mrf.mxu1 }
 0xc48   : > { %v17398_v62 = vpop.f32.mrf.mxu0 }
 0xc49   : > { %v5663_v47 = vadd.f32 %v17398_v62, %v5618_v43  ;;  %v19784_v11 = vpop.f32.mrf.mxu1 }
 0xc4a   : > { %v5654_v13 = vpop.f32.mrf.mxu0 }
 0xc4b   : > { %v5655_v45 = vadd.f32 %v5654_v13, %v5618_v43  ;;  %17427 = vmatpush3.xpose.msk.msra.mxu1 %vm786_vm2, %v5663_v47  ;;  %v19786_v23 = vpop.f32.mrf.mxu1 }
 0xc4c   : > { %v17399_v7 = vpop.f32.mrf.mxu0  ;;  %17436 = vmatprep.subr.mxu1 %v21836_v42 }
 0xc4d   : > { %17417 = vmatpush3.xpose.msk.msra.mxu0 %vm786_vm2, %v5655_v45  ;;  %v5666_v27 = vadd.f32 %v17399_v7, %v5618_v43 }
 0xc4e   : > { %v5657_v33 = vpop.f32.mrf.mxu0  ;;  %17429 = vmatmul.mubr.msk.f32.vlgmr.msra.gmra.mxu1 %vm786_vm2, %v5576_v58  ;;  %17421 = vmatprep.subr.mxu0 %v21836_v42 }
 0xc4f   : > { %v5658_v56 = vadd.f32 %v5657_v33, %v5618_v43  ;;  %17438 = vmatprep.mubr.msk.f32.mxu1 %vm18724_vm1, %v21836_v42 }
 0xc50   : > { %v17402_v0 = vpop.f32.mrf.mxu0  ;;  %17419 = vmatmul.mubr.msk.f32.vlgmr.msra.gmra.mxu0 %vm786_vm2, %v5568_v61 }
 0xc51   : > { %17422 = vmatpush3.xpose.msk.msra.mxu0 %vm786_vm2, %v5658_v56  ;;  %17423 = vmatprep.mubr.msk.f32.mxu0 %vm18724_vm1, %v21836_v42  ;;  %v5679_v31 = vadd.f32 %v17402_v0, %v5618_v43 }
 0xc52   : > { %v5670_v17 = vpop.f32.mrf.mxu0  ;;  %17431 = vmatprep.subr.mxu0 %v21836_v42 }
 0xc53   : > { %v5671_v53 = vadd.f32 %v5670_v17, %v5618_v43 }
 0xc54   : > { %v17403_v10 = vpop.f32.mrf.mxu0  ;;  %17424 = vmatmul.mubr.msk.f32.vlgmr.msra.gmra.mxu0 %vm786_vm2, %v5571_v22 }
 0xc55   : > { %17432 = vmatpush3.xpose.msk.msra.mxu0 %vm786_vm2, %v5666_v27  ;;  %17437 = vmatpush3.xpose.msk.msra.mxu1 %vm786_vm2, %v5671_v53  ;;  %v5682_v2 = vadd.f32 %v17403_v10, %v5618_v43 }
 0xc56   : > { %v5673_v15 = vpop.f32.mrf.mxu0  ;;  %17433 = vmatprep.mubr.msk.f32.mxu0 %vm18724_vm1, %v21836_v42  ;;  %17441 = vmatprep.subr.mxu0 %v21836_v42 }
 0xc57   : > { %v5674_v30 = vadd.f32 %v5673_v15, %v5618_v43  ;;  %17446 = vmatprep.subr.mxu1 %v21836_v42 }
 0xc58   : > { %17434 = vmatmul.mubr.msk.f32.vlgmr.msra.gmra.mxu0 %vm786_vm2, %v5579_v20  ;;  %17439 = vmatmul.mubr.msk.f32.vlgmr.msra.gmra.mxu1 %vm786_vm2, %v5584_v37 }
 0xc59   : > { %17442 = vmatpush3.xpose.msk.msra.mxu0 %vm786_vm2, %v5674_v30  ;;  %17447 = vmatpush3.xpose.msk.msra.mxu1 %vm786_vm2, %v5679_v31 }
 0xc5a   : > { %17443 = vmatprep.mubr.msk.f32.mxu0 %vm18724_vm1, %v21836_v42  ;;  %17448 = vmatprep.mubr.msk.f32.mxu1 %vm18724_vm1, %v21836_v42 }
 0xc5b   : > { %17451 = vmatprep.subr.mxu0 %v21836_v42  ;;  %17456 = vmatprep.subr.mxu1 %v21836_v42 }
 0xc5c   : > { %17444 = vmatmul.mubr.msk.f32.vlgmr.msra.gmra.mxu0 %vm786_vm2, %v5587_v26  ;;  %17449 = vmatmul.mubr.msk.f32.vlgmr.msra.gmra.mxu1 %vm786_vm2, %v5592_v16 }
 0xc5d   : > { %17452 = vmatpush3.xpose.msk.msra.mxu0 %vm786_vm2, %v5682_v2  ;;  %17453 = vmatprep.mubr.msk.f32.mxu0 %vm18724_vm1, %v21836_v42 }
 0xc5e   : > { %17461 = vmatprep.subr.mxu0 %v21836_v42  ;;  %17458 = vmatprep.mubr.msk.f32.mxu1 %vm18724_vm1, %v21836_v42 }
 0xc60   : > { %17454 = vmatmul.mubr.msk.f32.vlgmr.msra.gmra.mxu0 %vm786_vm2, %v5595_v38 }
 0xc61   : > { %17463 = vmatprep.mubr.msk.f32.mxu0 %vm18724_vm1, %v21836_v42 }
 0xd0e   : > { %v5996_v63 = vpop.f32.mrf.mxu1 }
 0xd0f   : > { %v6382_v47 = vmul.f32 0.35355338, %v5996_v63 }
 0xd10   : > { %v5844_v60 = vpop.f32.mrf.mxu0  ;;  %v17430_v43 = vpop.f32.mrf.mxu1 }
 0xd11   : > { %v6380_v21 = vmul.f32 0.35355338, %v5844_v60  ;;  %v6390_v44 = vadd.f32 %v19553_v9, %v6382_v47 }
 0xd12   : > { %v17420_v62 = vpop.f32.mrf.mxu0 }
 0xd13   : > { %v6388_v8 = vadd.f32 %v19537_v14, %v6380_v21  ;;  %v6402_v10 = vsel %vm786_vm2, %v6390_v44, -inf }
 0xd14   : > { %v5920_v13 = vpop.f32.mrf.mxu0 }
 0xd15   : > { %v6381_v32 = vmul.f32 0.35355338, %v5920_v13  ;;  %v6396_v45 = vsel %vm786_vm2, %v6388_v8, -inf }
 0xd16   : > { %6397 = vmax.xlane.f32.xlu1 %v6396_v45  ;;  %v17425_v58 = vpop.f32.mrf.mxu0 }
 0xd17   : > { %v6389_v7 = vadd.f32 %v19544_v57, %v6381_v32 }
 0xd18   : > { %v6072_v61 = vpop.f32.mrf.mxu0  ;;  %v6148_v33 = vpop.f32.mrf.mxu1 }
 0xd19   : > { %v6383_v56 = vmul.f32 0.35355338, %v6072_v61  ;;  %v6384_v0 = vmul.f32 0.35355338, %v6148_v33  ;;  %v6399_v22 = vsel %vm786_vm2, %v6389_v7, -inf }
 0xd1a   : > { %v17440_v17 = vpop.f32.mrf.mxu1  ;;  %6400 = vmax.xlane.f32.xlu0 %v6399_v22  ;;  %v17435_v14 = vpop.f32.mrf.mxu0 }
 0xd1b   : > { %v6391_v51 = vadd.f32 %v19563_v40, %v6383_v56  ;;  %v6392_v15 = vadd.f32 %v19549_v12, %v6384_v0 }
 0xd1c   : > { %v6224_v27 = vpop.f32.mrf.mxu0  ;;  %v6300_v53 = vpop.f32.mrf.mxu1 }
 0xd1d   : > { %v6385_v20 = vmul.f32 0.35355338, %v6224_v27  ;;  %v6386_v37 = vmul.f32 0.35355338, %v6300_v53  ;;  %v6405_v57 = vsel %vm786_vm2, %v6391_v51, -inf  ;;  %v6408_v40 = vsel %vm786_vm2, %v6392_v15, -inf }
 0xd1e   : > { %v17450_v9 = vpop.f32.mrf.mxu1  ;;  %6403 = vmax.xlane.f32.xlu0 %v6402_v10  ;;  %6406 = vmax.xlane.f32.xlu1 %v6405_v57  ;;  %v17445_v52 = vpop.f32.mrf.mxu0 }
 0xd1f   : > { %v6393_v31 = vadd.f32 %v19569_v29, %v6385_v20  ;;  %v6394_v2 = vadd.f32 %v19559_v25, %v6386_v37 }
 0xd20   : > { %v6376_v30 = vpop.f32.mrf.mxu0 }
 0xd21   : > { %v6387_v16 = vmul.f32 0.35355338, %v6376_v30  ;;  %v6411_v26 = vsel %vm786_vm2, %v6393_v31, -inf  ;;  %v6414_v12 = vsel %vm786_vm2, %v6394_v2, -inf }
 0xd22   : > { %6409 = vmax.xlane.f32.xlu0 %v6408_v40  ;;  %6412 = vmax.xlane.f32.xlu1 %v6411_v26  ;;  %v17455_v38 = vpop.f32.mrf.mxu0 }
 0xd23   : > { %v6395_v63 = vadd.f32 %v19574_v41, %v6387_v16 }
 0xd25   : > { %v6417_v60 = vsel %vm786_vm2, %v6395_v63, -inf }
 0xd26   : > { %6415 = vmax.xlane.f32.xlu0 %v6414_v12  ;;  %6418 = vmax.xlane.f32.xlu1 %v6417_v60 }
 0xd9f   : > { %v6398_v29 = vpop.xlane.xlu1 %6397 }
 0xda0   : > { %v6420_v62 = vsub.f32 %v6388_v8, %v6398_v29 }
 0xda2   : > { %v6428_v58 = vmul.f32 1.442695, %v6420_v62 }
 0xda3   : > { %v6401_v43 = vpop.xlane.xlu0 %6400 }
 0xda4   : > { %v6421_v21 = vsub.f32 %v6389_v7, %v6401_v43 }
 0xda6   : > { %v6430_v47 = vmul.f32 1.442695, %v6421_v21 }
 0xda7   : > { %v6404_v13 = vpop.xlane.xlu0 %6403  ;;  %v6407_v32 = vpop.xlane.xlu1 %6406 }
 0xda8   : > { %18379 = vpow2.f32 %v6430_v47  ;;  %v6422_v25 = vsub.f32 %v6390_v44, %v6404_v13  ;;  %v6423_v45 = vsub.f32 %v6391_v51, %v6407_v32 }
 0xdaa   : > { %v6432_v61 = vmul.f32 1.442695, %v6422_v25  ;;  %v6434_v33 = vmul.f32 1.442695, %v6423_v45 }
 0xdab   : > { %v6410_v41 = vpop.xlane.xlu0 %6409  ;;  %v6413_v56 = vpop.xlane.xlu1 %6412 }
 0xdac   : > { %18381 = vpow2.f32 %v6432_v61  ;;  %v6424_v0 = vsub.f32 %v6392_v15, %v6410_v41  ;;  %v6425_v22 = vsub.f32 %v6393_v31, %v6413_v56 }
 0xdad   : > { %18383 = vpow2.f32 %v6434_v33 }
 0xdae   : > { %18385 = vpow2.f32 %v6428_v58  ;;  %v6436_v17 = vmul.f32 1.442695, %v6424_v0  ;;  %v6438_v14 = vmul.f32 1.442695, %v6425_v22 }
 0xdaf   : > { %v6416_v7 = vpop.xlane.xlu0 %6415  ;;  %v6419_v8 = vpop.xlane.xlu1 %6418 }
 0xdb0   : > { %v6426_v27 = vsub.f32 %v6394_v2, %v6416_v7  ;;  %v6427_v53 = vsub.f32 %v6395_v63, %v6419_v8  ;;  %18387 = vpow2.f32 %v6438_v14 }
 0xdb1   : > { %18389 = vpow2.f32 %v6436_v17 }
 0xdb2   : > { %v6440_v44 = vmul.f32 1.442695, %v6426_v27  ;;  %v6442_v51 = vmul.f32 1.442695, %v6427_v53 }
 0xdb4   : > { %18391 = vpow2.f32 %v6442_v51 }
 0xdb5   : > { %v18380_v10 = vpop.eup %18379  ;;  %18393 = vpow2.f32 %v6440_v44 }
 0xdb6   : > { %v6447_v20 = vsel %vm786_vm2, %v18380_v10, 0.0 }
 0xdb7   : > { %6448 = vadd.xlane.f32.xlu1 %v6447_v20 }
 0xdb9   : > { %v18382_v37 = vpop.eup %18381 }
 0xdba   : > { %v18384_v57 = vpop.eup %18383  ;;  %v6450_v15 = vsel %vm786_vm2, %v18382_v37, 0.0 }
 0xdbb   : > { %v18386_v9 = vpop.eup %18385  ;;  %6451 = vadd.xlane.f32.xlu0 %v6450_v15  ;;  %v6453_v52 = vsel %vm786_vm2, %v18384_v57, 0.0 }
 0xdbc   : > { %6454 = vadd.xlane.f32.xlu1 %v6453_v52  ;;  %v6444_v30 = vsel %vm786_vm2, %v18386_v9, 0.0 }
 0xdbd   : > { %v18388_v31 = vpop.eup %18387 }
 0xdbe   : > { %v19808_v16 = vpop.eup %18389  ;;  %v6459_v40 = vsel %vm786_vm2, %v18388_v31, 0.0 }
 0xdbf   : > { %6445 = vadd.xlane.f32.xlu0 %v6444_v30  ;;  %v6456_v2 = vsel %vm786_vm2, %v19808_v16, 0.0 }
 0xdc0   : > { %6460 = vadd.xlane.f32.xlu1 %v6459_v40 }
 0xdc1   : > { %v19811_v26 = vpop.eup %18391 }
 0xdc2   : > { %v19815_v38 = vpop.eup %18393  ;;  %v6465_v63 = vsel %vm786_vm2, %v19811_v26, 0.0 }
 0xdc3   : > { %6457 = vadd.xlane.f32.xlu0 %v6456_v2  ;;  %v6462_v12 = vsel %vm786_vm2, %v19815_v38, 0.0 }
 0xdc4   : > { %6466 = vadd.xlane.f32.xlu1 %v6465_v63 }
 0xdc7   : > { %6463 = vadd.xlane.f32.xlu0 %v6462_v12 }
 0xddd   : > { %5704 = vrot.lane.b32.xlu0 %v19601_v6, %s18727_s12 }
 0xe40   : > { %v6449_v60 = vpop.xlane.xlu1 %6448 }
 0xe41   : > { %18395 = vrcp.f32 %v6449_v60 }
 0xe44   : > { %v6452_v29 = vpop.xlane.xlu0 %6451 }
 0xe45   : > { %v6455_v43 = vpop.xlane.xlu1 %6454 }
 0xe48   : > { %v6446_v21 = vpop.xlane.xlu0 %6445 }
 0xe49   : > { %18397 = vrcp.f32 %v6446_v21  ;;  %v6461_v62 = vpop.xlane.xlu1 %6460 }
 0xe4a   : > { %18399 = vrcp.f32 %v6455_v43 }
 0xe4b   : > { %18401 = vrcp.f32 %v6452_v29 }
 0xe4c   : > { %v6458_v47 = vpop.xlane.xlu0 %6457  ;;  %18403 = vrcp.f32 %v6461_v62 }
 0xe4d   : > { %v6467_v13 = vpop.xlane.xlu1 %6466  ;;  %18405 = vrcp.f32 %v6458_v47 }
 0xe4e   : > { %18407 = vrcp.f32 %v6467_v13  ;;  %v18396_v25 = vpop.eup %18395  ;;  %v7162_v13 = vld [vmem:[%s21802_s2 + $0x5] ss:$0 sm:$0xff] }
 0xe4f   : > { %v6477_v33 = vmul.f32 %v18396_v25, %v18380_v10 }
 0xe50   : > { %v6464_v32 = vpop.xlane.xlu0 %6463 }
 0xe51   : > { %18409 = vrcp.f32 %v6464_v32 }
 0xe54   : > { %v5705_v45 = vpop.permute.xlu0 %5704 }
 0xe55   : > { %v5742_v6 = vadd.f32 %v19774_v49, %v5705_v45  ;;  %v5745_v58 = vadd.f32 %v19778_v50, %v5705_v45  ;;  %v5750_v0 = vadd.f32 %v19772_v48, %v5705_v45  ;;  %v5753_v22 = vadd.f32 %v19776_v18, %v5705_v45 }
 0xe56   : > { %v18398_v61 = vpop.eup %18397  ;;  %v5761_v14 = vadd.f32 %v19786_v23, %v5705_v45  ;;  %v5758_v18 = vadd.f32 %v19782_v1, %v5705_v45  ;;  %v5769_v23 = vadd.f32 %v19784_v11, %v5705_v45  ;;  %v5766_v44 = vadd.f32 %v19780_v4, %v5705_v45  ;;  %v16168_v4 = vld [vmem:[%s21804_s4 + $0xc] sm:$0xf] }
 0xe57   : > { %v18400_v41 = vpop.eup %18399  ;;  %v6476_v56 = vmul.f32 %v18398_v61, %v18386_v9  ;;  %17457 = vmatpush3.msra.mxu1 %v5742_v6  ;;  %17462 = vmatpush3.msra.mxu0 %v5745_v58  ;;  %v7087_v10 = vsel %vm3711_vm3, %v16168_v4, 0  ;;  %v3833_v45 = vadd.f32 %v19429_v55, %v19470_v19 }
 0xe58   : > { %17464 = vmatmul.mubr.msk.f32.vlgmr.msra.gmra.mxu0 %vm786_vm2, %v6477_v33  ;;  %17466 = vmatprep.subr.mxu1 %v21836_v42  ;;  %v18402_v17 = vpop.eup %18401  ;;  %v6479_v49 = vmul.f32 %v18400_v41, %v18384_v57 }
 0xe59   : > { %17471 = vmatprep.subr.mxu0 %v21836_v42  ;;  %17459 = vmatmul.mubr.msk.f32.vlgmr.msra.gmra.mxu1 %vm786_vm2, %v6476_v56  ;;  %v18404_v50 = vpop.eup %18403  ;;  %v6478_v7 = vmul.f32 %v18402_v17, %v18382_v37  ;;  %v5504_v33 = vadd.f32 %v19716_v5, %v3833_v45 }
 0xe5a   : > { %17467 = vmatpush3.msra.mxu1 %v5750_v0  ;;  %17472 = vmatpush3.msra.mxu0 %v5753_v22  ;;  %v18406_v48 = vpop.eup %18405  ;;  %v6481_v8 = vmul.f32 %v18404_v50, %v18388_v31 }
 0xe5b   : > { %17473 = vmatprep.mubr.msk.f32.mxu0 %vm18724_vm1, %v21836_v42  ;;  %17481 = vmatprep.subr.mxu0 %v21836_v42  ;;  %v18408_v27 = vpop.eup %18407  ;;  %v6480_v53 = vmul.f32 %v18406_v48, %v19808_v16 }
 0xe5c   : > { %17468 = vmatprep.mubr.msk.f32.mxu1 %vm18724_vm1, %v21836_v42  ;;  %17474 = vmatmul.mubr.msk.f32.vlgmr.msra.gmra.mxu0 %vm786_vm2, %v6479_v49  ;;  %v6483_v51 = vmul.f32 %v18408_v27, %v19811_v26 }
 0xe5d   : > { %17476 = vmatprep.subr.mxu1 %v21836_v42  ;;  %17482 = vmatpush3.msra.mxu0 %v5761_v14 }
 0xe5e   : > { %17469 = vmatmul.mubr.msk.f32.vlgmr.msra.gmra.mxu1 %vm786_vm2, %v6478_v7  ;;  %17483 = vmatprep.mubr.msk.f32.mxu0 %vm18724_vm1, %v21836_v42  ;;  %v18410_v1 = vpop.eup %18409  ;;  %v21838_v7 = vld [vmem:[#allocation3_spill] sm:$0xff] }
 0xe5f   : > { %17477 = vmatpush3.msra.mxu1 %v5758_v18  ;;  %17491 = vmatprep.subr.mxu0 %v21836_v42  ;;  %v6482_v11 = vmul.f32 %v18410_v1, %v19815_v38 }
 0xe60   : > { %17478 = vmatprep.mubr.msk.f32.mxu1 %vm18724_vm1, %v21836_v42  ;;  %17484 = vmatmul.mubr.msk.f32.vlgmr.msra.gmra.mxu0 %vm786_vm2, %v6481_v8 }
 0xe61   : > { %17486 = vmatprep.subr.mxu1 %v21836_v42  ;;  %17492 = vmatpush3.msra.mxu0 %v5769_v23  ;;  %v21839_v23 = vld [vmem:[#allocation6_spill] sm:$0xff] }
 0xe62   : > { %17479 = vmatmul.mubr.msk.f32.vlgmr.msra.gmra.mxu1 %vm786_vm2, %v6480_v53  ;;  %17493 = vmatprep.mubr.msk.f32.mxu0 %vm18724_vm1, %v21836_v42 }
 0xe63   : > { %17487 = vmatpush3.msra.mxu1 %v5766_v44  ;;  %17488 = vmatprep.mubr.msk.f32.mxu1 %vm18724_vm1, %v21836_v42 }
 0xe64   : > { %17494 = vmatmul.mubr.msk.f32.vlgmr.msra.gmra.mxu0 %vm786_vm2, %v6483_v51  ;;  %18108 = vmatprep.subr.msk.bf16.mxu1 %vm3711_vm3, %v16168_v4 }
 0xe66   : > { %17489 = vmatmul.mubr.msk.f32.vlgmr.msra.gmra.mxu1 %vm786_vm2, %v6482_v11  ;;  %v21840_v11 = vld [vmem:[#allocation2_spill] sm:$0xff] }
 0xe67   : > { %17497 = vmatpush3.bf16.msra.mxu1 %v7087_v10 }
 0xf18   : > { %v6626_v20 = vpop.f32.mrf.mxu0 }
 0xf19   : > { %v6553_v37 = vpop.f32.mrf.mxu1 }
 0xf1a   : > { %v7068_v57 = vpack.c.bf16 %v6626_v20, %v6553_v37  ;;  %v17465_v15 = vpop.f32.mrf.mxu0  ;;  %v21841_v37 = vld [vmem:[#allocation4_spill] sm:$0xff] }
 0xf1b   : > { %v17460_v9 = vpop.f32.mrf.mxu1 }
 0xf1c   : > { %v6772_v52 = vpop.f32.mrf.mxu0  ;;  %17498 = vmatprep.mubr.msk.bf16.mxu1 %vm786_vm2, %v7068_v57  ;;  %v21842_v9 = vld [vmem:[#allocation5_spill] sm:$0xff] }
 0xf1e   : > { %v6699_v31 = vpop.f32.mrf.mxu1  ;;  %v17475_v30 = vpop.f32.mrf.mxu0 }
 0xf1f   : > { %v7069_v16 = vpack.c.bf16 %v6772_v52, %v6699_v31  ;;  %v21843_v30 = vld [vmem:[#allocation7_spill] sm:$0xff] }
 0xf20   : > { %v17470_v40 = vpop.f32.mrf.mxu1  ;;  %v6918_v26 = vpop.f32.mrf.mxu0 }
 0xf21   : > { %17499 = vmatmul.mubr.msk.bf16.vlgmr.msra.gmra.mxu1 %vm786_vm2, %v7069_v16 }
 0xf22   : > { %v6845_v2 = vpop.f32.mrf.mxu1  ;;  %v17485_v38 = vpop.f32.mrf.mxu0 }
 0xf23   : > { %v7070_v63 = vpack.c.bf16 %v6918_v26, %v6845_v2 }
 0xf24   : > { %v17480_v12 = vpop.f32.mrf.mxu1  ;;  %v7064_v60 = vpop.f32.mrf.mxu0 }
 0xf25   : > { %17502 = vmatprep.mubr.msk.bf16.mxu1 %vm786_vm2, %v7070_v63 }
 0xf26   : > { %v6991_v29 = vpop.f32.mrf.mxu1  ;;  %v17495_v43 = vpop.f32.mrf.mxu0 }
 0xf27   : > { %v7071_v21 = vpack.c.bf16 %v7064_v60, %v6991_v29 }
 0xf28   : > { %v17490_v62 = vpop.f32.mrf.mxu1 }
 0xf29   : > { %17503 = vmatmul.mubr.msk.bf16.gmra.mxu1 %vm786_vm2, %v7071_v21 }
 0xfe1   : > { %v17500_v47 = vpop.f32.mrf.mxu1 }
 0xfe2   : > { %v7156_v32 = vadd.f32 %v17500_v47, %v19708_v28 }
 0xfe3   : > { %v7123_v25 = vpop.f32.mrf.mxu1 }
 0xfe4   : > { %v7165_v6 = vadd.f32 %v7162_v13, %v7156_v32  ;;  %v7154_v58 = vadd.f32 %v7123_v25, %v19712_v34  ;;  %v21837_v34 = vld [vmem:[#allocation8_spill] sm:$0xff] }
 0xfe5   : > { %v17501_v61 = vpop.f32.mrf.mxu1  ;;  %v3849_v14 = vadd.f32 %v21837_v34, %v19478_v3 }
 0xfe6   : > { %v7163_v41 = vadd.f32 %v7162_v13, %v7154_v58  ;;  %v7157_v56 = vadd.f32 %v17501_v61, %v19714_v24  ;;  %v7173_v0 = vadd.f32 %v7165_v6, %v18887_v46 }
 0xfe7   : > { %v7126_v22 = vpop.f32.mrf.mxu1 }
 0xfe8   : > { %v7166_v17 = vadd.f32 %v7162_v13, %v7157_v56  ;;  %v7155_v49 = vadd.f32 %v7126_v22, %v5504_v33  ;;  %v7187_v28 = vsel %vm392_vm0, %v7173_v0, 0.0  ;;  %v7171_v50 = vadd.f32 %v7163_v41, %v18877_v36 }
 0xfe9   : > { %7188 = vadd.xlane.f32.xlu1 %v7187_v28  ;;  %v17504_v55 = vpop.f32.mrf.mxu1  ;;  %v5508_v36 = vadd.f32 %v19730_v54, %v3849_v14 }
 0xfea   : > { %v7160_v19 = vadd.f32 %v17504_v55, %v19722_v35  ;;  %v7174_v48 = vadd.f32 %v7166_v17, %v21838_v7  ;;  %v7164_v24 = vadd.f32 %v7162_v13, %v7155_v49  ;;  %v7181_v8 = vsel %vm392_vm0, %v7171_v50, 0.0 }
 0xfeb   : > { %v7139_v5 = vpop.f32.mrf.mxu1 }
 0xfec   : > { %v7169_v18 = vadd.f32 %v7162_v13, %v7160_v19  ;;  %v7158_v46 = vadd.f32 %v7139_v5, %v19726_v59  ;;  %v7190_v35 = vsel %vm392_vm0, %v7174_v48, 0.0  ;;  %v7172_v4 = vadd.f32 %v7164_v24, %v21840_v11 }
 0xfed   : > { %v17505_v27 = vpop.f32.mrf.mxu1  ;;  %7182 = vadd.xlane.f32.xlu1 %v7181_v8 }
 0xfee   : > { %v7177_v53 = vadd.f32 %v7169_v18, %v21839_v23  ;;  %v7167_v44 = vadd.f32 %v7162_v13, %v7158_v46  ;;  %v7161_v59 = vadd.f32 %v17505_v27, %v19728_v39  ;;  %v7184_v20 = vsel %vm392_vm0, %v7172_v4, 0.0  ;;  %v18154_v23 = vld [vmem:[%s21805_s5] sm:$0xff]  }
 0xfef   : > { %v7142_v1 = vpop.f32.mrf.mxu1 }
 0xff0   : > { %v7159_v3 = vadd.f32 %v7142_v1, %v5508_v36  ;;  %v7199_v51 = vsel %vm392_vm0, %v7177_v53, 0.0  ;;  %v7175_v54 = vadd.f32 %v7167_v44, %v21841_v37  ;;  %v7170_v57 = vadd.f32 %v7162_v13, %v7161_v59  ;;  %v18153_v36 = vld [vmem:[%s21805_s5 + $0x8] sm:$0xff]  }
 0xff1   : > { %7200 = vadd.xlane.f32.xlu0 %v7199_v51  ;;  %7191 = vadd.xlane.f32.xlu1 %v7190_v35 }
 0xff2   : > { %v7168_v10 = vadd.f32 %v7162_v13, %v7159_v3  ;;  %v7193_v15 = vsel %vm392_vm0, %v7175_v54, 0.0  ;;  %v7178_v16 = vadd.f32 %v7170_v57, %v21843_v30  ;;  %17506 = vmatprep.subr.bf16.mxu0 %v18153_v36 }
 0xff3   : > { %17507 = vmatpush3.bf16.msra.mxu0 %v18153_v36 }
 0xff4   : > { %v7176_v52 = vadd.f32 %v7168_v10, %v21842_v9  ;;  %v7202_v40 = vsel %vm392_vm0, %v7178_v16, 0.0  ;;  %17508 = vmatprep.subr.bf16.mxu0 %v18154_v23 }
 0xff5   : > { %7185 = vadd.xlane.f32.xlu1 %v7184_v20 }
 0xff6   : > { %v7196_v31 = vsel %vm392_vm0, %v7176_v52, 0.0 }
 0xff7   : > { %17509 = vmatpush3.bf16.msra.mxu0 %v18154_v23 }
 0xff9   : > { %7194 = vadd.xlane.f32.xlu1 %v7193_v15 }
 0xffd   : > { %7197 = vadd.xlane.f32.xlu1 %v7196_v31 }
0x1001   : > { %7203 = vadd.xlane.f32.xlu1 %v7202_v40 }
0x1072   : > { %v7189_v39 = vpop.xlane.xlu1 %7188 }
0x1073   : > { %v7207_v26 = vmul.f32 0.03125, %v7189_v39 }
0x1075   : > { %v19900_v2 = vsub.f32 %v7173_v0, %v7207_v26 }
0x1076   : > { %v7183_v38 = vpop.xlane.xlu1 %7182 }
0x1077   : > { %v7205_v63 = vmul.f32 0.03125, %v7183_v38  ;;  %v7223_v12 = vmul.f32 %v19900_v2, %v19900_v2 }
0x1079   : > { %v19904_v60 = vsub.f32 %v7171_v50, %v7205_v63  ;;  %v7235_v29 = vsel %vm392_vm0, %v7223_v12, 0.0 }
0x107a   : > { %7236 = vadd.xlane.f32.xlu1 %v7235_v29  ;;  %v7192_v43 = vpop.xlane.xlu1 %7191  ;;  %v7201_v61 = vpop.xlane.xlu0 %7200 }
0x107b   : > { %v7208_v21 = vmul.f32 0.03125, %v7192_v43  ;;  %v7221_v62 = vmul.f32 %v19904_v60, %v19904_v60  ;;  %v7211_v0 = vmul.f32 0.03125, %v7201_v61 }
0x107d   : > { %v19909_v47 = vsub.f32 %v7174_v48, %v7208_v21  ;;  %v7229_v13 = vsel %vm392_vm0, %v7221_v62, 0.0  ;;  %v19924_v55 = vsub.f32 %v7177_v53, %v7211_v0 }
0x107e   : > { %7230 = vadd.xlane.f32.xlu1 %v7229_v13  ;;  %v7186_v32 = vpop.xlane.xlu1 %7185  ;;  %v7179_v13 = vld [vmem:[%s21802_s2 + $0x6] ss:$0 sm:$0xff] }
0x107f   : > { %v7206_v25 = vmul.f32 0.03125, %v7186_v32  ;;  %v7224_v45 = vmul.f32 %v19909_v47, %v19909_v47  ;;  %v7227_v18 = vmul.f32 %v19924_v55, %v19924_v55 }
0x1081   : > { %v19914_v6 = vsub.f32 %v7172_v4, %v7206_v25  ;;  %v7238_v58 = vsel %vm392_vm0, %v7224_v45, 0.0  ;;  %v7247_v8 = vsel %vm392_vm0, %v7227_v18, 0.0 }
0x1082   : > { %7239 = vadd.xlane.f32.xlu1 %v7238_v58  ;;  %v7195_v33 = vpop.xlane.xlu1 %7194 }
0x1083   : > { %v7209_v41 = vmul.f32 0.03125, %v7195_v33  ;;  %v7222_v56 = vmul.f32 %v19914_v6, %v19914_v6 }
0x1085   : > { %v19919_v22 = vsub.f32 %v7175_v54, %v7209_v41  ;;  %v7232_v17 = vsel %vm392_vm0, %v7222_v56, 0.0 }
0x1086   : > { %7233 = vadd.xlane.f32.xlu1 %v7232_v17  ;;  %v7198_v49 = vpop.xlane.xlu1 %7197 }
0x1087   : > { %v7210_v28 = vmul.f32 0.03125, %v7198_v49  ;;  %v7225_v50 = vmul.f32 %v19919_v22, %v19919_v22 }
0x1089   : > { %v19926_v19 = vsub.f32 %v7176_v52, %v7210_v28  ;;  %v7241_v34 = vsel %vm392_vm0, %v7225_v50, 0.0 }
0x108a   : > { %7242 = vadd.xlane.f32.xlu1 %v7241_v34  ;;  %v7204_v14 = vpop.xlane.xlu1 %7203 }
0x108b   : > { %v7212_v5 = vmul.f32 0.03125, %v7204_v14  ;;  %v7226_v7 = vmul.f32 %v19926_v19, %v19926_v19 }
0x108d   : > { %v19931_v48 = vsub.f32 %v7178_v16, %v7212_v5  ;;  %v7244_v24 = vsel %vm392_vm0, %v7226_v7, 0.0 }
0x108e   : > { %7245 = vadd.xlane.f32.xlu1 %v7244_v24 }
0x108f   : > { %v7228_v46 = vmul.f32 %v19931_v48, %v19931_v48 }
0x1091   : > { %v7250_v27 = vsel %vm392_vm0, %v7228_v46, 0.0 }
0x1092   : > { %7248 = vadd.xlane.f32.xlu1 %v7247_v8  ;;  %7251 = vadd.xlane.f32.xlu0 %v7250_v27 }
0x1103   : > { %v7237_v53 = vpop.xlane.xlu1 %7236 }
0x1104   : > { %v7255_v1 = vmul.f32 0.03125, %v7237_v53  ;;  %v18156_v53 = vld [vmem:[%s21806_s6 + $0x10] sm:$0xff]  }
0x1106   : > { %v7263_v51 = vadd.f32 1e-12, %v7255_v1  ;;  %v18157_v1 = vld [vmem:[%s21806_s6 + $0x8] sm:$0xff]  }
0x1107   : > { %v7231_v35 = vpop.xlane.xlu1 %7230 }
0x1108   : > { %v7253_v44 = vmul.f32 0.03125, %v7231_v35  ;;  %v18158_v35 = vld [vmem:[%s21806_s6] sm:$0xff]  }
0x110a   : > { %v7261_v3 = vadd.f32 1e-12, %v7253_v44  ;;  %v7309_v44 = vld [vmem:[%s21802_s2 + $0x30] ss:$0 sm:$0xff] }
0x110b   : > { %v7240_v11 = vpop.xlane.xlu1 %7239 }
0x110c   : > { %v7256_v4 = vmul.f32 0.03125, %v7240_v11  ;;  %18411 = vrsqrt.f32 %v7261_v3 }
0x110d   : > { %18413 = vrsqrt.f32 %v7263_v51 }
0x110e   : > { %v7264_v59 = vadd.f32 1e-12, %v7256_v4 }
0x110f   : > { %v7234_v10 = vpop.xlane.xlu1 %7233 }
0x1110   : > { %18415 = vrsqrt.f32 %v7264_v59  ;;  %v7254_v20 = vmul.f32 0.03125, %v7234_v10 }
0x1112   : > { %v7262_v37 = vadd.f32 1e-12, %v7254_v20 }
0x1113   : > { %v7243_v54 = vpop.xlane.xlu1 %7242 }
0x1114   : > { %18417 = vrsqrt.f32 %v7262_v37  ;;  %v7257_v57 = vmul.f32 0.03125, %v7243_v54 }
0x1116   : > { %v7265_v15 = vadd.f32 1e-12, %v7257_v57 }
0x1117   : > { %v7246_v9 = vpop.xlane.xlu1 %7245 }
0x1118   : > { %18419 = vrsqrt.f32 %v7265_v15  ;;  %v7258_v52 = vmul.f32 0.03125, %v7246_v9 }
0x1119   : > { %v18412_v30 = vpop.eup %18411 }
0x111a   : > { %v7266_v31 = vadd.f32 1e-12, %v7258_v52  ;;  %v18414_v39 = vpop.eup %18413  ;;  %v7277_v21 = vmul.f32 %v18412_v30, %v19904_v60 }
0x111b   : > { %v7252_v16 = vpop.xlane.xlu0 %7251  ;;  %v7249_v40 = vpop.xlane.xlu1 %7248  ;;  %v7279_v62 = vmul.f32 %v18414_v39, %v19900_v2 }
0x111c   : > { %18421 = vrsqrt.f32 %v7266_v31  ;;  %v7260_v26 = vmul.f32 0.03125, %v7252_v16  ;;  %v7259_v38 = vmul.f32 0.03125, %v7249_v40  ;;  %v7285_v58 = vmul.f32 %v7277_v21, %v7179_v13 }
0x111d   : > { %v18416_v63 = vpop.eup %18415  ;;  %v7287_v61 = vmul.f32 %v7279_v62, %v7179_v13 }
0x111e   : > { %v7280_v12 = vmul.f32 %v18416_v63, %v19909_v47  ;;  %v7268_v29 = vadd.f32 1e-12, %v7260_v26  ;;  %v7267_v43 = vadd.f32 1e-12, %v7259_v38  ;;  %v7180_v47 = vld [vmem:[%s21802_s2 + $0x7] ss:$0 sm:$0xff] }
0x111f   : > { %v19958_v2 = vadd.f32 %v7285_v58, %v7180_v47  ;;  %v19963_v17 = vadd.f32 %v7287_v61, %v7180_v47 }
0x1120   : > { %18423 = vrsqrt.f32 %v7268_v29  ;;  %v7288_v25 = vmul.f32 %v7280_v12, %v7179_v13 }
0x1121   : > { %v18418_v32 = vpop.eup %18417  ;;  %18425 = vrsqrt.f32 %v7267_v43 }
0x1122   : > { %v7278_v45 = vmul.f32 %v18418_v32, %v19914_v6  ;;  %v19956_v41 = vadd.f32 %v7288_v25, %v7180_v47 }
0x1124   : > { %v7286_v33 = vmul.f32 %v7278_v45, %v7179_v13  ;;  %v7302_v28 = vpack.c.bf16 %v19956_v41, %v19963_v17 }
0x1125   : > { %v18420_v60 = vpop.eup %18419 }
0x1126   : > { %v19960_v56 = vadd.f32 %v7286_v33, %v7180_v47  ;;  %v7281_v0 = vmul.f32 %v18420_v60, %v19919_v22 }
0x1128   : > { %v7301_v6 = vpack.c.bf16 %v19960_v56, %v19958_v2  ;;  %v7289_v34 = vmul.f32 %v7281_v0, %v7179_v13 }
0x1129   : > { %v18422_v49 = vpop.eup %18421 }
0x112a   : > { %17510 = vmatprep.mubr.msk.bf16.mxu0 %vm392_vm0, %v7301_v6  ;;  %v7282_v50 = vmul.f32 %v18422_v49, %v19926_v19  ;;  %v19973_v24 = vadd.f32 %v7289_v34, %v7180_v47 }
0x112b   : > { %17511 = vmatmul.mubr.msk.bf16.vlgmr.msra.gmra.mxu0 %vm392_vm0, %v7302_v28 }
0x112c   : > { %v7290_v14 = vmul.f32 %v7282_v50, %v7179_v13 }
0x112d   : > { %v18424_v5 = vpop.eup %18423 }
0x112e   : > { %v18426_v7 = vpop.eup %18425  ;;  %v7284_v22 = vmul.f32 %v18424_v5, %v19931_v48  ;;  %v19975_v18 = vadd.f32 %v7290_v14, %v7180_v47 }
0x112f   : > { %v7283_v46 = vmul.f32 %v18426_v7, %v19924_v55  ;;  %v18155_v55 = vld [vmem:[%s21806_s6 + $0x18] sm:$0xff]  }
0x1130   : > { %v7303_v8 = vpack.c.bf16 %v19975_v18, %v19973_v24  ;;  %v7292_v27 = vmul.f32 %v7284_v22, %v7179_v13  ;;  %17518 = vmatprep.subr.bf16.mxu1 %v18155_v55 }
0x1131   : > { %v7291_v36 = vmul.f32 %v7283_v46, %v7179_v13  ;;  %17519 = vmatpush3.bf16.msra.mxu1 %v18155_v55 }
0x1132   : > { %17514 = vmatprep.mubr.msk.bf16.mxu0 %vm392_vm0, %v7303_v8  ;;  %v19981_v19 = vadd.f32 %v7292_v27, %v7180_v47  ;;  %17520 = vmatprep.subr.bf16.mxu1 %v18156_v53 }
0x1133   : > { %v19983_v23 = vadd.f32 %v7291_v36, %v7180_v47 }
0x1135   : > { %v7304_v48 = vpack.c.bf16 %v19981_v19, %v19983_v23  ;;  %17521 = vmatpush3.bf16.msra.mxu1 %v18156_v53 }
0x1136   : > { %17522 = vmatprep.subr.bf16.mxu1 %v18157_v1 }
0x1137   : > { %17515 = vmatmul.mubr.msk.bf16.gmra.mxu0 %vm392_vm0, %v7304_v48 }
0x1139   : > { %17523 = vmatpush3.bf16.msra.mxu1 %v18157_v1 }
0x113a   : > { %17524 = vmatprep.subr.bf16.mxu1 %v18158_v35 }
0x113d   : > { %17525 = vmatpush3.bf16.msra.mxu1 %v18158_v35 }
0x11eb   : > { %v17512_v3 = vpop.f32.mrf.mxu0 }
0x11ec   : > { %v20003_v51 = vadd.f32 %v17512_v3, %v7309_v44 }
0x11ed   : > { %v7368_v11 = vpop.f32.mrf.mxu0 }
0x11ee   : > { %v20006_v4 = vmul.f32 0.70710677, %v20003_v51  ;;  %v20008_v59 = vadd.f32 %v7368_v11, %v7309_v44 }
0x11ef   : > { %v17513_v10 = vpop.f32.mrf.mxu0 }
0x11f0   : > { %v7433_v20 = vand.u32 2147483647, %v20006_v4  ;;  %v20012_v37 = vmul.f32 0.70710677, %v20008_v59  ;;  %v20014_v54 = vadd.f32 %v17513_v10, %v7309_v44  ;;  %vm7417_vm4 = vcmp.ge.f32.partialorder %v20006_v4, 0.0 }
0x11f1   : > { %v7371_v57 = vpop.f32.mrf.mxu0 }
0x11f2   : > { %v7441_v15 = vmul.f32 0.3275911, %v7433_v20  ;;  %v7431_v9 = vand.u32 2147483647, %v20012_v37  ;;  %v20018_v52 = vmul.f32 0.70710677, %v20014_v54  ;;  %v20020_v31 = vadd.f32 %v7371_v57, %v7309_v44 }
0x11f3   : > { %v7545_v32 = vsub.f32 0.0, %v7433_v20  ;;  %vm7415_vm5 = vcmp.ge.f32.partialorder %v20012_v37, 0.0 }
0x11f4   : > { %v7449_v30 = vadd.f32 1.0, %v7441_v15  ;;  %v7439_v16 = vmul.f32 0.3275911, %v7431_v9  ;;  %v7434_v40 = vand.u32 2147483647, %v20018_v52  ;;  %v7543_v47 = vsub.f32 0.0, %v7431_v9 }
0x11f5   : > { %v20024_v39 = vmul.f32 0.70710677, %v20020_v31  ;;  %v7553_v6 = vmul.f32 %v7545_v32, %v7433_v20  ;;  %vm7418_vm6 = vcmp.ge.f32.partialorder %v20018_v52, 0.0 }
0x11f6   : > { %18427 = vrcp.f32 %v7449_v30  ;;  %v7447_v26 = vadd.f32 1.0, %v7439_v16  ;;  %v7442_v38 = vmul.f32 0.3275911, %v7434_v40  ;;  %v7546_v50 = vsub.f32 0.0, %v7434_v40 }
0x11f7   : > { %v17516_v63 = vpop.f32.mrf.mxu0  ;;  %v7432_v12 = vand.u32 2147483647, %v20024_v39  ;;  %v7551_v5 = vmul.f32 %v7543_v47, %v7431_v9  ;;  %v7563_v36 = vmul.f32 1.442695, %v7553_v6  ;;  %vm7416_vm7 = vcmp.ge.f32.partialorder %v20024_v39, 0.0 }
0x11f8   : > { %18429 = vrcp.f32 %v7447_v26  ;;  %v7450_v29 = vadd.f32 1.0, %v7442_v38  ;;  %v20027_v43 = vadd.f32 %v17516_v63, %v7309_v44  ;;  %v7554_v53 = vmul.f32 %v7546_v50, %v7434_v40 }
0x11f9   : > { %v7384_v21 = vpop.f32.mrf.mxu0  ;;  %v7440_v62 = vmul.f32 0.3275911, %v7432_v12  ;;  %v7544_v1 = vsub.f32 0.0, %v7432_v12 }
0x11fa   : > { %v20029_v13 = vadd.f32 %v7384_v21, %v7309_v44  ;;  %18431 = vrcp.f32 %v7450_v29  ;;  %v20032_v25 = vmul.f32 0.70710677, %v20027_v43  ;;  %v7565_v40 = vmul.f32 1.442695, %v7554_v53 }
0x11fb   : > { %v17517_v45 = vpop.f32.mrf.mxu0  ;;  %v7448_v58 = vadd.f32 1.0, %v7440_v62  ;;  %v7552_v26 = vmul.f32 %v7544_v1, %v7432_v12  ;;  %v21819_v62 = vmov -1.0  }
0x11fc   : > { %v20035_v61 = vmul.f32 0.70710677, %v20029_v13  ;;  %v7437_v33 = vand.u32 2147483647, %v20032_v25  ;;  %v20038_v60 = vadd.f32 %v17517_v45, %v7309_v44  ;;  %v20069_v32 = vsel %vm7417_vm4, 1.0, %v21819_v62 }
0x11fd   : > { %v7387_v0 = vpop.f32.mrf.mxu0  ;;  %18433 = vrcp.f32 %v7448_v58  ;;  %v20078_v50 = vsel %vm7415_vm5, 1.0, %v21819_v62  ;;  %v7426_v52 = vsel %vm7418_vm6, 1.0, %v21819_v62  ;;  %vm7421_vm9 = vcmp.ge.f32.partialorder %v20032_v25, 0.0 }
0x11fe   : > { %v7445_v49 = vmul.f32 0.3275911, %v7437_v33  ;;  %v7435_v28 = vand.u32 2147483647, %v20035_v61  ;;  %v20042_v34 = vmul.f32 0.70710677, %v20038_v60  ;;  %v20044_v14 = vadd.f32 %v7387_v0, %v7309_v44 }
0x11ff   : > { %v7559_v44 = vmul.f32 1.442695, %v7551_v5  ;;  %v7549_v20 = vsub.f32 0.0, %v7437_v33  ;;  %v7561_v5 = vmul.f32 1.442695, %v7552_v26  ;;  %vm7419_vm10 = vcmp.ge.f32.partialorder %v20035_v61, 0.0 }
0x1200   : > { %v7453_v7 = vadd.f32 1.0, %v7445_v49  ;;  %v7443_v22 = vmul.f32 0.3275911, %v7435_v28  ;;  %v7438_v46 = vand.u32 2147483647, %v20042_v34  ;;  %v7547_v29 = vsub.f32 0.0, %v7435_v28 }
0x1201   : > { %v20048_v8 = vmul.f32 0.70710677, %v20044_v14  ;;  %v7557_v58 = vmul.f32 %v7549_v20, %v7437_v33  ;;  %vm7422_vm11 = vcmp.ge.f32.partialorder %v20042_v34, 0.0 }
0x1202   : > { %18435 = vrcp.f32 %v7453_v7  ;;  %v7451_v48 = vadd.f32 1.0, %v7443_v22  ;;  %v7446_v35 = vmul.f32 0.3275911, %v7438_v46  ;;  %v7550_v6 = vsub.f32 0.0, %v7438_v46 }
0x1203   : > { %v20050_v27 = vpop.eup %18427  ;;  %v20055_v3 = vand.u32 2147483647, %v20048_v8  ;;  %v7555_v22 = vmul.f32 %v7547_v29, %v7435_v28  ;;  %v7430_v34 = vsel %vm7422_vm11, 1.0, %v21819_v62  ;;  %vm7420_vm12 = vcmp.ge.f32.partialorder %v20048_v8, 0.0 }
0x1204   : > { %v7473_v55 = vmul.f32 1.0614054, %v20050_v27  ;;  %18437 = vrcp.f32 %v7451_v48  ;;  %v7454_v57 = vadd.f32 1.0, %v7446_v35  ;;  %v7558_v35 = vmul.f32 %v7550_v6, %v7438_v46 }
0x1205   : > { %v20057_v11 = vpop.eup %18429  ;;  %18439 = vpow2.f32 %v7563_v36  ;;  %v7444_v9 = vmul.f32 0.3275911, %v20055_v3  ;;  %v7548_v20 = vsub.f32 0.0, %v20055_v3  ;;  %v7428_v25 = vsel %vm7420_vm12, 1.0, %v21819_v62 }
0x1206   : > { %v7481_v10 = vadd.f32 -1.4531521, %v7473_v55  ;;  %v7471_v15 = vmul.f32 1.0614054, %v20057_v11  ;;  %18441 = vrcp.f32 %v7454_v57  ;;  %v7571_v55 = vmul.f32 1.442695, %v7557_v58 }
0x1207   : > { %v20062_v30 = vpop.eup %18431  ;;  %v7452_v21 = vadd.f32 1.0, %v7444_v9  ;;  %18443 = vpow2.f32 %v7559_v44  ;;  %v7567_v9 = vmul.f32 1.442695, %v7555_v22  ;;  %v7573_v29 = vmul.f32 1.442695, %v7558_v35 }
0x1208   : > { %v7489_v16 = vmul.f32 %v20050_v27, %v7481_v10  ;;  %v7479_v38 = vadd.f32 -1.4531521, %v7471_v15  ;;  %v7474_v63 = vmul.f32 1.0614054, %v20062_v30  ;;  %v7405_v8 = vmul.f32 0.5, %v20027_v43 }
0x1209   : > { %18445 = vrcp.f32 %v7452_v21 }
0x120a   : > { %v7497_v45 = vadd.f32 1.4214138, %v7489_v16  ;;  %v20071_v47 = vpop.eup %18433  ;;  %v7487_v0 = vmul.f32 %v20057_v11, %v7479_v38  ;;  %v7482_v12 = vadd.f32 -1.4531521, %v7474_v63  ;;  %18447 = vpow2.f32 %v7565_v40 }
0x120b   : > { %v7472_v4 = vmul.f32 1.0614054, %v20071_v47  ;;  %18449 = vpow2.f32 %v7561_v5 }
0x120c   : > { %v7505_v49 = vmul.f32 %v20050_v27, %v7497_v45  ;;  %v7495_v7 = vadd.f32 1.4214138, %v7487_v0  ;;  %v7490_v33 = vmul.f32 %v20062_v30, %v7482_v12  ;;  %18451 = vpow2.f32 %v7571_v55 }
0x120d   : > { %v7480_v48 = vadd.f32 -1.4531521, %v7472_v4  ;;  %v7556_v12 = vmul.f32 %v7548_v20, %v20055_v3  ;;  %18453 = vpow2.f32 %v7567_v9 }
0x120e   : > { %v7513_v36 = vadd.f32 -0.28449672, %v7505_v49  ;;  %v7503_v53 = vmul.f32 %v20057_v11, %v7495_v7  ;;  %v7498_v1 = vadd.f32 1.4214138, %v7490_v33  ;;  %18455 = vpow2.f32 %v7573_v29 }
0x120f   : > { %v20084_v37 = vpop.eup %18435  ;;  %v7488_v10 = vmul.f32 %v20071_v47, %v7480_v48 }
0x1210   : > { %v7521_v44 = vmul.f32 %v20050_v27, %v7513_v36  ;;  %v7511_v57 = vadd.f32 -0.28449672, %v7503_v53  ;;  %v7506_v28 = vmul.f32 %v20062_v30, %v7498_v1  ;;  %v7477_v15 = vmul.f32 1.0614054, %v20084_v37 }
0x1211   : > { %v7496_v40 = vadd.f32 1.4214138, %v7488_v10  ;;  %v20092_v46 = vpop.eup %18437  ;;  %v7569_v10 = vmul.f32 1.442695, %v7556_v12 }
0x1212   : > { %v7529_v16 = vadd.f32 0.2548296, %v7521_v44  ;;  %v7519_v26 = vmul.f32 %v20057_v11, %v7511_v57  ;;  %v7514_v38 = vadd.f32 -0.28449672, %v7506_v28  ;;  %v7485_v63 = vadd.f32 -1.4531521, %v7477_v15  ;;  %v18440_v21 = vpop.eup %18439 }
0x1213   : > { %v7504_v58 = vmul.f32 %v20071_v47, %v7496_v40  ;;  %v7475_v0 = vmul.f32 1.0614054, %v20092_v46  ;;  %v20099_v6 = vpop.eup %18441  ;;  %18457 = vpow2.f32 %v7569_v10 }
0x1214   : > { %v7537_v45 = vmul.f32 %v20050_v27, %v7529_v16  ;;  %v7527_v49 = vadd.f32 0.2548296, %v7519_v26  ;;  %v7522_v4 = vmul.f32 %v20062_v30, %v7514_v38  ;;  %v7493_v5 = vmul.f32 %v20084_v37, %v7485_v63  ;;  %v18444_v27 = vpop.eup %18443 }
0x1215   : > { %v7512_v33 = vadd.f32 -0.28449672, %v7504_v58  ;;  %v7483_v22 = vadd.f32 -1.4531521, %v7475_v0  ;;  %v7478_v36 = vmul.f32 1.0614054, %v20099_v6 }
0x1216   : > { %v7577_v7 = vmul.f32 %v18440_v21, %v7537_v45  ;;  %v7535_v48 = vmul.f32 %v20057_v11, %v7527_v49  ;;  %v7530_v55 = vadd.f32 0.2548296, %v7522_v4  ;;  %v7501_v53 = vadd.f32 1.4214138, %v7493_v5  ;;  %v20105_v3 = vpop.eup %18445 }
0x1217   : > { %v7520_v1 = vmul.f32 %v20071_v47, %v7512_v33  ;;  %v7491_v35 = vmul.f32 %v20092_v46, %v7483_v22  ;;  %v7486_v44 = vadd.f32 -1.4531521, %v7478_v36  ;;  %v7476_v15 = vmul.f32 1.0614054, %v20105_v3  ;;  %v18448_v9 = vpop.eup %18447 }
0x1218   : > { %v7575_v20 = vmul.f32 %v18444_v27, %v7535_v48  ;;  %v7538_v57 = vmul.f32 %v20062_v30, %v7530_v55  ;;  %v7509_v28 = vmul.f32 %v20084_v37, %v7501_v53  ;;  %v7585_v11 = vsub.f32 1.0, %v7577_v7  ;;  %v18450_v0 = vpop.eup %18449 }
0x1219   : > { %v7528_v16 = vadd.f32 0.2548296, %v7520_v1  ;;  %v7499_v40 = vadd.f32 1.4214138, %v7491_v35  ;;  %v7494_v26 = vmul.f32 %v20099_v6, %v7486_v44  ;;  %v7484_v21 = vadd.f32 -1.4531521, %v7476_v15  ;;  %v18452_v36 = vpop.eup %18451 }
0x121a   : > { %v7583_v38 = vsub.f32 1.0, %v7575_v20  ;;  %v7578_v63 = vmul.f32 %v18448_v9, %v7538_v57  ;;  %v7517_v29 = vadd.f32 -0.28449672, %v7509_v28  ;;  %v7593_v27 = vmul.f32 %v7585_v11, %v20069_v32  ;;  %v18454_v32 = vpop.eup %18453 }
0x121b   : > { %v7536_v45 = vmul.f32 %v20071_v47, %v7528_v16  ;;  %v7507_v30 = vmul.f32 %v20092_v46, %v7499_v40  ;;  %v7502_v58 = vadd.f32 1.4214138, %v7494_v26  ;;  %v7492_v4 = vmul.f32 %v20105_v3, %v7484_v21  ;;  %v18456_v26 = vpop.eup %18455 }
0x121c   : > { %v7586_v12 = vsub.f32 1.0, %v7578_v63  ;;  %v7525_v49 = vmul.f32 %v20084_v37, %v7517_v29  ;;  %v7591_v5 = vmul.f32 %v7583_v38, %v20078_v50  ;;  %v7399_v53 = vmul.f32 0.5, %v20008_v59 }
0x121d   : > { %v7576_v7 = vmul.f32 %v18450_v0, %v7536_v45  ;;  %v7515_v33 = vadd.f32 -0.28449672, %v7507_v30  ;;  %v7510_v22 = vmul.f32 %v20099_v6, %v7502_v58  ;;  %v7500_v55 = vadd.f32 1.4214138, %v7492_v4 }
0x121e   : > { %v7594_v47 = vmul.f32 %v7586_v12, %v7426_v52  ;;  %v7533_v48 = vadd.f32 0.2548296, %v7525_v49  ;;  %v7424_v50 = vsel %vm7416_vm7, 1.0, %v21819_v62  ;;  %v7599_v52 = vadd.f32 1.0, %v7591_v5 }
0x121f   : > { %v7584_v1 = vsub.f32 1.0, %v7576_v7  ;;  %v7523_v35 = vmul.f32 %v20092_v46, %v7515_v33  ;;  %v7518_v44 = vadd.f32 -0.28449672, %v7510_v22  ;;  %v7508_v57 = vmul.f32 %v20105_v3, %v7500_v55 }
0x1220   : > { %v7602_v10 = vadd.f32 1.0, %v7594_v47  ;;  %v7541_v20 = vmul.f32 %v20084_v37, %v7533_v48  ;;  %v7601_v59 = vadd.f32 1.0, %v7593_v27  ;;  %v7402_v11 = vmul.f32 0.5, %v20014_v54  ;;  %v18458_v33 = vpop.eup %18457 }
0x1221   : > { %v7592_v28 = vmul.f32 %v7584_v1, %v7424_v50  ;;  %v7531_v15 = vadd.f32 0.2548296, %v7523_v35  ;;  %v7526_v9 = vmul.f32 %v20099_v6, %v7518_v44  ;;  %v7400_v16 = vmul.f32 0.5, %v20020_v31 }
0x1222   : > { %v7516_v40 = vadd.f32 -0.28449672, %v7508_v57  ;;  %v7581_v39 = vmul.f32 %v18452_v36, %v7541_v20  ;;  %v7401_v29 = vmul.f32 0.5, %v20003_v51  ;;  %v7610_v21 = vmul.f32 %v7602_v10, %v7402_v11 }
0x1223   : > { %v7600_v38 = vadd.f32 1.0, %v7592_v28  ;;  %v7539_v63 = vmul.f32 %v20092_v46, %v7531_v15  ;;  %v7534_v37 = vadd.f32 0.2548296, %v7526_v9  ;;  %v7607_v30 = vmul.f32 %v7599_v52, %v7399_v53 }
0x1224   : > { %v7524_v45 = vmul.f32 %v20105_v3, %v7516_v40  ;;  %v7609_v31 = vmul.f32 %v7601_v59, %v7401_v29  ;;  %v7589_v49 = vsub.f32 1.0, %v7581_v39  ;;  %v7429_v22 = vsel %vm7421_vm9, 1.0, %v21819_v62 }
0x1225   : > { %v7608_v58 = vmul.f32 %v7600_v38, %v7400_v16  ;;  %v7579_v0 = vmul.f32 %v18454_v32, %v7539_v63  ;;  %v7542_v54 = vmul.f32 %v20099_v6, %v7534_v37  ;;  %v7427_v6 = vsel %vm7419_vm10, 1.0, %v21819_v62 }
0x1226   : > { %v7532_v12 = vadd.f32 0.2548296, %v7524_v45  ;;  %v7616_v5 = vpack.c.bf16 %v7610_v21, %v7609_v31  ;;  %v7597_v47 = vmul.f32 %v7589_v49, %v7429_v22  ;;  %v7406_v44 = vmul.f32 0.5, %v20038_v60 }
0x1227   : > { %v7615_v46 = vpack.c.bf16 %v7608_v58, %v7607_v30  ;;  %v7587_v4 = vsub.f32 1.0, %v7579_v0  ;;  %v7582_v51 = vmul.f32 %v18456_v26, %v7542_v54  ;;  %v7403_v10 = vmul.f32 0.5, %v20029_v13  ;;  %v7627_v13 = vld [vmem:[%s21802_s2 + $0x31] ss:$0 sm:$0xff] }
0x1228   : > { %v7540_v7 = vmul.f32 %v20105_v3, %v7532_v12  ;;  %v7605_v35 = vadd.f32 1.0, %v7597_v47  ;;  %v7404_v50 = vmul.f32 0.5, %v20044_v14 }
0x1229   : > { %v7590_v36 = vsub.f32 1.0, %v7582_v51  ;;  %17526 = vmatprep.mubr.msk.bf16.mxu1 %vm7652_vm8, %v7615_v46  ;;  %v7595_v61 = vmul.f32 %v7587_v4, %v7427_v6 }
0x122a   : > { %v7580_v27 = vmul.f32 %v18458_v33, %v7540_v7  ;;  %17527 = vmatmul.mubr.msk.bf16.vlgmr.msra.gmra.mxu1 %vm7652_vm8, %v7616_v5  ;;  %v7613_v28 = vmul.f32 %v7605_v35, %v7405_v8 }
0x122b   : > { %v7598_v3 = vmul.f32 %v7590_v36, %v7430_v34  ;;  %v7603_v53 = vadd.f32 1.0, %v7595_v61 }
0x122c   : > { %v7588_v48 = vsub.f32 1.0, %v7580_v27 }
0x122d   : > { %v7606_v55 = vadd.f32 1.0, %v7598_v3  ;;  %v7611_v32 = vmul.f32 %v7603_v53, %v7403_v10 }
0x122e   : > { %v7596_v1 = vmul.f32 %v7588_v48, %v7428_v25 }
0x122f   : > { %v7614_v57 = vmul.f32 %v7606_v55, %v7406_v44 }
0x1230   : > { %v7604_v20 = vadd.f32 1.0, %v7596_v1 }
0x1231   : > { %v7618_v9 = vpack.c.bf16 %v7614_v57, %v7613_v28 }
0x1232   : > { %v7612_v52 = vmul.f32 %v7604_v20, %v7404_v50 }
0x1234   : > { %v7617_v15 = vpack.c.bf16 %v7612_v52, %v7611_v32 }
0x1236   : > { %17530 = vmatprep.mubr.msk.bf16.mxu1 %vm7652_vm8, %v7617_v15 }
0x1237   : > { %17531 = vmatmul.mubr.msk.bf16.gmra.mxu1 %vm7652_vm8, %v7618_v9 }
0x12ea   : > { %v17528_v59 = vpop.f32.mrf.mxu1 }
0x12eb   : > { %v7708_v14 = vadd.f32 %v17528_v59, %v7627_v13 }
0x12ec   : > { %v7699_v60 = vpop.f32.mrf.mxu1 }
0x12ed   : > { %v7700_v11 = vadd.f32 %v7699_v60, %v7627_v13  ;;  %v7732_v26 = vadd.f32 %v7708_v14, %v19963_v17 }
0x12ee   : > { %v17529_v16 = vpop.f32.mrf.mxu1 }
0x12ef   : > { %v7730_v43 = vadd.f32 %v7700_v11, %v19958_v2  ;;  %v7711_v38 = vadd.f32 %v17529_v16, %v7627_v13  ;;  %v7746_v21 = vsel %vm392_vm0, %v7732_v26, 0.0 }
0x12f0   : > { %v7702_v40 = vpop.f32.mrf.mxu1 }
0x12f1   : > { %v7703_v39 = vadd.f32 %v7702_v40, %v7627_v13  ;;  %v7740_v63 = vsel %vm392_vm0, %v7730_v43, 0.0  ;;  %v7733_v45 = vadd.f32 %v7711_v38, %v19956_v41 }
0x12f2   : > { %7741 = vadd.xlane.f32.xlu1 %v7740_v63  ;;  %v18159_v63 = vld [vmem:[%s21803_s3 + $0xc8] sm:$0xff]  }
0x12f3   : > { %v7731_v37 = vadd.f32 %v7703_v39, %v19960_v56  ;;  %v7749_v58 = vsel %vm392_vm0, %v7733_v45, 0.0  ;;  %17534 = vmatprep.subr.bf16.mxu0 %v18159_v63 }
0x12f4   : > { %17535 = vmatpush3.bf16.msra.mxu0 %v18159_v63 }
0x12f5   : > { %v7743_v29 = vsel %vm392_vm0, %v7731_v37, 0.0 }
0x12f6   : > { %7744 = vadd.xlane.f32.xlu0 %v7743_v29  ;;  %7747 = vadd.xlane.f32.xlu1 %v7746_v21  ;;  %v18161_v29 = vld [vmem:[%s21803_s3 + $0xc0] sm:$0xff]  }
0x12f7   : > { %v17532_v30 = vpop.f32.mrf.mxu1  ;;  %v18162_v21 = vld [vmem:[%s21803_s3 + $0x100] sm:$0xff]   ;;  %17536 = vmatprep.subr.bf16.mxu0 %v18161_v29 }
0x12f8   : > { %v7724_v17 = vadd.f32 %v17532_v30, %v7627_v13  ;;  %17537 = vmatpush3.bf16.msra.mxu0 %v18161_v29 }
0x12f9   : > { %v7715_v2 = vpop.f32.mrf.mxu1 }
0x12fa   : > { %v7716_v0 = vadd.f32 %v7715_v2, %v7627_v13  ;;  %7750 = vadd.xlane.f32.xlu0 %v7749_v58  ;;  %v7736_v56 = vadd.f32 %v7724_v17, %v19983_v23 }
0x12fb   : > { %v17533_v54 = vpop.f32.mrf.mxu1 }
0x12fc   : > { %v7734_v31 = vadd.f32 %v7716_v0, %v19973_v24  ;;  %v7727_v46 = vadd.f32 %v17533_v54, %v7627_v13  ;;  %v7758_v7 = vsel %vm392_vm0, %v7736_v56, 0.0 }
0x12fd   : > { %v7718_v12 = vpop.f32.mrf.mxu1 }
0x12fe   : > { %v7719_v49 = vadd.f32 %v7718_v12, %v7627_v13  ;;  %v7752_v4 = vsel %vm392_vm0, %v7734_v31, 0.0  ;;  %v7737_v51 = vadd.f32 %v7727_v46, %v19981_v19 }
0x12ff   : > { %7753 = vadd.xlane.f32.xlu1 %v7752_v4 }
0x1300   : > { %v7735_v41 = vadd.f32 %v7719_v49, %v19975_v18  ;;  %v7761_v24 = vsel %vm392_vm0, %v7737_v51, 0.0 }
0x1302   : > { %v7755_v5 = vsel %vm392_vm0, %v7735_v41, 0.0 }
0x1303   : > { %7756 = vadd.xlane.f32.xlu0 %v7755_v5  ;;  %7759 = vadd.xlane.f32.xlu1 %v7758_v7 }
0x1307   : > { %7762 = vadd.xlane.f32.xlu0 %v7761_v24 }
0x137b   : > { %v7742_v33 = vpop.xlane.xlu1 %7741 }
0x137c   : > { %v7764_v23 = vmul.f32 0.03125, %v7742_v33 }
0x137e   : > { %v20173_v22 = vsub.f32 %v7730_v43, %v7764_v23 }
0x137f   : > { %v7745_v6 = vpop.xlane.xlu0 %7744  ;;  %v7748_v36 = vpop.xlane.xlu1 %7747 }
0x1380   : > { %v7765_v61 = vmul.f32 0.03125, %v7745_v6  ;;  %v7766_v34 = vmul.f32 0.03125, %v7748_v36  ;;  %v7780_v18 = vmul.f32 %v20173_v22, %v20173_v22 }
0x1382   : > { %v20177_v19 = vsub.f32 %v7731_v37, %v7765_v61  ;;  %v20179_v27 = vsub.f32 %v7732_v26, %v7766_v34  ;;  %v7788_v47 = vsel %vm392_vm0, %v7780_v18, 0.0  ;;  %v18160_v37 = vld [vmem:[%s21803_s3 + $0x108] sm:$0xff]   ;;  %v7738_v61 = vld [vmem:[%s21802_s2 + $0x32] ss:$0 sm:$0xff] }
0x1383   : > { %v7751_v3 = vpop.xlane.xlu0 %7750  ;;  %7789 = vadd.xlane.f32.xlu1 %v7788_v47  ;;  %17546 = vmatprep.subr.bf16.mxu1 %v18160_v37 }
0x1384   : > { %v7767_v48 = vmul.f32 0.03125, %v7751_v3  ;;  %v7781_v55 = vmul.f32 %v20177_v19, %v20177_v19  ;;  %v7782_v25 = vmul.f32 %v20179_v27, %v20179_v27  ;;  %17547 = vmatpush3.bf16.msra.mxu1 %v18160_v37 }
0x1385   : > { %17548 = vmatprep.subr.bf16.mxu1 %v18162_v21 }
0x1386   : > { %v20186_v53 = vsub.f32 %v7733_v45, %v7767_v48  ;;  %v7791_v1 = vsel %vm392_vm0, %v7781_v55, 0.0  ;;  %v7794_v35 = vsel %vm392_vm0, %v7782_v25, 0.0  ;;  %v20229_v45 = vld [vmem:[%s21803_s3 + $0x148] sm:$0xff]  }
0x1387   : > { %7792 = vadd.xlane.f32.xlu0 %v7791_v1  ;;  %7795 = vadd.xlane.f32.xlu1 %v7794_v35  ;;  %v7739_v35 = vld [vmem:[%s21802_s2 + $0x33] ss:$0 sm:$0xff] }
0x1388   : > { %v7754_v44 = vpop.xlane.xlu1 %7753  ;;  %v7783_v10 = vmul.f32 %v20186_v53, %v20186_v53  ;;  %17549 = vmatpush3.bf16.msra.mxu1 %v18162_v21  ;;  %17558 = vmatprep.subr.bf16.mxu0 %v20229_v45 }
0x1389   : > { %v7768_v50 = vmul.f32 0.03125, %v7754_v44  ;;  %17570 = vmatprep.subr.mxu1 %v21836_v42 }
0x138a   : > { %v7797_v20 = vsel %vm392_vm0, %v7783_v10, 0.0 }
0x138b   : > { %v20193_v8 = vsub.f32 %v7734_v31, %v7768_v50  ;;  %7798 = vadd.xlane.f32.xlu0 %v7797_v20 }
0x138c   : > { %v7757_v57 = vpop.xlane.xlu0 %7756  ;;  %v7760_v32 = vpop.xlane.xlu1 %7759 }
0x138d   : > { %v7769_v52 = vmul.f32 0.03125, %v7757_v57  ;;  %v7770_v28 = vmul.f32 0.03125, %v7760_v32  ;;  %v7784_v15 = vmul.f32 %v20193_v8, %v20193_v8 }
0x138f   : > { %v20197_v9 = vsub.f32 %v7735_v41, %v7769_v52  ;;  %v20199_v59 = vsub.f32 %v7736_v56, %v7770_v28  ;;  %v7800_v13 = vsel %vm392_vm0, %v7784_v15, 0.0 }
0x1390   : > { %v7763_v60 = vpop.xlane.xlu0 %7762  ;;  %7801 = vadd.xlane.f32.xlu1 %v7800_v13 }
0x1391   : > { %v7771_v14 = vmul.f32 0.03125, %v7763_v60  ;;  %v7785_v11 = vmul.f32 %v20197_v9, %v20197_v9  ;;  %v7786_v16 = vmul.f32 %v20199_v59, %v20199_v59 }
0x1393   : > { %v20206_v43 = vsub.f32 %v7737_v51, %v7771_v14  ;;  %v7803_v40 = vsel %vm392_vm0, %v7785_v11, 0.0  ;;  %v7806_v26 = vsel %vm392_vm0, %v7786_v16, 0.0  ;;  %v18164_v14 = vld [vmem:[%s21803_s3 + $0x140] sm:$0xff]  }
0x1394   : > { %7804 = vadd.xlane.f32.xlu0 %v7803_v40  ;;  %7807 = vadd.xlane.f32.xlu1 %v7806_v26 }
0x1395   : > { %v7787_v38 = vmul.f32 %v20206_v43, %v20206_v43 }
0x1397   : > { %v7809_v39 = vsel %vm392_vm0, %v7787_v38, 0.0 }
0x1398   : > { %7810 = vadd.xlane.f32.xlu0 %v7809_v39 }
0x140c   : > { %v7790_v30 = vpop.xlane.xlu1 %7789 }
0x140d   : > { %v7812_v2 = vmul.f32 0.03125, %v7790_v30 }
0x140f   : > { %v7820_v58 = vadd.f32 1e-12, %v7812_v2  ;;  %v20314_v2 = vld [vmem:[%s21802_s2 + $0x35] ss:$0 sm:$0xff] }
0x1410   : > { %v7793_v17 = vpop.xlane.xlu0 %7792  ;;  %v7796_v0 = vpop.xlane.xlu1 %7795 }
0x1411   : > { %18459 = vrsqrt.f32 %v7820_v58  ;;  %v7813_v54 = vmul.f32 0.03125, %v7793_v17  ;;  %v7814_v31 = vmul.f32 0.03125, %v7796_v0  ;;  %v20319_v0 = vld [vmem:[%s21802_s2 + $0x34] ss:$0 sm:$0xff] }
0x1413   : > { %v7821_v12 = vadd.f32 1e-12, %v7813_v54  ;;  %v7822_v56 = vadd.f32 1e-12, %v7814_v31 }
0x1414   : > { %v7799_v46 = vpop.xlane.xlu0 %7798 }
0x1415   : > { %18461 = vrsqrt.f32 %v7821_v12  ;;  %v7815_v49 = vmul.f32 0.03125, %v7799_v46 }
0x1416   : > { %18463 = vrsqrt.f32 %v7822_v56 }
0x1417   : > { %v7823_v4 = vadd.f32 1e-12, %v7815_v49 }
0x1419   : > { %18465 = vrsqrt.f32 %v7823_v4  ;;  %v7802_v41 = vpop.xlane.xlu1 %7801 }
0x141a   : > { %v7816_v51 = vmul.f32 0.03125, %v7802_v41 }
0x141c   : > { %v7824_v5 = vadd.f32 1e-12, %v7816_v51 }
0x141d   : > { %v7805_v7 = vpop.xlane.xlu0 %7804  ;;  %v7808_v24 = vpop.xlane.xlu1 %7807 }
0x141e   : > { %v18460_v33 = vpop.eup %18459  ;;  %18467 = vrsqrt.f32 %v7824_v5  ;;  %v7817_v23 = vmul.f32 0.03125, %v7805_v7  ;;  %v7818_v6 = vmul.f32 0.03125, %v7808_v24 }
0x141f   : > { %v7836_v36 = vmul.f32 %v18460_v33, %v20173_v22 }
0x1420   : > { %v7825_v34 = vadd.f32 1e-12, %v7817_v23  ;;  %v7826_v18 = vadd.f32 1e-12, %v7818_v6 }
0x1421   : > { %v7811_v47 = vpop.xlane.xlu0 %7810  ;;  %v7844_v25 = vmul.f32 %v7836_v36, %v7738_v61 }
0x1422   : > { %v18462_v3 = vpop.eup %18461  ;;  %18469 = vrsqrt.f32 %v7825_v34  ;;  %v7819_v48 = vmul.f32 0.03125, %v7811_v47 }
0x1423   : > { %v18464_v55 = vpop.eup %18463  ;;  %v7837_v1 = vmul.f32 %v18462_v3, %v20177_v19  ;;  %18471 = vrsqrt.f32 %v7826_v18  ;;  %v20241_v20 = vadd.f32 %v7844_v25, %v7739_v35 }
0x1424   : > { %v7838_v22 = vmul.f32 %v18464_v55, %v20179_v27  ;;  %v7827_v44 = vadd.f32 1e-12, %v7819_v48 }
0x1425   : > { %v7845_v10 = vmul.f32 %v7837_v1, %v7738_v61  ;;  %21844 = vst [vmem:[#allocation8_spill] sm:$0xff] %v20241_v20 }
0x1426   : > { %v18466_v50 = vpop.eup %18465  ;;  %18473 = vrsqrt.f32 %v7827_v44  ;;  %v7846_v32 = vmul.f32 %v7838_v22, %v7738_v61 }
0x1427   : > { %v20243_v57 = vadd.f32 %v7845_v10, %v7739_v35  ;;  %v7839_v52 = vmul.f32 %v18466_v50, %v20186_v53  ;;  %v20365_v50 = vld [vmem:[%s21802_s2 + $0x36] ss:$0 sm:$0xff] }
0x1428   : > { %v20250_v13 = vadd.f32 %v7846_v32, %v7739_v35 }
0x1429   : > { %21845 = vst [vmem:[#allocation3_spill] sm:$0xff] %v20243_v57  ;;  %v20248_v19 = vpack.c.bf16 %v20243_v57, %v20241_v20  ;;  %v7847_v28 = vmul.f32 %v7839_v52, %v7738_v61 }
0x142a   : > { %21846 = vst [vmem:[#allocation6_spill] sm:$0xff] %v20250_v13 }
0x142b   : > { %v18468_v15 = vpop.eup %18467  ;;  %v20252_v27 = vadd.f32 %v7847_v28, %v7739_v35  ;;  %17538 = vmatprep.mubr.msk.bf16.mxu0 %vm392_vm0, %v20248_v19  ;;  %17550 = vmatprep.mubr.msk.bf16.mxu1 %vm392_vm0, %v20248_v19 }
0x142c   : > { %v7840_v60 = vmul.f32 %v18468_v15, %v20193_v8 }
0x142d   : > { %21847 = vst [vmem:[#allocation2_spill] sm:$0xff] %v20252_v27  ;;  %v20261_v53 = vpack.c.bf16 %v20252_v27, %v20250_v13 }
0x142e   : > { %v7848_v40 = vmul.f32 %v7840_v60, %v7738_v61 }
0x142f   : > { %v18470_v11 = vpop.eup %18469  ;;  %17539 = vmatmul.mubr.msk.bf16.vlgmr.msra.gmra.mxu0 %vm392_vm0, %v20261_v53  ;;  %17551 = vmatmul.mubr.msk.bf16.vlgmr.msra.gmra.mxu1 %vm392_vm0, %v20261_v53 }
0x1430   : > { %v18472_v16 = vpop.eup %18471  ;;  %v7841_v26 = vmul.f32 %v18470_v11, %v20197_v9  ;;  %17559 = vmatpush3.bf16.msra.mxu0 %v20229_v45  ;;  %v20273_v63 = vadd.f32 %v7848_v40, %v7739_v35 }
0x1431   : > { %v7842_v8 = vmul.f32 %v18472_v16, %v20199_v59  ;;  %17560 = vmatprep.subr.bf16.mxu0 %v18164_v14 }
0x1432   : > { %v7849_v38 = vmul.f32 %v7841_v26, %v7738_v61  ;;  %21848 = vst [vmem:[#allocation4_spill] sm:$0xff] %v20273_v63 }
0x1433   : > { %v18474_v39 = vpop.eup %18473  ;;  %v7850_v29 = vmul.f32 %v7842_v8, %v7738_v61 }
0x1434   : > { %v20275_v37 = vadd.f32 %v7849_v38, %v7739_v35  ;;  %v7843_v21 = vmul.f32 %v18474_v39, %v20206_v43  ;;  %17561 = vmatpush3.bf16.msra.mxu0 %v18164_v14 }
0x1435   : > { %17580 = vmatprep.subr.mxu0 %v21836_v42  ;;  %v20283_v30 = vadd.f32 %v7850_v29, %v7739_v35 }
0x1436   : > { %21849 = vst [vmem:[#allocation5_spill] sm:$0xff] %v20275_v37  ;;  %v20281_v9 = vpack.c.bf16 %v20275_v37, %v20273_v63  ;;  %v7851_v45 = vmul.f32 %v7843_v21, %v7738_v61 }
0x1437   : > { %21850 = vst [vmem:[#allocation7_spill] sm:$0xff] %v20283_v30 }
0x1438   : > { %v20285_v59 = vadd.f32 %v7851_v45, %v7739_v35  ;;  %17542 = vmatprep.mubr.msk.bf16.mxu0 %vm392_vm0, %v20281_v9  ;;  %17554 = vmatprep.mubr.msk.bf16.mxu1 %vm392_vm0, %v20281_v9 }
0x143a   : > { %21851 = vst [vmem:[#allocation9_spill] sm:$0xff] %v20285_v59  ;;  %v20293_v43 = vpack.c.bf16 %v20285_v59, %v20283_v30 }
0x143c   : > { %17543 = vmatmul.mubr.msk.bf16.gmra.mxu0 %vm392_vm0, %v20293_v43  ;;  %17555 = vmatmul.mubr.msk.bf16.gmra.mxu1 %vm392_vm0, %v20293_v43 }
0x143d   : > { %17562 = vmatprep.mubr.msk.bf16.mxu0 %vm392_vm0, %v20248_v19  ;;  %17572 = vmatprep.mubr.msk.f32.mxu1 %vm18724_vm1, %v21836_v42 }
0x1444   : > { %17563 = vmatmul.mubr.msk.bf16.vlgmr.msra.gmra.mxu0 %vm392_vm0, %v20261_v53 }
0x1445   : > { %17566 = vmatprep.mubr.msk.bf16.mxu0 %vm392_vm0, %v20281_v9 }
0x144c   : > { %17567 = vmatmul.mubr.msk.bf16.gmra.mxu0 %vm392_vm0, %v20293_v43 }
0x144d   : > { %17582 = vmatprep.mubr.msk.f32.mxu0 %vm18724_vm1, %v21836_v42 }
0x14ef   : > { %v17540_v58 = vpop.f32.mrf.mxu0  ;;  %v17552_v17 = vpop.f32.mrf.mxu1 }
0x14f0   : > { %v8020_v54 = vadd.f32 %v17552_v17, %v20314_v2  ;;  %v7937_v46 = vadd.f32 %v17540_v58, %v20319_v0  ;;  %v20399_v17 = vld [vmem:[%s19036_s27] ss:$0 sm:$0xff] }
0x14f1   : > { %v7928_v31 = vpop.f32.mrf.mxu0  ;;  %v8011_v12 = vpop.f32.mrf.mxu1 }
0x14f2   : > { %v8012_v56 = vadd.f32 %v8011_v12, %v20314_v2  ;;  %17581 = vmatpush3.xpose.msk.msra.mxu0 %vm786_vm2, %v8020_v54  ;;  %v7929_v41 = vadd.f32 %v7928_v31, %v20319_v0  ;;  %v20403_v12 = vld [vmem:[%s19036_s27 + $0x2] ss:$0 sm:$0xff] }
0x14f3   : > { %v17541_v49 = vpop.f32.mrf.mxu0  ;;  %v17553_v4 = vpop.f32.mrf.mxu1  ;;  %17590 = vmatprep.subr.mxu0 %v21836_v42 }
0x14f4   : > { %17571 = vmatpush3.xpose.msk.msra.mxu1 %vm786_vm2, %v8012_v56  ;;  %v8023_v33 = vadd.f32 %v17553_v4, %v20314_v2  ;;  %v7940_v36 = vadd.f32 %v17541_v49, %v20319_v0 }
0x14f5   : > { %v8014_v51 = vpop.f32.mrf.mxu1  ;;  %17583 = vmatmul.mubr.msk.f32.vlgmr.msra.gmra.mxu0 %vm786_vm2, %v7937_v46  ;;  %17575 = vmatprep.subr.mxu1 %v21836_v42  ;;  %v7931_v5 = vpop.f32.mrf.mxu0 }
0x14f6   : > { %v8015_v7 = vadd.f32 %v8014_v51, %v20314_v2  ;;  %17592 = vmatprep.mubr.msk.f32.mxu0 %vm18724_vm1, %v21836_v42  ;;  %v7932_v24 = vadd.f32 %v7931_v5, %v20319_v0 }
0x14f7   : > { %17573 = vmatmul.mubr.msk.f32.vlgmr.msra.gmra.mxu1 %vm786_vm2, %v7929_v41  ;;  %v20408_v41 = vld [vmem:[%s19036_s27 + $0x1] ss:$0 sm:$0xff] }
0x14f8   : > { %17576 = vmatpush3.xpose.msk.msra.mxu1 %vm786_vm2, %v8015_v7  ;;  %17577 = vmatprep.mubr.msk.f32.mxu1 %vm18724_vm1, %v21836_v42 }
0x14f9   : > { %17585 = vmatprep.subr.mxu1 %v21836_v42 }
0x14fb   : > { %17578 = vmatmul.mubr.msk.f32.vlgmr.msra.gmra.mxu1 %vm786_vm2, %v7932_v24 }
0x14fc   : > { %v17544_v23 = vpop.f32.mrf.mxu0  ;;  %v17556_v6 = vpop.f32.mrf.mxu1  ;;  %17586 = vmatpush3.xpose.msk.msra.mxu1 %vm786_vm2, %v8023_v33  ;;  %17587 = vmatprep.mubr.msk.f32.mxu1 %vm18724_vm1, %v21836_v42 }
0x14fd   : > { %17595 = vmatprep.subr.mxu1 %v21836_v42  ;;  %v8036_v1 = vadd.f32 %v17556_v6, %v20314_v2  ;;  %v7953_v44 = vadd.f32 %v17544_v23, %v20319_v0  ;;  %v20414_v6 = vld [vmem:[%s19036_s27 + $0x3] ss:$0 sm:$0xff] }
0x14fe   : > { %v7944_v61 = vpop.f32.mrf.mxu0  ;;  %v8027_v34 = vpop.f32.mrf.mxu1 }
0x14ff   : > { %v8028_v18 = vadd.f32 %v8027_v34, %v20314_v2  ;;  %17588 = vmatmul.mubr.msk.f32.vlgmr.msra.gmra.mxu1 %vm786_vm2, %v7940_v36  ;;  %v7945_v48 = vadd.f32 %v7944_v61, %v20319_v0 }
0x1500   : > { %v17545_v47 = vpop.f32.mrf.mxu0  ;;  %v17557_v3 = vpop.f32.mrf.mxu1  ;;  %17597 = vmatprep.mubr.msk.f32.mxu1 %vm18724_vm1, %v21836_v42 }
0x1501   : > { %17591 = vmatpush3.xpose.msk.msra.mxu0 %vm786_vm2, %v8028_v18  ;;  %v8039_v52 = vadd.f32 %v17557_v3, %v20314_v2  ;;  %v7956_v60 = vadd.f32 %v17545_v47, %v20319_v0  ;;  %v20419_v3 = vld [vmem:[%s19036_s27 + $0x4] ss:$0 sm:$0xff] }
0x1502   : > { %v7947_v55 = vpop.f32.mrf.mxu0  ;;  %v8030_v25 = vpop.f32.mrf.mxu1  ;;  %17600 = vmatprep.subr.mxu0 %v21836_v42 }
0x1503   : > { %v8031_v35 = vadd.f32 %v8030_v25, %v20314_v2  ;;  %v7948_v10 = vadd.f32 %v7947_v55, %v20319_v0 }
0x1504   : > { %v20355_v22 = vpop.f32.mrf.mxu0  ;;  %17593 = vmatmul.mubr.msk.f32.vlgmr.msra.gmra.mxu0 %vm786_vm2, %v7945_v48 }
0x1505   : > { %17596 = vmatpush3.xpose.msk.msra.mxu1 %vm786_vm2, %v8031_v35  ;;  %17601 = vmatpush3.xpose.msk.msra.mxu0 %vm786_vm2, %v8036_v1 }
0x1506   : > { %v8094_v32 = vpop.f32.mrf.mxu0  ;;  %17602 = vmatprep.mubr.msk.f32.mxu0 %vm18724_vm1, %v21836_v42  ;;  %17605 = vmatprep.subr.mxu1 %v21836_v42 }
0x1507   : > { %v8095_v28 = vadd.f32 %v8094_v32, %v20365_v50  ;;  %17610 = vmatprep.subr.mxu0 %v21836_v42 }
0x1508   : > { %v20373_v15 = vpop.f32.mrf.mxu0  ;;  %17598 = vmatmul.mubr.msk.f32.vlgmr.msra.gmra.mxu1 %vm786_vm2, %v7948_v10  ;;  %17603 = vmatmul.mubr.msk.f32.vlgmr.msra.gmra.mxu0 %vm786_vm2, %v7953_v44 }
0x1509   : > { %17606 = vmatpush3.xpose.msk.msra.mxu1 %vm786_vm2, %v8039_v52  ;;  %17611 = vmatpush3.msra.mxu0 %v8095_v28  ;;  %v20424_v52 = vld [vmem:[%s19036_s27 + $0x5] ss:$0 sm:$0xff] }
0x150a   : > { %v8097_v14 = vpop.f32.mrf.mxu0  ;;  %17607 = vmatprep.mubr.msk.f32.mxu1 %vm18724_vm1, %v21836_v42  ;;  %17615 = vmatprep.subr.mxu1 %v21836_v42 }
0x150b   : > { %v8098_v11 = vadd.f32 %v8097_v14, %v20365_v50  ;;  %17612 = vmatprep.mubr.msk.f32.mxu0 %vm18724_vm1, %v21836_v42  ;;  %17620 = vmatprep.subr.mxu0 %v21836_v42 }
0x150c   : > { %17608 = vmatmul.mubr.msk.f32.vlgmr.msra.gmra.mxu1 %vm786_vm2, %v7956_v60  ;;  %v20390_v16 = vpop.f32.mrf.mxu0  ;;  %v20428_v60 = vld [vmem:[%s19036_s27 + $0x6] ss:$0 sm:$0xff] }
0x150d   : > { %17616 = vmatpush3.msra.mxu1 %v8098_v11  ;;  %17617 = vmatprep.mubr.msk.f32.mxu1 %vm18724_vm1, %v21836_v42 }
0x150e   : > { %17625 = vmatprep.subr.mxu1 %v21836_v42  ;;  %v20392_v40 = vpop.f32.mrf.mxu0 }
0x1510   : > { %v20394_v26 = vpop.f32.mrf.mxu0 }
0x1512   : > { %v20396_v8 = vpop.f32.mrf.mxu0 }
0x15b5   : > { %v8349_v38 = vpop.f32.mrf.mxu0 }
0x15b6   : > { %v8735_v21 = vmul.f32 0.35355338, %v8349_v38 }
0x15b7   : > { %v8197_v39 = vpop.f32.mrf.mxu1  ;;  %v17584_v29 = vpop.f32.mrf.mxu0 }
0x15b8   : > { %v8733_v45 = vmul.f32 0.35355338, %v8197_v39  ;;  %v8743_v56 = vadd.f32 %v20403_v12, %v8735_v21 }
0x15b9   : > { %v17574_v58 = vpop.f32.mrf.mxu1 }
0x15ba   : > { %v8741_v54 = vadd.f32 %v20399_v17, %v8733_v45  ;;  %v8755_v33 = vsel %vm786_vm2, %v8743_v56, -inf  ;;  %v20434_v45 = vld [vmem:[%s19036_s27 + $0x7] ss:$0 sm:$0xff] }
0x15bb   : > { %v8273_v31 = vpop.f32.mrf.mxu1 }
0x15bc   : > { %v8734_v46 = vmul.f32 0.35355338, %v8273_v31  ;;  %v8749_v49 = vsel %vm786_vm2, %v8741_v54, -inf }
0x15bd   : > { %8750 = vmax.xlane.f32.xlu0 %v8749_v49  ;;  %v17579_v4 = vpop.f32.mrf.mxu1 }
0x15be   : > { %v8742_v51 = vadd.f32 %v20408_v41, %v8734_v46 }
0x15bf   : > { %v8425_v5 = vpop.f32.mrf.mxu1 }
0x15c0   : > { %v8736_v7 = vmul.f32 0.35355338, %v8425_v5  ;;  %v8752_v24 = vsel %vm786_vm2, %v8742_v51, -inf }
0x15c1   : > { %8753 = vmax.xlane.f32.xlu1 %v8752_v24  ;;  %v17589_v23 = vpop.f32.mrf.mxu1  ;;  %8756 = vmax.xlane.f32.xlu0 %v8755_v33 }
0x15c2   : > { %v8744_v36 = vadd.f32 %v20414_v6, %v8736_v7 }
0x15c4   : > { %v8501_v61 = vpop.f32.mrf.mxu0  ;;  %v8758_v34 = vsel %vm786_vm2, %v8744_v36, -inf }
0x15c5   : > { %v8737_v18 = vmul.f32 0.35355338, %v8501_v61  ;;  %8759 = vmax.xlane.f32.xlu1 %v8758_v34 }
0x15c6   : > { %v17594_v47 = vpop.f32.mrf.mxu0 }
0x15c7   : > { %v8745_v48 = vadd.f32 %v20419_v3, %v8737_v18 }
0x15c8   : > { %v8577_v55 = vpop.f32.mrf.mxu1  ;;  %v8653_v25 = vpop.f32.mrf.mxu0 }
0x15c9   : > { %v8738_v1 = vmul.f32 0.35355338, %v8577_v55  ;;  %v8739_v35 = vmul.f32 0.35355338, %v8653_v25  ;;  %v8761_v44 = vsel %vm786_vm2, %v8745_v48, -inf }
0x15ca   : > { %v17599_v10 = vpop.f32.mrf.mxu1  ;;  %8762 = vmax.xlane.f32.xlu0 %v8761_v44  ;;  %v17604_v32 = vpop.f32.mrf.mxu0 }
0x15cb   : > { %v8746_v28 = vadd.f32 %v20424_v52, %v8738_v1  ;;  %v8747_v14 = vadd.f32 %v20428_v60, %v8739_v35 }
0x15cc   : > { %v8729_v11 = vpop.f32.mrf.mxu1 }
0x15cd   : > { %v8740_v38 = vmul.f32 0.35355338, %v8729_v11  ;;  %v8764_v39 = vsel %vm786_vm2, %v8746_v28, -inf  ;;  %v8767_v29 = vsel %vm786_vm2, %v8747_v14, -inf }
0x15ce   : > { %8765 = vmax.xlane.f32.xlu1 %v8764_v39  ;;  %v17609_v21 = vpop.f32.mrf.mxu1  ;;  %8768 = vmax.xlane.f32.xlu0 %v8767_v29 }
0x15cf   : > { %v8748_v58 = vadd.f32 %v20434_v45, %v8740_v38 }
0x15d1   : > { %v8770_v31 = vsel %vm786_vm2, %v8748_v58, -inf }
0x15d2   : > { %8771 = vmax.xlane.f32.xlu1 %v8770_v31 }
0x1646   : > { %v8751_v46 = vpop.xlane.xlu0 %8750 }
0x1647   : > { %v8773_v49 = vsub.f32 %v8741_v54, %v8751_v46 }
0x1649   : > { %v8781_v4 = vmul.f32 1.442695, %v8773_v49 }
0x164a   : > { %v8754_v5 = vpop.xlane.xlu1 %8753  ;;  %v8757_v7 = vpop.xlane.xlu0 %8756 }
0x164b   : > { %18475 = vpow2.f32 %v8781_v4  ;;  %v8774_v24 = vsub.f32 %v8742_v51, %v8754_v5  ;;  %v8775_v33 = vsub.f32 %v8743_v56, %v8757_v7 }
0x164d   : > { %v8783_v23 = vmul.f32 1.442695, %v8774_v24  ;;  %v8785_v61 = vmul.f32 1.442695, %v8775_v33 }
0x164e   : > { %v8760_v34 = vpop.xlane.xlu1 %8759 }
0x164f   : > { %18477 = vpow2.f32 %v8783_v23  ;;  %v8776_v18 = vsub.f32 %v8744_v36, %v8760_v34 }
0x1650   : > { %18479 = vpow2.f32 %v8785_v61 }
0x1651   : > { %v8787_v47 = vmul.f32 1.442695, %v8776_v18 }
0x1653   : > { %18481 = vpow2.f32 %v8787_v47  ;;  %v8763_v55 = vpop.xlane.xlu0 %8762 }
0x1654   : > { %v8777_v25 = vsub.f32 %v8745_v48, %v8763_v55 }
0x1656   : > { %v8789_v1 = vmul.f32 1.442695, %v8777_v25 }
0x1657   : > { %v8766_v35 = vpop.xlane.xlu1 %8765  ;;  %v8769_v44 = vpop.xlane.xlu0 %8768 }
0x1658   : > { %v18476_v54 = vpop.eup %18475  ;;  %18483 = vpow2.f32 %v8789_v1  ;;  %v8778_v10 = vsub.f32 %v8746_v28, %v8766_v35  ;;  %v8779_v32 = vsub.f32 %v8747_v14, %v8769_v44  ;;  %v8103_v1 = vadd.f32 %v20355_v22, %v20365_v50 }
0x1659   : > { %v8797_v51 = vsel %vm786_vm2, %v18476_v54, 0.0  ;;  %v8111_v22 = vadd.f32 %v20392_v40, %v20365_v50 }
0x165a   : > { %v8791_v56 = vmul.f32 1.442695, %v8778_v10  ;;  %v8793_v11 = vmul.f32 1.442695, %v8779_v32  ;;  %8798 = vadd.xlane.f32.xlu0 %v8797_v51 }
0x165b   : > { %v8772_v38 = vpop.xlane.xlu1 %8771 }
0x165c   : > { %v18478_v39 = vpop.eup %18477  ;;  %18485 = vpow2.f32 %v8791_v56  ;;  %v8780_v36 = vsub.f32 %v8748_v58, %v8772_v38 }
0x165d   : > { %v18480_v29 = vpop.eup %18479  ;;  %18487 = vpow2.f32 %v8793_v11  ;;  %v8800_v48 = vsel %vm786_vm2, %v18478_v39, 0.0 }
0x165e   : > { %v8795_v21 = vmul.f32 1.442695, %v8780_v36  ;;  %8801 = vadd.xlane.f32.xlu1 %v8800_v48  ;;  %v8803_v31 = vsel %vm786_vm2, %v18480_v29, 0.0 }
0x165f   : > { %8804 = vadd.xlane.f32.xlu0 %v8803_v31 }
0x1660   : > { %v18482_v28 = vpop.eup %18481  ;;  %18489 = vpow2.f32 %v8795_v21  ;;  %v8122_v21 = vadd.f32 %v20394_v26, %v20365_v50  ;;  %v18168_v26 = vld [vmem:[%s21803_s3 + $0x110] sm:$0xff]  }
0x1661   : > { %v8806_v14 = vsel %vm786_vm2, %v18482_v28, 0.0 }
0x1662   : > { %8807 = vadd.xlane.f32.xlu1 %v8806_v14 }
0x1665   : > { %v18484_v46 = vpop.eup %18483 }
0x1666   : > { %v8809_v49 = vsel %vm786_vm2, %v18484_v46, 0.0 }
0x1667   : > { %8810 = vadd.xlane.f32.xlu0 %v8809_v49  ;;  %v18169_v49 = vld [vmem:[%s21803_s3 + $0x158] sm:$0xff]  }
0x1669   : > { %v20443_v4 = vpop.eup %18485 }
0x166a   : > { %v20445_v58 = vpop.eup %18487  ;;  %v8812_v5 = vsel %vm786_vm2, %v20443_v4, 0.0 }
0x166b   : > { %8813 = vadd.xlane.f32.xlu1 %v8812_v5  ;;  %v8815_v7 = vsel %vm786_vm2, %v20445_v58, 0.0 }
0x166c   : > { %8816 = vadd.xlane.f32.xlu0 %v8815_v7 }
0x166d   : > { %v20451_v24 = vpop.eup %18489 }
0x166e   : > { %v8818_v33 = vsel %vm786_vm2, %v20451_v24, 0.0 }
0x166f   : > { %8819 = vadd.xlane.f32.xlu1 %v8818_v33 }
0x1680   : > { %9533 = vrot.lane.b32.xlu1 %v20314_v2, %s18725_s15 }
0x1682   : > { %9446 = vrot.lane.b32.xlu0 %v20319_v0, %s18725_s15 }
0x16e3   : > { %v8799_v23 = vpop.xlane.xlu0 %8798 }
0x16e4   : > { %18491 = vrcp.f32 %v8799_v23 }
0x16e7   : > { %v8802_v61 = vpop.xlane.xlu1 %8801 }
0x16e8   : > { %18493 = vrcp.f32 %v8802_v61  ;;  %v8805_v34 = vpop.xlane.xlu0 %8804 }
0x16e9   : > { %18495 = vrcp.f32 %v8805_v34 }
0x16eb   : > { %v8808_v18 = vpop.xlane.xlu1 %8807 }
0x16ec   : > { %18497 = vrcp.f32 %v8808_v18 }
0x16f0   : > { %v8811_v47 = vpop.xlane.xlu0 %8810 }
0x16f1   : > { %v18492_v55 = vpop.eup %18491  ;;  %18499 = vrcp.f32 %v8811_v47 }
0x16f2   : > { %v8829_v25 = vmul.f32 %v18492_v55, %v18476_v54  ;;  %v8106_v54 = vadd.f32 %v20373_v15, %v20365_v50  ;;  %v8114_v15 = vadd.f32 %v20396_v8, %v20365_v50  ;;  %v18165_v8 = vld [vmem:[%s21803_s3 + $0xd8] sm:$0xff]  }
0x16f4   : > { %v8814_v35 = vpop.xlane.xlu1 %8813  ;;  %17613 = vmatmul.mubr.msk.f32.vlgmr.msra.gmra.mxu0 %vm786_vm2, %v8829_v25 }
0x16f5   : > { %v18494_v2 = vpop.eup %18493  ;;  %18501 = vrcp.f32 %v8814_v35  ;;  %v8817_v0 = vpop.xlane.xlu0 %8816  ;;  %17621 = vmatpush3.msra.mxu0 %v8103_v1  ;;  %17622 = vmatprep.mubr.msk.f32.mxu0 %vm18724_vm1, %v21836_v42 }
0x16f6   : > { %v18496_v44 = vpop.eup %18495  ;;  %v8830_v10 = vmul.f32 %v18494_v2, %v18478_v39  ;;  %18503 = vrcp.f32 %v8817_v0  ;;  %17630 = vmatprep.subr.mxu0 %v21836_v42  ;;  %v8119_v39 = vadd.f32 %v20390_v16, %v20365_v50  ;;  %v18166_v16 = vld [vmem:[%s21803_s3 + $0xd0] sm:$0xff]  }
0x16f7   : > { %v8831_v32 = vmul.f32 %v18496_v44, %v18480_v29 }
0x16f8   : > { %v8820_v51 = vpop.xlane.xlu1 %8819  ;;  %17618 = vmatmul.mubr.msk.f32.vlgmr.msra.gmra.mxu1 %vm786_vm2, %v8830_v10 }
0x16f9   : > { %v18498_v56 = vpop.eup %18497  ;;  %18505 = vrcp.f32 %v8820_v51  ;;  %17623 = vmatmul.mubr.msk.f32.vlgmr.msra.gmra.mxu0 %vm786_vm2, %v8831_v32  ;;  %17626 = vmatpush3.msra.mxu1 %v8106_v54 }
0x16fa   : > { %v8832_v11 = vmul.f32 %v18498_v56, %v18482_v28  ;;  %17631 = vmatpush3.msra.mxu0 %v8111_v22  ;;  %17627 = vmatprep.mubr.msk.f32.mxu1 %vm18724_vm1, %v21836_v42  ;;  %v18167_v28 = vld [vmem:[%s21803_s3 + $0x118] sm:$0xff]  }
0x16fb   : > { %17635 = vmatprep.subr.mxu1 %v21836_v42  ;;  %17632 = vmatprep.mubr.msk.f32.mxu0 %vm18724_vm1, %v21836_v42 }
0x16fc   : > { %17628 = vmatmul.mubr.msk.f32.vlgmr.msra.gmra.mxu1 %vm786_vm2, %v8832_v11  ;;  %17640 = vmatprep.subr.mxu0 %v21836_v42 }
0x16fd   : > { %17636 = vmatpush3.msra.mxu1 %v8114_v15  ;;  %17637 = vmatprep.mubr.msk.f32.mxu1 %vm18724_vm1, %v21836_v42  ;;  %v9534_v15 = vpop.permute.xlu1 %9533 }
0x16fe   : > { %v18500_v40 = vpop.eup %18499  ;;  %17645 = vmatprep.subr.mxu1 %v21836_v42 }
0x16ff   : > { %v8833_v38 = vmul.f32 %v18500_v40, %v18484_v46 }
0x1701   : > { %17633 = vmatmul.mubr.msk.f32.vlgmr.msra.gmra.mxu0 %vm786_vm2, %v8833_v38 }
0x1702   : > { %v18502_v36 = vpop.eup %18501  ;;  %17641 = vmatpush3.msra.mxu0 %v8119_v39  ;;  %17642 = vmatprep.mubr.msk.f32.mxu0 %vm18724_vm1, %v21836_v42 }
0x1703   : > { %v18504_v29 = vpop.eup %18503  ;;  %v8834_v48 = vmul.f32 %v18502_v36, %v20443_v4  ;;  %17650 = vmatprep.subr.bf16.mxu0 %v18165_v8  ;;  %v18170_v4 = vld [vmem:[%s21803_s3 + $0x150] sm:$0xff]   ;;  %v9447_v36 = vpop.permute.xlu0 %9446 }
0x1704   : > { %v8835_v31 = vmul.f32 %v18504_v29, %v20445_v58 }
0x1705   : > { %17638 = vmatmul.mubr.msk.f32.vlgmr.msra.gmra.mxu1 %vm786_vm2, %v8834_v48 }
0x1706   : > { %v18506_v14 = vpop.eup %18505  ;;  %17643 = vmatmul.mubr.msk.f32.vlgmr.msra.gmra.mxu0 %vm786_vm2, %v8835_v31  ;;  %17646 = vmatpush3.msra.mxu1 %v8122_v21 }
0x1707   : > { %v8836_v46 = vmul.f32 %v18506_v14, %v20451_v24  ;;  %17651 = vmatpush3.bf16.msra.mxu0 %v18165_v8  ;;  %17654 = vmatprep.mubr.msk.bf16.mxu0 %vm392_vm0, %v20248_v19 }
0x1708   : > { %17647 = vmatprep.mubr.msk.f32.mxu1 %vm18724_vm1, %v21836_v42  ;;  %17652 = vmatprep.subr.bf16.mxu0 %v18166_v16 }
0x1709   : > { %17662 = vmatprep.subr.bf16.mxu1 %v18167_v28  ;;  %17648 = vmatmul.mubr.msk.f32.vlgmr.msra.gmra.mxu1 %vm786_vm2, %v8836_v46 }
0x170a   : > { %17663 = vmatpush3.bf16.msra.mxu1 %v18167_v28  ;;  %17666 = vmatprep.mubr.msk.bf16.mxu1 %vm392_vm0, %v20248_v19 }
0x170b   : > { %17653 = vmatpush3.bf16.msra.mxu0 %v18166_v16  ;;  %17664 = vmatprep.subr.bf16.mxu1 %v18168_v26 }
0x170c   : > { %17674 = vmatprep.subr.bf16.mxu0 %v18169_v49 }
0x170e   : > { %17655 = vmatmul.mubr.msk.bf16.vlgmr.msra.gmra.mxu0 %vm392_vm0, %v20261_v53  ;;  %17665 = vmatpush3.bf16.msra.mxu1 %v18168_v26 }
0x170f   : > { %17658 = vmatprep.mubr.msk.bf16.mxu0 %vm392_vm0, %v20281_v9  ;;  %17675 = vmatpush3.bf16.msra.mxu0 %v18169_v49 }
0x1710   : > { %17676 = vmatprep.subr.bf16.mxu0 %v18170_v4  ;;  %17686 = vmatprep.subr.mxu1 %v21836_v42 }
0x1711   : > { %17667 = vmatmul.mubr.msk.bf16.vlgmr.msra.gmra.mxu1 %vm392_vm0, %v20261_v53 }
0x1712   : > { %17670 = vmatprep.mubr.msk.bf16.mxu1 %vm392_vm0, %v20281_v9 }
0x1713   : > { %17677 = vmatpush3.bf16.msra.mxu0 %v18170_v4 }
0x1714   : > { %17706 = vmatprep.subr.mxu0 %v21836_v42 }
0x1716   : > { %17659 = vmatmul.mubr.msk.bf16.gmra.mxu0 %vm392_vm0, %v20293_v43 }
0x1717   : > { %17678 = vmatprep.mubr.msk.bf16.mxu0 %vm392_vm0, %v20248_v19 }
0x1719   : > { %17671 = vmatmul.mubr.msk.bf16.gmra.mxu1 %vm392_vm0, %v20293_v43 }
0x171a   : > { %17688 = vmatprep.mubr.msk.f32.mxu1 %vm18724_vm1, %v21836_v42 }
0x171e   : > { %17679 = vmatmul.mubr.msk.bf16.vlgmr.msra.gmra.mxu0 %vm392_vm0, %v20261_v53 }
0x171f   : > { %17682 = vmatprep.mubr.msk.bf16.mxu0 %vm392_vm0, %v20281_v9 }
0x1726   : > { %17683 = vmatmul.mubr.msk.bf16.gmra.mxu0 %vm392_vm0, %v20293_v43 }
0x1727   : > { %17708 = vmatprep.mubr.msk.f32.mxu0 %vm18724_vm1, %v21836_v42 }
0x17b4   : > { %v20546_v58 = vpop.f32.mrf.mxu0 }
0x17b6   : > { %v17614_v5 = vpop.f32.mrf.mxu0 }
0x17b8   : > { %v20548_v7 = vpop.f32.mrf.mxu1 }
0x17b9   : > { %v9421_v24 = vpack.c.bf16 %v20548_v7, %v20546_v58  ;;  %v20552_v33 = vpop.f32.mrf.mxu0  ;;  %v16296_v58 = vld [vmem:[%s21804_s4 + $0x14] sm:$0xf] }
0x17ba   : > { %v17619_v23 = vpop.f32.mrf.mxu1  ;;  %v11003_v7 = vsel %vm3711_vm3, %v16296_v58, 0 }
0x17bb   : > { %v17624_v61 = vpop.f32.mrf.mxu0 }
0x17bc   : > { %v20554_v34 = vpop.f32.mrf.mxu1 }
0x17bd   : > { %v9422_v18 = vpack.c.bf16 %v20554_v34, %v20552_v33  ;;  %v20758_v33 = vld [vmem:[%s21802_s2 + $0x34] ss:$0 sm:$0xff] }
0x17be   : > { %v17629_v47 = vpop.f32.mrf.mxu1 }
0x17c1   : > { %v20558_v55 = vpop.f32.mrf.mxu0 }
0x17c3   : > { %v17634_v25 = vpop.f32.mrf.mxu0 }
0x17c5   : > { %v20560_v1 = vpop.f32.mrf.mxu1 }
0x17c6   : > { %v9423_v35 = vpack.c.bf16 %v20560_v1, %v20558_v55  ;;  %v20564_v2 = vpop.f32.mrf.mxu0 }
0x17c7   : > { %v17639_v0 = vpop.f32.mrf.mxu1 }
0x17c8   : > { %v17644_v44 = vpop.f32.mrf.mxu0 }
0x17c9   : > { %v20566_v10 = vpop.f32.mrf.mxu1 }
0x17ca   : > { %v9424_v54 = vpack.c.bf16 %v20566_v10, %v20564_v2 }
0x17cb   : > { %v17649_v32 = vpop.f32.mrf.mxu1 }
0x17ce   : > { %v17656_v22 = vpop.f32.mrf.mxu0 }
0x17cf   : > { %v9492_v5 = vadd.f32 %v17656_v22, %v9447_v36 }
0x17d0   : > { %v9483_v51 = vpop.f32.mrf.mxu0 }
0x17d1   : > { %v17668_v56 = vpop.f32.mrf.mxu1  ;;  %v9484_v29 = vadd.f32 %v9483_v51, %v9447_v36 }
0x17d2   : > { %v17657_v11 = vpop.f32.mrf.mxu0  ;;  %v9579_v46 = vadd.f32 %v17668_v56, %v9534_v15 }
0x17d3   : > { %v9570_v40 = vpop.f32.mrf.mxu1  ;;  %v9495_v44 = vadd.f32 %v17657_v11, %v9447_v36 }
0x17d4   : > { %v9486_v38 = vpop.f32.mrf.mxu0  ;;  %v9571_v8 = vadd.f32 %v9570_v40, %v9534_v15 }
0x17d5   : > { %v17669_v39 = vpop.f32.mrf.mxu1  ;;  %v9487_v28 = vadd.f32 %v9486_v38, %v9447_v36 }
0x17d6   : > { %17687 = vmatpush3.xpose.msk.msra.mxu1 %vm786_vm2, %v9571_v8  ;;  %v17660_v21 = vpop.f32.mrf.mxu0  ;;  %v9582_v61 = vadd.f32 %v17669_v39, %v9534_v15 }
0x17d7   : > { %v9573_v48 = vpop.f32.mrf.mxu1  ;;  %17691 = vmatprep.subr.mxu1 %v21836_v42  ;;  %v9508_v32 = vadd.f32 %v17660_v21, %v9447_v36 }
0x17d8   : > { %v9574_v31 = vadd.f32 %v9573_v48, %v9534_v15  ;;  %v9499_v26 = vpop.f32.mrf.mxu0 }
0x17d9   : > { %v17672_v16 = vpop.f32.mrf.mxu1  ;;  %17689 = vmatmul.mubr.msk.f32.vlgmr.msra.gmra.mxu1 %vm786_vm2, %v9484_v29  ;;  %v9500_v23 = vadd.f32 %v9499_v26, %v9447_v36 }
0x17da   : > { %17692 = vmatpush3.xpose.msk.msra.mxu1 %vm786_vm2, %v9574_v31  ;;  %17693 = vmatprep.mubr.msk.f32.mxu1 %vm18724_vm1, %v21836_v42  ;;  %v17661_v47 = vpop.f32.mrf.mxu0  ;;  %v9595_v25 = vadd.f32 %v17672_v16, %v9534_v15 }
0x17db   : > { %v9586_v14 = vpop.f32.mrf.mxu1  ;;  %17696 = vmatprep.subr.mxu1 %v21836_v42  ;;  %v9511_v40 = vadd.f32 %v17661_v47, %v9447_v36 }
0x17dc   : > { %v9587_v49 = vadd.f32 %v9586_v14, %v9534_v15  ;;  %v9502_v22 = vpop.f32.mrf.mxu0 }
0x17dd   : > { %v17673_v4 = vpop.f32.mrf.mxu1  ;;  %17694 = vmatmul.mubr.msk.f32.vlgmr.msra.gmra.mxu1 %vm786_vm2, %v9487_v28  ;;  %v9503_v56 = vadd.f32 %v9502_v22, %v9447_v36 }
0x17de   : > { %17697 = vmatpush3.xpose.msk.msra.mxu1 %vm786_vm2, %v9579_v46  ;;  %17707 = vmatpush3.xpose.msk.msra.mxu0 %vm786_vm2, %v9587_v49  ;;  %v9598_v11 = vadd.f32 %v17673_v4, %v9534_v15  ;;  %v20610_v38 = vpop.f32.mrf.mxu0 }
0x17df   : > { %17698 = vmatprep.mubr.msk.f32.mxu1 %vm18724_vm1, %v21836_v42  ;;  %17701 = vmatprep.subr.mxu1 %v21836_v42  ;;  %v9589_v0 = vpop.f32.mrf.mxu1 }
0x17e0   : > { %17716 = vmatprep.subr.mxu0 %v21836_v42  ;;  %v9590_v51 = vadd.f32 %v9589_v0, %v9534_v15  ;;  %v20612_v8 = vpop.f32.mrf.mxu0 }
0x17e1   : > { %17699 = vmatmul.mubr.msk.f32.vlgmr.msra.gmra.mxu1 %vm786_vm2, %v9492_v5  ;;  %17709 = vmatmul.mubr.msk.f32.vlgmr.msra.gmra.mxu0 %vm786_vm2, %v9500_v23 }
0x17e2   : > { %17702 = vmatpush3.xpose.msk.msra.mxu1 %vm786_vm2, %v9582_v61  ;;  %17717 = vmatpush3.xpose.msk.msra.mxu0 %vm786_vm2, %v9595_v25  ;;  %v20614_v15 = vpop.f32.mrf.mxu0 }
0x17e3   : > { %17703 = vmatprep.mubr.msk.f32.mxu1 %vm18724_vm1, %v21836_v42  ;;  %17718 = vmatprep.mubr.msk.f32.mxu0 %vm18724_vm1, %v21836_v42 }
0x17e4   : > { %17711 = vmatprep.subr.mxu1 %v21836_v42  ;;  %17726 = vmatprep.subr.mxu0 %v21836_v42  ;;  %v20616_v39 = vpop.f32.mrf.mxu0 }
0x17e5   : > { %17704 = vmatmul.mubr.msk.f32.vlgmr.msra.gmra.mxu1 %vm786_vm2, %v9495_v44  ;;  %17719 = vmatmul.mubr.msk.f32.vlgmr.msra.gmra.mxu0 %vm786_vm2, %v9508_v32 }
0x17e6   : > { %17712 = vmatpush3.xpose.msk.msra.mxu1 %vm786_vm2, %v9590_v51  ;;  %17713 = vmatprep.mubr.msk.f32.mxu1 %vm18724_vm1, %v21836_v42  ;;  %v20618_v29 = vpop.f32.mrf.mxu0 }
0x17e7   : > { %17721 = vmatprep.subr.mxu1 %v21836_v42  ;;  %17728 = vmatprep.mubr.msk.f32.mxu0 %vm18724_vm1, %v21836_v42 }
0x17e8   : > { %v20620_v48 = vpop.f32.mrf.mxu0 }
0x17e9   : > { %17714 = vmatmul.mubr.msk.f32.vlgmr.msra.gmra.mxu1 %vm786_vm2, %v9503_v56 }
0x17ea   : > { %17722 = vmatpush3.xpose.msk.msra.mxu1 %vm786_vm2, %v9598_v11  ;;  %17723 = vmatprep.mubr.msk.f32.mxu1 %vm18724_vm1, %v21836_v42  ;;  %v20622_v31 = vpop.f32.mrf.mxu0 }
0x17eb   : > { %17731 = vmatprep.subr.mxu1 %v21836_v42 }
0x17ec   : > { %v20626_v49 = vpop.f32.mrf.mxu0 }
0x17ed   : > { %17724 = vmatmul.mubr.msk.f32.vlgmr.msra.gmra.mxu1 %vm786_vm2, %v9511_v40 }
0x17ee   : > { %17733 = vmatprep.mubr.msk.f32.mxu1 %vm18724_vm1, %v21836_v42 }
0x1899   : > { %v9760_v36 = vpop.f32.mrf.mxu1 }
0x189a   : > { %v10296_v21 = vmul.f32 0.35355338, %v9760_v36 }
0x189b   : > { %v17690_v16 = vpop.f32.mrf.mxu1 }
0x189c   : > { %v10304_v28 = vadd.f32 %v20399_v17, %v10296_v21 }
0x189d   : > { %v9836_v14 = vpop.f32.mrf.mxu1 }
0x189e   : > { %v10297_v46 = vmul.f32 0.35355338, %v9836_v14  ;;  %v10312_v26 = vsel %vm786_vm2, %v10304_v28, -inf }
0x189f   : > { %10313 = vmax.xlane.f32.xlu1 %v10312_v26  ;;  %v17695_v4 = vpop.f32.mrf.mxu1 }
0x18a0   : > { %v10305_v5 = vadd.f32 %v20408_v41, %v10297_v46 }
0x18a1   : > { %v9912_v23 = vpop.f32.mrf.mxu1  ;;  %v10064_v61 = vpop.f32.mrf.mxu0 }
0x18a2   : > { %v10298_v47 = vmul.f32 0.35355338, %v9912_v23  ;;  %v10300_v25 = vmul.f32 0.35355338, %v10064_v61  ;;  %v10315_v0 = vsel %vm786_vm2, %v10305_v5, -inf }
0x18a3   : > { %v17710_v44 = vpop.f32.mrf.mxu0  ;;  %10316 = vmax.xlane.f32.xlu0 %v10315_v0  ;;  %v17700_v32 = vpop.f32.mrf.mxu1 }
0x18a4   : > { %v10306_v17 = vadd.f32 %v20403_v12, %v10298_v47  ;;  %v10308_v56 = vadd.f32 %v20419_v3, %v10300_v25 }
0x18a5   : > { %v9988_v22 = vpop.f32.mrf.mxu1  ;;  %v10216_v51 = vpop.f32.mrf.mxu0 }
0x18a6   : > { %v10299_v11 = vmul.f32 0.35355338, %v9988_v22  ;;  %v10302_v40 = vmul.f32 0.35355338, %v10216_v51  ;;  %v10318_v36 = vsel %vm786_vm2, %v10306_v17, -inf  ;;  %v10324_v4 = vsel %vm786_vm2, %v10308_v56, -inf }
0x18a7   : > { %v17720_v41 = vpop.f32.mrf.mxu0  ;;  %10319 = vmax.xlane.f32.xlu1 %v10318_v36  ;;  %v17705_v21 = vpop.f32.mrf.mxu1 }
0x18a8   : > { %v10307_v16 = vadd.f32 %v20414_v6, %v10299_v11  ;;  %v10310_v46 = vadd.f32 %v20428_v60, %v10302_v40 }
0x18a9   : > { %v10140_v14 = vpop.f32.mrf.mxu1 }
0x18aa   : > { %v10301_v26 = vmul.f32 0.35355338, %v10140_v14  ;;  %v10321_v12 = vsel %vm786_vm2, %v10307_v16, -inf  ;;  %v10330_v25 = vsel %vm786_vm2, %v10310_v46, -inf }
0x18ab   : > { %10325 = vmax.xlane.f32.xlu1 %v10324_v4  ;;  %10322 = vmax.xlane.f32.xlu0 %v10321_v12  ;;  %v17715_v3 = vpop.f32.mrf.mxu1 }
0x18ac   : > { %v10309_v23 = vadd.f32 %v20424_v52, %v10301_v26 }
0x18ad   : > { %v10292_v61 = vpop.f32.mrf.mxu1 }
0x18ae   : > { %v10303_v47 = vmul.f32 0.35355338, %v10292_v61  ;;  %v10327_v0 = vsel %vm786_vm2, %v10309_v23, -inf }
0x18af   : > { %10331 = vmax.xlane.f32.xlu1 %v10330_v25  ;;  %10328 = vmax.xlane.f32.xlu0 %v10327_v0  ;;  %v17725_v6 = vpop.f32.mrf.mxu1 }
0x18b0   : > { %v10311_v60 = vadd.f32 %v20434_v45, %v10303_v47 }
0x18b2   : > { %v10333_v44 = vsel %vm786_vm2, %v10311_v60, -inf }
0x18b3   : > { %10334 = vmax.xlane.f32.xlu0 %v10333_v44 }
0x1928   : > { %v10314_v32 = vpop.xlane.xlu1 %10313 }
0x1929   : > { %v10336_v22 = vsub.f32 %v10304_v28, %v10314_v32 }
0x192b   : > { %v10344_v51 = vmul.f32 1.442695, %v10336_v22 }
0x192c   : > { %v10317_v11 = vpop.xlane.xlu0 %10316 }
0x192d   : > { %18507 = vpow2.f32 %v10344_v51  ;;  %v10337_v52 = vsub.f32 %v10305_v5, %v10317_v11 }
0x192f   : > { %v10346_v40 = vmul.f32 1.442695, %v10337_v52 }
0x1930   : > { %v10320_v36 = vpop.xlane.xlu1 %10319 }
0x1931   : > { %18509 = vpow2.f32 %v10346_v40  ;;  %v10338_v41 = vsub.f32 %v10306_v17, %v10320_v36 }
0x1933   : > { %v10348_v21 = vmul.f32 1.442695, %v10338_v41 }
0x1934   : > { %v10326_v14 = vpop.xlane.xlu1 %10325  ;;  %v10323_v26 = vpop.xlane.xlu0 %10322 }
0x1935   : > { %18511 = vpow2.f32 %v10348_v21  ;;  %v10340_v4 = vsub.f32 %v10308_v56, %v10326_v14  ;;  %v10339_v12 = vsub.f32 %v10307_v16, %v10323_v26 }
0x1937   : > { %v10352_v45 = vmul.f32 1.442695, %v10340_v4  ;;  %v10350_v3 = vmul.f32 1.442695, %v10339_v12  ;;  %v20667_v4 = vld [vmem:[%s21802_s2 + $0x35] ss:$0 sm:$0xff] }
0x1938   : > { %v10332_v61 = vpop.xlane.xlu1 %10331  ;;  %v10329_v47 = vpop.xlane.xlu0 %10328 }
0x1939   : > { %18513 = vpow2.f32 %v10352_v45  ;;  %v10342_v28 = vsub.f32 %v10310_v46, %v10332_v61  ;;  %v10341_v25 = vsub.f32 %v10309_v23, %v10329_v47 }
0x193a   : > { %v18508_v0 = vpop.eup %18507  ;;  %18515 = vpow2.f32 %v10350_v3 }
0x193b   : > { %v10356_v5 = vmul.f32 1.442695, %v10342_v28  ;;  %v10354_v6 = vmul.f32 1.442695, %v10341_v25  ;;  %v10360_v44 = vsel %vm786_vm2, %v18508_v0, 0.0 }
0x193c   : > { %10361 = vadd.xlane.f32.xlu1 %v10360_v44  ;;  %v10335_v17 = vpop.xlane.xlu0 %10334 }
0x193d   : > { %18517 = vpow2.f32 %v10356_v5  ;;  %v10343_v32 = vsub.f32 %v10311_v60, %v10335_v17 }
0x193e   : > { %v18510_v22 = vpop.eup %18509  ;;  %18519 = vpow2.f32 %v10354_v6 }
0x193f   : > { %v10358_v56 = vmul.f32 1.442695, %v10343_v32  ;;  %v10363_v16 = vsel %vm786_vm2, %v18510_v22, 0.0 }
0x1940   : > { %10364 = vadd.xlane.f32.xlu0 %v10363_v16 }
0x1941   : > { %18521 = vpow2.f32 %v10358_v56 }
0x1942   : > { %v18512_v51 = vpop.eup %18511 }
0x1943   : > { %v10366_v46 = vsel %vm786_vm2, %v18512_v51, 0.0 }
0x1944   : > { %10367 = vadd.xlane.f32.xlu1 %v10366_v46 }
0x1946   : > { %v20645_v23 = vpop.eup %18513 }
0x1947   : > { %v18516_v11 = vpop.eup %18515  ;;  %v10372_v52 = vsel %vm786_vm2, %v20645_v23, 0.0 }
0x1948   : > { %10373 = vadd.xlane.f32.xlu1 %v10372_v52  ;;  %v10369_v60 = vsel %vm786_vm2, %v18516_v11, 0.0 }
0x1949   : > { %10370 = vadd.xlane.f32.xlu0 %v10369_v60 }
0x194a   : > { %v20650_v40 = vpop.eup %18517 }
0x194b   : > { %v20652_v36 = vpop.eup %18519  ;;  %v10378_v41 = vsel %vm786_vm2, %v20650_v40, 0.0 }
0x194c   : > { %10379 = vadd.xlane.f32.xlu1 %v10378_v41  ;;  %v10375_v21 = vsel %vm786_vm2, %v20652_v36, 0.0 }
0x194d   : > { %10376 = vadd.xlane.f32.xlu0 %v10375_v21 }
0x194e   : > { %v20658_v14 = vpop.eup %18521 }
0x194f   : > { %v10381_v26 = vsel %vm786_vm2, %v20658_v14, 0.0 }
0x1951   : > { %10382 = vadd.xlane.f32.xlu0 %v10381_v26 }
0x195d   : > { %9620 = vrot.lane.b32.xlu1 %v20365_v50, %s18725_s15 }
0x1961   : > { %11169 = vrot.lane.b32.xlu1 %v20758_v33, %s18726_s25 }
0x1967   : > { %11256 = vrot.lane.b32.xlu0 %v20667_v4, %s18726_s25 }
0x19c5   : > { %v10362_v12 = vpop.xlane.xlu1 %10361 }
0x19c6   : > { %18523 = vrcp.f32 %v10362_v12 }
0x19c9   : > { %v10365_v45 = vpop.xlane.xlu0 %10364 }
0x19ca   : > { %18525 = vrcp.f32 %v10365_v45  ;;  %v18174_v45 = vld [vmem:[%s21803_s3 + $0xe0] sm:$0xff]  }
0x19cd   : > { %v10368_v3 = vpop.xlane.xlu1 %10367 }
0x19ce   : > { %18527 = vrcp.f32 %v10368_v3 }
0x19d1   : > { %v10374_v61 = vpop.xlane.xlu1 %10373 }
0x19d2   : > { %18529 = vrcp.f32 %v10374_v61  ;;  %v10371_v47 = vpop.xlane.xlu0 %10370 }
0x19d3   : > { %18531 = vrcp.f32 %v10371_v47  ;;  %v18524_v25 = vpop.eup %18523 }
0x19d4   : > { %v10392_v56 = vmul.f32 %v18524_v25, %v18508_v0  ;;  %v18175_v25 = vld [vmem:[%s21803_s3 + $0x168] sm:$0xff]  }
0x19d5   : > { %v10380_v28 = vpop.xlane.xlu1 %10379 }
0x19d6   : > { %18533 = vrcp.f32 %v10380_v28  ;;  %v10377_v50 = vpop.xlane.xlu0 %10376 }
0x19d7   : > { %18535 = vrcp.f32 %v10377_v50  ;;  %v18526_v5 = vpop.eup %18525 }
0x19d8   : > { %v10393_v16 = vmul.f32 %v18526_v5, %v18510_v22 }
0x19d9   : > { %v9621_v6 = vpop.permute.xlu1 %9620 }
0x19da   : > { %v10383_v44 = vpop.xlane.xlu0 %10382  ;;  %v9658_v17 = vadd.f32 %v20612_v8, %v9621_v6  ;;  %v9661_v32 = vadd.f32 %v20616_v39, %v9621_v6  ;;  %v9666_v52 = vadd.f32 %v20610_v38, %v9621_v6  ;;  %v9669_v60 = vadd.f32 %v20614_v15, %v9621_v6 }
0x19db   : > { %18537 = vrcp.f32 %v10383_v44  ;;  %v18528_v46 = vpop.eup %18527  ;;  %v9674_v22 = vadd.f32 %v20620_v48, %v9621_v6  ;;  %v9677_v38 = vadd.f32 %v20626_v49, %v9621_v6  ;;  %v9685_v49 = vadd.f32 %v20622_v31, %v9621_v6 }
0x19dc   : > { %17727 = vmatpush3.msra.mxu0 %v9658_v17  ;;  %17732 = vmatpush3.msra.mxu1 %v9661_v32  ;;  %v10394_v39 = vmul.f32 %v18528_v46, %v18512_v51 }
0x19dd   : > { %17729 = vmatmul.mubr.msk.f32.vlgmr.msra.gmra.mxu0 %vm786_vm2, %v10392_v56  ;;  %17734 = vmatmul.mubr.msk.f32.vlgmr.msra.gmra.mxu1 %vm786_vm2, %v10393_v16 }
0x19de   : > { %17736 = vmatprep.subr.mxu0 %v21836_v42  ;;  %17741 = vmatprep.subr.mxu1 %v21836_v42 }
0x19df   : > { %v18530_v8 = vpop.eup %18529  ;;  %17737 = vmatpush3.msra.mxu0 %v9666_v52  ;;  %17742 = vmatpush3.msra.mxu1 %v9669_v60  ;;  %v18176_v60 = vld [vmem:[%s21803_s3 + $0x160] sm:$0xff]  }
0x19e0   : > { %v18532_v0 = vpop.eup %18531  ;;  %17738 = vmatprep.mubr.msk.f32.mxu0 %vm18724_vm1, %v21836_v42  ;;  %17746 = vmatprep.subr.mxu0 %v21836_v42  ;;  %v10396_v51 = vmul.f32 %v18530_v8, %v20645_v23  ;;  %v16241_v23 = vld [vmem:[%s21804_s4 + $0x10] sm:$0xf] }
0x19e1   : > { %v10395_v41 = vmul.f32 %v18532_v0, %v18516_v11  ;;  %17739 = vmatmul.mubr.msk.f32.vlgmr.msra.gmra.mxu0 %vm786_vm2, %v10394_v39  ;;  %17743 = vmatprep.mubr.msk.f32.mxu1 %vm18724_vm1, %v21836_v42  ;;  %v9682_v11 = vadd.f32 %v20618_v29, %v9621_v6  ;;  %v11083_v31 = vsel %vm3711_vm3, %v16241_v23, 0 }
0x19e2   : > { %17747 = vmatpush3.msra.mxu0 %v9674_v22  ;;  %17751 = vmatprep.subr.mxu1 %v21836_v42 }
0x19e3   : > { %v18534_v15 = vpop.eup %18533  ;;  %17744 = vmatmul.mubr.msk.f32.vlgmr.msra.gmra.mxu1 %vm786_vm2, %v10395_v41  ;;  %17748 = vmatprep.mubr.msk.f32.mxu0 %vm18724_vm1, %v21836_v42 }
0x19e4   : > { %v18536_v48 = vpop.eup %18535  ;;  %17752 = vmatpush3.msra.mxu1 %v9677_v38  ;;  %17756 = vmatprep.subr.mxu0 %v21836_v42  ;;  %v10398_v26 = vmul.f32 %v18534_v15, %v20650_v40  ;;  %v18171_v40 = vld [vmem:[%s21803_s3 + $0x128] sm:$0xff]   ;;  %v20802_v15 = vpop.permute.xlu0 %11256 }
0x19e5   : > { %v10397_v21 = vmul.f32 %v18536_v48, %v20652_v36  ;;  %17749 = vmatmul.mubr.msk.f32.vlgmr.msra.gmra.mxu0 %vm786_vm2, %v10396_v51  ;;  %17753 = vmatprep.mubr.msk.f32.mxu1 %vm18724_vm1, %v21836_v42 }
0x19e6   : > { %17757 = vmatpush3.msra.mxu0 %v9682_v11  ;;  %17761 = vmatprep.subr.mxu1 %v21836_v42 }
0x19e7   : > { %17754 = vmatmul.mubr.msk.f32.vlgmr.msra.gmra.mxu1 %vm786_vm2, %v10397_v21  ;;  %17758 = vmatprep.mubr.msk.f32.mxu0 %vm18724_vm1, %v21836_v42 }
0x19e8   : > { %v18538_v29 = vpop.eup %18537  ;;  %17762 = vmatpush3.msra.mxu1 %v9685_v49  ;;  %17763 = vmatprep.mubr.msk.f32.mxu1 %vm18724_vm1, %v21836_v42 }
0x19e9   : > { %v10399_v36 = vmul.f32 %v18538_v29, %v20658_v14  ;;  %17759 = vmatmul.mubr.msk.f32.vlgmr.msra.gmra.mxu0 %vm786_vm2, %v10398_v26  ;;  %18110 = vmatprep.subr.msk.bf16.mxu1 %vm3711_vm3, %v16241_v23  ;;  %v18172_v14 = vld [vmem:[%s21803_s3 + $0x120] sm:$0xff]  }
0x19ea   : > { %18109 = vmatprep.subr.msk.bf16.mxu0 %vm3711_vm3, %v16296_v58 }
0x19eb   : > { %17764 = vmatmul.mubr.msk.f32.vlgmr.msra.gmra.mxu1 %vm786_vm2, %v10399_v36  ;;  %17767 = vmatpush3.bf16.msra.mxu0 %v11003_v7 }
0x19ec   : > { %17777 = vmatpush3.bf16.msra.mxu1 %v11083_v31  ;;  %17778 = vmatprep.mubr.msk.bf16.mxu1 %vm786_vm2, %v9421_v24  ;;  %v18173_v24 = vld [vmem:[%s21803_s3 + $0xe8] sm:$0xff]  }
0x19ed   : > { %17798 = vmatprep.subr.bf16.mxu1 %v18171_v40  ;;  %17786 = vmatprep.subr.bf16.mxu0 %v18173_v24 }
0x19ef   : > { %17779 = vmatmul.mubr.msk.bf16.vlgmr.msra.gmra.mxu1 %vm786_vm2, %v9422_v18 }
0x19f0   : > { %17782 = vmatprep.mubr.msk.bf16.mxu1 %vm786_vm2, %v9423_v35  ;;  %17799 = vmatpush3.bf16.msra.mxu1 %v18171_v40 }
0x19f1   : > { %17800 = vmatprep.subr.bf16.mxu1 %v18172_v14 }
0x19f4   : > { %17801 = vmatpush3.bf16.msra.mxu1 %v18172_v14 }
0x19f5   : > { %17822 = vmatprep.subr.mxu1 %v21836_v42 }
0x19f7   : > { %17783 = vmatmul.mubr.msk.bf16.gmra.mxu1 %vm786_vm2, %v9424_v54 }
0x19f8   : > { %17802 = vmatprep.mubr.msk.bf16.mxu1 %vm392_vm0, %v20248_v19 }
0x19ff   : > { %17803 = vmatmul.mubr.msk.bf16.vlgmr.msra.gmra.mxu1 %vm392_vm0, %v20261_v53 }
0x1a00   : > { %17806 = vmatprep.mubr.msk.bf16.mxu1 %vm392_vm0, %v20281_v9 }
0x1a07   : > { %17807 = vmatmul.mubr.msk.bf16.gmra.mxu1 %vm392_vm0, %v20293_v43 }
0x1a08   : > { %17824 = vmatprep.mubr.msk.f32.mxu1 %vm18724_vm1, %v21836_v42 }
0x1a9d   : > { %v10469_v34 = vpop.f32.mrf.mxu0  ;;  %v10542_v18 = vpop.f32.mrf.mxu1 }
0x1a9e   : > { %v10984_v55 = vpack.c.bf16 %v10542_v18, %v10469_v34  ;;  %v11170_v18 = vpop.permute.xlu1 %11169 }
0x1a9f   : > { %v17730_v1 = vpop.f32.mrf.mxu0  ;;  %v17735_v35 = vpop.f32.mrf.mxu1 }
0x1aa0   : > { %17768 = vmatprep.mubr.msk.bf16.mxu0 %vm786_vm2, %v10984_v55 }
0x1aa1   : > { %v10615_v2 = vpop.f32.mrf.mxu0 }
0x1aa3   : > { %v10688_v10 = vpop.f32.mrf.mxu1  ;;  %v17740_v54 = vpop.f32.mrf.mxu0 }
0x1aa4   : > { %v10985_v12 = vpack.c.bf16 %v10688_v10, %v10615_v2 }
0x1aa5   : > { %v17745_v3 = vpop.f32.mrf.mxu1  ;;  %v10761_v61 = vpop.f32.mrf.mxu0 }
0x1aa6   : > { %17769 = vmatmul.mubr.msk.bf16.vlgmr.msra.gmra.mxu0 %vm786_vm2, %v10985_v12 }
0x1aa7   : > { %v10834_v47 = vpop.f32.mrf.mxu1  ;;  %v17750_v28 = vpop.f32.mrf.mxu0  ;;  %17787 = vmatpush3.bf16.msra.mxu0 %v18173_v24 }
0x1aa8   : > { %v10986_v50 = vpack.c.bf16 %v10834_v47, %v10761_v61  ;;  %17788 = vmatprep.subr.bf16.mxu0 %v18174_v45 }
0x1aa9   : > { %v17755_v5 = vpop.f32.mrf.mxu1  ;;  %v10907_v6 = vpop.f32.mrf.mxu0 }
0x1aaa   : > { %17772 = vmatprep.mubr.msk.bf16.mxu0 %vm786_vm2, %v10986_v50 }
0x1aab   : > { %v10980_v44 = vpop.f32.mrf.mxu1  ;;  %v17760_v17 = vpop.f32.mrf.mxu0  ;;  %17789 = vmatpush3.bf16.msra.mxu0 %v18174_v45 }
0x1aac   : > { %v10987_v32 = vpack.c.bf16 %v10980_v44, %v10907_v6  ;;  %17810 = vmatprep.subr.bf16.mxu0 %v18175_v25 }
0x1aad   : > { %v17765_v56 = vpop.f32.mrf.mxu1 }
0x1aae   : > { %17773 = vmatmul.mubr.msk.bf16.gmra.mxu0 %vm786_vm2, %v10987_v32 }
0x1aaf   : > { %v20772_v16 = vpop.f32.mrf.mxu1  ;;  %17790 = vmatprep.mubr.msk.bf16.mxu0 %vm392_vm0, %v20248_v19 }
0x1ab1   : > { %v20776_v46 = vpop.f32.mrf.mxu1 }
0x1ab3   : > { %v20778_v52 = vpop.f32.mrf.mxu1 }
0x1ab5   : > { %v20783_v8 = vpop.f32.mrf.mxu1 }
0x1ab6   : > { %17791 = vmatmul.mubr.msk.bf16.vlgmr.msra.gmra.mxu0 %vm392_vm0, %v20261_v53 }
0x1ab7   : > { %v20787_v39 = vpop.f32.mrf.mxu1  ;;  %17794 = vmatprep.mubr.msk.bf16.mxu0 %vm392_vm0, %v20281_v9  ;;  %17811 = vmatpush3.bf16.msra.mxu0 %v18175_v25 }
0x1ab8   : > { %17812 = vmatprep.subr.bf16.mxu0 %v18176_v60 }
0x1ab9   : > { %v20791_v0 = vpop.f32.mrf.mxu1 }
0x1abb   : > { %v20793_v22 = vpop.f32.mrf.mxu1  ;;  %17813 = vmatpush3.bf16.msra.mxu0 %v18176_v60 }
0x1abc   : > { %17842 = vmatprep.subr.mxu0 %v21836_v42 }
0x1abd   : > { %v20796_v41 = vpop.f32.mrf.mxu1 }
0x1abe   : > { %17795 = vmatmul.mubr.msk.bf16.gmra.mxu0 %vm392_vm0, %v20293_v43 }
0x1abf   : > { %v17804_v38 = vpop.f32.mrf.mxu1  ;;  %17814 = vmatprep.mubr.msk.bf16.mxu0 %vm392_vm0, %v20248_v19 }
0x1ac0   : > { %v11302_v12 = vadd.f32 %v17804_v38, %v20802_v15 }
0x1ac1   : > { %v11293_v51 = vpop.f32.mrf.mxu1 }
0x1ac2   : > { %v11294_v48 = vadd.f32 %v11293_v51, %v20802_v15 }
0x1ac3   : > { %v17805_v11 = vpop.f32.mrf.mxu1 }
0x1ac4   : > { %17823 = vmatpush3.xpose.msk.msra.mxu1 %vm786_vm2, %v11294_v48  ;;  %v11305_v50 = vadd.f32 %v17805_v11, %v20802_v15 }
0x1ac5   : > { %v11296_v21 = vpop.f32.mrf.mxu1  ;;  %17827 = vmatprep.subr.mxu1 %v21836_v42 }
0x1ac6   : > { %17815 = vmatmul.mubr.msk.bf16.vlgmr.msra.gmra.mxu0 %vm392_vm0, %v20261_v53  ;;  %v11297_v35 = vadd.f32 %v11296_v21, %v20802_v15 }
0x1ac7   : > { %v17808_v49 = vpop.f32.mrf.mxu1  ;;  %17818 = vmatprep.mubr.msk.bf16.mxu0 %vm392_vm0, %v20281_v9 }
0x1ac8   : > { %v11318_v25 = vadd.f32 %v17808_v49, %v20802_v15 }
0x1ac9   : > { %v11309_v23 = vpop.f32.mrf.mxu1 }
0x1aca   : > { %v11310_v26 = vadd.f32 %v11309_v23, %v20802_v15 }
0x1acb   : > { %v17809_v3 = vpop.f32.mrf.mxu1 }
0x1acc   : > { %17843 = vmatpush3.xpose.msk.msra.mxu0 %vm786_vm2, %v11310_v26  ;;  %v11321_v38 = vadd.f32 %v17809_v3, %v20802_v15  ;;  %v20898_v3 = vld [vmem:[%s19036_s27 + $0x1] ss:$0 sm:$0xff] }
0x1acd   : > { %17852 = vmatprep.subr.mxu0 %v21836_v42  ;;  %v11312_v6 = vpop.f32.mrf.mxu1 }
0x1ace   : > { %17819 = vmatmul.mubr.msk.bf16.gmra.mxu0 %vm392_vm0, %v20293_v43  ;;  %v11313_v32 = vadd.f32 %v11312_v6, %v20802_v15 }
0x1acf   : > { %17844 = vmatprep.mubr.msk.f32.mxu0 %vm18724_vm1, %v21836_v42 }
0x1b66   : > { %v20818_v29 = vpop.f32.mrf.mxu0 }
0x1b68   : > { %v20820_v36 = vpop.f32.mrf.mxu0 }
0x1b6a   : > { %v20822_v31 = vpop.f32.mrf.mxu0 }
0x1b6c   : > { %v20824_v40 = vpop.f32.mrf.mxu0 }
0x1b6e   : > { %v20826_v14 = vpop.f32.mrf.mxu0 }
0x1b70   : > { %v20828_v58 = vpop.f32.mrf.mxu0 }
0x1b72   : > { %v20830_v7 = vpop.f32.mrf.mxu0 }
0x1b74   : > { %v20832_v24 = vpop.f32.mrf.mxu0 }
0x1b76   : > { %v17792_v34 = vpop.f32.mrf.mxu0 }
0x1b77   : > { %v11215_v47 = vadd.f32 %v17792_v34, %v11170_v18 }
0x1b78   : > { %v11206_v55 = vpop.f32.mrf.mxu0 }
0x1b79   : > { %v11207_v1 = vadd.f32 %v11206_v55, %v11170_v18 }
0x1b7a   : > { %v17793_v2 = vpop.f32.mrf.mxu0 }
0x1b7b   : > { %17825 = vmatmul.mubr.msk.f32.vlgmr.msra.gmra.mxu1 %vm786_vm2, %v11207_v1  ;;  %v11218_v44 = vadd.f32 %v17793_v2, %v11170_v18  ;;  %v20891_v1 = vld [vmem:[%s19036_s27] ss:$0 sm:$0xff] }
0x1b7c   : > { %17828 = vmatpush3.xpose.msk.msra.mxu1 %vm786_vm2, %v11297_v35  ;;  %v11209_v10 = vpop.f32.mrf.mxu0  ;;  %17829 = vmatprep.mubr.msk.f32.mxu1 %vm18724_vm1, %v21836_v42 }
0x1b7d   : > { %v11210_v54 = vadd.f32 %v11209_v10, %v11170_v18  ;;  %17832 = vmatprep.subr.mxu1 %v21836_v42 }
0x1b7e   : > { %v17796_v45 = vpop.f32.mrf.mxu0 }
0x1b7f   : > { %17830 = vmatmul.mubr.msk.f32.vlgmr.msra.gmra.mxu1 %vm786_vm2, %v11210_v54  ;;  %v11231_v17 = vadd.f32 %v17796_v45, %v11170_v18 }
0x1b80   : > { %17833 = vmatpush3.xpose.msk.msra.mxu1 %vm786_vm2, %v11302_v12  ;;  %v11222_v61 = vpop.f32.mrf.mxu0  ;;  %17834 = vmatprep.mubr.msk.f32.mxu1 %vm18724_vm1, %v21836_v42 }
0x1b81   : > { %v11223_v28 = vadd.f32 %v11222_v61, %v11170_v18  ;;  %17837 = vmatprep.subr.mxu1 %v21836_v42 }
0x1b82   : > { %v17797_v5 = vpop.f32.mrf.mxu0 }
0x1b83   : > { %17835 = vmatmul.mubr.msk.f32.vlgmr.msra.gmra.mxu1 %vm786_vm2, %v11215_v47  ;;  %17845 = vmatmul.mubr.msk.f32.vlgmr.msra.gmra.mxu0 %vm786_vm2, %v11223_v28  ;;  %v11234_v51 = vadd.f32 %v17797_v5, %v11170_v18 }
0x1b84   : > { %17838 = vmatpush3.xpose.msk.msra.mxu1 %vm786_vm2, %v11305_v50  ;;  %17853 = vmatpush3.xpose.msk.msra.mxu0 %vm786_vm2, %v11318_v25  ;;  %v11225_v56 = vpop.f32.mrf.mxu0 }
0x1b85   : > { %17839 = vmatprep.mubr.msk.f32.mxu1 %vm18724_vm1, %v21836_v42  ;;  %17847 = vmatprep.subr.mxu1 %v21836_v42  ;;  %v11226_v60 = vadd.f32 %v11225_v56, %v11170_v18 }
0x1b86   : > { %17854 = vmatprep.mubr.msk.f32.mxu0 %vm18724_vm1, %v21836_v42  ;;  %17862 = vmatprep.subr.mxu0 %v21836_v42  ;;  %v20876_v48 = vpop.f32.mrf.mxu0 }
0x1b87   : > { %17840 = vmatmul.mubr.msk.f32.vlgmr.msra.gmra.mxu1 %vm786_vm2, %v11218_v44  ;;  %17855 = vmatmul.mubr.msk.f32.vlgmr.msra.gmra.mxu0 %vm786_vm2, %v11231_v17  ;;  %v20903_v17 = vld [vmem:[%s19036_s27 + $0x2] ss:$0 sm:$0xff] }
0x1b88   : > { %17848 = vmatpush3.xpose.msk.msra.mxu1 %vm786_vm2, %v11313_v32  ;;  %17849 = vmatprep.mubr.msk.f32.mxu1 %vm18724_vm1, %v21836_v42  ;;  %v20878_v11 = vpop.f32.mrf.mxu0 }
0x1b89   : > { %17857 = vmatprep.subr.mxu1 %v21836_v42  ;;  %17864 = vmatprep.mubr.msk.f32.mxu0 %vm18724_vm1, %v21836_v42 }
0x1b8a   : > { %v20880_v15 = vpop.f32.mrf.mxu0 }
0x1b8b   : > { %17850 = vmatmul.mubr.msk.f32.vlgmr.msra.gmra.mxu1 %vm786_vm2, %v11226_v60 }
0x1b8c   : > { %17858 = vmatpush3.xpose.msk.msra.mxu1 %vm786_vm2, %v11321_v38  ;;  %17859 = vmatprep.mubr.msk.f32.mxu1 %vm18724_vm1, %v21836_v42  ;;  %v20882_v21 = vpop.f32.mrf.mxu0  ;;  %v20907_v38 = vld [vmem:[%s19036_s27 + $0x4] ss:$0 sm:$0xff] }
0x1b8d   : > { %17867 = vmatprep.subr.mxu1 %v21836_v42 }
0x1b8e   : > { %v20884_v49 = vpop.f32.mrf.mxu0 }
0x1b8f   : > { %17860 = vmatmul.mubr.msk.f32.vlgmr.msra.gmra.mxu1 %vm786_vm2, %v11234_v51 }
0x1b90   : > { %17869 = vmatprep.mubr.msk.f32.mxu1 %vm18724_vm1, %v21836_v42  ;;  %v20886_v23 = vpop.f32.mrf.mxu0 }
0x1b92   : > { %v20888_v18 = vpop.f32.mrf.mxu0 }
0x1b94   : > { %v20895_v12 = vpop.f32.mrf.mxu0 }
0x1c3b   : > { %v11483_v26 = vpop.f32.mrf.mxu1 }
0x1c3c   : > { %v12019_v34 = vmul.f32 0.35355338, %v11483_v26 }
0x1c3d   : > { %v17826_v55 = vpop.f32.mrf.mxu1 }
0x1c3e   : > { %v12027_v35 = vadd.f32 %v20891_v1, %v12019_v34 }
0x1c3f   : > { %v11559_v2 = vpop.f32.mrf.mxu1 }
0x1c40   : > { %v12020_v10 = vmul.f32 0.35355338, %v11559_v2  ;;  %v12035_v54 = vsel %vm786_vm2, %v12027_v35, -inf }
0x1c41   : > { %12036 = vmax.xlane.f32.xlu1 %v12035_v54  ;;  %v17831_v45 = vpop.f32.mrf.mxu1  ;;  %v20912_v54 = vld [vmem:[%s19036_s27 + $0x3] ss:$0 sm:$0xff] }
0x1c42   : > { %v12028_v61 = vadd.f32 %v20898_v3, %v12020_v10 }
0x1c43   : > { %v11635_v47 = vpop.f32.mrf.mxu1  ;;  %v11787_v28 = vpop.f32.mrf.mxu0 }
0x1c44   : > { %v12021_v50 = vmul.f32 0.35355338, %v11635_v47  ;;  %v12023_v25 = vmul.f32 0.35355338, %v11787_v28  ;;  %v12038_v5 = vsel %vm786_vm2, %v12028_v61, -inf }
0x1c45   : > { %v17846_v6 = vpop.f32.mrf.mxu0  ;;  %12039 = vmax.xlane.f32.xlu0 %v12038_v5  ;;  %v17836_v44 = vpop.f32.mrf.mxu1  ;;  %v20916_v28 = vld [vmem:[%s19036_s27 + $0x6] ss:$0 sm:$0xff] }
0x1c46   : > { %v12029_v32 = vadd.f32 %v20903_v17, %v12021_v50  ;;  %v12031_v51 = vadd.f32 %v20907_v38, %v12023_v25 }
0x1c47   : > { %v11711_v56 = vpop.f32.mrf.mxu1  ;;  %v11939_v60 = vpop.f32.mrf.mxu0 }
0x1c48   : > { %v12022_v26 = vmul.f32 0.35355338, %v11711_v56  ;;  %v12025_v34 = vmul.f32 0.35355338, %v11939_v60  ;;  %v12041_v55 = vsel %vm786_vm2, %v12029_v32, -inf  ;;  %v12047_v25 = vsel %vm786_vm2, %v12031_v51, -inf }
0x1c49   : > { %v17856_v2 = vpop.f32.mrf.mxu0  ;;  %12042 = vmax.xlane.f32.xlu0 %v12041_v55  ;;  %v17841_v10 = vpop.f32.mrf.mxu1  ;;  %v20922_v56 = vld [vmem:[%s19036_s27 + $0x5] ss:$0 sm:$0xff] }
0x1c4a   : > { %v12030_v45 = vadd.f32 %v20912_v54, %v12022_v26  ;;  %v12033_v50 = vadd.f32 %v20916_v28, %v12025_v34 }
0x1c4b   : > { %v11863_v47 = vpop.f32.mrf.mxu1 }
0x1c4c   : > { %v12024_v5 = vmul.f32 0.35355338, %v11863_v47  ;;  %v12044_v6 = vsel %vm786_vm2, %v12030_v45, -inf  ;;  %v12053_v2 = vsel %vm786_vm2, %v12033_v50, -inf  ;;  %v20928_v47 = vld [vmem:[%s19036_s27 + $0x7] ss:$0 sm:$0xff] }
0x1c4d   : > { %12048 = vmax.xlane.f32.xlu0 %v12047_v25  ;;  %12045 = vmax.xlane.f32.xlu1 %v12044_v6  ;;  %v17851_v44 = vpop.f32.mrf.mxu1 }
0x1c4e   : > { %v12032_v60 = vadd.f32 %v20922_v56, %v12024_v5 }
0x1c4f   : > { %v12015_v55 = vpop.f32.mrf.mxu1 }
0x1c50   : > { %v12026_v26 = vmul.f32 0.35355338, %v12015_v55  ;;  %v12050_v10 = vsel %vm786_vm2, %v12032_v60, -inf }
0x1c51   : > { %12054 = vmax.xlane.f32.xlu0 %v12053_v2  ;;  %12051 = vmax.xlane.f32.xlu1 %v12050_v10  ;;  %v17861_v34 = vpop.f32.mrf.mxu1 }
0x1c52   : > { %v12034_v62 = vadd.f32 %v20928_v47, %v12026_v26 }
0x1c54   : > { %v12056_v25 = vsel %vm786_vm2, %v12034_v62, -inf }
0x1c55   : > { %12057 = vmax.xlane.f32.xlu1 %v12056_v25 }
0x1cca   : > { %v12037_v6 = vpop.xlane.xlu1 %12036 }
0x1ccb   : > { %v12059_v44 = vsub.f32 %v12027_v35, %v12037_v6 }
0x1ccd   : > { %v12067_v59 = vmul.f32 1.442695, %v12059_v44 }
0x1cce   : > { %v12040_v5 = vpop.xlane.xlu0 %12039 }
0x1ccf   : > { %18539 = vpow2.f32 %v12067_v59  ;;  %v12060_v55 = vsub.f32 %v12028_v61, %v12040_v5 }
0x1cd1   : > { %v12069_v30 = vmul.f32 1.442695, %v12060_v55 }
0x1cd2   : > { %v12043_v63 = vpop.xlane.xlu0 %12042 }
0x1cd3   : > { %18541 = vpow2.f32 %v12069_v30  ;;  %v12061_v37 = vsub.f32 %v12029_v32, %v12043_v63 }
0x1cd5   : > { %v12071_v2 = vmul.f32 1.442695, %v12061_v37 }
0x1cd6   : > { %v12049_v10 = vpop.xlane.xlu0 %12048  ;;  %v12046_v34 = vpop.xlane.xlu1 %12045 }
0x1cd7   : > { %18543 = vpow2.f32 %v12071_v2  ;;  %v12063_v57 = vsub.f32 %v12031_v51, %v12049_v10  ;;  %v12062_v27 = vsub.f32 %v12030_v45, %v12046_v34 }
0x1cd9   : > { %v12075_v26 = vmul.f32 1.442695, %v12063_v57  ;;  %v12073_v20 = vmul.f32 1.442695, %v12062_v27 }
0x1cda   : > { %v12055_v13 = vpop.xlane.xlu0 %12054  ;;  %v12052_v25 = vpop.xlane.xlu1 %12051 }
0x1cdb   : > { %18545 = vpow2.f32 %v12075_v26  ;;  %v12065_v35 = vsub.f32 %v12033_v50, %v12055_v13  ;;  %v12064_v6 = vsub.f32 %v12032_v60, %v12052_v25  ;;  %v20955_v26 = vld [vmem:[%s21802_s2 + $0x36] ss:$0 sm:$0xff] }
0x1cdc   : > { %v18540_v44 = vpop.eup %18539  ;;  %18547 = vpow2.f32 %v12073_v20 }
0x1cdd   : > { %v12079_v59 = vmul.f32 1.442695, %v12065_v35  ;;  %v12077_v61 = vmul.f32 1.442695, %v12064_v6  ;;  %v12083_v30 = vsel %vm786_vm2, %v18540_v44, 0.0 }
0x1cde   : > { %12084 = vadd.xlane.f32.xlu0 %v12083_v30  ;;  %v12058_v63 = vpop.xlane.xlu1 %12057 }
0x1cdf   : > { %18549 = vpow2.f32 %v12079_v59  ;;  %v12066_v37 = vsub.f32 %v12034_v62, %v12058_v63 }
0x1ce0   : > { %v18542_v32 = vpop.eup %18541  ;;  %18551 = vpow2.f32 %v12077_v61 }
0x1ce1   : > { %v12081_v51 = vmul.f32 1.442695, %v12066_v37  ;;  %v12086_v57 = vsel %vm786_vm2, %v18542_v32, 0.0 }
0x1ce2   : > { %12087 = vadd.xlane.f32.xlu1 %v12086_v57 }
0x1ce3   : > { %18553 = vpow2.f32 %v12081_v51 }
0x1ce4   : > { %v18544_v27 = vpop.eup %18543 }
0x1ce5   : > { %v12089_v13 = vsel %vm786_vm2, %v18544_v27, 0.0 }
0x1ce6   : > { %12090 = vadd.xlane.f32.xlu0 %v12089_v13 }
0x1ce8   : > { %v20935_v20 = vpop.eup %18545 }
0x1ce9   : > { %v18548_v45 = vpop.eup %18547  ;;  %v12095_v50 = vsel %vm786_vm2, %v20935_v20, 0.0 }
0x1cea   : > { %12096 = vadd.xlane.f32.xlu0 %v12095_v50  ;;  %v12092_v62 = vsel %vm786_vm2, %v18548_v45, 0.0 }
0x1ceb   : > { %12093 = vadd.xlane.f32.xlu1 %v12092_v62 }
0x1cec   : > { %v20940_v60 = vpop.eup %18549 }
0x1ced   : > { %v20942_v5 = vpop.eup %18551  ;;  %v12101_v55 = vsel %vm786_vm2, %v20940_v60, 0.0 }
0x1cee   : > { %12102 = vadd.xlane.f32.xlu0 %v12101_v55  ;;  %v12098_v2 = vsel %vm786_vm2, %v20942_v5, 0.0 }
0x1cef   : > { %12099 = vadd.xlane.f32.xlu1 %v12098_v2 }
0x1cf0   : > { %v20948_v10 = vpop.eup %18553 }
0x1cf1   : > { %v12104_v34 = vsel %vm786_vm2, %v20948_v10, 0.0 }
0x1cf3   : > { %12105 = vadd.xlane.f32.xlu1 %v12104_v34 }
0x1d04   : > { %11343 = vrot.lane.b32.xlu0 %v20955_v26, %s18726_s25  ;;  %12907 = vrot.lane.b32.xlu1 %v20667_v4, %s18727_s12 }
0x1d08   : > { %12820 = vrot.lane.b32.xlu1 %v20758_v33, %s18727_s12 }
0x1d67   : > { %v12085_v25 = vpop.xlane.xlu0 %12084 }
0x1d68   : > { %18555 = vrcp.f32 %v12085_v25 }
0x1d6b   : > { %v12088_v35 = vpop.xlane.xlu1 %12087 }
0x1d6c   : > { %18557 = vrcp.f32 %v12088_v35 }
0x1d6f   : > { %v12091_v6 = vpop.xlane.xlu0 %12090 }
0x1d70   : > { %18559 = vrcp.f32 %v12091_v6 }
0x1d73   : > { %v12097_v59 = vpop.xlane.xlu0 %12096 }
0x1d74   : > { %18561 = vrcp.f32 %v12097_v59  ;;  %v12094_v61 = vpop.xlane.xlu1 %12093  ;;  %v16359_v59 = vld [vmem:[%s21804_s4 + $0x18] sm:$0xf] }
0x1d75   : > { %18563 = vrcp.f32 %v12094_v61  ;;  %v18556_v37 = vpop.eup %18555  ;;  %v12726_v61 = vsel %vm3711_vm3, %v16359_v59, 0 }
0x1d76   : > { %v12115_v50 = vmul.f32 %v18556_v37, %v18540_v44 }
0x1d77   : > { %v12103_v30 = vpop.xlane.xlu0 %12102 }
0x1d78   : > { %18565 = vrcp.f32 %v12103_v30  ;;  %v12100_v63 = vpop.xlane.xlu1 %12099  ;;  %v18181_v30 = vld [vmem:[%s21803_s3 + $0x138] sm:$0xff]  }
0x1d79   : > { %18567 = vrcp.f32 %v12100_v63  ;;  %v18558_v51 = vpop.eup %18557 }
0x1d7a   : > { %v12116_v62 = vmul.f32 %v18558_v51, %v18542_v32 }
0x1d7b   : > { %v11344_v4 = vpop.permute.xlu0 %11343 }
0x1d7c   : > { %v12106_v57 = vpop.xlane.xlu1 %12105  ;;  %v11381_v33 = vadd.f32 %v20878_v11, %v11344_v4  ;;  %v11384_v13 = vadd.f32 %v20882_v21, %v11344_v4  ;;  %v11389_v2 = vadd.f32 %v20876_v48, %v11344_v4  ;;  %v11392_v34 = vadd.f32 %v20880_v15, %v11344_v4 }
0x1d7d   : > { %18569 = vrcp.f32 %v12106_v57  ;;  %v18560_v55 = vpop.eup %18559  ;;  %v11397_v32 = vadd.f32 %v20886_v23, %v11344_v4  ;;  %v11400_v48 = vadd.f32 %v20895_v12, %v11344_v4  ;;  %v18177_v12 = vld [vmem:[%s21803_s3 + $0xf8] sm:$0xff]  }
0x1d7e   : > { %17863 = vmatpush3.msra.mxu0 %v11381_v33  ;;  %17868 = vmatpush3.msra.mxu1 %v11384_v13  ;;  %v12117_v21 = vmul.f32 %v18560_v55, %v18544_v27  ;;  %v18182_v55 = vld [vmem:[%s21803_s3 + $0x130] sm:$0xff]  }
0x1d7f   : > { %17865 = vmatmul.mubr.msk.f32.vlgmr.msra.gmra.mxu0 %vm786_vm2, %v12115_v50  ;;  %17870 = vmatmul.mubr.msk.f32.vlgmr.msra.gmra.mxu1 %vm786_vm2, %v12116_v62 }
0x1d80   : > { %17872 = vmatprep.subr.mxu0 %v21836_v42  ;;  %17877 = vmatprep.subr.mxu1 %v21836_v42 }
0x1d81   : > { %v18562_v11 = vpop.eup %18561  ;;  %17873 = vmatpush3.msra.mxu0 %v11389_v2  ;;  %17878 = vmatpush3.msra.mxu1 %v11392_v34 }
0x1d82   : > { %v18564_v44 = vpop.eup %18563  ;;  %17874 = vmatprep.mubr.msk.f32.mxu0 %vm18724_vm1, %v21836_v42  ;;  %17882 = vmatprep.subr.mxu0 %v21836_v42  ;;  %v12119_v27 = vmul.f32 %v18562_v11, %v20935_v20  ;;  %v11408_v20 = vadd.f32 %v20888_v18, %v11344_v4  ;;  %v18178_v18 = vld [vmem:[%s21803_s3 + $0xf0] sm:$0xff]  }
0x1d83   : > { %v12118_v25 = vmul.f32 %v18564_v44, %v18548_v45  ;;  %17875 = vmatmul.mubr.msk.f32.vlgmr.msra.gmra.mxu0 %vm786_vm2, %v12117_v21  ;;  %17879 = vmatprep.mubr.msk.f32.mxu1 %vm18724_vm1, %v21836_v42  ;;  %v11405_v45 = vadd.f32 %v20884_v49, %v11344_v4 }
0x1d84   : > { %17883 = vmatpush3.msra.mxu0 %v11397_v32  ;;  %17887 = vmatprep.subr.mxu1 %v21836_v42 }
0x1d85   : > { %v18566_v15 = vpop.eup %18565  ;;  %17880 = vmatmul.mubr.msk.f32.vlgmr.msra.gmra.mxu1 %vm786_vm2, %v12118_v25  ;;  %17884 = vmatprep.mubr.msk.f32.mxu0 %vm18724_vm1, %v21836_v42 }
0x1d86   : > { %v18568_v23 = vpop.eup %18567  ;;  %17888 = vmatpush3.msra.mxu1 %v11400_v48  ;;  %17892 = vmatprep.subr.mxu0 %v21836_v42  ;;  %v12121_v6 = vmul.f32 %v18566_v15, %v20940_v60  ;;  %v18179_v60 = vld [vmem:[%s21803_s3 + $0x178] sm:$0xff]  }
0x1d87   : > { %v12120_v35 = vmul.f32 %v18568_v23, %v20942_v5  ;;  %17885 = vmatmul.mubr.msk.f32.vlgmr.msra.gmra.mxu0 %vm786_vm2, %v12119_v27  ;;  %17889 = vmatprep.mubr.msk.f32.mxu1 %vm18724_vm1, %v21836_v42 }
0x1d88   : > { %17893 = vmatpush3.msra.mxu0 %v11405_v45  ;;  %17897 = vmatprep.subr.mxu1 %v21836_v42  ;;  %v11128_v45 = vadd.f32 %v20772_v16, %v20818_v29  ;;  %v11144_v29 = vadd.f32 %v20787_v39, %v20826_v14  ;;  %v11139_v39 = vadd.f32 %v20796_v41, %v20832_v24 }
0x1d89   : > { %17890 = vmatmul.mubr.msk.f32.vlgmr.msra.gmra.mxu1 %vm786_vm2, %v12120_v35  ;;  %17894 = vmatprep.mubr.msk.f32.mxu0 %vm18724_vm1, %v21836_v42 }
0x1d8a   : > { %v18570_v49 = vpop.eup %18569  ;;  %17898 = vmatpush3.msra.mxu1 %v11408_v20  ;;  %17899 = vmatprep.mubr.msk.f32.mxu1 %vm18724_vm1, %v21836_v42 }
0x1d8b   : > { %v12122_v5 = vmul.f32 %v18570_v49, %v20948_v10  ;;  %17895 = vmatmul.mubr.msk.f32.vlgmr.msra.gmra.mxu0 %vm786_vm2, %v12121_v6  ;;  %17912 = vmatprep.subr.bf16.mxu1 %v18177_v12  ;;  %v18180_v10 = vld [vmem:[%s21803_s3 + $0x170] sm:$0xff]   ;;  %v11123_v49 = vadd.f32 %v20783_v8, %v20824_v40  ;;  %v12908_v8 = vpop.permute.xlu1 %12907 }
0x1d8c   : > { %18111 = vmatprep.subr.msk.bf16.mxu0 %vm3711_vm3, %v16359_v59 }
0x1d8d   : > { %17900 = vmatmul.mubr.msk.f32.vlgmr.msra.gmra.mxu1 %vm786_vm2, %v12122_v5  ;;  %17903 = vmatpush3.bf16.msra.mxu0 %v12726_v61 }
0x1d8e   : > { %17913 = vmatpush3.bf16.msra.mxu1 %v18177_v12  ;;  %17916 = vmatprep.mubr.msk.bf16.mxu1 %vm392_vm0, %v20248_v19  ;;  %v11120_v12 = vadd.f32 %v20776_v46, %v20820_v36 }
0x1d8f   : > { %17914 = vmatprep.subr.bf16.mxu1 %v18178_v18  ;;  %17924 = vmatprep.subr.bf16.mxu0 %v18181_v30 }
0x1d92   : > { %17915 = vmatpush3.bf16.msra.mxu1 %v18178_v18 }
0x1d93   : > { %17936 = vmatprep.subr.bf16.mxu1 %v18179_v60 }
0x1d95   : > { %17917 = vmatmul.mubr.msk.bf16.vlgmr.msra.gmra.mxu1 %vm392_vm0, %v20261_v53 }
0x1d96   : > { %17920 = vmatprep.mubr.msk.bf16.mxu1 %vm392_vm0, %v20281_v9  ;;  %17937 = vmatpush3.bf16.msra.mxu1 %v18179_v60 }
0x1d97   : > { %17938 = vmatprep.subr.bf16.mxu1 %v18180_v10 }
0x1d9a   : > { %17939 = vmatpush3.bf16.msra.mxu1 %v18180_v10  ;;  %v11147_v10 = vadd.f32 %v20793_v22, %v20830_v7 }
0x1d9b   : > { %17958 = vmatprep.subr.mxu1 %v21836_v42 }
0x1d9d   : > { %17921 = vmatmul.mubr.msk.bf16.gmra.mxu1 %vm392_vm0, %v20293_v43 }
0x1d9e   : > { %17940 = vmatprep.mubr.msk.bf16.mxu1 %vm392_vm0, %v20248_v19 }
0x1da5   : > { %17941 = vmatmul.mubr.msk.bf16.vlgmr.msra.gmra.mxu1 %vm392_vm0, %v20261_v53 }
0x1da6   : > { %17944 = vmatprep.mubr.msk.bf16.mxu1 %vm392_vm0, %v20281_v9 }
0x1dad   : > { %17945 = vmatmul.mubr.msk.bf16.gmra.mxu1 %vm392_vm0, %v20293_v43 }
0x1dae   : > { %17960 = vmatprep.mubr.msk.f32.mxu1 %vm18724_vm1, %v21836_v42 }
0x1e3f   : > { %v12192_v63 = vpop.f32.mrf.mxu0  ;;  %v12265_v37 = vpop.f32.mrf.mxu1 }
0x1e40   : > { %v12707_v51 = vpack.c.bf16 %v12265_v37, %v12192_v63 }
0x1e41   : > { %v17866_v4 = vpop.f32.mrf.mxu0  ;;  %v17871_v57 = vpop.f32.mrf.mxu1 }
0x1e42   : > { %17904 = vmatprep.mubr.msk.bf16.mxu0 %vm786_vm2, %v12707_v51 }
0x1e43   : > { %v12338_v33 = vpop.f32.mrf.mxu0 }
0x1e45   : > { %v12411_v13 = vpop.f32.mrf.mxu1  ;;  %v17876_v50 = vpop.f32.mrf.mxu0 }
0x1e46   : > { %v12708_v62 = vpack.c.bf16 %v12411_v13, %v12338_v33 }
0x1e47   : > { %v17881_v2 = vpop.f32.mrf.mxu1  ;;  %v12484_v34 = vpop.f32.mrf.mxu0 }
0x1e48   : > { %17905 = vmatmul.mubr.msk.bf16.vlgmr.msra.gmra.mxu0 %vm786_vm2, %v12708_v62 }
0x1e49   : > { %v12557_v11 = vpop.f32.mrf.mxu1  ;;  %v17886_v21 = vpop.f32.mrf.mxu0  ;;  %17925 = vmatpush3.bf16.msra.mxu0 %v18181_v30 }
0x1e4a   : > { %v12709_v44 = vpack.c.bf16 %v12557_v11, %v12484_v34  ;;  %17926 = vmatprep.subr.bf16.mxu0 %v18182_v55 }
0x1e4b   : > { %v17891_v32 = vpop.f32.mrf.mxu1  ;;  %v12630_v25 = vpop.f32.mrf.mxu0 }
0x1e4c   : > { %17908 = vmatprep.mubr.msk.bf16.mxu0 %vm786_vm2, %v12709_v44 }
0x1e4d   : > { %v12703_v48 = vpop.f32.mrf.mxu1  ;;  %v17896_v15 = vpop.f32.mrf.mxu0  ;;  %17927 = vmatpush3.bf16.msra.mxu0 %v18182_v55 }
0x1e4e   : > { %v12710_v27 = vpack.c.bf16 %v12703_v48, %v12630_v25  ;;  %17948 = vmatprep.subr.mxu0 %v21836_v42 }
0x1e4f   : > { %v17901_v23 = vpop.f32.mrf.mxu1 }
0x1e50   : > { %17909 = vmatmul.mubr.msk.bf16.gmra.mxu0 %vm786_vm2, %v12710_v27 }
0x1e51   : > { %17928 = vmatprep.mubr.msk.bf16.mxu0 %vm392_vm0, %v20248_v19 }
0x1e58   : > { %17929 = vmatmul.mubr.msk.bf16.vlgmr.msra.gmra.mxu0 %vm392_vm0, %v20261_v53  ;;  %v11131_v53 = vadd.f32 %v20778_v52, %v20822_v31  ;;  %v11136_v52 = vadd.f32 %v20791_v0, %v20828_v58  ;;  %v12821_v58 = vpop.permute.xlu1 %12820 }
0x1e59   : > { %17932 = vmatprep.mubr.msk.bf16.mxu0 %vm392_vm0, %v20281_v9  ;;  %v17918_v9 = vpop.f32.mrf.mxu1 }
0x1e5a   : > { %v12866_v7 = vadd.f32 %v17918_v9, %v12821_v58 }
0x1e5b   : > { %v12857_v46 = vpop.f32.mrf.mxu1 }
0x1e5c   : > { %v12858_v41 = vadd.f32 %v12857_v46, %v12821_v58 }
0x1e5d   : > { %v17919_v40 = vpop.f32.mrf.mxu1 }
0x1e5e   : > { %v12869_v32 = vadd.f32 %v17919_v40, %v12821_v58 }
0x1e5f   : > { %v12860_v63 = vpop.f32.mrf.mxu1 }
0x1e60   : > { %17933 = vmatmul.mubr.msk.bf16.gmra.mxu0 %vm392_vm0, %v20293_v43  ;;  %v12861_v55 = vadd.f32 %v12860_v63, %v12821_v58 }
0x1e61   : > { %17950 = vmatprep.mubr.msk.f32.mxu0 %vm18724_vm1, %v21836_v42  ;;  %v17922_v57 = vpop.f32.mrf.mxu1 }
0x1e63   : > { %v12873_v13 = vpop.f32.mrf.mxu1 }
0x1e64   : > { %v12874_v25 = vadd.f32 %v12873_v13, %v12821_v58 }
0x1e65   : > { %v17923_v34 = vpop.f32.mrf.mxu1 }
0x1e67   : > { %v12876_v15 = vpop.f32.mrf.mxu1 }
0x1f08   : > { %v17906_v35 = vpop.f32.mrf.mxu0 }
0x1f09   : > { %v21062_v19 = vadd.f32 %v17906_v35, %v11128_v45  ;;  %v12882_v45 = vadd.f32 %v17922_v57, %v12821_v58  ;;  %v12877_v35 = vadd.f32 %v12876_v15, %v12821_v58 }
0x1f0a   : > { %v12762_v20 = vpop.f32.mrf.mxu0 }
0x1f0b   : > { %v21066_v6 = vadd.f32 %v12762_v20, %v11120_v12  ;;  %v12885_v20 = vadd.f32 %v17923_v34, %v12821_v58 }
0x1f0c   : > { %v17907_v43 = vpop.f32.mrf.mxu0 }
0x1f0d   : > { %v21070_v5 = vadd.f32 %v17907_v43, %v11131_v53  ;;  %v21130_v53 = vpop.f32.mrf.mxu1 }
0x1f0e   : > { %v12765_v16 = vpop.f32.mrf.mxu0 }
0x1f0f   : > { %v21074_v36 = vadd.f32 %v12765_v16, %v11123_v49  ;;  %v21132_v9 = vpop.f32.mrf.mxu1 }
0x1f10   : > { %v17910_v18 = vpop.f32.mrf.mxu0 }
0x1f11   : > { %v21078_v31 = vadd.f32 %v17910_v18, %v11144_v29  ;;  %v21134_v43 = vpop.f32.mrf.mxu1 }
0x1f12   : > { %v12778_v60 = vpop.f32.mrf.mxu0 }
0x1f13   : > { %v21082_v59 = vadd.f32 %v12778_v60, %v11136_v52  ;;  %v21136_v49 = vpop.f32.mrf.mxu1 }
0x1f14   : > { %v17911_v61 = vpop.f32.mrf.mxu0 }
0x1f15   : > { %v21086_v14 = vadd.f32 %v17911_v61, %v11147_v10  ;;  %v21138_v16 = vpop.f32.mrf.mxu1 }
0x1f16   : > { %v12781_v30 = vpop.f32.mrf.mxu0 }
0x1f17   : > { %v21088_v37 = vadd.f32 %v12781_v30, %v11139_v39  ;;  %v21140_v29 = vpop.f32.mrf.mxu1 }
0x1f18   : > { %v17930_v0 = vpop.f32.mrf.mxu0 }
0x1f19   : > { %v12953_v51 = vadd.f32 %v17930_v0, %v12908_v8  ;;  %v21142_v46 = vpop.f32.mrf.mxu1 }
0x1f1a   : > { %v12944_v4 = vpop.f32.mrf.mxu0 }
0x1f1b   : > { %v12945_v22 = vadd.f32 %v12944_v4, %v12908_v8  ;;  %17959 = vmatpush3.xpose.msk.msra.mxu1 %vm786_vm2, %v12953_v51  ;;  %v21144_v18 = vpop.f32.mrf.mxu1 }
0x1f1c   : > { %v17931_v33 = vpop.f32.mrf.mxu0  ;;  %17968 = vmatprep.subr.mxu1 %v21836_v42 }
0x1f1d   : > { %17949 = vmatpush3.xpose.msk.msra.mxu0 %vm786_vm2, %v12945_v22  ;;  %v12956_v11 = vadd.f32 %v17931_v33, %v12908_v8 }
0x1f1e   : > { %v12947_v24 = vpop.f32.mrf.mxu0  ;;  %17961 = vmatmul.mubr.msk.f32.vlgmr.msra.gmra.mxu1 %vm786_vm2, %v12866_v7  ;;  %17953 = vmatprep.subr.mxu0 %v21836_v42 }
0x1f1f   : > { %v12948_v50 = vadd.f32 %v12947_v24, %v12908_v8  ;;  %17970 = vmatprep.mubr.msk.f32.mxu1 %vm18724_vm1, %v21836_v42 }
0x1f20   : > { %v17934_v62 = vpop.f32.mrf.mxu0  ;;  %17951 = vmatmul.mubr.msk.f32.vlgmr.msra.gmra.mxu0 %vm786_vm2, %v12858_v41 }
0x1f21   : > { %17954 = vmatpush3.xpose.msk.msra.mxu0 %vm786_vm2, %v12948_v50  ;;  %17955 = vmatprep.mubr.msk.f32.mxu0 %vm18724_vm1, %v21836_v42  ;;  %v12969_v27 = vadd.f32 %v17934_v62, %v12908_v8 }
0x1f22   : > { %v12960_v2 = vpop.f32.mrf.mxu0  ;;  %17963 = vmatprep.subr.mxu0 %v21836_v42 }
0x1f23   : > { %v12961_v21 = vadd.f32 %v12960_v2, %v12908_v8 }
0x1f24   : > { %v17935_v44 = vpop.f32.mrf.mxu0  ;;  %17956 = vmatmul.mubr.msk.f32.vlgmr.msra.gmra.mxu0 %vm786_vm2, %v12861_v55 }
0x1f25   : > { %17964 = vmatpush3.xpose.msk.msra.mxu0 %vm786_vm2, %v12956_v11  ;;  %17969 = vmatpush3.xpose.msk.msra.mxu1 %vm786_vm2, %v12961_v21  ;;  %v12972_v12 = vadd.f32 %v17935_v44, %v12908_v8 }
0x1f26   : > { %v12963_v48 = vpop.f32.mrf.mxu0  ;;  %17965 = vmatprep.mubr.msk.f32.mxu0 %vm18724_vm1, %v21836_v42  ;;  %17973 = vmatprep.subr.mxu0 %v21836_v42 }
0x1f27   : > { %v12964_v23 = vadd.f32 %v12963_v48, %v12908_v8  ;;  %17978 = vmatprep.subr.mxu1 %v21836_v42 }
0x1f28   : > { %17966 = vmatmul.mubr.msk.f32.vlgmr.msra.gmra.mxu0 %vm786_vm2, %v12869_v32  ;;  %17971 = vmatmul.mubr.msk.f32.vlgmr.msra.gmra.mxu1 %vm786_vm2, %v12874_v25 }
0x1f29   : > { %17974 = vmatpush3.xpose.msk.msra.mxu0 %vm786_vm2, %v12964_v23  ;;  %17979 = vmatpush3.xpose.msk.msra.mxu1 %vm786_vm2, %v12969_v27 }
0x1f2a   : > { %17975 = vmatprep.mubr.msk.f32.mxu0 %vm18724_vm1, %v21836_v42  ;;  %17980 = vmatprep.mubr.msk.f32.mxu1 %vm18724_vm1, %v21836_v42 }
0x1f2b   : > { %17983 = vmatprep.subr.mxu0 %v21836_v42  ;;  %17988 = vmatprep.subr.mxu1 %v21836_v42 }
0x1f2c   : > { %17976 = vmatmul.mubr.msk.f32.vlgmr.msra.gmra.mxu0 %vm786_vm2, %v12877_v35  ;;  %17981 = vmatmul.mubr.msk.f32.vlgmr.msra.gmra.mxu1 %vm786_vm2, %v12882_v45 }
0x1f2d   : > { %17984 = vmatpush3.xpose.msk.msra.mxu0 %vm786_vm2, %v12972_v12  ;;  %17985 = vmatprep.mubr.msk.f32.mxu0 %vm18724_vm1, %v21836_v42 }
0x1f2e   : > { %17993 = vmatprep.subr.mxu0 %v21836_v42  ;;  %17990 = vmatprep.mubr.msk.f32.mxu1 %vm18724_vm1, %v21836_v42 }
0x1f30   : > { %17986 = vmatmul.mubr.msk.f32.vlgmr.msra.gmra.mxu0 %vm786_vm2, %v12885_v20 }
0x1f31   : > { %17995 = vmatprep.mubr.msk.f32.mxu0 %vm18724_vm1, %v21836_v42 }
0x1fde   : > { %v13286_v52 = vpop.f32.mrf.mxu1 }
0x1fdf   : > { %v13672_v8 = vmul.f32 0.35355338, %v13286_v52 }
0x1fe0   : > { %v13134_v60 = vpop.f32.mrf.mxu0  ;;  %v17962_v10 = vpop.f32.mrf.mxu1 }
0x1fe1   : > { %v13670_v40 = vmul.f32 0.35355338, %v13134_v60  ;;  %v13680_v63 = vadd.f32 %v20903_v17, %v13672_v8 }
0x1fe2   : > { %v17952_v61 = vpop.f32.mrf.mxu0 }
0x1fe3   : > { %v13678_v39 = vadd.f32 %v20891_v1, %v13670_v40  ;;  %v13692_v41 = vsel %vm786_vm2, %v13680_v63, -inf }
0x1fe4   : > { %v13210_v30 = vpop.f32.mrf.mxu0 }
0x1fe5   : > { %v13671_v0 = vmul.f32 0.35355338, %v13210_v30  ;;  %v13686_v58 = vsel %vm786_vm2, %v13678_v39, -inf }
0x1fe6   : > { %13687 = vmax.xlane.f32.xlu0 %v13686_v58  ;;  %v17957_v51 = vpop.f32.mrf.mxu0 }
0x1fe7   : > { %v13679_v4 = vadd.f32 %v20898_v3, %v13671_v0 }
0x1fe8   : > { %v13362_v57 = vpop.f32.mrf.mxu0  ;;  %v13438_v22 = vpop.f32.mrf.mxu1 }
0x1fe9   : > { %v13673_v7 = vmul.f32 0.35355338, %v13362_v57  ;;  %v13674_v33 = vmul.f32 0.35355338, %v13438_v22  ;;  %v13689_v24 = vsel %vm786_vm2, %v13679_v4, -inf }
0x1fea   : > { %v17972_v13 = vpop.f32.mrf.mxu1  ;;  %13693 = vmax.xlane.f32.xlu0 %v13692_v41  ;;  %13690 = vmax.xlane.f32.xlu1 %v13689_v24  ;;  %v17967_v1 = vpop.f32.mrf.mxu0 }
0x1feb   : > { %v13681_v17 = vadd.f32 %v20912_v54, %v13673_v7  ;;  %v13682_v50 = vadd.f32 %v20907_v38, %v13674_v33 }
0x1fec   : > { %v13514_v62 = vpop.f32.mrf.mxu0  ;;  %v13590_v55 = vpop.f32.mrf.mxu1 }
0x1fed   : > { %v13675_v2 = vmul.f32 0.35355338, %v13514_v62  ;;  %v13676_v3 = vmul.f32 0.35355338, %v13590_v55  ;;  %v13698_v34 = vsel %vm786_vm2, %v13682_v50, -inf  ;;  %v13695_v11 = vsel %vm786_vm2, %v13681_v17, -inf }
0x1fee   : > { %v17982_v21 = vpop.f32.mrf.mxu1  ;;  %13699 = vmax.xlane.f32.xlu1 %v13698_v34  ;;  %13696 = vmax.xlane.f32.xlu0 %v13695_v11  ;;  %v17977_v44 = vpop.f32.mrf.mxu0 }
0x1fef   : > { %v13683_v32 = vadd.f32 %v20922_v56, %v13675_v2  ;;  %v13684_v25 = vadd.f32 %v20916_v28, %v13676_v3 }
0x1ff0   : > { %v13666_v48 = vpop.f32.mrf.mxu0 }
0x1ff1   : > { %v13677_v54 = vmul.f32 0.35355338, %v13666_v48  ;;  %v13704_v38 = vsel %vm786_vm2, %v13684_v25, -inf  ;;  %v13701_v15 = vsel %vm786_vm2, %v13683_v32, -inf }
0x1ff2   : > { %13705 = vmax.xlane.f32.xlu1 %v13704_v38  ;;  %13702 = vmax.xlane.f32.xlu0 %v13701_v15  ;;  %v17987_v27 = vpop.f32.mrf.mxu0 }
0x1ff3   : > { %v13685_v23 = vadd.f32 %v20928_v47, %v13677_v54 }
0x1ff5   : > { %v13707_v45 = vsel %vm786_vm2, %v13685_v23, -inf }
0x1ff6   : > { %13708 = vmax.xlane.f32.xlu0 %v13707_v45 }
0x206f   : > { %v13688_v35 = vpop.xlane.xlu0 %13687 }
0x2070   : > { %v13710_v12 = vsub.f32 %v13678_v39, %v13688_v35 }
0x2072   : > { %v13718_v60 = vmul.f32 1.442695, %v13710_v12 }
0x2073   : > { %v13694_v20 = vpop.xlane.xlu0 %13693  ;;  %v13691_v56 = vpop.xlane.xlu1 %13690 }
0x2074   : > { %v13712_v52 = vsub.f32 %v13680_v63, %v13694_v20  ;;  %v13711_v28 = vsub.f32 %v13679_v4, %v13691_v56 }
0x2076   : > { %v13722_v10 = vmul.f32 1.442695, %v13712_v52  ;;  %v13720_v8 = vmul.f32 1.442695, %v13711_v28 }
0x2077   : > { %v13700_v40 = vpop.xlane.xlu1 %13699  ;;  %v13697_v61 = vpop.xlane.xlu0 %13696 }
0x2078   : > { %18571 = vpow2.f32 %v13722_v10  ;;  %v13714_v30 = vsub.f32 %v13682_v50, %v13700_v40  ;;  %v13713_v0 = vsub.f32 %v13681_v17, %v13697_v61 }
0x2079   : > { %18573 = vpow2.f32 %v13720_v8 }
0x207a   : > { %18575 = vpow2.f32 %v13718_v60  ;;  %v13726_v47 = vmul.f32 1.442695, %v13714_v30  ;;  %v13724_v58 = vmul.f32 1.442695, %v13713_v0 }
0x207b   : > { %v13706_v51 = vpop.xlane.xlu1 %13705  ;;  %v13703_v57 = vpop.xlane.xlu0 %13702 }
0x207c   : > { %v13716_v22 = vsub.f32 %v13684_v25, %v13706_v51  ;;  %v13715_v39 = vsub.f32 %v13683_v32, %v13703_v57  ;;  %18577 = vpow2.f32 %v13724_v58 }
0x207d   : > { %18579 = vpow2.f32 %v13726_v47 }
0x207e   : > { %v13730_v63 = vmul.f32 1.442695, %v13716_v22  ;;  %v13728_v4 = vmul.f32 1.442695, %v13715_v39 }
0x207f   : > { %v13709_v7 = vpop.xlane.xlu0 %13708 }
0x2080   : > { %v13717_v33 = vsub.f32 %v13685_v23, %v13709_v7  ;;  %18581 = vpow2.f32 %v13728_v4 }
0x2081   : > { %18583 = vpow2.f32 %v13730_v63 }
0x2082   : > { %v13732_v41 = vmul.f32 1.442695, %v13717_v33 }
0x2084   : > { %18585 = vpow2.f32 %v13732_v41 }
0x2085   : > { %v21162_v24 = vpop.eup %18571 }
0x2086   : > { %v18574_v13 = vpop.eup %18573  ;;  %v13740_v1 = vsel %vm786_vm2, %v21162_v24, 0.0 }
0x2087   : > { %v18576_v17 = vpop.eup %18575  ;;  %13741 = vadd.xlane.f32.xlu1 %v13740_v1  ;;  %v13737_v50 = vsel %vm786_vm2, %v18574_v13, 0.0 }
0x2088   : > { %13738 = vadd.xlane.f32.xlu0 %v13737_v50  ;;  %v13734_v55 = vsel %vm786_vm2, %v18576_v17, 0.0 }
0x2089   : > { %v18578_v62 = vpop.eup %18577 }
0x208a   : > { %v21168_v2 = vpop.eup %18579  ;;  %v13743_v3 = vsel %vm786_vm2, %v18578_v62, 0.0 }
0x208b   : > { %13735 = vadd.xlane.f32.xlu1 %v13734_v55  ;;  %v13746_v11 = vsel %vm786_vm2, %v21168_v2, 0.0 }
0x208c   : > { %13744 = vadd.xlane.f32.xlu0 %v13743_v3 }
0x208d   : > { %v18582_v34 = vpop.eup %18581 }
0x208e   : > { %v21173_v21 = vpop.eup %18583  ;;  %v13749_v44 = vsel %vm786_vm2, %v18582_v34, 0.0 }
0x208f   : > { %13747 = vadd.xlane.f32.xlu1 %v13746_v11  ;;  %v13752_v25 = vsel %vm786_vm2, %v21173_v21, 0.0 }
0x2090   : > { %13750 = vadd.xlane.f32.xlu0 %v13749_v44 }
0x2091   : > { %v21176_v32 = vpop.eup %18585 }
0x2092   : > { %v13755_v48 = vsel %vm786_vm2, %v21176_v32, 0.0 }
0x2093   : > { %13753 = vadd.xlane.f32.xlu1 %v13752_v25 }
0x2094   : > { %13756 = vadd.xlane.f32.xlu0 %v13755_v48 }
0x20a4   : > { %12994 = vrot.lane.b32.xlu1 %v20955_v26, %s18727_s12  ;;  %s18113_s12 = smul.u32 48, %s21864_s14 }
0x20a6   : > { %s380_s22 = scalar_lea.vmem %s21810_s10, %s18113_s12 }
0x2110   : > { %v13742_v54 = vpop.xlane.xlu1 %13741 }
0x2111   : > { %v13739_v38 = vpop.xlane.xlu0 %13738 }
0x2112   : > { %18587 = vrcp.f32 %v13739_v38  ;;  %v14452_v38 = vld [vmem:[%s21802_s2 + $0x37] ss:$0 sm:$0xff] }
0x2114   : > { %v13736_v15 = vpop.xlane.xlu1 %13735 }
0x2115   : > { %18589 = vrcp.f32 %v13736_v15  ;;  %v13745_v27 = vpop.xlane.xlu0 %13744 }
0x2116   : > { %18591 = vrcp.f32 %v13745_v27 }
0x2117   : > { %18593 = vrcp.f32 %v13742_v54 }
0x2118   : > { %v13748_v23 = vpop.xlane.xlu1 %13747 }
0x2119   : > { %v13751_v45 = vpop.xlane.xlu0 %13750 }
0x211a   : > { %18595 = vrcp.f32 %v13751_v45 }
0x211b   : > { %18597 = vrcp.f32 %v13748_v23 }
0x211c   : > { %v13754_v35 = vpop.xlane.xlu1 %13753 }
0x211d   : > { %v13757_v12 = vpop.xlane.xlu0 %13756 }
0x211e   : > { %18599 = vrcp.f32 %v13757_v12 }
0x211f   : > { %v18588_v20 = vpop.eup %18587  ;;  %18601 = vrcp.f32 %v13754_v35 }
0x2120   : > { %v12995_v56 = vpop.permute.xlu1 %12994  ;;  %v13767_v60 = vmul.f32 %v18588_v20, %v18574_v13 }
0x2121   : > { %v13032_v26 = vadd.f32 %v21132_v9, %v12995_v56  ;;  %v13035_v52 = vadd.f32 %v21136_v49, %v12995_v56  ;;  %v13040_v40 = vadd.f32 %v21130_v53, %v12995_v56  ;;  %v13043_v61 = vadd.f32 %v21134_v43, %v12995_v56 }
0x2122   : > { %v18590_v28 = vpop.eup %18589  ;;  %v13051_v0 = vadd.f32 %v21144_v18, %v12995_v56  ;;  %v13048_v47 = vadd.f32 %v21140_v29, %v12995_v56  ;;  %v13059_v51 = vadd.f32 %v21142_v46, %v12995_v56  ;;  %v13056_v22 = vadd.f32 %v21138_v16, %v12995_v56  ;;  %v16418_v16 = vld [vmem:[%s21804_s4 + $0x1c] sm:$0xf]  ;;  %v21852_v56 = vld [vmem:[#allocation6_spill] sm:$0xff] }
0x2123   : > { %v18592_v10 = vpop.eup %18591  ;;  %v13766_v8 = vmul.f32 %v18590_v28, %v18576_v17  ;;  %17989 = vmatpush3.msra.mxu1 %v13032_v26  ;;  %17994 = vmatpush3.msra.mxu0 %v13035_v52  ;;  %v14377_v63 = vsel %vm3711_vm3, %v16418_v16, 0 }
0x2124   : > { %17996 = vmatmul.mubr.msk.f32.vlgmr.msra.gmra.mxu0 %vm786_vm2, %v13767_v60  ;;  %17998 = vmatprep.subr.mxu1 %v21836_v42  ;;  %v18594_v30 = vpop.eup %18593  ;;  %v13769_v9 = vmul.f32 %v18592_v10, %v18578_v62 }
0x2125   : > { %18003 = vmatprep.subr.mxu0 %v21836_v42  ;;  %17991 = vmatmul.mubr.msk.f32.vlgmr.msra.gmra.mxu1 %vm786_vm2, %v13766_v8  ;;  %v13768_v53 = vmul.f32 %v18594_v30, %v21162_v24  ;;  %v21853_v8 = vld [vmem:[#allocation8_spill] sm:$0xff] }
0x2126   : > { %17999 = vmatpush3.msra.mxu1 %v13040_v40  ;;  %18004 = vmatpush3.msra.mxu0 %v13043_v61 }
0x2127   : > { %v18596_v49 = vpop.eup %18595  ;;  %18005 = vmatprep.mubr.msk.f32.mxu0 %vm18724_vm1, %v21836_v42  ;;  %18013 = vmatprep.subr.mxu0 %v21836_v42 }
0x2128   : > { %18000 = vmatprep.mubr.msk.f32.mxu1 %vm18724_vm1, %v21836_v42  ;;  %18006 = vmatmul.mubr.msk.f32.vlgmr.msra.gmra.mxu0 %vm786_vm2, %v13769_v9  ;;  %v18598_v43 = vpop.eup %18597  ;;  %v13771_v58 = vmul.f32 %v18596_v49, %v18582_v34  ;;  %v21854_v49 = vld [vmem:[#allocation2_spill] sm:$0xff] }
0x2129   : > { %18008 = vmatprep.subr.mxu1 %v21836_v42  ;;  %18014 = vmatpush3.msra.mxu0 %v13051_v0  ;;  %v13770_v57 = vmul.f32 %v18598_v43, %v21168_v2 }
0x212a   : > { %18001 = vmatmul.mubr.msk.f32.vlgmr.msra.gmra.mxu1 %vm786_vm2, %v13768_v53  ;;  %18015 = vmatprep.mubr.msk.f32.mxu0 %vm18724_vm1, %v21836_v42 }
0x212b   : > { %v18600_v18 = vpop.eup %18599  ;;  %18009 = vmatpush3.msra.mxu1 %v13048_v47  ;;  %18023 = vmatprep.subr.mxu0 %v21836_v42 }
0x212c   : > { %18010 = vmatprep.mubr.msk.f32.mxu1 %vm18724_vm1, %v21836_v42  ;;  %18016 = vmatmul.mubr.msk.f32.vlgmr.msra.gmra.mxu0 %vm786_vm2, %v13771_v58  ;;  %v18602_v29 = vpop.eup %18601  ;;  %v13773_v39 = vmul.f32 %v18600_v18, %v21176_v32  ;;  %v21855_v18 = vld [vmem:[#allocation3_spill] sm:$0xff] }
0x212d   : > { %18018 = vmatprep.subr.mxu1 %v21836_v42  ;;  %18024 = vmatpush3.msra.mxu0 %v13059_v51  ;;  %v13772_v46 = vmul.f32 %v18602_v29, %v21173_v21 }
0x212e   : > { %18011 = vmatmul.mubr.msk.f32.vlgmr.msra.gmra.mxu1 %vm786_vm2, %v13770_v57  ;;  %18025 = vmatprep.mubr.msk.f32.mxu0 %vm18724_vm1, %v21836_v42 }
0x212f   : > { %18019 = vmatpush3.msra.mxu1 %v13056_v22  ;;  %18020 = vmatprep.mubr.msk.f32.mxu1 %vm18724_vm1, %v21836_v42 }
0x2130   : > { %18026 = vmatmul.mubr.msk.f32.vlgmr.msra.gmra.mxu0 %vm786_vm2, %v13773_v39  ;;  %18112 = vmatprep.subr.msk.bf16.mxu1 %vm3711_vm3, %v16418_v16  ;;  %v21856_v39 = vld [vmem:[#allocation5_spill] sm:$0xff]  ;;  %v21857_v16 = vld [vmem:[#allocation4_spill] sm:$0xff] }
0x2132   : > { %18021 = vmatmul.mubr.msk.f32.vlgmr.msra.gmra.mxu1 %vm786_vm2, %v13772_v46 }
0x2133   : > { %18029 = vmatpush3.bf16.msra.mxu1 %v14377_v63 }
0x21e4   : > { %v13916_v4 = vpop.f32.mrf.mxu0 }
0x21e5   : > { %v13843_v7 = vpop.f32.mrf.mxu1 }
0x21e6   : > { %v14358_v33 = vpack.c.bf16 %v13916_v4, %v13843_v7  ;;  %v17997_v41 = vpop.f32.mrf.mxu0  ;;  %v21858_v7 = vld [vmem:[#allocation7_spill] sm:$0xff] }
0x21e7   : > { %v17992_v24 = vpop.f32.mrf.mxu1 }
0x21e8   : > { %v14062_v13 = vpop.f32.mrf.mxu0  ;;  %18030 = vmatprep.mubr.msk.bf16.mxu1 %vm786_vm2, %v14358_v33  ;;  %v21859_v24 = vld [vmem:[#allocation9_spill] sm:$0xff] }
0x21ea   : > { %v13989_v1 = vpop.f32.mrf.mxu1  ;;  %v18007_v17 = vpop.f32.mrf.mxu0 }
0x21eb   : > { %v14359_v50 = vpack.c.bf16 %v14062_v13, %v13989_v1 }
0x21ec   : > { %v18002_v62 = vpop.f32.mrf.mxu1  ;;  %v14208_v55 = vpop.f32.mrf.mxu0 }
0x21ed   : > { %18031 = vmatmul.mubr.msk.bf16.vlgmr.msra.gmra.mxu1 %vm786_vm2, %v14359_v50 }
0x21ee   : > { %v14135_v2 = vpop.f32.mrf.mxu1  ;;  %v18017_v3 = vpop.f32.mrf.mxu0 }
0x21ef   : > { %v14360_v34 = vpack.c.bf16 %v14208_v55, %v14135_v2 }
0x21f0   : > { %v18012_v11 = vpop.f32.mrf.mxu1  ;;  %v14354_v21 = vpop.f32.mrf.mxu0 }
0x21f1   : > { %18034 = vmatprep.mubr.msk.bf16.mxu1 %vm786_vm2, %v14360_v34 }
0x21f2   : > { %v14281_v44 = vpop.f32.mrf.mxu1  ;;  %v18027_v32 = vpop.f32.mrf.mxu0 }
0x21f3   : > { %v14361_v25 = vpack.c.bf16 %v14354_v21, %v14281_v44 }
0x21f4   : > { %v18022_v48 = vpop.f32.mrf.mxu1 }
0x21f5   : > { %18035 = vmatmul.mubr.msk.bf16.gmra.mxu1 %vm786_vm2, %v14361_v25 }
0x22ad   : > { %v18032_v54 = vpop.f32.mrf.mxu1 }
0x22ae   : > { %v14446_v15 = vadd.f32 %v18032_v54, %v21062_v19 }
0x22af   : > { %v14413_v27 = vpop.f32.mrf.mxu1 }
0x22b0   : > { %v14455_v23 = vadd.f32 %v14452_v38, %v14446_v15  ;;  %v14444_v45 = vadd.f32 %v14413_v27, %v21066_v6 }
0x22b1   : > { %v18033_v35 = vpop.f32.mrf.mxu1 }
0x22b2   : > { %v14453_v12 = vadd.f32 %v14452_v38, %v14444_v45  ;;  %v14447_v20 = vadd.f32 %v18033_v35, %v21070_v5  ;;  %v14463_v26 = vadd.f32 %v14455_v23, %v21852_v56 }
0x22b3   : > { %v14416_v52 = vpop.f32.mrf.mxu1 }
0x22b4   : > { %v14456_v28 = vadd.f32 %v14452_v38, %v14447_v20  ;;  %v14445_v60 = vadd.f32 %v14416_v52, %v21074_v36  ;;  %v14477_v10 = vsel %vm392_vm0, %v14463_v26, 0.0  ;;  %v14461_v40 = vadd.f32 %v14453_v12, %v21853_v8 }
0x22b5   : > { %14478 = vadd.xlane.f32.xlu0 %v14477_v10  ;;  %v18036_v19 = vpop.f32.mrf.mxu1 }
0x22b6   : > { %v14454_v30 = vadd.f32 %v14452_v38, %v14445_v60  ;;  %v14471_v9 = vsel %vm392_vm0, %v14461_v40, 0.0  ;;  %v14464_v5 = vadd.f32 %v14456_v28, %v21854_v49  ;;  %v14450_v53 = vadd.f32 %v18036_v19, %v21078_v31 }
0x22b7   : > { %v14429_v61 = vpop.f32.mrf.mxu1 }
0x22b8   : > { %v14448_v6 = vadd.f32 %v14429_v61, %v21082_v59  ;;  %v14480_v58 = vsel %vm392_vm0, %v14464_v5, 0.0  ;;  %v14462_v51 = vadd.f32 %v14454_v30, %v21855_v18  ;;  %v14459_v29 = vadd.f32 %v14452_v38, %v14450_v53 }
0x22b9   : > { %v18037_v0 = vpop.f32.mrf.mxu1  ;;  %14472 = vadd.xlane.f32.xlu0 %v14471_v9 }
0x22ba   : > { %v14457_v36 = vadd.f32 %v14452_v38, %v14448_v6  ;;  %v14451_v59 = vadd.f32 %v18037_v0, %v21086_v14  ;;  %v14474_v22 = vsel %vm392_vm0, %v14462_v51, 0.0  ;;  %v14467_v33 = vadd.f32 %v14459_v29, %v21858_v7 }
0x22bb   : > { %v14432_v43 = vpop.f32.mrf.mxu1 }
0x22bc   : > { %v14449_v47 = vadd.f32 %v14432_v43, %v21088_v37  ;;  %v14465_v63 = vadd.f32 %v14457_v36, %v21857_v16  ;;  %v14460_v37 = vadd.f32 %v14452_v38, %v14451_v59  ;;  %v14489_v41 = vsel %vm392_vm0, %v14467_v33, 0.0  ;;  %v18183_v43 = vld [vmem:[%s21805_s5 + $0x18] sm:$0xff]   ;;  %v18184_v36 = vld [vmem:[%s21805_s5 + $0x10] sm:$0xff]  }
0x22bd   : > { %14481 = vadd.xlane.f32.xlu0 %v14480_v58  ;;  %18038 = vmatprep.subr.bf16.mxu0 %v18183_v43 }
0x22be   : > { %v14458_v57 = vadd.f32 %v14452_v38, %v14449_v47  ;;  %v14483_v4 = vsel %vm392_vm0, %v14465_v63, 0.0  ;;  %v14468_v14 = vadd.f32 %v14460_v37, %v21859_v24  ;;  %18039 = vmatpush3.bf16.msra.mxu0 %v18183_v43 }
0x22bf   : > { %18040 = vmatprep.subr.bf16.mxu0 %v18184_v36 }
0x22c0   : > { %v14466_v46 = vadd.f32 %v14458_v57, %v21856_v39  ;;  %v14492_v13 = vsel %vm392_vm0, %v14468_v14, 0.0 }
0x22c1   : > { %14475 = vadd.xlane.f32.xlu0 %v14474_v22 }
0x22c2   : > { %v14486_v31 = vsel %vm392_vm0, %v14466_v46, 0.0  ;;  %18041 = vmatpush3.bf16.msra.mxu0 %v18184_v36 }
0x22c3   : > { %14487 = vadd.xlane.f32.xlu1 %v14486_v31  ;;  %18066 = vmatprep.subr.mxu0 %v21836_v42 }
0x22c5   : > { %14484 = vadd.xlane.f32.xlu0 %v14483_v4 }
0x22c9   : > { %14490 = vadd.xlane.f32.xlu0 %v14489_v41 }
0x22cd   : > { %14493 = vadd.xlane.f32.xlu0 %v14492_v13 }
0x233e   : > { %v14479_v1 = vpop.xlane.xlu0 %14478 }
0x233f   : > { %v14497_v17 = vmul.f32 0.03125, %v14479_v1 }
0x2341   : > { %v21258_v50 = vsub.f32 %v14463_v26, %v14497_v17 }
0x2342   : > { %v14473_v62 = vpop.xlane.xlu0 %14472 }
0x2343   : > { %v14495_v55 = vmul.f32 0.03125, %v14473_v62  ;;  %v14513_v2 = vmul.f32 %v21258_v50, %v21258_v50 }
0x2345   : > { %v21262_v3 = vsub.f32 %v14461_v40, %v14495_v55  ;;  %v14525_v34 = vsel %vm392_vm0, %v14513_v2, 0.0 }
0x2346   : > { %14526 = vadd.xlane.f32.xlu0 %v14525_v34  ;;  %v14482_v11 = vpop.xlane.xlu0 %14481 }
0x2347   : > { %v14498_v21 = vmul.f32 0.03125, %v14482_v11  ;;  %v14511_v44 = vmul.f32 %v21262_v3, %v21262_v3 }
0x2349   : > { %v21267_v32 = vsub.f32 %v14464_v5, %v14498_v21  ;;  %v14519_v25 = vsel %vm392_vm0, %v14511_v44, 0.0 }
0x234a   : > { %14520 = vadd.xlane.f32.xlu0 %v14519_v25  ;;  %v14476_v48 = vpop.xlane.xlu0 %14475  ;;  %v14469_v25 = vld [vmem:[%s21802_s2 + $0x60] ss:$0 sm:$0xff] }
0x234b   : > { %v14496_v54 = vmul.f32 0.03125, %v14476_v48  ;;  %v14514_v38 = vmul.f32 %v21267_v32, %v21267_v32 }
0x234c   : > { %v14488_v15 = vpop.xlane.xlu1 %14487 }
0x234d   : > { %v21272_v27 = vsub.f32 %v14462_v51, %v14496_v54  ;;  %v14500_v23 = vmul.f32 0.03125, %v14488_v15  ;;  %v14528_v45 = vsel %vm392_vm0, %v14514_v38, 0.0 }
0x234e   : > { %14529 = vadd.xlane.f32.xlu0 %v14528_v45  ;;  %v14485_v35 = vpop.xlane.xlu0 %14484 }
0x234f   : > { %v14499_v12 = vmul.f32 0.03125, %v14485_v35  ;;  %v14512_v20 = vmul.f32 %v21272_v27, %v21272_v27  ;;  %v21277_v56 = vsub.f32 %v14466_v46, %v14500_v23 }
0x2351   : > { %v21279_v26 = vsub.f32 %v14465_v63, %v14499_v12  ;;  %v14522_v52 = vsel %vm392_vm0, %v14512_v20, 0.0  ;;  %v14516_v19 = vmul.f32 %v21277_v56, %v21277_v56 }
0x2352   : > { %14523 = vadd.xlane.f32.xlu0 %v14522_v52  ;;  %v14491_v28 = vpop.xlane.xlu0 %14490 }
0x2353   : > { %v14501_v60 = vmul.f32 0.03125, %v14491_v28  ;;  %v14515_v10 = vmul.f32 %v21279_v26, %v21279_v26  ;;  %v14534_v9 = vsel %vm392_vm0, %v14516_v19, 0.0 }
0x2355   : > { %v21284_v8 = vsub.f32 %v14467_v33, %v14501_v60  ;;  %v14531_v40 = vsel %vm392_vm0, %v14515_v10, 0.0 }
0x2356   : > { %14532 = vadd.xlane.f32.xlu0 %v14531_v40  ;;  %v14494_v61 = vpop.xlane.xlu0 %14493 }
0x2357   : > { %v14502_v30 = vmul.f32 0.03125, %v14494_v61  ;;  %v14517_v49 = vmul.f32 %v21284_v8, %v21284_v8 }
0x2359   : > { %v21289_v6 = vsub.f32 %v14468_v14, %v14502_v30  ;;  %v14537_v0 = vsel %vm392_vm0, %v14517_v49, 0.0 }
0x235a   : > { %14535 = vadd.xlane.f32.xlu0 %v14534_v9 }
0x235b   : > { %v14518_v5 = vmul.f32 %v21289_v6, %v21289_v6 }
0x235d   : > { %v14540_v53 = vsel %vm392_vm0, %v14518_v5, 0.0 }
0x235e   : > { %14538 = vadd.xlane.f32.xlu0 %v14537_v0  ;;  %14541 = vadd.xlane.f32.xlu1 %v14540_v53 }
0x23cf   : > { %v14527_v47 = vpop.xlane.xlu0 %14526 }
0x23d0   : > { %v14545_v58 = vmul.f32 0.03125, %v14527_v47  ;;  %v18186_v47 = vld [vmem:[%s21806_s6 + $0x30] sm:$0xff]  }
0x23d2   : > { %v14553_v29 = vadd.f32 1e-12, %v14545_v58  ;;  %v18187_v58 = vld [vmem:[%s21806_s6 + $0x28] sm:$0xff]  }
0x23d3   : > { %v14521_v18 = vpop.xlane.xlu0 %14520 }
0x23d4   : > { %v14543_v51 = vmul.f32 0.03125, %v14521_v18  ;;  %v18188_v18 = vld [vmem:[%s21806_s6 + $0x20] sm:$0xff]  }
0x23d6   : > { %v14551_v57 = vadd.f32 1e-12, %v14543_v51  ;;  %v14600_v51 = vld [vmem:[%s21802_s2 + $0x62] ss:$0 sm:$0xff] }
0x23d7   : > { %v14530_v59 = vpop.xlane.xlu0 %14529 }
0x23d8   : > { %v14546_v22 = vmul.f32 0.03125, %v14530_v59  ;;  %18603 = vrsqrt.f32 %v14551_v57 }
0x23d9   : > { %18605 = vrsqrt.f32 %v14553_v29 }
0x23da   : > { %v14554_v39 = vadd.f32 1e-12, %v14546_v22 }
0x23db   : > { %v14524_v46 = vpop.xlane.xlu0 %14523 }
0x23dc   : > { %18607 = vrsqrt.f32 %v14554_v39  ;;  %v14544_v16 = vmul.f32 0.03125, %v14524_v46 }
0x23de   : > { %v14552_v63 = vadd.f32 1e-12, %v14544_v16 }
0x23df   : > { %v14533_v31 = vpop.xlane.xlu0 %14532 }
0x23e0   : > { %18609 = vrsqrt.f32 %v14552_v63  ;;  %v14547_v37 = vmul.f32 0.03125, %v14533_v31 }
0x23e2   : > { %v14555_v4 = vadd.f32 1e-12, %v14547_v37 }
0x23e3   : > { %v14536_v7 = vpop.xlane.xlu0 %14535 }
0x23e4   : > { %18611 = vrsqrt.f32 %v14555_v4  ;;  %v14548_v33 = vmul.f32 0.03125, %v14536_v7 }
0x23e5   : > { %v18604_v24 = vpop.eup %18603 }
0x23e6   : > { %v14556_v41 = vadd.f32 1e-12, %v14548_v33  ;;  %v18606_v1 = vpop.eup %18605  ;;  %v14567_v21 = vmul.f32 %v18604_v24, %v21262_v3 }
0x23e7   : > { %v14542_v14 = vpop.xlane.xlu1 %14541  ;;  %v14539_v13 = vpop.xlane.xlu0 %14538  ;;  %v14569_v44 = vmul.f32 %v18606_v1, %v21258_v50 }
0x23e8   : > { %18613 = vrsqrt.f32 %v14556_v41  ;;  %v14550_v17 = vmul.f32 0.03125, %v14542_v14  ;;  %v14549_v62 = vmul.f32 0.03125, %v14539_v13  ;;  %v14575_v15 = vmul.f32 %v14567_v21, %v14469_v25 }
0x23e9   : > { %v18608_v55 = vpop.eup %18607  ;;  %v14577_v23 = vmul.f32 %v14569_v44, %v14469_v25 }
0x23ea   : > { %v14570_v2 = vmul.f32 %v18608_v55, %v21267_v32  ;;  %v14558_v34 = vadd.f32 1e-12, %v14550_v17  ;;  %v14557_v11 = vadd.f32 1e-12, %v14549_v62  ;;  %v14470_v32 = vld [vmem:[%s21802_s2 + $0x61] ss:$0 sm:$0xff] }
0x23eb   : > { %v21317_v50 = vadd.f32 %v14575_v15, %v14470_v32  ;;  %v21322_v52 = vadd.f32 %v14577_v23, %v14470_v32 }
0x23ec   : > { %18615 = vrsqrt.f32 %v14558_v34  ;;  %v14578_v54 = vmul.f32 %v14570_v2, %v14469_v25 }
0x23ed   : > { %v18610_v48 = vpop.eup %18609  ;;  %18617 = vrsqrt.f32 %v14557_v11 }
0x23ee   : > { %v14568_v38 = vmul.f32 %v18610_v48, %v21272_v27  ;;  %v21315_v35 = vadd.f32 %v14578_v54, %v14470_v32 }
0x23f0   : > { %v14576_v45 = vmul.f32 %v14568_v38, %v14469_v25  ;;  %v14592_v60 = vpack.c.bf16 %v21315_v35, %v21322_v52 }
0x23f1   : > { %v18612_v3 = vpop.eup %18611 }
0x23f2   : > { %v21319_v12 = vadd.f32 %v14576_v45, %v14470_v32  ;;  %v14571_v20 = vmul.f32 %v18612_v3, %v21279_v26 }
0x23f4   : > { %v14591_v27 = vpack.c.bf16 %v21319_v12, %v21317_v50  ;;  %v14579_v40 = vmul.f32 %v14571_v20, %v14469_v25 }
0x23f5   : > { %v18614_v28 = vpop.eup %18613 }
0x23f6   : > { %18042 = vmatprep.mubr.msk.bf16.mxu0 %vm392_vm0, %v14591_v27  ;;  %v14572_v10 = vmul.f32 %v18614_v28, %v21277_v56  ;;  %v21332_v9 = vadd.f32 %v14579_v40, %v14470_v32 }
0x23f7   : > { %18043 = vmatmul.mubr.msk.bf16.vlgmr.msra.gmra.mxu0 %vm392_vm0, %v14592_v60 }
0x23f8   : > { %v14580_v19 = vmul.f32 %v14572_v10, %v14469_v25 }
0x23f9   : > { %v18616_v61 = vpop.eup %18615 }
0x23fa   : > { %v18618_v30 = vpop.eup %18617  ;;  %v14574_v26 = vmul.f32 %v18616_v61, %v21289_v6  ;;  %v21334_v49 = vadd.f32 %v14580_v19, %v14470_v32 }
0x23fb   : > { %v14573_v5 = vmul.f32 %v18618_v30, %v21284_v8  ;;  %v18185_v8 = vld [vmem:[%s21806_s6 + $0x38] sm:$0xff]  }
0x23fc   : > { %v14593_v0 = vpack.c.bf16 %v21334_v49, %v21332_v9  ;;  %v14582_v53 = vmul.f32 %v14574_v26, %v14469_v25  ;;  %18050 = vmatprep.subr.bf16.mxu1 %v18185_v8 }
0x23fd   : > { %v14581_v43 = vmul.f32 %v14573_v5, %v14469_v25  ;;  %18051 = vmatpush3.bf16.msra.mxu1 %v18185_v8 }
0x23fe   : > { %18046 = vmatprep.mubr.msk.bf16.mxu0 %vm392_vm0, %v14593_v0  ;;  %v21340_v56 = vadd.f32 %v14582_v53, %v14470_v32  ;;  %18052 = vmatprep.subr.bf16.mxu1 %v18186_v47 }
0x23ff   : > { %v21342_v36 = vadd.f32 %v14581_v43, %v14470_v32 }
0x2401   : > { %v14594_v6 = vpack.c.bf16 %v21340_v56, %v21342_v36  ;;  %18053 = vmatpush3.bf16.msra.mxu1 %v18186_v47 }
0x2402   : > { %18054 = vmatprep.subr.bf16.mxu1 %v18187_v58 }
0x2403   : > { %18047 = vmatmul.mubr.msk.bf16.gmra.mxu0 %vm392_vm0, %v14594_v6 }
0x2404   : > { %18082 = vmatprep.mubr.msk.f32.mxu0 %vm18724_vm1, %v21836_v42 }
0x2405   : > { %18055 = vmatpush3.bf16.msra.mxu1 %v18187_v58 }
0x2406   : > { %18056 = vmatprep.subr.bf16.mxu1 %v18188_v18 }
0x2409   : > { %18057 = vmatpush3.bf16.msra.mxu1 %v18188_v18 }
0x240a   : > { %18093 = vmatprep.subr.bf16.mxu1 %v21836_v42 }
0x24b7   : > { %v18044_v57 = vpop.f32.mrf.mxu0 }
0x24b8   : > { %v21365_v29 = vadd.f32 %v18044_v57, %v14600_v51 }
0x24b9   : > { %v14659_v59 = vpop.f32.mrf.mxu0 }
0x24ba   : > { %v21368_v22 = vmul.f32 0.70710677, %v21365_v29  ;;  %v21370_v39 = vadd.f32 %v14659_v59, %v14600_v51 }
0x24bb   : > { %v18045_v46 = vpop.f32.mrf.mxu0 }
0x24bc   : > { %v14724_v16 = vand.u32 2147483647, %v21368_v22  ;;  %v21374_v63 = vmul.f32 0.70710677, %v21370_v39  ;;  %v21376_v31 = vadd.f32 %v18045_v46, %v14600_v51  ;;  %vm14708_vm13 = vcmp.ge.f32.partialorder %v21368_v22, 0.0 }
0x24bd   : > { %v14662_v37 = vpop.f32.mrf.mxu0 }
0x24be   : > { %v14732_v4 = vmul.f32 0.3275911, %v14724_v16  ;;  %v14722_v7 = vand.u32 2147483647, %v21374_v63  ;;  %v21380_v33 = vmul.f32 0.70710677, %v21376_v31  ;;  %v21382_v41 = vadd.f32 %v14662_v37, %v14600_v51 }
0x24bf   : > { %v14836_v48 = vsub.f32 0.0, %v14724_v16  ;;  %vm14706_vm14 = vcmp.ge.f32.partialorder %v21374_v63, 0.0 }
0x24c0   : > { %v14740_v24 = vadd.f32 1.0, %v14732_v4  ;;  %v14730_v14 = vmul.f32 0.3275911, %v14722_v7  ;;  %v14725_v13 = vand.u32 2147483647, %v21380_v33  ;;  %v14834_v32 = vsub.f32 0.0, %v14722_v7 }
0x24c1   : > { %v21386_v1 = vmul.f32 0.70710677, %v21382_v41  ;;  %v14844_v27 = vmul.f32 %v14836_v48, %v14724_v16  ;;  %vm14709_vm15 = vcmp.ge.f32.partialorder %v21380_v33, 0.0 }
0x24c2   : > { %18619 = vrcp.f32 %v14740_v24  ;;  %v14738_v17 = vadd.f32 1.0, %v14730_v14  ;;  %v14733_v62 = vmul.f32 0.3275911, %v14725_v13  ;;  %v14837_v10 = vsub.f32 0.0, %v14725_v13 }
0x24c3   : > { %v18048_v55 = vpop.f32.mrf.mxu0  ;;  %v14723_v2 = vand.u32 2147483647, %v21386_v1  ;;  %v14842_v61 = vmul.f32 %v14834_v32, %v14722_v7  ;;  %v14854_v43 = vmul.f32 1.442695, %v14844_v27  ;;  %vm14707_vm2 = vcmp.ge.f32.partialorder %v21386_v1, 0.0 }
0x24c4   : > { %18621 = vrcp.f32 %v14738_v17  ;;  %v14741_v34 = vadd.f32 1.0, %v14733_v62  ;;  %v21389_v11 = vadd.f32 %v18048_v55, %v14600_v51  ;;  %v14845_v47 = vmul.f32 %v14837_v10, %v14725_v13 }
0x24c5   : > { %v14675_v21 = vpop.f32.mrf.mxu0  ;;  %v14731_v44 = vmul.f32 0.3275911, %v14723_v2  ;;  %v14835_v58 = vsub.f32 0.0, %v14723_v2 }
0x24c6   : > { %v21391_v25 = vadd.f32 %v14675_v21, %v14600_v51  ;;  %18623 = vrcp.f32 %v14741_v34  ;;  %v21394_v54 = vmul.f32 0.70710677, %v21389_v11  ;;  %v14856_v13 = vmul.f32 1.442695, %v14845_v47 }
0x24c7   : > { %v18049_v38 = vpop.f32.mrf.mxu0  ;;  %v14739_v15 = vadd.f32 1.0, %v14731_v44  ;;  %v14843_v17 = vmul.f32 %v14835_v58, %v14723_v2  ;;  %v21860_v44 = vmov -1.0  }
0x24c8   : > { %v21397_v23 = vmul.f32 0.70710677, %v21391_v25  ;;  %v14728_v45 = vand.u32 2147483647, %v21394_v54  ;;  %v21400_v3 = vadd.f32 %v18049_v38, %v14600_v51  ;;  %v21431_v48 = vsel %vm14708_vm13, 1.0, %v21860_v44 }
0x24c9   : > { %v14678_v20 = vpop.f32.mrf.mxu0  ;;  %18625 = vrcp.f32 %v14739_v15  ;;  %v21440_v10 = vsel %vm14706_vm14, 1.0, %v21860_v44  ;;  %v14717_v33 = vsel %vm14709_vm15, 1.0, %v21860_v44  ;;  %vm14712_vm3 = vcmp.ge.f32.partialorder %v21394_v54, 0.0 }
0x24ca   : > { %v14736_v28 = vmul.f32 0.3275911, %v14728_v45  ;;  %v14726_v60 = vand.u32 2147483647, %v21397_v23  ;;  %v21404_v40 = vmul.f32 0.70710677, %v21400_v3  ;;  %v21406_v19 = vadd.f32 %v14678_v20, %v14600_v51 }
0x24cb   : > { %v14850_v51 = vmul.f32 1.442695, %v14842_v61  ;;  %v14840_v16 = vsub.f32 0.0, %v14728_v45  ;;  %v14852_v61 = vmul.f32 1.442695, %v14843_v17  ;;  %vm14710_vm4 = vcmp.ge.f32.partialorder %v21397_v23, 0.0 }
0x24cc   : > { %v14744_v30 = vadd.f32 1.0, %v14736_v28  ;;  %v14734_v26 = vmul.f32 0.3275911, %v14726_v60  ;;  %v14729_v5 = vand.u32 2147483647, %v21404_v40  ;;  %v14838_v34 = vsub.f32 0.0, %v14726_v60 }
0x24cd   : > { %v21410_v0 = vmul.f32 0.70710677, %v21406_v19  ;;  %v14848_v15 = vmul.f32 %v14840_v16, %v14728_v45  ;;  %vm14713_vm5 = vcmp.ge.f32.partialorder %v21404_v40, 0.0 }
0x24ce   : > { %18627 = vrcp.f32 %v14744_v30  ;;  %v14742_v6 = vadd.f32 1.0, %v14734_v26  ;;  %v14737_v18 = vmul.f32 0.3275911, %v14729_v5  ;;  %v14841_v2 = vsub.f32 0.0, %v14729_v5 }
0x24cf   : > { %v21412_v53 = vpop.eup %18619  ;;  %v21417_v57 = vand.u32 2147483647, %v21410_v0  ;;  %v14846_v26 = vmul.f32 %v14838_v34, %v14726_v60  ;;  %v14721_v40 = vsel %vm14713_vm5, 1.0, %v21860_v44  ;;  %vm14711_vm6 = vcmp.ge.f32.partialorder %v21410_v0, 0.0 }
0x24d0   : > { %v14764_v8 = vmul.f32 1.0614054, %v21412_v53  ;;  %18629 = vrcp.f32 %v14742_v6  ;;  %v14745_v37 = vadd.f32 1.0, %v14737_v18  ;;  %v14849_v18 = vmul.f32 %v14841_v2, %v14729_v5 }
0x24d1   : > { %v21419_v59 = vpop.eup %18621  ;;  %18631 = vpow2.f32 %v14854_v43  ;;  %v14735_v7 = vmul.f32 0.3275911, %v21417_v57  ;;  %v14839_v16 = vsub.f32 0.0, %v21417_v57  ;;  %v14719_v54 = vsel %vm14711_vm6, 1.0, %v21860_v44 }
0x24d2   : > { %v14772_v46 = vadd.f32 -1.4531521, %v14764_v8  ;;  %v14762_v4 = vmul.f32 1.0614054, %v21419_v59  ;;  %18633 = vrcp.f32 %v14745_v37  ;;  %v14862_v8 = vmul.f32 1.442695, %v14848_v15 }
0x24d3   : > { %v21424_v24 = vpop.eup %18623  ;;  %v14743_v21 = vadd.f32 1.0, %v14735_v7  ;;  %18635 = vpow2.f32 %v14850_v51  ;;  %v14858_v7 = vmul.f32 1.442695, %v14846_v26  ;;  %v14864_v34 = vmul.f32 1.442695, %v14849_v18 }
0x24d4   : > { %v14780_v14 = vmul.f32 %v21412_v53, %v14772_v46  ;;  %v14770_v62 = vadd.f32 -1.4531521, %v14762_v4  ;;  %v14765_v55 = vmul.f32 1.0614054, %v21424_v24  ;;  %v14696_v0 = vmul.f32 0.5, %v21389_v11 }
0x24d5   : > { %18637 = vrcp.f32 %v14743_v21  ;;  %v14919_v11 = vld [vmem:[%s21802_s2 + $0x63] ss:$0 sm:$0xff] }
0x24d6   : > { %v14788_v38 = vadd.f32 1.4214138, %v14780_v14  ;;  %v21433_v32 = vpop.eup %18625  ;;  %v14778_v20 = vmul.f32 %v21419_v59, %v14770_v62  ;;  %v14773_v27 = vadd.f32 -1.4531521, %v14765_v55  ;;  %18639 = vpow2.f32 %v14856_v13 }
0x24d7   : > { %v14763_v22 = vmul.f32 1.0614054, %v21433_v32  ;;  %18641 = vpow2.f32 %v14852_v61 }
0x24d8   : > { %v14796_v28 = vmul.f32 %v21412_v53, %v14788_v38  ;;  %v14786_v30 = vadd.f32 1.4214138, %v14778_v20  ;;  %v14781_v45 = vmul.f32 %v21424_v24, %v14773_v27  ;;  %18643 = vpow2.f32 %v14862_v8 }
0x24d9   : > { %v14771_v6 = vadd.f32 -1.4531521, %v14763_v22  ;;  %v14847_v27 = vmul.f32 %v14839_v16, %v21417_v57  ;;  %18645 = vpow2.f32 %v14858_v7 }
0x24da   : > { %v14804_v43 = vadd.f32 -0.28449672, %v14796_v28  ;;  %v14794_v47 = vmul.f32 %v21419_v59, %v14786_v30  ;;  %v14789_v58 = vadd.f32 1.4214138, %v14781_v45  ;;  %18647 = vpow2.f32 %v14864_v34 }
0x24db   : > { %v21446_v63 = vpop.eup %18627  ;;  %v14779_v46 = vmul.f32 %v21433_v32, %v14771_v6 }
0x24dc   : > { %v14812_v51 = vmul.f32 %v21412_v53, %v14804_v43  ;;  %v14802_v37 = vadd.f32 -0.28449672, %v14794_v47  ;;  %v14797_v60 = vmul.f32 %v21424_v24, %v14789_v58  ;;  %v14768_v4 = vmul.f32 1.0614054, %v21446_v63 }
0x24dd   : > { %v14787_v13 = vadd.f32 1.4214138, %v14779_v46  ;;  %v21454_v5 = vpop.eup %18629  ;;  %v14860_v46 = vmul.f32 1.442695, %v14847_v27 }
0x24de   : > { %v14820_v14 = vadd.f32 0.2548296, %v14812_v51  ;;  %v14810_v17 = vmul.f32 %v21419_v59, %v14802_v37  ;;  %v14805_v62 = vadd.f32 -0.28449672, %v14797_v60  ;;  %v14776_v55 = vadd.f32 -1.4531521, %v14768_v4  ;;  %v18632_v21 = vpop.eup %18631 }
0x24df   : > { %v14795_v15 = vmul.f32 %v21433_v32, %v14787_v13  ;;  %v14766_v20 = vmul.f32 1.0614054, %v21454_v5  ;;  %v21461_v2 = vpop.eup %18633  ;;  %18649 = vpow2.f32 %v14860_v46 }
0x24e0   : > { %v14828_v38 = vmul.f32 %v21412_v53, %v14820_v14  ;;  %v14818_v28 = vadd.f32 0.2548296, %v14810_v17  ;;  %v14813_v22 = vmul.f32 %v21424_v24, %v14805_v62  ;;  %v14784_v61 = vmul.f32 %v21446_v63, %v14776_v55  ;;  %v18636_v53 = vpop.eup %18635 }
0x24e1   : > { %v14803_v45 = vadd.f32 -0.28449672, %v14795_v15  ;;  %v14774_v26 = vadd.f32 -1.4531521, %v14766_v20  ;;  %v14769_v43 = vmul.f32 1.0614054, %v21461_v2 }
0x24e2   : > { %v14868_v30 = vmul.f32 %v18632_v21, %v14828_v38  ;;  %v14826_v6 = vmul.f32 %v21419_v59, %v14818_v28  ;;  %v14821_v8 = vadd.f32 0.2548296, %v14813_v22  ;;  %v14792_v47 = vadd.f32 1.4214138, %v14784_v61  ;;  %v21467_v57 = vpop.eup %18637 }
0x24e3   : > { %v14811_v58 = vmul.f32 %v21433_v32, %v14803_v45  ;;  %v14782_v18 = vmul.f32 %v21454_v5, %v14774_v26  ;;  %v14777_v51 = vadd.f32 -1.4531521, %v14769_v43  ;;  %v14767_v4 = vmul.f32 1.0614054, %v21467_v57  ;;  %v18640_v7 = vpop.eup %18639 }
0x24e4   : > { %v14866_v16 = vmul.f32 %v18636_v53, %v14826_v6  ;;  %v14829_v37 = vmul.f32 %v21424_v24, %v14821_v8  ;;  %v14800_v60 = vmul.f32 %v21446_v63, %v14792_v47  ;;  %v14876_v59 = vsub.f32 1.0, %v14868_v30  ;;  %v18642_v20 = vpop.eup %18641 }
0x24e5   : > { %v14819_v14 = vadd.f32 0.2548296, %v14811_v58  ;;  %v14790_v13 = vadd.f32 1.4214138, %v14782_v18  ;;  %v14785_v17 = vmul.f32 %v21461_v2, %v14777_v51  ;;  %v14775_v21 = vadd.f32 -1.4531521, %v14767_v4  ;;  %v18644_v43 = vpop.eup %18643 }
0x24e6   : > { %v14874_v62 = vsub.f32 1.0, %v14866_v16  ;;  %v14869_v55 = vmul.f32 %v18640_v7, %v14829_v37  ;;  %v14808_v34 = vadd.f32 -0.28449672, %v14800_v60  ;;  %v14884_v53 = vmul.f32 %v14876_v59, %v21431_v48  ;;  %v18646_v60 = vpop.eup %18645 }
0x24e7   : > { %v14827_v38 = vmul.f32 %v21433_v32, %v14819_v14  ;;  %v14798_v24 = vmul.f32 %v21454_v5, %v14790_v13  ;;  %v14793_v15 = vadd.f32 1.4214138, %v14785_v17  ;;  %v14783_v22 = vmul.f32 %v21467_v57, %v14775_v21  ;;  %v18648_v17 = vpop.eup %18647 }
0x24e8   : > { %v14877_v27 = vsub.f32 1.0, %v14869_v55  ;;  %v14816_v28 = vmul.f32 %v21446_v63, %v14808_v34  ;;  %v14882_v61 = vmul.f32 %v14874_v62, %v21440_v10  ;;  %v14690_v47 = vmul.f32 0.5, %v21370_v39 }
0x24e9   : > { %v14867_v30 = vmul.f32 %v18642_v20, %v14827_v38  ;;  %v14806_v45 = vadd.f32 -0.28449672, %v14798_v24  ;;  %v14801_v26 = vmul.f32 %v21461_v2, %v14793_v15  ;;  %v14791_v8 = vadd.f32 1.4214138, %v14783_v22 }
0x24ea   : > { %v14885_v32 = vmul.f32 %v14877_v27, %v14717_v33  ;;  %v14824_v6 = vadd.f32 0.2548296, %v14816_v28  ;;  %v14715_v10 = vsel %vm14707_vm2, 1.0, %v21860_v44  ;;  %v14890_v48 = vadd.f32 1.0, %v14882_v61 }
0x24eb   : > { %v14875_v58 = vsub.f32 1.0, %v14867_v30  ;;  %v14814_v18 = vmul.f32 %v21454_v5, %v14806_v45  ;;  %v14809_v51 = vadd.f32 -0.28449672, %v14801_v26  ;;  %v14799_v37 = vmul.f32 %v21467_v57, %v14791_v8 }
0x24ec   : > { %v14893_v16 = vadd.f32 1.0, %v14885_v32  ;;  %v14832_v46 = vmul.f32 %v21446_v63, %v14824_v6  ;;  %v14892_v39 = vadd.f32 1.0, %v14884_v53  ;;  %v14693_v59 = vmul.f32 0.5, %v21376_v31  ;;  %v18650_v45 = vpop.eup %18649 }
0x24ed   : > { %v14883_v33 = vmul.f32 %v14875_v58, %v14715_v10  ;;  %v14822_v4 = vadd.f32 0.2548296, %v14814_v18  ;;  %v14817_v7 = vmul.f32 %v21461_v2, %v14809_v51  ;;  %v14691_v14 = vmul.f32 0.5, %v21382_v41 }
0x24ee   : > { %v14807_v13 = vadd.f32 -0.28449672, %v14799_v37  ;;  %v14872_v1 = vmul.f32 %v18644_v43, %v14832_v46  ;;  %v14692_v34 = vmul.f32 0.5, %v21365_v29  ;;  %v14901_v21 = vmul.f32 %v14893_v16, %v14693_v59 }
0x24ef   : > { %v14891_v62 = vadd.f32 1.0, %v14883_v33  ;;  %v14830_v55 = vmul.f32 %v21454_v5, %v14822_v4  ;;  %v14825_v63 = vadd.f32 0.2548296, %v14817_v7  ;;  %v14898_v24 = vmul.f32 %v14890_v48, %v14690_v47 }
0x24f0   : > { %v14815_v38 = vmul.f32 %v21467_v57, %v14807_v13  ;;  %v14900_v41 = vmul.f32 %v14892_v39, %v14692_v34  ;;  %v14880_v28 = vsub.f32 1.0, %v14872_v1  ;;  %v14720_v26 = vsel %vm14712_vm3, 1.0, %v21860_v44 }
0x24f1   : > { %v14899_v15 = vmul.f32 %v14891_v62, %v14691_v14  ;;  %v14870_v20 = vmul.f32 %v18646_v60, %v14830_v55  ;;  %v14833_v31 = vmul.f32 %v21461_v2, %v14825_v63  ;;  %v14718_v2 = vsel %vm14710_vm4, 1.0, %v21860_v44 }
0x24f2   : > { %v14823_v27 = vadd.f32 0.2548296, %v14815_v38  ;;  %v14907_v61 = vpack.c.bf16 %v14901_v21, %v14900_v41  ;;  %v14888_v32 = vmul.f32 %v14880_v28, %v14720_v26  ;;  %v14697_v51 = vmul.f32 0.5, %v21400_v3 }
0x24f3   : > { %v14906_v5 = vpack.c.bf16 %v14899_v15, %v14898_v24  ;;  %v14878_v22 = vsub.f32 1.0, %v14870_v20  ;;  %v14873_v29 = vmul.f32 %v18648_v17, %v14833_v31  ;;  %v14694_v16 = vmul.f32 0.5, %v21391_v25 }
0x24f4   : > { %v14831_v30 = vmul.f32 %v21467_v57, %v14823_v27  ;;  %v14896_v18 = vadd.f32 1.0, %v14888_v32  ;;  %v14695_v10 = vmul.f32 0.5, %v21406_v19 }
0x24f5   : > { %v14881_v43 = vsub.f32 1.0, %v14873_v29  ;;  %18058 = vmatprep.mubr.msk.bf16.mxu1 %vm7652_vm8, %v14906_v5  ;;  %v14886_v23 = vmul.f32 %v14878_v22, %v14718_v2 }
0x24f6   : > { %v14871_v53 = vmul.f32 %v18650_v45, %v14831_v30  ;;  %18059 = vmatmul.mubr.msk.bf16.vlgmr.msra.gmra.mxu1 %vm7652_vm8, %v14907_v61  ;;  %v14904_v33 = vmul.f32 %v14896_v18, %v14696_v0 }
0x24f7   : > { %v14889_v57 = vmul.f32 %v14881_v43, %v14721_v40  ;;  %v14894_v47 = vadd.f32 1.0, %v14886_v23 }
0x24f8   : > { %v14879_v6 = vsub.f32 1.0, %v14871_v53 }
0x24f9   : > { %v14897_v8 = vadd.f32 1.0, %v14889_v57  ;;  %v14902_v60 = vmul.f32 %v14894_v47, %v14694_v16 }
0x24fa   : > { %v14887_v58 = vmul.f32 %v14879_v6, %v14719_v54 }
0x24fb   : > { %v14905_v37 = vmul.f32 %v14897_v8, %v14697_v51 }
0x24fc   : > { %v14895_v46 = vadd.f32 1.0, %v14887_v58 }
0x24fd   : > { %v14909_v7 = vpack.c.bf16 %v14905_v37, %v14904_v33 }
0x24fe   : > { %v14903_v48 = vmul.f32 %v14895_v46, %v14695_v10 }
0x2500   : > { %v14908_v4 = vpack.c.bf16 %v14903_v48, %v14902_v60 }
0x2502   : > { %18062 = vmatprep.mubr.msk.bf16.mxu1 %vm7652_vm8, %v14908_v4 }
0x2503   : > { %18063 = vmatmul.mubr.msk.bf16.gmra.mxu1 %vm7652_vm8, %v14909_v7 }
0x2504   : > { %18101 = vmatprep.mubr.msk.bf16.mxu1 %vm18724_vm1, %v21836_v42 }
0x25b6   : > { %v18060_v3 = vpop.f32.mrf.mxu1 }
0x25b7   : > { %v14999_v62 = vadd.f32 %v18060_v3, %v14919_v11 }
0x25b8   : > { %v14990_v25 = vpop.f32.mrf.mxu1 }
0x25b9   : > { %v15023_v15 = vadd.f32 %v14999_v62, %v21322_v52  ;;  %v14991_v20 = vadd.f32 %v14990_v25, %v14919_v11 }
0x25ba   : > { %v18061_v44 = vpop.f32.mrf.mxu1 }
0x25bb   : > { %v15002_v31 = vadd.f32 %v18061_v44, %v14919_v11  ;;  %v15037_v22 = vsel %vm392_vm0, %v15023_v15, 0.0 }
0x25bc   : > { %v14993_v19 = vpop.f32.mrf.mxu1 }
0x25bd   : > { %v15024_v5 = vadd.f32 %v15002_v31, %v21315_v35  ;;  %v14994_v28 = vadd.f32 %v14993_v19, %v14919_v11 }
0x25bf   : > { %v15022_v52 = vadd.f32 %v14994_v28, %v21319_v12 }
0x25c1   : > { %v15034_v61 = vsel %vm392_vm0, %v15022_v52, 0.0 }
0x25c3   : > { %v18064_v39 = vpop.f32.mrf.mxu1 }
0x25c4   : > { %v15015_v59 = vadd.f32 %v18064_v39, %v14919_v11 }
0x25c5   : > { %v15006_v14 = vpop.f32.mrf.mxu1 }
0x25c6   : > { %v15027_v13 = vadd.f32 %v15015_v59, %v21342_v36  ;;  %v15007_v17 = vadd.f32 %v15006_v14, %v14919_v11 }
0x25c7   : > { %v18065_v1 = vpop.f32.mrf.mxu1 }
0x25c8   : > { %v15025_v55 = vadd.f32 %v15007_v17, %v21332_v9  ;;  %v15018_v63 = vadd.f32 %v18065_v1, %v14919_v11  ;;  %v15049_v34 = vsel %vm392_vm0, %v15027_v13, 0.0  ;;  %v15021_v9 = vadd.f32 %v14991_v20, %v21317_v50 }
0x25c9   : > { %15050 = vadd.xlane.f32.xlu1 %v15049_v34  ;;  %v15009_v21 = vpop.f32.mrf.mxu1 }
0x25ca   : > { %v15028_v38 = vadd.f32 %v15018_v63, %v21340_v56  ;;  %v15010_v24 = vadd.f32 %v15009_v21, %v14919_v11  ;;  %v15043_v27 = vsel %vm392_vm0, %v15025_v55, 0.0  ;;  %v15031_v29 = vsel %vm392_vm0, %v15021_v9, 0.0 }
0x25cc   : > { %v15026_v41 = vadd.f32 %v15010_v24, %v21334_v49  ;;  %v15052_v36 = vsel %vm392_vm0, %v15028_v38, 0.0  ;;  %v15040_v49 = vsel %vm392_vm0, %v15024_v5, 0.0 }
0x25cd   : > { %15053 = vadd.xlane.f32.xlu0 %v15052_v36  ;;  %15044 = vadd.xlane.f32.xlu1 %v15043_v27 }
0x25ce   : > { %v15046_v56 = vsel %vm392_vm0, %v15026_v41, 0.0 }
0x25d1   : > { %15047 = vadd.xlane.f32.xlu0 %v15046_v56  ;;  %15038 = vadd.xlane.f32.xlu1 %v15037_v22 }
0x25d5   : > { %15041 = vadd.xlane.f32.xlu0 %v15040_v49  ;;  %15032 = vadd.xlane.f32.xlu1 %v15031_v29 }
0x25d9   : > { %15035 = vadd.xlane.f32.xlu0 %v15034_v61 }
0x2652   : > { %v15051_v50 = vpop.xlane.xlu1 %15050 }
0x2653   : > { %v15061_v35 = vmul.f32 0.03125, %v15051_v50 }
0x2655   : > { %v21537_v30 = vsub.f32 %v15027_v13, %v15061_v35 }
0x2656   : > { %v15054_v45 = vpop.xlane.xlu0 %15053  ;;  %v15045_v26 = vpop.xlane.xlu1 %15044 }
0x2657   : > { %v15062_v2 = vmul.f32 0.03125, %v15054_v45  ;;  %v15059_v43 = vmul.f32 0.03125, %v15045_v26  ;;  %v15077_v12 = vmul.f32 %v21537_v30, %v21537_v30 }
0x2659   : > { %v21541_v23 = vsub.f32 %v15028_v38, %v15062_v2  ;;  %v21543_v40 = vsub.f32 %v15025_v55, %v15059_v43  ;;  %v15097_v53 = vsel %vm392_vm0, %v15077_v12, 0.0  ;;  %v15029_v2 = vld [vmem:[%s21802_s2 + $0x64] ss:$0 sm:$0xff] }
0x265a   : > { %v15048_v32 = vpop.xlane.xlu0 %15047  ;;  %15098 = vadd.xlane.f32.xlu1 %v15097_v53  ;;  %v15039_v57 = vpop.xlane.xlu1 %15038 }
0x265b   : > { %v15060_v6 = vmul.f32 0.03125, %v15048_v32  ;;  %v15057_v8 = vmul.f32 0.03125, %v15039_v57  ;;  %v15078_v54 = vmul.f32 %v21541_v23, %v21541_v23  ;;  %v15075_v47 = vmul.f32 %v21543_v40, %v21543_v40 }
0x265d   : > { %v21550_v58 = vsub.f32 %v15026_v41, %v15060_v6  ;;  %v21552_v18 = vsub.f32 %v15023_v15, %v15057_v8  ;;  %v15100_v51 = vsel %vm392_vm0, %v15078_v54, 0.0  ;;  %v15091_v16 = vsel %vm392_vm0, %v15075_v47, 0.0  ;;  %v15030_v8 = vld [vmem:[%s21802_s2 + $0x65] ss:$0 sm:$0xff] }
0x265e   : > { %15101 = vadd.xlane.f32.xlu0 %v15100_v51  ;;  %v15042_v10 = vpop.xlane.xlu0 %15041  ;;  %15092 = vadd.xlane.f32.xlu1 %v15091_v16  ;;  %v15033_v46 = vpop.xlane.xlu1 %15032  ;;  %v15151_v54 = vlaneseq }
0x265f   : > { %v15058_v0 = vmul.f32 0.03125, %v15042_v10  ;;  %v15055_v37 = vmul.f32 0.03125, %v15033_v46  ;;  %v15076_v60 = vmul.f32 %v21550_v58, %v21550_v58  ;;  %v15073_v48 = vmul.f32 %v21552_v18, %v21552_v18 }
0x2661   : > { %v21560_v33 = vsub.f32 %v15024_v5, %v15058_v0  ;;  %v21562_v4 = vsub.f32 %v15021_v9, %v15055_v37  ;;  %v15094_v7 = vsel %vm392_vm0, %v15076_v60, 0.0  ;;  %v15085_v3 = vsel %vm392_vm0, %v15073_v48, 0.0 }
0x2662   : > { %15095 = vadd.xlane.f32.xlu0 %v15094_v7  ;;  %v15036_v25 = vpop.xlane.xlu0 %15035  ;;  %15086 = vadd.xlane.f32.xlu1 %v15085_v3 }
0x2663   : > { %v15056_v44 = vmul.f32 0.03125, %v15036_v25  ;;  %v15074_v19 = vmul.f32 %v21560_v33, %v21560_v33  ;;  %v15071_v11 = vmul.f32 %v21562_v4, %v21562_v4 }
0x2665   : > { %v21570_v39 = vsub.f32 %v15022_v52, %v15056_v44  ;;  %v15088_v59 = vsel %vm392_vm0, %v15074_v19, 0.0  ;;  %v15079_v14 = vsel %vm392_vm0, %v15071_v11, 0.0 }
0x2666   : > { %15089 = vadd.xlane.f32.xlu0 %v15088_v59  ;;  %15080 = vadd.xlane.f32.xlu1 %v15079_v14 }
0x2667   : > { %v15072_v13 = vmul.f32 %v21570_v39, %v21570_v39 }
0x2669   : > { %v15082_v17 = vsel %vm392_vm0, %v15072_v13, 0.0 }
0x266a   : > { %15083 = vadd.xlane.f32.xlu0 %v15082_v17 }
0x26e3   : > { %v15099_v62 = vpop.xlane.xlu1 %15098 }
0x26e4   : > { %v15109_v1 = vmul.f32 0.03125, %v15099_v62 }
0x26e6   : > { %v15117_v55 = vadd.f32 1e-12, %v15109_v1  ;;  %v18190_v1 = vld [vmem:[%s21807_s7] sm:$0xff]  }
0x26e7   : > { %v15102_v63 = vpop.xlane.xlu0 %15101  ;;  %v15093_v34 = vpop.xlane.xlu1 %15092 }
0x26e8   : > { %18651 = vrsqrt.f32 %v15117_v55  ;;  %v15110_v21 = vmul.f32 0.03125, %v15102_v63  ;;  %v15107_v38 = vmul.f32 0.03125, %v15093_v34  ;;  %v18191_v55 = vld [vmem:[%s21808_s8 + $0x18] sm:$0xff]   ;;  %v18192_v63 = vld [vmem:[%s21808_s8 + $0x10] sm:$0xff]  }
0x26e9   : > { %18094 = vmatpush3.bf16.msra.mxu1 %v18191_v55  ;;  %v18252_v55 = vld [vmem:[%s21809_s9 + $0xd0] ss:$24 sps:$4 sm:$0xff]  }
0x26ea   : > { %v15118_v24 = vadd.f32 1e-12, %v15110_v21  ;;  %v15115_v15 = vadd.f32 1e-12, %v15107_v38  ;;  %18095 = vmatprep.subr.bf16.mxu1 %v21836_v42 }
0x26eb   : > { %v15096_v20 = vpop.xlane.xlu0 %15095  ;;  %v15087_v31 = vpop.xlane.xlu1 %15086 }
0x26ec   : > { %18653 = vrsqrt.f32 %v15118_v24  ;;  %v15108_v41 = vmul.f32 0.03125, %v15096_v20  ;;  %v15105_v36 = vmul.f32 0.03125, %v15087_v31  ;;  %v18193_v24 = vld [vmem:[%s21808_s8 + $0x8] sm:$0xff]  }
0x26ed   : > { %18655 = vrsqrt.f32 %v15115_v15  ;;  %18096 = vmatpush3.bf16.msra.mxu1 %v18192_v63  ;;  %v18194_v15 = vld [vmem:[%s21808_s8] sm:$0xff]   ;;  %v18195_v20 = vld [vmem:[%s21809_s9 + $0x150] ss:$24 sps:$4 sm:$0xff]   ;;  %v18197_v31 = vld [vmem:[%s21809_s9 + $0x154] ss:$24 sps:$4 sm:$0xff]  }
0x26ee   : > { %v15116_v27 = vadd.f32 1e-12, %v15108_v41  ;;  %v15113_v9 = vadd.f32 1e-12, %v15105_v36  ;;  %18097 = vmatprep.subr.bf16.mxu1 %v21836_v42  ;;  %v18200_v41 = vld [vmem:[%s21809_s9 + $0x124] ss:$24 sps:$4 sm:$0xff]  }
0x26ef   : > { %v15090_v5 = vpop.xlane.xlu0 %15089  ;;  %v15081_v28 = vpop.xlane.xlu1 %15080  ;;  %v18198_v36 = vld [vmem:[%s21809_s9 + $0x120] ss:$24 sps:$4 sm:$0xff]   ;;  %v18257_v63 = vld [vmem:[%s21809_s9 + $0xa4] ss:$24 sps:$4 sm:$0xff]  }
0x26f0   : > { %18657 = vrsqrt.f32 %v15116_v27  ;;  %v15106_v56 = vmul.f32 0.03125, %v15090_v5  ;;  %v15103_v22 = vmul.f32 0.03125, %v15081_v28  ;;  %v18203_v27 = vld [vmem:[%s21809_s9 + $0xf4] ss:$24 sps:$4 sm:$0xff]   ;;  %v18209_v5 = vld [vmem:[%s21809_s9 + $0xc4] ss:$24 sps:$4 sm:$0xff]  }
0x26f1   : > { %18659 = vrsqrt.f32 %v15113_v9  ;;  %18098 = vmatpush3.bf16.msra.mxu1 %v18193_v24  ;;  %v18201_v9 = vld [vmem:[%s21809_s9 + $0xf0] ss:$24 sps:$4 sm:$0xff]   ;;  %v18207_v28 = vld [vmem:[%s21809_s9 + $0xc0] ss:$24 sps:$4 sm:$0xff]   ;;  %v18263_v24 = vld [vmem:[%s21809_s9 + $0x44] ss:$24 sps:$4 sm:$0xff]  }
0x26f2   : > { %v15114_v52 = vadd.f32 1e-12, %v15106_v56  ;;  %v15111_v49 = vadd.f32 1e-12, %v15103_v22  ;;  %18099 = vmatprep.subr.bf16.mxu1 %v21836_v42  ;;  %v18215_v56 = vld [vmem:[%s21809_s9 + $0x94] ss:$24 sps:$4 sm:$0xff]  }
0x26f3   : > { %v15084_v29 = vpop.xlane.xlu0 %15083  ;;  %v18213_v22 = vld [vmem:[%s21809_s9 + $0x90] ss:$24 sps:$4 sm:$0xff]  }
0x26f4   : > { %18661 = vrsqrt.f32 %v15114_v52  ;;  %v15104_v61 = vmul.f32 0.03125, %v15084_v29  ;;  %v18221_v52 = vld [vmem:[%s21809_s9 + $0x64] ss:$24 sps:$4 sm:$0xff]   ;;  %v18227_v29 = vld [vmem:[%s21809_s9 + $0x34] ss:$24 sps:$4 sm:$0xff]  }
0x26f5   : > { %v18652_v50 = vpop.eup %18651  ;;  %18663 = vrsqrt.f32 %v15111_v49  ;;  %18100 = vmatpush3.bf16.msra.mxu1 %v18194_v15  ;;  %v18219_v49 = vld [vmem:[%s21809_s9 + $0x60] ss:$24 sps:$4 sm:$0xff]  }
0x26f6   : > { %v15112_v35 = vadd.f32 1e-12, %v15104_v61  ;;  %v15133_v45 = vmul.f32 %v18652_v50, %v21537_v30  ;;  %v18225_v61 = vld [vmem:[%s21809_s9 + $0x30] ss:$24 sps:$4 sm:$0xff]   ;;  %v15237_v50 = vld [vmem:[%s21802_s2 + $0x66] ss:$0 sm:$0xff] }
0x26f7   : > { %v18261_v15 = vld [vmem:[%s21809_s9 + $0x40] ss:$24 sps:$4 sm:$0xff]  }
0x26f8   : > { %18665 = vrsqrt.f32 %v15112_v35  ;;  %v15141_v32 = vmul.f32 %v15133_v45, %v15029_v2 }
0x26f9   : > { %v18654_v26 = vpop.eup %18653 }
0x26fa   : > { %v18656_v43 = vpop.eup %18655  ;;  %v15134_v12 = vmul.f32 %v18654_v26, %v21541_v23  ;;  %v15149_v16 = vadd.f32 %v15141_v32, %v15030_v8  ;;  %v18212_v32 = vld [vmem:[%s21809_s9 + $0x12c] ss:$24 sps:$4 sm:$0xff]  }
0x26fb   : > { %v15131_v57 = vmul.f32 %v18656_v43, %v21543_v40  ;;  %v21589_v40 = vshrl.u32 %v15151_v54, 7 }
0x26fc   : > { %v15142_v53 = vmul.f32 %v15134_v12, %v15029_v2  ;;  %v18204_v12 = vld [vmem:[%s21809_s9 + $0x158] ss:$24 sps:$4 sm:$0xff]  }
0x26fd   : > { %v18658_v6 = vpop.eup %18657  ;;  %v15139_v46 = vmul.f32 %v15131_v57, %v15029_v2  ;;  %v15155_v19 = vmul.u32 8, %v21589_v40 }
0x26fe   : > { %v18660_v47 = vpop.eup %18659  ;;  %v15150_v30 = vadd.f32 %v15142_v53, %v15030_v8  ;;  %v15132_v51 = vmul.f32 %v18658_v6, %v21550_v58  ;;  %v18210_v6 = vld [vmem:[%s21809_s9 + $0x128] ss:$24 sps:$4 sm:$0xff]  }
0x26ff   : > { %v15129_v23 = vmul.f32 %v18660_v47, %v21552_v18  ;;  %v15147_v58 = vadd.f32 %v15139_v46, %v15030_v8  ;;  %v15154_v18 = vand.u32 127, %v15151_v54  ;;  %v18216_v54 = vld [vmem:[%s21809_s9 + $0xf8] ss:$24 sps:$4 sm:$0xff]   ;;  %v18224_v47 = vld [vmem:[%s21809_s9 + $0xcc] ss:$24 sps:$4 sm:$0xff]  }
0x2700   : > { %18067 = vmatpush3.msra.mxu0 %v15150_v30  ;;  %v15140_v10 = vmul.f32 %v15132_v51, %v15029_v2  ;;  %v18222_v30 = vld [vmem:[%s21809_s9 + $0xc8] ss:$24 sps:$4 sm:$0xff]   ;;  %v18230_v51 = vld [vmem:[%s21809_s9 + $0x9c] ss:$24 sps:$4 sm:$0xff]  }
0x2701   : > { %v18662_v0 = vpop.eup %18661  ;;  %18068 = vmatprep.subr.mxu0 %v21836_v42  ;;  %v15137_v3 = vmul.f32 %v15129_v23, %v15029_v2  ;;  %vm15156_vm7 = vcmp.eq.s32.totalorder %v15154_v18, %v15155_v19  ;;  %v18234_v46 = vld [vmem:[%s21809_s9 + $0x68] ss:$24 sps:$4 sm:$0xff]   ;;  %v18239_v23 = vld [vmem:[%s21809_s9 + $0x3c] ss:$24 sps:$4 sm:$0xff]  }
0x2702   : > { %v18664_v37 = vpop.eup %18663  ;;  %18069 = vmatpush3.msra.mxu0 %v15149_v16  ;;  %v15148_v60 = vadd.f32 %v15140_v10, %v15030_v8  ;;  %v15130_v48 = vmul.f32 %v18662_v0, %v21560_v33  ;;  %v16449_v62 = vsel %vm15156_vm7, 1.0, %v21836_v42  ;;  %v18228_v16 = vld [vmem:[%s21809_s9 + $0x98] ss:$24 sps:$4 sm:$0xff]   ;;  %v18236_v10 = vld [vmem:[%s21809_s9 + $0x6c] ss:$24 sps:$4 sm:$0xff]  }
0x2703   : > { %18070 = vmatprep.subr.mxu0 %v21836_v42  ;;  %v15127_v25 = vmul.f32 %v18664_v37, %v21562_v4  ;;  %v15145_v33 = vadd.f32 %v15137_v3, %v15030_v8  ;;  %v18237_v0 = vld [vmem:[%s21809_s9 + $0x38] ss:$24 sps:$4 sm:$0xff]   ;;  %v18233_v37 = vld [vmem:[%s21809_s9 + $0x4] ss:$24 sps:$4 sm:$0xff]   ;;  %v18729_v3 = vmov 0  }
0x2704   : > { %18071 = vmatpush3.msra.mxu0 %v15148_v60  ;;  %v15138_v7 = vmul.f32 %v15130_v48, %v15029_v2  ;;  %v18231_v60 = vld [vmem:[%s21809_s9] ss:$24 sps:$4 sm:$0xff]   ;;  %v18245_v48 = vld [vmem:[%s21809_s9 + $0xc] ss:$24 sps:$4 sm:$0xff]  }
0x2705   : > { %v18666_v44 = vpop.eup %18665  ;;  %18072 = vmatprep.subr.mxu0 %v21836_v42  ;;  %v15135_v13 = vmul.f32 %v15127_v25, %v15029_v2  ;;  %v15303_v25 = vld [vmem:[%s21802_s2 + $0x67] ss:$0 sm:$0xff] }
0x2706   : > { %18073 = vmatpush3.msra.mxu0 %v15147_v58  ;;  %v15146_v11 = vadd.f32 %v15138_v7, %v15030_v8  ;;  %v15128_v59 = vmul.f32 %v18666_v44, %v21570_v39  ;;  %v18189_v39 = vld [vmem:[%s21807_s7 + $0x8] sm:$0xff]   ;;  %v18242_v7 = vld [vmem:[%s21809_s9 + $0x164] ss:$24 sps:$4 sm:$0xff]  }
0x2707   : > { %18074 = vmatprep.subr.mxu0 %v21836_v42  ;;  %v15143_v17 = vadd.f32 %v15135_v13, %v15030_v8  ;;  %v18243_v58 = vld [vmem:[%s21809_s9 + $0x8] ss:$24 sps:$4 sm:$0xff]   ;;  %v18248_v13 = vld [vmem:[%s21809_s9 + $0x134] ss:$24 sps:$4 sm:$0xff]  }
0x2708   : > { %18075 = vmatpush3.msra.mxu0 %v15146_v11  ;;  %v15136_v14 = vmul.f32 %v15128_v59, %v15029_v2  ;;  %v18240_v59 = vld [vmem:[%s21809_s9 + $0x160] ss:$24 sps:$4 sm:$0xff]  }
0x2709   : > { %18076 = vmatprep.subr.mxu0 %v21836_v42 }
0x270a   : > { %18077 = vmatpush3.msra.mxu0 %v15145_v33  ;;  %v15144_v4 = vadd.f32 %v15136_v14, %v15030_v8  ;;  %v18218_v8 = vld [vmem:[%s21809_s9 + $0xfc] ss:$24 sps:$4 sm:$0xff]  }
0x270b   : > { %18078 = vmatprep.subr.mxu0 %v21836_v42 }
0x270c   : > { %18079 = vmatpush3.msra.mxu0 %v15144_v4 }
0x270d   : > { %18080 = vmatprep.subr.mxu0 %v21836_v42 }
0x270e   : > { %18081 = vmatpush3.msra.mxu0 %v15143_v17  ;;  %v18246_v17 = vld [vmem:[%s21809_s9 + $0x130] ss:$24 sps:$4 sm:$0xff]  }
0x270f   : > { %18083 = vmatmul.mubr.msk.f32.vlgmr.msra.gmra.mxu0 %vm7652_vm8, %v16449_v62  ;;  %18085 = vmatprep.subr.bf16.mxu0 %v21836_v42  ;;  %v18251_v62 = vld [vmem:[%s21809_s9 + $0x104] ss:$24 sps:$4 sm:$0xff]  }
0x2710   : > { %18086 = vmatpush3.bf16.msra.mxu0 %v18189_v39  ;;  %18089 = vmatprep.mubr.msk.bf16.mxu0 %vm18724_vm1, %v21836_v42  ;;  %v18249_v39 = vld [vmem:[%s21809_s9 + $0x100] ss:$24 sps:$4 sm:$0xff]  }
0x2711   : > { %18087 = vmatprep.subr.bf16.mxu0 %v21836_v42  ;;  %v18206_v42 = vld [vmem:[%s21809_s9 + $0x15c] ss:$24 sps:$4 sm:$0xff]  }
0x2712   : > { %15737 = vmatprep.subr.bf16.mxu1 %v18206_v42  ;;  %v16460_v42 = vld [vmem:[%s21802_s2 + $0x90] ss:$8 sm:$0x30] }
0x2714   : > { %18088 = vmatpush3.bf16.msra.mxu0 %v18190_v1  ;;  %v18254_v1 = vld [vmem:[%s21809_s9 + $0xd4] ss:$24 sps:$4 sm:$0xff]  }
0x2715   : > { %15696 = vmatprep.subr.bf16.mxu0 %v18197_v31  ;;  %v18264_v31 = vld [vmem:[%s21809_s9 + $0x10] ss:$24 sps:$4 sm:$0xff]  }
0x27cf   : > { %v15228_v34 = vpop.f32.mrf.mxu0 }
0x27d0   : > { %v15232_v21 = vpack.c.bf16 %v15228_v34, %v15228_v34  ;;  %v18255_v34 = vld [vmem:[%s21809_s9 + $0xa0] ss:$24 sps:$4 sm:$0xff]  }
0x27d1   : > { %v18084_v38 = vpop.f32.mrf.mxu0 }
0x27d2   : > { %18090 = vmatmul.mubr.msk.bf16.vlgmr.msra.gmra.mxu0 %vm392_vm0, %v15232_v21  ;;  %v18260_v21 = vld [vmem:[%s21809_s9 + $0x74] ss:$24 sps:$4 sm:$0xff]   ;;  %v18258_v38 = vld [vmem:[%s21809_s9 + $0x70] ss:$24 sps:$4 sm:$0xff]  }
0x27d3   : > { %15697 = vmatpush1.bf16.msra.mxu0 %v18195_v20  ;;  %15728 = vmatprep.mubr.bf16.mxu0 %v18729_v3  ;;  %v18266_v20 = vld [vmem:[%s21809_s9 + $0x14] ss:$24 sps:$4 sm:$0xff]  }
0x27d4   : > { %15698 = vmatprep.subr.bf16.mxu0 %v18200_v41  ;;  %v16459_v41 = vld [vmem:[%s21802_s2 + $0x90] ss:$8 sm:$0xf] }
0x27d7   : > { %15699 = vmatpush1.bf16.msra.mxu0 %v18198_v36  ;;  %v15424_v36 = vor.u32 %v16460_v42, %v16459_v41 }
0x27d8   : > { %15700 = vmatprep.subr.bf16.mxu0 %v18203_v27  ;;  %v15428_v27 = vsub.s32 0, %v21589_v40 }
0x27db   : > { %15701 = vmatpush1.bf16.msra.mxu0 %v18201_v9  ;;  %v15436_v9 = vsub.s32 2, %v21589_v40 }
0x27dc   : > { %15702 = vmatprep.subr.bf16.mxu0 %v18209_v5  ;;  %v15432_v5 = vsub.s32 1, %v21589_v40 }
0x27df   : > { %15703 = vmatpush1.bf16.msra.mxu0 %v18207_v28  ;;  %v15440_v28 = vsub.s32 3, %v21589_v40 }
0x27e0   : > { %15704 = vmatprep.subr.bf16.mxu0 %v18215_v56  ;;  %v15429_v56 = vrot.slane %v15424_v36, %v15428_v27 }
0x27e3   : > { %15705 = vmatpush1.bf16.msra.mxu0 %v18213_v22  ;;  %v15437_v22 = vrot.slane %v15424_v36, %v15436_v9 }
0x27e4   : > { %15706 = vmatprep.subr.bf16.mxu0 %v18221_v52  ;;  %v15433_v52 = vrot.slane %v15424_v36, %v15432_v5 }
0x27e7   : > { %15707 = vmatpush1.bf16.msra.mxu0 %v18219_v49  ;;  %v15441_v49 = vrot.slane %v15424_v36, %v15440_v28 }
0x27e8   : > { %15708 = vmatprep.subr.bf16.mxu0 %v18227_v29 }
0x27eb   : > { %15709 = vmatpush1.bf16.msra.mxu0 %v18225_v61 }
0x27ec   : > { %15710 = vmatprep.subr.bf16.mxu0 %v18233_v37 }
0x27ef   : > { %15711 = vmatpush1.bf16.msra.mxu0 %v18231_v60  ;;  %v15444_v60 = vsub.s32 4, %v21589_v40 }
0x27f0   : > { %15778 = vmatprep.subr.bf16.mxu0 %v18242_v7 }
0x2892   : > { %v15287_v35 = vpop.f32.mrf.mxu0 }
0x2893   : > { %v15288_v45 = vadd.f32 %v15287_v35, %v15237_v50 }
0x2894   : > { %v18091_v26 = vpop.f32.mrf.mxu0 }
0x2895   : > { %v15293_v2 = vmax.f32 %v15288_v45, 0.0 }
0x2896   : > { %v15290_v43 = vpop.f32.mrf.mxu0 }
0x2897   : > { %v15294_v53 = vpack.c.bf16 %v15293_v2, %v15293_v2 }
0x2898   : > { %v18092_v57 = vpop.f32.mrf.mxu0 }
0x2899   : > { %18102 = vmatmul.mubr.msk.bf16.vlgmr.msra.gmra.mxu1 %vm7652_vm8, %v15294_v53 }
0x289a   : > { %15738 = vmatpush1.bf16.msra.mxu1 %v18204_v12  ;;  %15769 = vmatprep.mubr.bf16.mxu1 %v18729_v3 }
0x289b   : > { %15739 = vmatprep.subr.bf16.mxu1 %v18212_v32 }
0x289e   : > { %15740 = vmatpush1.bf16.msra.mxu1 %v18210_v6 }
0x289f   : > { %15741 = vmatprep.subr.bf16.mxu1 %v18218_v8 }
0x28a2   : > { %15742 = vmatpush1.bf16.msra.mxu1 %v18216_v54 }
0x28a3   : > { %15743 = vmatprep.subr.bf16.mxu1 %v18224_v47 }
0x28a6   : > { %15744 = vmatpush1.bf16.msra.mxu1 %v18222_v30 }
0x28a7   : > { %15745 = vmatprep.subr.bf16.mxu1 %v18230_v51 }
0x28aa   : > { %15746 = vmatpush1.bf16.msra.mxu1 %v18228_v16 }
0x28ab   : > { %15747 = vmatprep.subr.bf16.mxu1 %v18236_v10 }
0x28ae   : > { %15748 = vmatpush1.bf16.msra.mxu1 %v18234_v46 }
0x28af   : > { %15749 = vmatprep.subr.bf16.mxu1 %v18239_v23 }
0x28b2   : > { %15750 = vmatpush1.bf16.msra.mxu1 %v18237_v0 }
0x28b3   : > { %15751 = vmatprep.subr.bf16.mxu1 %v18245_v48  ;;  %v15448_v48 = vsub.s32 5, %v21589_v40 }
0x28b5   : > { %v15449_v7 = vrot.slane %v15424_v36, %v15448_v48 }
0x28b6   : > { %15752 = vmatpush1.bf16.msra.mxu1 %v18243_v58  ;;  %v15445_v58 = vrot.slane %v15424_v36, %v15444_v60 }
0x2959   : > { %v15365_v44 = vpop.f32.mrf.mxu1 }
0x295a   : > { %v15366_v18 = vadd.f32 %v15365_v44, %v15303_v25 }
0x295b   : > { %v18103_v19 = vpop.f32.mrf.mxu1 }
0x295c   : > { %v15371_v11 = vmax.f32 %v15366_v18, 0.0 }
0x295d   : > { %v15368_v33 = vpop.f32.mrf.mxu1 }
0x295e   : > { %v15372_v14 = vpack.c.bf16 %v15371_v11, %v15371_v11 }
0x295f   : > { %v18104_v4 = vpop.f32.mrf.mxu1 }
0x2960   : > { %15729 = vmatmul.mubr.bf16.vlgmr.msra.gmra.mxu0 %v15372_v14  ;;  %15770 = vmatmul.mubr.bf16.vlgmr.msra.gmra.mxu1 %v15372_v14 }
0x2961   : > { %15779 = vmatpush1.bf16.msra.mxu0 %v18240_v59  ;;  %15810 = vmatprep.mubr.bf16.mxu0 %v18729_v3 }
0x2962   : > { %15780 = vmatprep.subr.bf16.mxu0 %v18248_v13 }
0x2965   : > { %15781 = vmatpush1.bf16.msra.mxu0 %v18246_v17 }
0x2966   : > { %15782 = vmatprep.subr.bf16.mxu0 %v18251_v62 }
0x2969   : > { %15783 = vmatpush1.bf16.msra.mxu0 %v18249_v39 }
0x296a   : > { %15784 = vmatprep.subr.bf16.mxu0 %v18254_v1 }
0x296d   : > { %15785 = vmatpush1.bf16.msra.mxu0 %v18252_v55 }
0x296e   : > { %15786 = vmatprep.subr.bf16.mxu0 %v18257_v63 }
0x2971   : > { %15787 = vmatpush1.bf16.msra.mxu0 %v18255_v34 }
0x2972   : > { %15788 = vmatprep.subr.bf16.mxu0 %v18260_v21 }
0x2975   : > { %15789 = vmatpush1.bf16.msra.mxu0 %v18258_v38 }
0x2976   : > { %15790 = vmatprep.subr.bf16.mxu0 %v18263_v24 }
0x2979   : > { %15791 = vmatpush1.bf16.msra.mxu0 %v18261_v15 }
0x297a   : > { %15792 = vmatprep.subr.bf16.mxu0 %v18266_v20 }
0x297d   : > { %15793 = vmatpush1.bf16.msra.mxu0 %v18264_v31 }
0x2980   : > { %15811 = vmatmul.mubr.bf16.vlgmr.msra.gmra.mxu0 %v15372_v14 }
0x2a20   : > { %v15730_v29 = vpop.f32.mrf.mxu0  ;;  %v15771_v61 = vpop.f32.mrf.mxu1 }
0x2a21   : > { %v15731_v50 = vadd.f32 %v15730_v29, %v15429_v56  ;;  %v15772_v35 = vadd.f32 %v15771_v61, %v15437_v22 }
0x2a22   : > { %v15732_v45 = vpop.f32.mrf.mxu0  ;;  %v15773_v26 = vpop.f32.mrf.mxu1 }
0x2a23   : > { %v16509_v2 = vmul.f32 -1.442695, %v15731_v50  ;;  %v16511_v43 = vmul.f32 -1.442695, %v15772_v35  ;;  %v15733_v12 = vadd.f32 %v15732_v45, %v15433_v52  ;;  %v15774_v53 = vadd.f32 %v15773_v26, %v15441_v49 }
0x2a24   : > { %v15734_v32 = vpop.f32.mrf.mxu0  ;;  %v15775_v57 = vpop.f32.mrf.mxu1 }
0x2a25   : > { %18667 = vpow2.f32 %v16509_v2  ;;  %v16510_v6 = vmul.f32 -1.442695, %v15733_v12  ;;  %v16512_v8 = vmul.f32 -1.442695, %v15774_v53 }
0x2a26   : > { %18669 = vpow2.f32 %v16511_v43  ;;  %v15735_v54 = vpop.f32.mrf.mxu0  ;;  %v15776_v47 = vpop.f32.mrf.mxu1 }
0x2a27   : > { %18671 = vpow2.f32 %v16510_v6 }
0x2a28   : > { %18673 = vpow2.f32 %v16512_v8 }
0x2a32   : > { %v18668_v30 = vpop.eup %18667 }
0x2a33   : > { %v18670_v51 = vpop.eup %18669  ;;  %v15837_v16 = vadd.f32 1.0, %v18668_v30 }
0x2a34   : > { %v18672_v10 = vpop.eup %18671  ;;  %v15839_v46 = vadd.f32 1.0, %v18670_v51 }
0x2a35   : > { %v18674_v23 = vpop.eup %18673  ;;  %18675 = vrcp.f32 %v15837_v16  ;;  %v15838_v0 = vadd.f32 1.0, %v18672_v10 }
0x2a36   : > { %18677 = vrcp.f32 %v15839_v46  ;;  %v15840_v37 = vadd.f32 1.0, %v18674_v23 }
0x2a37   : > { %18679 = vrcp.f32 %v15838_v0 }
0x2a38   : > { %18681 = vrcp.f32 %v15840_v37 }
0x2a40   : > { %v15812_v3 = vpop.f32.mrf.mxu0 }
0x2a41   : > { %v15813_v25 = vadd.f32 %v15812_v3, %v15445_v58 }
0x2a42   : > { %v18676_v44 = vpop.eup %18675  ;;  %v15814_v18 = vpop.f32.mrf.mxu0 }
0x2a43   : > { %v18678_v19 = vpop.eup %18677  ;;  %15855 = vst [vmem:[%s380_s22] sm:$0xff] %v18676_v44  ;;  %v16513_v11 = vmul.f32 -1.442695, %v15813_v25  ;;  %v15815_v59 = vadd.f32 %v15814_v18, %v15449_v7 }
0x2a44   : > { %v18680_v33 = vpop.eup %18679  ;;  %15857 = vst [vmem:[%s380_s22 + $0x10] sm:$0xff] %v18678_v19  ;;  %v15816_v14 = vpop.f32.mrf.mxu0 }
0x2a45   : > { %v18682_v13 = vpop.eup %18681  ;;  %15856 = vst [vmem:[%s380_s22 + $0x8] sm:$0xff] %v18680_v33  ;;  %18683 = vpow2.f32 %v16513_v11  ;;  %v16514_v40 = vmul.f32 -1.442695, %v15815_v59 }
0x2a46   : > { %15858 = vst [vmem:[%s380_s22 + $0x18] sm:$0xff] %v18682_v13  ;;  %v15817_v4 = vpop.f32.mrf.mxu0 }
0x2a47   : > { %18685 = vpow2.f32 %v16514_v40 }
0x2a52   : > { %v18684_v17 = vpop.eup %18683 }
0x2a53   : > { %v15841_v62 = vadd.f32 1.0, %v18684_v17 }
0x2a54   : > { %v18686_v39 = vpop.eup %18685 }
0x2a55   : > { %18687 = vrcp.f32 %v15841_v62  ;;  %v15842_v1 = vadd.f32 1.0, %v18686_v39 }
0x2a57   : > { %18689 = vrcp.f32 %v15842_v1 }
0x2a62   : > { %v18688_v55 = vpop.eup %18687 }
0x2a63   : > { %15859 = vst [vmem:[%s380_s22 + $0x20] sm:$0xff] %v18688_v55 }
0x2a64   : > { %v18690_v63 = vpop.eup %18689 }
0x2a65   : > { %15860 = vst [vmem:[%s380_s22 + $0x28] sm:$0xff] %v18690_v63 }
0x2a66 PF: > { %s20_s13 = sadd.s32 1, %s18721_s13  }
0x2a67   : > { %p17_p5 = scmp.ge.s32.totalorder %s20_s13, 4  }
0x2a69   :  { %19 = sbr.rel (!%p17_p5) target bundleno = 1 (0x1), region = 126 }

</bundles_post_ra>
